<compile_context>
chip_gen: v5e
topology: v5e:2x2
jax: 0.10.0
libtpu: 0.0.40
codegen_flags: <defaults>
</compile_context>

<pallas_src>
import math

import jax
import jax.numpy as jnp
from jax import lax
from jax.experimental import pallas as pl
from jax.experimental.pallas import tpu as pltpu

LANES = 128  # TPU lane width; all kernel-side arrays are lane-padded to this.


def _myrelu(v):
    # CenteredLayer: x[x<0] *= 0.01 ; then x[x>1] = 0.01*x + 0.99
    v = jnp.where(v < 0.0, v * 0.01, v)
    v = jnp.where(v > 1.0, v * 0.01 + 0.99, v)
    return v


def _make_kernel(trace_len, n_iter):
    """trace_len = T, n_iter = T + K (both static)."""

    def kernel(base_ref, m1_ref, wops_ref, o_ref):
        # base_ref : (R, 128)  atom_x + (w_not - w_and), lane-padded; R = Bb*T
        # m1_ref   : (128,128) sk@diag(w_and-w_not) + right_w@diag(w_and+w_until)
        # wops_ref : (8, 128)  row0 = w_next, row1 = w_until (lane-padded)
        # o_ref    : (R, 128)  sigmoid((all_x-0.5)*5); lanes >= K are junk
        R = base_ref.shape[0]
        base = base_ref[...]
        m1 = m1_ref[...]

        # Hoist the (1,128)->(R,128) sublane broadcasts out of the unrolled
        # loop (JAX does not CSE broadcast_in_dim across unrolled bodies).
        w_next = jnp.broadcast_to(wops_ref[0:1, :], (R, LANES))
        w_until = jnp.broadcast_to(wops_ref[1:2, :], (R, LANES))

        # Row mask for the T-shift: zero on every row whose trace index is
        # T-1 (this also kills the sublane-roll wrap row).  Built in-kernel,
        # no extra input array / DMA.
        rows = lax.broadcasted_iota(jnp.int32, (R, LANES), 0)
        umask = jnp.where(rows % trace_len == trace_len - 1, 0.0, 1.0)

        def body(_, all_x):
            # One MXU matmul: lin = left*(w_and-w_not) + right*(w_and+w_until)
            lin = jnp.dot(all_x, m1, preferred_element_type=jnp.float32)
            # K-shift via a lane roll (XLU slot, off the MXU).  Lane K-1 gets
            # the always-zero lane K; the lane-127 wrap only ever multiplies
            # zero-padded weights.
            left = pltpu.roll(all_x, shift=LANES - 1, axis=1)
            # T-shift (and T+K shift) via sublane rolls; umask restores the
            # per-batch zero fill at t = T-1.
            up = pltpu.roll(all_x, shift=R - 1, axis=0) * umask
            upleft = pltpu.roll(left, shift=R - 1, axis=0) * umask
            return _myrelu(base + lin + w_next * upleft
                           + w_until * _myrelu(left + up - 1.0))

        # Iteration 0 peeled: with all_x == 0 the body collapses to
        #   myrelu(base + w_until * myrelu(-1)) = myrelu(base - 0.01 * w_until)
        all_x = _myrelu(base - 0.01 * w_until)
        all_x = lax.fori_loop(0, n_iter - 1, body, all_x, unroll=True)
        o_ref[...] = jax.nn.sigmoid((all_x - 0.5) * 5.0)

    return kernel


# ----------------------------------------------------------------------------
# Parameter setup (mirrors Net.__init__ with ltl == '')
# ----------------------------------------------------------------------------
def make_params(net_k, vocab_len, key):
    K, V = net_k, vocab_len
    i_idx = jnp.arange(K)[:, None]
    j_idx = jnp.arange(K + 1)[None, :]
    w_right = jnp.where(j_idx > i_idx + 1, 0.0, -1000.0).astype(jnp.float32)
    bound = 1.0 / math.sqrt(K + 1)
    last_col = jax.random.uniform(key, (K,), minval=-bound, maxval=bound,
                                  dtype=jnp.float32)
    w_right = w_right.at[:, -1].set(last_col)
    w_op = jnp.zeros((K, 5 + V), dtype=jnp.float32)
    return w_right, w_op


# ----------------------------------------------------------------------------
# Wrapper: parameter-side glue (XLA) + pallas_call
# ----------------------------------------------------------------------------
def net_forward(x, w_right, w_op, net_k, num_blocks=1):
    """num_blocks: grid steps (= TensorCores to use).  1 for v5e/v6e; 2 on v7x."""
    B, T, V = x.shape
    K = net_k
    assert K <= LANES

    # cal_softmax (cheap parameter-side glue, done once in XLA)
    sm_op = jax.nn.softmax(w_op, axis=1)
    opw = sm_op[:, :5].T                                  # (5, K): [_, not, and, next, until]
    atom_w = sm_op[:, 5:].T                               # (V, K)
    right_w = jax.nn.softmax(w_right, axis=1)[:, :-1].T   # (K, K)
    w_not, w_and, w_next, w_until = opw[1], opw[2], opw[3], opw[4]

    # Folded linear matrix (exact 0/1 K-shift matrix only used here, in XLA).
    sk = jnp.eye(K, k=-1, dtype=jnp.float32)              # (v @ sk)[:, k] = v[:, k+1]
    m1 = sk * (w_and - w_not)[None, :] + right_w * (w_and + w_until)[None, :]
    m1_p = jnp.zeros((LANES, LANES), jnp.float32).at[:K, :K].set(m1)
    wops = (jnp.zeros((8, LANES), jnp.float32)
            .at[0, :K].set(w_next)
            .at[1, :K].set(w_until))

    # Loop-invariant atom term at full batch width, flattened + constant folded.
    atom_x = x.reshape(B * T, V) @ atom_w                 # (B*T, K)
    base = atom_x + (w_not - w_and)[None, :]
    base_p = jnp.zeros((B * T, LANES), jnp.float32).at[:, :K].set(base)

    # Grid sizing: one grid step per TensorCore (the serial chain latency is
    # paid once per step).  Extra rows per step are pure MXU data-parallelism.
    if num_blocks < 1 or B % num_blocks != 0 or ((B // num_blocks) * T) % 8 != 0:
        num_blocks = 1
    Bb = B // num_blocks
    R = Bb * T

    kernel = _make_kernel(T, T + K)
    # CORE_PARALLEL actually shards the grid axis across v7x's two TCs; with a
    # single step the axis semantics are irrelevant.
    dim_sem = (pltpu.CORE_PARALLEL,) if num_blocks > 1 else (pltpu.ARBITRARY,)

    grid_spec = pltpu.PrefetchScalarGridSpec(
        num_scalar_prefetch=0,
        grid=(num_blocks,),
        in_specs=[
            pl.BlockSpec((R, LANES), lambda b: (b, 0)),       # base (per block)
            pl.BlockSpec((LANES, LANES), lambda b: (0, 0)),   # folded M1
            pl.BlockSpec((8, LANES), lambda b: (0, 0)),       # op weights
        ],
        out_specs=pl.BlockSpec((R, LANES), lambda b: (b, 0)),
    )
    out_p = pl.pallas_call(
        kernel,
        out_shape=jax.ShapeDtypeStruct((B * T, LANES), jnp.float32),
        grid_spec=grid_spec,
        compiler_params=pltpu.CompilerParams(dimension_semantics=dim_sem),
    )(base_p, m1_p, wops)

    return out_p[:, :K].reshape(B, T, K)


# ----------------------------------------------------------------------------
# Pure-JAX reference (direct transcription of the PyTorch forward)
# ----------------------------------------------------------------------------
def net_forward_ref(x, w_right, w_op, net_k):
    B, T, V = x.shape
    K = net_k
    sm_op = jax.nn.softmax(w_op, axis=1)
    opw = sm_op[:, :5].T
    atom_w = sm_op[:, 5:].T
    right_w = jax.nn.softmax(w_right, axis=1)[:, :-1].T

    all_x = jnp.zeros((B, T, K), jnp.float32)
    zcol = jnp.zeros((B, T, 1), jnp.float32)
    zrow = jnp.zeros((B, 1, K), jnp.float32)
    for _ in range(T + K):
        atom_x = x @ atom_w
        left_x = jnp.concatenate([all_x[:, :, 1:], zcol], axis=2)
        right_x = all_x @ right_w
        up_x = jnp.concatenate([all_x[:, 1:], zrow], axis=1)
        upleft_x = jnp.concatenate([up_x[:, :, 1:], zcol], axis=2)
        not_x = (1.0 - left_x) * opw[1]
        and_x = (left_x + right_x - 1.0) * opw[2]
        nxt_x = upleft_x * opw[3]
        until_x = (right_x + _myrelu(left_x + up_x - 1.0)) * opw[4]
        all_x = _myrelu(atom_x + not_x + nxt_x + and_x + until_x)
    return jax.nn.sigmoid((all_x - 0.5) * 5.0)


if __name__ == "__main__":
    B, T = 8, 8            # batch, trace_len
    net_k, vocab_len = 8, 4

    key = jax.random.PRNGKey(0)
    k_w, k_op, k_x = jax.random.split(key, 3)
    w_right, w_op = make_params(net_k, vocab_len, k_w)
    # Perturb the op weights so every folded term is exercised by the check.
    w_op = w_op + 0.3 * jax.random.normal(k_op, w_op.shape, dtype=jnp.float32)
    x = jax.random.uniform(k_x, (B, T, vocab_len), dtype=jnp.float32)

    out = net_forward(x, w_right, w_op, net_k)   # default: 1 grid step (v5e/v6e)
    out = jax.block_until_ready(out)

    ref = net_forward_ref(x, w_right, w_op, net_k)
    assert out.shape == (B, T, net_k)
    err = float(jnp.max(jnp.abs(out - ref)))
    assert jnp.allclose(out, ref, atol=5e-3, rtol=5e-3), err

    print("KERNEL_OK")
</pallas_src>

<mosaic_0001>
module attributes {stable_mosaic.version = 11 : i64} {
  func.func @kernel(%arg0: i32, %arg1: memref<64x128xf32, #tpu.memory_space<vmem>>, %arg2: memref<128x128xf32, #tpu.memory_space<vmem>>, %arg3: memref<8x128xf32, #tpu.memory_space<vmem>>, %arg4: memref<64x128xf32, #tpu.memory_space<vmem>>) attributes {dimension_semantics = [#tpu.dimension_semantics<arbitrary>], iteration_bounds = array<i64: 1>, scalar_prefetch = 0 : i64, scratch_operands = 0 : i64, tpu.core_type = #tpu.core_type<tc>, window_params = [{transform_indices = @transform_0, window_bounds = array<i64: 64, 128>}, {pipeline_mode = #tpu.pipeline_mode<synchronous>, transform_indices = @transform_1, window_bounds = array<i64: 128, 128>}, {pipeline_mode = #tpu.pipeline_mode<synchronous>, transform_indices = @transform_2, window_bounds = array<i64: 8, 128>}, {transform_indices = @transform_3, window_bounds = array<i64: 64, 128>}]} {
    %c0 = arith.constant 0 : index
    %c0_0 = arith.constant 0 : index
    %0 = vector.load %arg1[%c0, %c0_0] : memref<64x128xf32, #tpu.memory_space<vmem>>, vector<64x128xf32>
    %c0_1 = arith.constant 0 : index
    %c0_2 = arith.constant 0 : index
    %1 = vector.load %arg2[%c0_1, %c0_2] : memref<128x128xf32, #tpu.memory_space<vmem>>, vector<128x128xf32>
    %c0_3 = arith.constant 0 : index
    %c0_4 = arith.constant 0 : index
    %2 = vector.load %arg3[%c0_3, %c0_4] : memref<8x128xf32, #tpu.memory_space<vmem>>, vector<1x128xf32>
    %3 = vector.shape_cast %2 : vector<1x128xf32> to vector<1x128xf32>
    %4 = vector.broadcast %3 : vector<1x128xf32> to vector<64x128xf32>
    %c1 = arith.constant 1 : index
    %c0_5 = arith.constant 0 : index
    %5 = vector.load %arg3[%c1, %c0_5] : memref<8x128xf32, #tpu.memory_space<vmem>>, vector<1x128xf32>
    %6 = vector.shape_cast %5 : vector<1x128xf32> to vector<1x128xf32>
    %7 = vector.broadcast %6 : vector<1x128xf32> to vector<64x128xf32>
    %8 = tpu.iota {dimensions = array<i32: 0>} : vector<64x128xi32>
    %c8_i32 = arith.constant 8 : i32
    %c0_i32 = arith.constant 0 : i32
    %9 = arith.cmpi eq, %c8_i32, %c0_i32 : i32
    %c1_i32 = arith.constant 1 : i32
    %10 = arith.select %9, %c1_i32, %c8_i32 : i32
    %11 = vector.broadcast %10 : i32 to vector<64x128xi32>
    %12 = arith.remsi %8, %11 : vector<64x128xi32>
    %c0_i32_6 = arith.constant 0 : i32
    %13 = vector.broadcast %c0_i32_6 : i32 to vector<64x128xi32>
    %14 = arith.cmpi ne, %12, %13 : vector<64x128xi32>
    %c0_i32_7 = arith.constant 0 : i32
    %15 = vector.broadcast %c0_i32_7 : i32 to vector<64x128xi32>
    %16 = arith.cmpi slt, %12, %15 : vector<64x128xi32>
    %c0_i32_8 = arith.constant 0 : i32
    %17 = arith.cmpi slt, %10, %c0_i32_8 : i32
    %18 = vector.broadcast %17 : i1 to vector<64x128xi1>
    %19 = vector.broadcast %18 : vector<64x128xi1> to vector<64x128xi1>
    %20 = arith.xori %16, %19 : vector<64x128xi1>
    %21 = arith.andi %20, %14 : vector<64x128xi1>
    %22 = vector.broadcast %10 : i32 to vector<64x128xi32>
    %23 = arith.addi %12, %22 : vector<64x128xi32>
    %24 = arith.select %21, %23, %12 : vector<64x128xi1>, vector<64x128xi32>
    %c7_i32 = arith.constant 7 : i32
    %25 = vector.broadcast %c7_i32 : i32 to vector<64x128xi32>
    %26 = arith.cmpi eq, %24, %25 : vector<64x128xi32>
    %cst = arith.constant 0.000000e+00 : f32
    %cst_9 = arith.constant 1.000000e+00 : f32
    %27 = vector.broadcast %cst : f32 to vector<64x128xf32>
    %28 = vector.broadcast %cst_9 : f32 to vector<64x128xf32>
    %29 = arith.select %26, %27, %28 : vector<64x128xi1>, vector<64x128xf32>
    %cst_10 = arith.constant 0.00999999977 : f32
    %30 = vector.broadcast %cst_10 : f32 to vector<64x128xf32>
    %31 = arith.mulf %30, %7 : vector<64x128xf32>
    %32 = arith.subf %0, %31 : vector<64x128xf32>
    %cst_11 = arith.constant 0.000000e+00 : f32
    %33 = vector.broadcast %cst_11 : f32 to vector<64x128xf32>
    %34 = arith.cmpf olt, %32, %33 : vector<64x128xf32>
    %cst_12 = arith.constant 0.00999999977 : f32
    %35 = vector.broadcast %cst_12 : f32 to vector<64x128xf32>
    %36 = arith.mulf %32, %35 : vector<64x128xf32>
    %37 = arith.select %34, %36, %32 : vector<64x128xi1>, vector<64x128xf32>
    %cst_13 = arith.constant 1.000000e+00 : f32
    %38 = vector.broadcast %cst_13 : f32 to vector<64x128xf32>
    %39 = arith.cmpf ogt, %37, %38 : vector<64x128xf32>
    %cst_14 = arith.constant 0.00999999977 : f32
    %40 = vector.broadcast %cst_14 : f32 to vector<64x128xf32>
    %41 = arith.mulf %37, %40 : vector<64x128xf32>
    %cst_15 = arith.constant 9.900000e-01 : f32
    %42 = vector.broadcast %cst_15 : f32 to vector<64x128xf32>
    %43 = arith.addf %41, %42 : vector<64x128xf32>
    %44 = arith.select %39, %43, %37 : vector<64x128xi1>, vector<64x128xf32>
    %c0_i32_16 = arith.constant 0 : i32
    %cst_17 = arith.constant dense<0.000000e+00> : vector<64x128xf32>
    %45 = tpu.matmul %44, %1, %cst_17 {dimension_numbers = #tpu.dot_dimension_numbers<[1], [0], [0], [1], [0, 0, 1, 1], [], []>} : vector<64x128xf32>, vector<128x128xf32>, vector<64x128xf32> -> vector<64x128xf32>
    %c127_i32 = arith.constant 127 : i32
    %46 = tpu.dynamic_rotate %44 by %c127_i32 dim 1 : vector<64x128xf32>, i32 -> vector<64x128xf32>
    %c63_i32 = arith.constant 63 : i32
    %47 = tpu.dynamic_rotate %44 by %c63_i32 dim 0 : vector<64x128xf32>, i32 -> vector<64x128xf32>
    %48 = arith.mulf %47, %29 : vector<64x128xf32>
    %c63_i32_18 = arith.constant 63 : i32
    %49 = tpu.dynamic_rotate %46 by %c63_i32_18 dim 0 : vector<64x128xf32>, i32 -> vector<64x128xf32>
    %50 = arith.mulf %49, %29 : vector<64x128xf32>
    %51 = arith.addf %0, %45 : vector<64x128xf32>
    %52 = arith.mulf %4, %50 : vector<64x128xf32>
    %53 = arith.addf %51, %52 : vector<64x128xf32>
    %54 = arith.addf %46, %48 : vector<64x128xf32>
    %cst_19 = arith.constant 1.000000e+00 : f32
    %55 = vector.broadcast %cst_19 : f32 to vector<64x128xf32>
    %56 = arith.subf %54, %55 : vector<64x128xf32>
    %cst_20 = arith.constant 0.000000e+00 : f32
    %57 = vector.broadcast %cst_20 : f32 to vector<64x128xf32>
    %58 = arith.cmpf olt, %56, %57 : vector<64x128xf32>
    %cst_21 = arith.constant 0.00999999977 : f32
    %59 = vector.broadcast %cst_21 : f32 to vector<64x128xf32>
    %60 = arith.mulf %56, %59 : vector<64x128xf32>
    %61 = arith.select %58, %60, %56 : vector<64x128xi1>, vector<64x128xf32>
    %cst_22 = arith.constant 1.000000e+00 : f32
    %62 = vector.broadcast %cst_22 : f32 to vector<64x128xf32>
    %63 = arith.cmpf ogt, %61, %62 : vector<64x128xf32>
    %cst_23 = arith.constant 0.00999999977 : f32
    %64 = vector.broadcast %cst_23 : f32 to vector<64x128xf32>
    %65 = arith.mulf %61, %64 : vector<64x128xf32>
    %cst_24 = arith.constant 9.900000e-01 : f32
    %66 = vector.broadcast %cst_24 : f32 to vector<64x128xf32>
    %67 = arith.addf %65, %66 : vector<64x128xf32>
    %68 = arith.select %63, %67, %61 : vector<64x128xi1>, vector<64x128xf32>
    %69 = arith.mulf %7, %68 : vector<64x128xf32>
    %70 = arith.addf %53, %69 : vector<64x128xf32>
    %cst_25 = arith.constant 0.000000e+00 : f32
    %71 = vector.broadcast %cst_25 : f32 to vector<64x128xf32>
    %72 = arith.cmpf olt, %70, %71 : vector<64x128xf32>
    %cst_26 = arith.constant 0.00999999977 : f32
    %73 = vector.broadcast %cst_26 : f32 to vector<64x128xf32>
    %74 = arith.mulf %70, %73 : vector<64x128xf32>
    %75 = arith.select %72, %74, %70 : vector<64x128xi1>, vector<64x128xf32>
    %cst_27 = arith.constant 1.000000e+00 : f32
    %76 = vector.broadcast %cst_27 : f32 to vector<64x128xf32>
    %77 = arith.cmpf ogt, %75, %76 : vector<64x128xf32>
    %cst_28 = arith.constant 0.00999999977 : f32
    %78 = vector.broadcast %cst_28 : f32 to vector<64x128xf32>
    %79 = arith.mulf %75, %78 : vector<64x128xf32>
    %cst_29 = arith.constant 9.900000e-01 : f32
    %80 = vector.broadcast %cst_29 : f32 to vector<64x128xf32>
    %81 = arith.addf %79, %80 : vector<64x128xf32>
    %82 = arith.select %77, %81, %75 : vector<64x128xi1>, vector<64x128xf32>
    %c1_i32_30 = arith.constant 1 : i32
    %cst_31 = arith.constant dense<0.000000e+00> : vector<64x128xf32>
    %83 = tpu.matmul %82, %1, %cst_31 {dimension_numbers = #tpu.dot_dimension_numbers<[1], [0], [0], [1], [0, 0, 1, 1], [], []>} : vector<64x128xf32>, vector<128x128xf32>, vector<64x128xf32> -> vector<64x128xf32>
    %c127_i32_32 = arith.constant 127 : i32
    %84 = tpu.dynamic_rotate %82 by %c127_i32_32 dim 1 : vector<64x128xf32>, i32 -> vector<64x128xf32>
    %c63_i32_33 = arith.constant 63 : i32
    %85 = tpu.dynamic_rotate %82 by %c63_i32_33 dim 0 : vector<64x128xf32>, i32 -> vector<64x128xf32>
    %86 = arith.mulf %85, %29 : vector<64x128xf32>
    %c63_i32_34 = arith.constant 63 : i32
    %87 = tpu.dynamic_rotate %84 by %c63_i32_34 dim 0 : vector<64x128xf32>, i32 -> vector<64x128xf32>
    %88 = arith.mulf %87, %29 : vector<64x128xf32>
    %89 = arith.addf %0, %83 : vector<64x128xf32>
    %90 = arith.mulf %4, %88 : vector<64x128xf32>
    %91 = arith.addf %89, %90 : vector<64x128xf32>
    %92 = arith.addf %84, %86 : vector<64x128xf32>
    %cst_35 = arith.constant 1.000000e+00 : f32
    %93 = vector.broadcast %cst_35 : f32 to vector<64x128xf32>
    %94 = arith.subf %92, %93 : vector<64x128xf32>
    %cst_36 = arith.constant 0.000000e+00 : f32
    %95 = vector.broadcast %cst_36 : f32 to vector<64x128xf32>
    %96 = arith.cmpf olt, %94, %95 : vector<64x128xf32>
    %cst_37 = arith.constant 0.00999999977 : f32
    %97 = vector.broadcast %cst_37 : f32 to vector<64x128xf32>
    %98 = arith.mulf %94, %97 : vector<64x128xf32>
    %99 = arith.select %96, %98, %94 : vector<64x128xi1>, vector<64x128xf32>
    %cst_38 = arith.constant 1.000000e+00 : f32
    %100 = vector.broadcast %cst_38 : f32 to vector<64x128xf32>
    %101 = arith.cmpf ogt, %99, %100 : vector<64x128xf32>
    %cst_39 = arith.constant 0.00999999977 : f32
    %102 = vector.broadcast %cst_39 : f32 to vector<64x128xf32>
    %103 = arith.mulf %99, %102 : vector<64x128xf32>
    %cst_40 = arith.constant 9.900000e-01 : f32
    %104 = vector.broadcast %cst_40 : f32 to vector<64x128xf32>
    %105 = arith.addf %103, %104 : vector<64x128xf32>
    %106 = arith.select %101, %105, %99 : vector<64x128xi1>, vector<64x128xf32>
    %107 = arith.mulf %7, %106 : vector<64x128xf32>
    %108 = arith.addf %91, %107 : vector<64x128xf32>
    %cst_41 = arith.constant 0.000000e+00 : f32
    %109 = vector.broadcast %cst_41 : f32 to vector<64x128xf32>
    %110 = arith.cmpf olt, %108, %109 : vector<64x128xf32>
    %cst_42 = arith.constant 0.00999999977 : f32
    %111 = vector.broadcast %cst_42 : f32 to vector<64x128xf32>
    %112 = arith.mulf %108, %111 : vector<64x128xf32>
    %113 = arith.select %110, %112, %108 : vector<64x128xi1>, vector<64x128xf32>
    %cst_43 = arith.constant 1.000000e+00 : f32
    %114 = vector.broadcast %cst_43 : f32 to vector<64x128xf32>
    %115 = arith.cmpf ogt, %113, %114 : vector<64x128xf32>
    %cst_44 = arith.constant 0.00999999977 : f32
    %116 = vector.broadcast %cst_44 : f32 to vector<64x128xf32>
    %117 = arith.mulf %113, %116 : vector<64x128xf32>
    %cst_45 = arith.constant 9.900000e-01 : f32
    %118 = vector.broadcast %cst_45 : f32 to vector<64x128xf32>
    %119 = arith.addf %117, %118 : vector<64x128xf32>
    %120 = arith.select %115, %119, %113 : vector<64x128xi1>, vector<64x128xf32>
    %c2_i32 = arith.constant 2 : i32
    %cst_46 = arith.constant dense<0.000000e+00> : vector<64x128xf32>
    %121 = tpu.matmul %120, %1, %cst_46 {dimension_numbers = #tpu.dot_dimension_numbers<[1], [0], [0], [1], [0, 0, 1, 1], [], []>} : vector<64x128xf32>, vector<128x128xf32>, vector<64x128xf32> -> vector<64x128xf32>
    %c127_i32_47 = arith.constant 127 : i32
    %122 = tpu.dynamic_rotate %120 by %c127_i32_47 dim 1 : vector<64x128xf32>, i32 -> vector<64x128xf32>
    %c63_i32_48 = arith.constant 63 : i32
    %123 = tpu.dynamic_rotate %120 by %c63_i32_48 dim 0 : vector<64x128xf32>, i32 -> vector<64x128xf32>
    %124 = arith.mulf %123, %29 : vector<64x128xf32>
    %c63_i32_49 = arith.constant 63 : i32
    %125 = tpu.dynamic_rotate %122 by %c63_i32_49 dim 0 : vector<64x128xf32>, i32 -> vector<64x128xf32>
    %126 = arith.mulf %125, %29 : vector<64x128xf32>
    %127 = arith.addf %0, %121 : vector<64x128xf32>
    %128 = arith.mulf %4, %126 : vector<64x128xf32>
    %129 = arith.addf %127, %128 : vector<64x128xf32>
    %130 = arith.addf %122, %124 : vector<64x128xf32>
    %cst_50 = arith.constant 1.000000e+00 : f32
    %131 = vector.broadcast %cst_50 : f32 to vector<64x128xf32>
    %132 = arith.subf %130, %131 : vector<64x128xf32>
    %cst_51 = arith.constant 0.000000e+00 : f32
    %133 = vector.broadcast %cst_51 : f32 to vector<64x128xf32>
    %134 = arith.cmpf olt, %132, %133 : vector<64x128xf32>
    %cst_52 = arith.constant 0.00999999977 : f32
    %135 = vector.broadcast %cst_52 : f32 to vector<64x128xf32>
    %136 = arith.mulf %132, %135 : vector<64x128xf32>
    %137 = arith.select %134, %136, %132 : vector<64x128xi1>, vector<64x128xf32>
    %cst_53 = arith.constant 1.000000e+00 : f32
    %138 = vector.broadcast %cst_53 : f32 to vector<64x128xf32>
    %139 = arith.cmpf ogt, %137, %138 : vector<64x128xf32>
    %cst_54 = arith.constant 0.00999999977 : f32
    %140 = vector.broadcast %cst_54 : f32 to vector<64x128xf32>
    %141 = arith.mulf %137, %140 : vector<64x128xf32>
    %cst_55 = arith.constant 9.900000e-01 : f32
    %142 = vector.broadcast %cst_55 : f32 to vector<64x128xf32>
    %143 = arith.addf %141, %142 : vector<64x128xf32>
    %144 = arith.select %139, %143, %137 : vector<64x128xi1>, vector<64x128xf32>
    %145 = arith.mulf %7, %144 : vector<64x128xf32>
    %146 = arith.addf %129, %145 : vector<64x128xf32>
    %cst_56 = arith.constant 0.000000e+00 : f32
    %147 = vector.broadcast %cst_56 : f32 to vector<64x128xf32>
    %148 = arith.cmpf olt, %146, %147 : vector<64x128xf32>
    %cst_57 = arith.constant 0.00999999977 : f32
    %149 = vector.broadcast %cst_57 : f32 to vector<64x128xf32>
    %150 = arith.mulf %146, %149 : vector<64x128xf32>
    %151 = arith.select %148, %150, %146 : vector<64x128xi1>, vector<64x128xf32>
    %cst_58 = arith.constant 1.000000e+00 : f32
    %152 = vector.broadcast %cst_58 : f32 to vector<64x128xf32>
    %153 = arith.cmpf ogt, %151, %152 : vector<64x128xf32>
    %cst_59 = arith.constant 0.00999999977 : f32
    %154 = vector.broadcast %cst_59 : f32 to vector<64x128xf32>
    %155 = arith.mulf %151, %154 : vector<64x128xf32>
    %cst_60 = arith.constant 9.900000e-01 : f32
    %156 = vector.broadcast %cst_60 : f32 to vector<64x128xf32>
    %157 = arith.addf %155, %156 : vector<64x128xf32>
    %158 = arith.select %153, %157, %151 : vector<64x128xi1>, vector<64x128xf32>
    %c3_i32 = arith.constant 3 : i32
    %cst_61 = arith.constant dense<0.000000e+00> : vector<64x128xf32>
    %159 = tpu.matmul %158, %1, %cst_61 {dimension_numbers = #tpu.dot_dimension_numbers<[1], [0], [0], [1], [0, 0, 1, 1], [], []>} : vector<64x128xf32>, vector<128x128xf32>, vector<64x128xf32> -> vector<64x128xf32>
    %c127_i32_62 = arith.constant 127 : i32
    %160 = tpu.dynamic_rotate %158 by %c127_i32_62 dim 1 : vector<64x128xf32>, i32 -> vector<64x128xf32>
    %c63_i32_63 = arith.constant 63 : i32
    %161 = tpu.dynamic_rotate %158 by %c63_i32_63 dim 0 : vector<64x128xf32>, i32 -> vector<64x128xf32>
    %162 = arith.mulf %161, %29 : vector<64x128xf32>
    %c63_i32_64 = arith.constant 63 : i32
    %163 = tpu.dynamic_rotate %160 by %c63_i32_64 dim 0 : vector<64x128xf32>, i32 -> vector<64x128xf32>
    %164 = arith.mulf %163, %29 : vector<64x128xf32>
    %165 = arith.addf %0, %159 : vector<64x128xf32>
    %166 = arith.mulf %4, %164 : vector<64x128xf32>
    %167 = arith.addf %165, %166 : vector<64x128xf32>
    %168 = arith.addf %160, %162 : vector<64x128xf32>
    %cst_65 = arith.constant 1.000000e+00 : f32
    %169 = vector.broadcast %cst_65 : f32 to vector<64x128xf32>
    %170 = arith.subf %168, %169 : vector<64x128xf32>
    %cst_66 = arith.constant 0.000000e+00 : f32
    %171 = vector.broadcast %cst_66 : f32 to vector<64x128xf32>
    %172 = arith.cmpf olt, %170, %171 : vector<64x128xf32>
    %cst_67 = arith.constant 0.00999999977 : f32
    %173 = vector.broadcast %cst_67 : f32 to vector<64x128xf32>
    %174 = arith.mulf %170, %173 : vector<64x128xf32>
    %175 = arith.select %172, %174, %170 : vector<64x128xi1>, vector<64x128xf32>
    %cst_68 = arith.constant 1.000000e+00 : f32
    %176 = vector.broadcast %cst_68 : f32 to vector<64x128xf32>
    %177 = arith.cmpf ogt, %175, %176 : vector<64x128xf32>
    %cst_69 = arith.constant 0.00999999977 : f32
    %178 = vector.broadcast %cst_69 : f32 to vector<64x128xf32>
    %179 = arith.mulf %175, %178 : vector<64x128xf32>
    %cst_70 = arith.constant 9.900000e-01 : f32
    %180 = vector.broadcast %cst_70 : f32 to vector<64x128xf32>
    %181 = arith.addf %179, %180 : vector<64x128xf32>
    %182 = arith.select %177, %181, %175 : vector<64x128xi1>, vector<64x128xf32>
    %183 = arith.mulf %7, %182 : vector<64x128xf32>
    %184 = arith.addf %167, %183 : vector<64x128xf32>
    %cst_71 = arith.constant 0.000000e+00 : f32
    %185 = vector.broadcast %cst_71 : f32 to vector<64x128xf32>
    %186 = arith.cmpf olt, %184, %185 : vector<64x128xf32>
    %cst_72 = arith.constant 0.00999999977 : f32
    %187 = vector.broadcast %cst_72 : f32 to vector<64x128xf32>
    %188 = arith.mulf %184, %187 : vector<64x128xf32>
    %189 = arith.select %186, %188, %184 : vector<64x128xi1>, vector<64x128xf32>
    %cst_73 = arith.constant 1.000000e+00 : f32
    %190 = vector.broadcast %cst_73 : f32 to vector<64x128xf32>
    %191 = arith.cmpf ogt, %189, %190 : vector<64x128xf32>
    %cst_74 = arith.constant 0.00999999977 : f32
    %192 = vector.broadcast %cst_74 : f32 to vector<64x128xf32>
    %193 = arith.mulf %189, %192 : vector<64x128xf32>
    %cst_75 = arith.constant 9.900000e-01 : f32
    %194 = vector.broadcast %cst_75 : f32 to vector<64x128xf32>
    %195 = arith.addf %193, %194 : vector<64x128xf32>
    %196 = arith.select %191, %195, %189 : vector<64x128xi1>, vector<64x128xf32>
    %c4_i32 = arith.constant 4 : i32
    %cst_76 = arith.constant dense<0.000000e+00> : vector<64x128xf32>
    %197 = tpu.matmul %196, %1, %cst_76 {dimension_numbers = #tpu.dot_dimension_numbers<[1], [0], [0], [1], [0, 0, 1, 1], [], []>} : vector<64x128xf32>, vector<128x128xf32>, vector<64x128xf32> -> vector<64x128xf32>
    %c127_i32_77 = arith.constant 127 : i32
    %198 = tpu.dynamic_rotate %196 by %c127_i32_77 dim 1 : vector<64x128xf32>, i32 -> vector<64x128xf32>
    %c63_i32_78 = arith.constant 63 : i32
    %199 = tpu.dynamic_rotate %196 by %c63_i32_78 dim 0 : vector<64x128xf32>, i32 -> vector<64x128xf32>
    %200 = arith.mulf %199, %29 : vector<64x128xf32>
    %c63_i32_79 = arith.constant 63 : i32
    %201 = tpu.dynamic_rotate %198 by %c63_i32_79 dim 0 : vector<64x128xf32>, i32 -> vector<64x128xf32>
    %202 = arith.mulf %201, %29 : vector<64x128xf32>
    %203 = arith.addf %0, %197 : vector<64x128xf32>
    %204 = arith.mulf %4, %202 : vector<64x128xf32>
    %205 = arith.addf %203, %204 : vector<64x128xf32>
    %206 = arith.addf %198, %200 : vector<64x128xf32>
    %cst_80 = arith.constant 1.000000e+00 : f32
    %207 = vector.broadcast %cst_80 : f32 to vector<64x128xf32>
    %208 = arith.subf %206, %207 : vector<64x128xf32>
    %cst_81 = arith.constant 0.000000e+00 : f32
    %209 = vector.broadcast %cst_81 : f32 to vector<64x128xf32>
    %210 = arith.cmpf olt, %208, %209 : vector<64x128xf32>
    %cst_82 = arith.constant 0.00999999977 : f32
    %211 = vector.broadcast %cst_82 : f32 to vector<64x128xf32>
    %212 = arith.mulf %208, %211 : vector<64x128xf32>
    %213 = arith.select %210, %212, %208 : vector<64x128xi1>, vector<64x128xf32>
    %cst_83 = arith.constant 1.000000e+00 : f32
    %214 = vector.broadcast %cst_83 : f32 to vector<64x128xf32>
    %215 = arith.cmpf ogt, %213, %214 : vector<64x128xf32>
    %cst_84 = arith.constant 0.00999999977 : f32
    %216 = vector.broadcast %cst_84 : f32 to vector<64x128xf32>
    %217 = arith.mulf %213, %216 : vector<64x128xf32>
    %cst_85 = arith.constant 9.900000e-01 : f32
    %218 = vector.broadcast %cst_85 : f32 to vector<64x128xf32>
    %219 = arith.addf %217, %218 : vector<64x128xf32>
    %220 = arith.select %215, %219, %213 : vector<64x128xi1>, vector<64x128xf32>
    %221 = arith.mulf %7, %220 : vector<64x128xf32>
    %222 = arith.addf %205, %221 : vector<64x128xf32>
    %cst_86 = arith.constant 0.000000e+00 : f32
    %223 = vector.broadcast %cst_86 : f32 to vector<64x128xf32>
    %224 = arith.cmpf olt, %222, %223 : vector<64x128xf32>
    %cst_87 = arith.constant 0.00999999977 : f32
    %225 = vector.broadcast %cst_87 : f32 to vector<64x128xf32>
    %226 = arith.mulf %222, %225 : vector<64x128xf32>
    %227 = arith.select %224, %226, %222 : vector<64x128xi1>, vector<64x128xf32>
    %cst_88 = arith.constant 1.000000e+00 : f32
    %228 = vector.broadcast %cst_88 : f32 to vector<64x128xf32>
    %229 = arith.cmpf ogt, %227, %228 : vector<64x128xf32>
    %cst_89 = arith.constant 0.00999999977 : f32
    %230 = vector.broadcast %cst_89 : f32 to vector<64x128xf32>
    %231 = arith.mulf %227, %230 : vector<64x128xf32>
    %cst_90 = arith.constant 9.900000e-01 : f32
    %232 = vector.broadcast %cst_90 : f32 to vector<64x128xf32>
    %233 = arith.addf %231, %232 : vector<64x128xf32>
    %234 = arith.select %229, %233, %227 : vector<64x128xi1>, vector<64x128xf32>
    %c5_i32 = arith.constant 5 : i32
    %cst_91 = arith.constant dense<0.000000e+00> : vector<64x128xf32>
    %235 = tpu.matmul %234, %1, %cst_91 {dimension_numbers = #tpu.dot_dimension_numbers<[1], [0], [0], [1], [0, 0, 1, 1], [], []>} : vector<64x128xf32>, vector<128x128xf32>, vector<64x128xf32> -> vector<64x128xf32>
    %c127_i32_92 = arith.constant 127 : i32
    %236 = tpu.dynamic_rotate %234 by %c127_i32_92 dim 1 : vector<64x128xf32>, i32 -> vector<64x128xf32>
    %c63_i32_93 = arith.constant 63 : i32
    %237 = tpu.dynamic_rotate %234 by %c63_i32_93 dim 0 : vector<64x128xf32>, i32 -> vector<64x128xf32>
    %238 = arith.mulf %237, %29 : vector<64x128xf32>
    %c63_i32_94 = arith.constant 63 : i32
    %239 = tpu.dynamic_rotate %236 by %c63_i32_94 dim 0 : vector<64x128xf32>, i32 -> vector<64x128xf32>
    %240 = arith.mulf %239, %29 : vector<64x128xf32>
    %241 = arith.addf %0, %235 : vector<64x128xf32>
    %242 = arith.mulf %4, %240 : vector<64x128xf32>
    %243 = arith.addf %241, %242 : vector<64x128xf32>
    %244 = arith.addf %236, %238 : vector<64x128xf32>
    %cst_95 = arith.constant 1.000000e+00 : f32
    %245 = vector.broadcast %cst_95 : f32 to vector<64x128xf32>
    %246 = arith.subf %244, %245 : vector<64x128xf32>
    %cst_96 = arith.constant 0.000000e+00 : f32
    %247 = vector.broadcast %cst_96 : f32 to vector<64x128xf32>
    %248 = arith.cmpf olt, %246, %247 : vector<64x128xf32>
    %cst_97 = arith.constant 0.00999999977 : f32
    %249 = vector.broadcast %cst_97 : f32 to vector<64x128xf32>
    %250 = arith.mulf %246, %249 : vector<64x128xf32>
    %251 = arith.select %248, %250, %246 : vector<64x128xi1>, vector<64x128xf32>
    %cst_98 = arith.constant 1.000000e+00 : f32
    %252 = vector.broadcast %cst_98 : f32 to vector<64x128xf32>
    %253 = arith.cmpf ogt, %251, %252 : vector<64x128xf32>
    %cst_99 = arith.constant 0.00999999977 : f32
    %254 = vector.broadcast %cst_99 : f32 to vector<64x128xf32>
    %255 = arith.mulf %251, %254 : vector<64x128xf32>
    %cst_100 = arith.constant 9.900000e-01 : f32
    %256 = vector.broadcast %cst_100 : f32 to vector<64x128xf32>
    %257 = arith.addf %255, %256 : vector<64x128xf32>
    %258 = arith.select %253, %257, %251 : vector<64x128xi1>, vector<64x128xf32>
    %259 = arith.mulf %7, %258 : vector<64x128xf32>
    %260 = arith.addf %243, %259 : vector<64x128xf32>
    %cst_101 = arith.constant 0.000000e+00 : f32
    %261 = vector.broadcast %cst_101 : f32 to vector<64x128xf32>
    %262 = arith.cmpf olt, %260, %261 : vector<64x128xf32>
    %cst_102 = arith.constant 0.00999999977 : f32
    %263 = vector.broadcast %cst_102 : f32 to vector<64x128xf32>
    %264 = arith.mulf %260, %263 : vector<64x128xf32>
    %265 = arith.select %262, %264, %260 : vector<64x128xi1>, vector<64x128xf32>
    %cst_103 = arith.constant 1.000000e+00 : f32
    %266 = vector.broadcast %cst_103 : f32 to vector<64x128xf32>
    %267 = arith.cmpf ogt, %265, %266 : vector<64x128xf32>
    %cst_104 = arith.constant 0.00999999977 : f32
    %268 = vector.broadcast %cst_104 : f32 to vector<64x128xf32>
    %269 = arith.mulf %265, %268 : vector<64x128xf32>
    %cst_105 = arith.constant 9.900000e-01 : f32
    %270 = vector.broadcast %cst_105 : f32 to vector<64x128xf32>
    %271 = arith.addf %269, %270 : vector<64x128xf32>
    %272 = arith.select %267, %271, %265 : vector<64x128xi1>, vector<64x128xf32>
    %c6_i32 = arith.constant 6 : i32
    %cst_106 = arith.constant dense<0.000000e+00> : vector<64x128xf32>
    %273 = tpu.matmul %272, %1, %cst_106 {dimension_numbers = #tpu.dot_dimension_numbers<[1], [0], [0], [1], [0, 0, 1, 1], [], []>} : vector<64x128xf32>, vector<128x128xf32>, vector<64x128xf32> -> vector<64x128xf32>
    %c127_i32_107 = arith.constant 127 : i32
    %274 = tpu.dynamic_rotate %272 by %c127_i32_107 dim 1 : vector<64x128xf32>, i32 -> vector<64x128xf32>
    %c63_i32_108 = arith.constant 63 : i32
    %275 = tpu.dynamic_rotate %272 by %c63_i32_108 dim 0 : vector<64x128xf32>, i32 -> vector<64x128xf32>
    %276 = arith.mulf %275, %29 : vector<64x128xf32>
    %c63_i32_109 = arith.constant 63 : i32
    %277 = tpu.dynamic_rotate %274 by %c63_i32_109 dim 0 : vector<64x128xf32>, i32 -> vector<64x128xf32>
    %278 = arith.mulf %277, %29 : vector<64x128xf32>
    %279 = arith.addf %0, %273 : vector<64x128xf32>
    %280 = arith.mulf %4, %278 : vector<64x128xf32>
    %281 = arith.addf %279, %280 : vector<64x128xf32>
    %282 = arith.addf %274, %276 : vector<64x128xf32>
    %cst_110 = arith.constant 1.000000e+00 : f32
    %283 = vector.broadcast %cst_110 : f32 to vector<64x128xf32>
    %284 = arith.subf %282, %283 : vector<64x128xf32>
    %cst_111 = arith.constant 0.000000e+00 : f32
    %285 = vector.broadcast %cst_111 : f32 to vector<64x128xf32>
    %286 = arith.cmpf olt, %284, %285 : vector<64x128xf32>
    %cst_112 = arith.constant 0.00999999977 : f32
    %287 = vector.broadcast %cst_112 : f32 to vector<64x128xf32>
    %288 = arith.mulf %284, %287 : vector<64x128xf32>
    %289 = arith.select %286, %288, %284 : vector<64x128xi1>, vector<64x128xf32>
    %cst_113 = arith.constant 1.000000e+00 : f32
    %290 = vector.broadcast %cst_113 : f32 to vector<64x128xf32>
    %291 = arith.cmpf ogt, %289, %290 : vector<64x128xf32>
    %cst_114 = arith.constant 0.00999999977 : f32
    %292 = vector.broadcast %cst_114 : f32 to vector<64x128xf32>
    %293 = arith.mulf %289, %292 : vector<64x128xf32>
    %cst_115 = arith.constant 9.900000e-01 : f32
    %294 = vector.broadcast %cst_115 : f32 to vector<64x128xf32>
    %295 = arith.addf %293, %294 : vector<64x128xf32>
    %296 = arith.select %291, %295, %289 : vector<64x128xi1>, vector<64x128xf32>
    %297 = arith.mulf %7, %296 : vector<64x128xf32>
    %298 = arith.addf %281, %297 : vector<64x128xf32>
    %cst_116 = arith.constant 0.000000e+00 : f32
    %299 = vector.broadcast %cst_116 : f32 to vector<64x128xf32>
    %300 = arith.cmpf olt, %298, %299 : vector<64x128xf32>
    %cst_117 = arith.constant 0.00999999977 : f32
    %301 = vector.broadcast %cst_117 : f32 to vector<64x128xf32>
    %302 = arith.mulf %298, %301 : vector<64x128xf32>
    %303 = arith.select %300, %302, %298 : vector<64x128xi1>, vector<64x128xf32>
    %cst_118 = arith.constant 1.000000e+00 : f32
    %304 = vector.broadcast %cst_118 : f32 to vector<64x128xf32>
    %305 = arith.cmpf ogt, %303, %304 : vector<64x128xf32>
    %cst_119 = arith.constant 0.00999999977 : f32
    %306 = vector.broadcast %cst_119 : f32 to vector<64x128xf32>
    %307 = arith.mulf %303, %306 : vector<64x128xf32>
    %cst_120 = arith.constant 9.900000e-01 : f32
    %308 = vector.broadcast %cst_120 : f32 to vector<64x128xf32>
    %309 = arith.addf %307, %308 : vector<64x128xf32>
    %310 = arith.select %305, %309, %303 : vector<64x128xi1>, vector<64x128xf32>
    %c7_i32_121 = arith.constant 7 : i32
    %cst_122 = arith.constant dense<0.000000e+00> : vector<64x128xf32>
    %311 = tpu.matmul %310, %1, %cst_122 {dimension_numbers = #tpu.dot_dimension_numbers<[1], [0], [0], [1], [0, 0, 1, 1], [], []>} : vector<64x128xf32>, vector<128x128xf32>, vector<64x128xf32> -> vector<64x128xf32>
    %c127_i32_123 = arith.constant 127 : i32
    %312 = tpu.dynamic_rotate %310 by %c127_i32_123 dim 1 : vector<64x128xf32>, i32 -> vector<64x128xf32>
    %c63_i32_124 = arith.constant 63 : i32
    %313 = tpu.dynamic_rotate %310 by %c63_i32_124 dim 0 : vector<64x128xf32>, i32 -> vector<64x128xf32>
    %314 = arith.mulf %313, %29 : vector<64x128xf32>
    %c63_i32_125 = arith.constant 63 : i32
    %315 = tpu.dynamic_rotate %312 by %c63_i32_125 dim 0 : vector<64x128xf32>, i32 -> vector<64x128xf32>
    %316 = arith.mulf %315, %29 : vector<64x128xf32>
    %317 = arith.addf %0, %311 : vector<64x128xf32>
    %318 = arith.mulf %4, %316 : vector<64x128xf32>
    %319 = arith.addf %317, %318 : vector<64x128xf32>
    %320 = arith.addf %312, %314 : vector<64x128xf32>
    %cst_126 = arith.constant 1.000000e+00 : f32
    %321 = vector.broadcast %cst_126 : f32 to vector<64x128xf32>
    %322 = arith.subf %320, %321 : vector<64x128xf32>
    %cst_127 = arith.constant 0.000000e+00 : f32
    %323 = vector.broadcast %cst_127 : f32 to vector<64x128xf32>
    %324 = arith.cmpf olt, %322, %323 : vector<64x128xf32>
    %cst_128 = arith.constant 0.00999999977 : f32
    %325 = vector.broadcast %cst_128 : f32 to vector<64x128xf32>
    %326 = arith.mulf %322, %325 : vector<64x128xf32>
    %327 = arith.select %324, %326, %322 : vector<64x128xi1>, vector<64x128xf32>
    %cst_129 = arith.constant 1.000000e+00 : f32
    %328 = vector.broadcast %cst_129 : f32 to vector<64x128xf32>
    %329 = arith.cmpf ogt, %327, %328 : vector<64x128xf32>
    %cst_130 = arith.constant 0.00999999977 : f32
    %330 = vector.broadcast %cst_130 : f32 to vector<64x128xf32>
    %331 = arith.mulf %327, %330 : vector<64x128xf32>
    %cst_131 = arith.constant 9.900000e-01 : f32
    %332 = vector.broadcast %cst_131 : f32 to vector<64x128xf32>
    %333 = arith.addf %331, %332 : vector<64x128xf32>
    %334 = arith.select %329, %333, %327 : vector<64x128xi1>, vector<64x128xf32>
    %335 = arith.mulf %7, %334 : vector<64x128xf32>
    %336 = arith.addf %319, %335 : vector<64x128xf32>
    %cst_132 = arith.constant 0.000000e+00 : f32
    %337 = vector.broadcast %cst_132 : f32 to vector<64x128xf32>
    %338 = arith.cmpf olt, %336, %337 : vector<64x128xf32>
    %cst_133 = arith.constant 0.00999999977 : f32
    %339 = vector.broadcast %cst_133 : f32 to vector<64x128xf32>
    %340 = arith.mulf %336, %339 : vector<64x128xf32>
    %341 = arith.select %338, %340, %336 : vector<64x128xi1>, vector<64x128xf32>
    %cst_134 = arith.constant 1.000000e+00 : f32
    %342 = vector.broadcast %cst_134 : f32 to vector<64x128xf32>
    %343 = arith.cmpf ogt, %341, %342 : vector<64x128xf32>
    %cst_135 = arith.constant 0.00999999977 : f32
    %344 = vector.broadcast %cst_135 : f32 to vector<64x128xf32>
    %345 = arith.mulf %341, %344 : vector<64x128xf32>
    %cst_136 = arith.constant 9.900000e-01 : f32
    %346 = vector.broadcast %cst_136 : f32 to vector<64x128xf32>
    %347 = arith.addf %345, %346 : vector<64x128xf32>
    %348 = arith.select %343, %347, %341 : vector<64x128xi1>, vector<64x128xf32>
    %c8_i32_137 = arith.constant 8 : i32
    %cst_138 = arith.constant dense<0.000000e+00> : vector<64x128xf32>
    %349 = tpu.matmul %348, %1, %cst_138 {dimension_numbers = #tpu.dot_dimension_numbers<[1], [0], [0], [1], [0, 0, 1, 1], [], []>} : vector<64x128xf32>, vector<128x128xf32>, vector<64x128xf32> -> vector<64x128xf32>
    %c127_i32_139 = arith.constant 127 : i32
    %350 = tpu.dynamic_rotate %348 by %c127_i32_139 dim 1 : vector<64x128xf32>, i32 -> vector<64x128xf32>
    %c63_i32_140 = arith.constant 63 : i32
    %351 = tpu.dynamic_rotate %348 by %c63_i32_140 dim 0 : vector<64x128xf32>, i32 -> vector<64x128xf32>
    %352 = arith.mulf %351, %29 : vector<64x128xf32>
    %c63_i32_141 = arith.constant 63 : i32
    %353 = tpu.dynamic_rotate %350 by %c63_i32_141 dim 0 : vector<64x128xf32>, i32 -> vector<64x128xf32>
    %354 = arith.mulf %353, %29 : vector<64x128xf32>
    %355 = arith.addf %0, %349 : vector<64x128xf32>
    %356 = arith.mulf %4, %354 : vector<64x128xf32>
    %357 = arith.addf %355, %356 : vector<64x128xf32>
    %358 = arith.addf %350, %352 : vector<64x128xf32>
    %cst_142 = arith.constant 1.000000e+00 : f32
    %359 = vector.broadcast %cst_142 : f32 to vector<64x128xf32>
    %360 = arith.subf %358, %359 : vector<64x128xf32>
    %cst_143 = arith.constant 0.000000e+00 : f32
    %361 = vector.broadcast %cst_143 : f32 to vector<64x128xf32>
    %362 = arith.cmpf olt, %360, %361 : vector<64x128xf32>
    %cst_144 = arith.constant 0.00999999977 : f32
    %363 = vector.broadcast %cst_144 : f32 to vector<64x128xf32>
    %364 = arith.mulf %360, %363 : vector<64x128xf32>
    %365 = arith.select %362, %364, %360 : vector<64x128xi1>, vector<64x128xf32>
    %cst_145 = arith.constant 1.000000e+00 : f32
    %366 = vector.broadcast %cst_145 : f32 to vector<64x128xf32>
    %367 = arith.cmpf ogt, %365, %366 : vector<64x128xf32>
    %cst_146 = arith.constant 0.00999999977 : f32
    %368 = vector.broadcast %cst_146 : f32 to vector<64x128xf32>
    %369 = arith.mulf %365, %368 : vector<64x128xf32>
    %cst_147 = arith.constant 9.900000e-01 : f32
    %370 = vector.broadcast %cst_147 : f32 to vector<64x128xf32>
    %371 = arith.addf %369, %370 : vector<64x128xf32>
    %372 = arith.select %367, %371, %365 : vector<64x128xi1>, vector<64x128xf32>
    %373 = arith.mulf %7, %372 : vector<64x128xf32>
    %374 = arith.addf %357, %373 : vector<64x128xf32>
    %cst_148 = arith.constant 0.000000e+00 : f32
    %375 = vector.broadcast %cst_148 : f32 to vector<64x128xf32>
    %376 = arith.cmpf olt, %374, %375 : vector<64x128xf32>
    %cst_149 = arith.constant 0.00999999977 : f32
    %377 = vector.broadcast %cst_149 : f32 to vector<64x128xf32>
    %378 = arith.mulf %374, %377 : vector<64x128xf32>
    %379 = arith.select %376, %378, %374 : vector<64x128xi1>, vector<64x128xf32>
    %cst_150 = arith.constant 1.000000e+00 : f32
    %380 = vector.broadcast %cst_150 : f32 to vector<64x128xf32>
    %381 = arith.cmpf ogt, %379, %380 : vector<64x128xf32>
    %cst_151 = arith.constant 0.00999999977 : f32
    %382 = vector.broadcast %cst_151 : f32 to vector<64x128xf32>
    %383 = arith.mulf %379, %382 : vector<64x128xf32>
    %cst_152 = arith.constant 9.900000e-01 : f32
    %384 = vector.broadcast %cst_152 : f32 to vector<64x128xf32>
    %385 = arith.addf %383, %384 : vector<64x128xf32>
    %386 = arith.select %381, %385, %379 : vector<64x128xi1>, vector<64x128xf32>
    %c9_i32 = arith.constant 9 : i32
    %cst_153 = arith.constant dense<0.000000e+00> : vector<64x128xf32>
    %387 = tpu.matmul %386, %1, %cst_153 {dimension_numbers = #tpu.dot_dimension_numbers<[1], [0], [0], [1], [0, 0, 1, 1], [], []>} : vector<64x128xf32>, vector<128x128xf32>, vector<64x128xf32> -> vector<64x128xf32>
    %c127_i32_154 = arith.constant 127 : i32
    %388 = tpu.dynamic_rotate %386 by %c127_i32_154 dim 1 : vector<64x128xf32>, i32 -> vector<64x128xf32>
    %c63_i32_155 = arith.constant 63 : i32
    %389 = tpu.dynamic_rotate %386 by %c63_i32_155 dim 0 : vector<64x128xf32>, i32 -> vector<64x128xf32>
    %390 = arith.mulf %389, %29 : vector<64x128xf32>
    %c63_i32_156 = arith.constant 63 : i32
    %391 = tpu.dynamic_rotate %388 by %c63_i32_156 dim 0 : vector<64x128xf32>, i32 -> vector<64x128xf32>
    %392 = arith.mulf %391, %29 : vector<64x128xf32>
    %393 = arith.addf %0, %387 : vector<64x128xf32>
    %394 = arith.mulf %4, %392 : vector<64x128xf32>
    %395 = arith.addf %393, %394 : vector<64x128xf32>
    %396 = arith.addf %388, %390 : vector<64x128xf32>
    %cst_157 = arith.constant 1.000000e+00 : f32
    %397 = vector.broadcast %cst_157 : f32 to vector<64x128xf32>
    %398 = arith.subf %396, %397 : vector<64x128xf32>
    %cst_158 = arith.constant 0.000000e+00 : f32
    %399 = vector.broadcast %cst_158 : f32 to vector<64x128xf32>
    %400 = arith.cmpf olt, %398, %399 : vector<64x128xf32>
    %cst_159 = arith.constant 0.00999999977 : f32
    %401 = vector.broadcast %cst_159 : f32 to vector<64x128xf32>
    %402 = arith.mulf %398, %401 : vector<64x128xf32>
    %403 = arith.select %400, %402, %398 : vector<64x128xi1>, vector<64x128xf32>
    %cst_160 = arith.constant 1.000000e+00 : f32
    %404 = vector.broadcast %cst_160 : f32 to vector<64x128xf32>
    %405 = arith.cmpf ogt, %403, %404 : vector<64x128xf32>
    %cst_161 = arith.constant 0.00999999977 : f32
    %406 = vector.broadcast %cst_161 : f32 to vector<64x128xf32>
    %407 = arith.mulf %403, %406 : vector<64x128xf32>
    %cst_162 = arith.constant 9.900000e-01 : f32
    %408 = vector.broadcast %cst_162 : f32 to vector<64x128xf32>
    %409 = arith.addf %407, %408 : vector<64x128xf32>
    %410 = arith.select %405, %409, %403 : vector<64x128xi1>, vector<64x128xf32>
    %411 = arith.mulf %7, %410 : vector<64x128xf32>
    %412 = arith.addf %395, %411 : vector<64x128xf32>
    %cst_163 = arith.constant 0.000000e+00 : f32
    %413 = vector.broadcast %cst_163 : f32 to vector<64x128xf32>
    %414 = arith.cmpf olt, %412, %413 : vector<64x128xf32>
    %cst_164 = arith.constant 0.00999999977 : f32
    %415 = vector.broadcast %cst_164 : f32 to vector<64x128xf32>
    %416 = arith.mulf %412, %415 : vector<64x128xf32>
    %417 = arith.select %414, %416, %412 : vector<64x128xi1>, vector<64x128xf32>
    %cst_165 = arith.constant 1.000000e+00 : f32
    %418 = vector.broadcast %cst_165 : f32 to vector<64x128xf32>
    %419 = arith.cmpf ogt, %417, %418 : vector<64x128xf32>
    %cst_166 = arith.constant 0.00999999977 : f32
    %420 = vector.broadcast %cst_166 : f32 to vector<64x128xf32>
    %421 = arith.mulf %417, %420 : vector<64x128xf32>
    %cst_167 = arith.constant 9.900000e-01 : f32
    %422 = vector.broadcast %cst_167 : f32 to vector<64x128xf32>
    %423 = arith.addf %421, %422 : vector<64x128xf32>
    %424 = arith.select %419, %423, %417 : vector<64x128xi1>, vector<64x128xf32>
    %c10_i32 = arith.constant 10 : i32
    %cst_168 = arith.constant dense<0.000000e+00> : vector<64x128xf32>
    %425 = tpu.matmul %424, %1, %cst_168 {dimension_numbers = #tpu.dot_dimension_numbers<[1], [0], [0], [1], [0, 0, 1, 1], [], []>} : vector<64x128xf32>, vector<128x128xf32>, vector<64x128xf32> -> vector<64x128xf32>
    %c127_i32_169 = arith.constant 127 : i32
    %426 = tpu.dynamic_rotate %424 by %c127_i32_169 dim 1 : vector<64x128xf32>, i32 -> vector<64x128xf32>
    %c63_i32_170 = arith.constant 63 : i32
    %427 = tpu.dynamic_rotate %424 by %c63_i32_170 dim 0 : vector<64x128xf32>, i32 -> vector<64x128xf32>
    %428 = arith.mulf %427, %29 : vector<64x128xf32>
    %c63_i32_171 = arith.constant 63 : i32
    %429 = tpu.dynamic_rotate %426 by %c63_i32_171 dim 0 : vector<64x128xf32>, i32 -> vector<64x128xf32>
    %430 = arith.mulf %429, %29 : vector<64x128xf32>
    %431 = arith.addf %0, %425 : vector<64x128xf32>
    %432 = arith.mulf %4, %430 : vector<64x128xf32>
    %433 = arith.addf %431, %432 : vector<64x128xf32>
    %434 = arith.addf %426, %428 : vector<64x128xf32>
    %cst_172 = arith.constant 1.000000e+00 : f32
    %435 = vector.broadcast %cst_172 : f32 to vector<64x128xf32>
    %436 = arith.subf %434, %435 : vector<64x128xf32>
    %cst_173 = arith.constant 0.000000e+00 : f32
    %437 = vector.broadcast %cst_173 : f32 to vector<64x128xf32>
    %438 = arith.cmpf olt, %436, %437 : vector<64x128xf32>
    %cst_174 = arith.constant 0.00999999977 : f32
    %439 = vector.broadcast %cst_174 : f32 to vector<64x128xf32>
    %440 = arith.mulf %436, %439 : vector<64x128xf32>
    %441 = arith.select %438, %440, %436 : vector<64x128xi1>, vector<64x128xf32>
    %cst_175 = arith.constant 1.000000e+00 : f32
    %442 = vector.broadcast %cst_175 : f32 to vector<64x128xf32>
    %443 = arith.cmpf ogt, %441, %442 : vector<64x128xf32>
    %cst_176 = arith.constant 0.00999999977 : f32
    %444 = vector.broadcast %cst_176 : f32 to vector<64x128xf32>
    %445 = arith.mulf %441, %444 : vector<64x128xf32>
    %cst_177 = arith.constant 9.900000e-01 : f32
    %446 = vector.broadcast %cst_177 : f32 to vector<64x128xf32>
    %447 = arith.addf %445, %446 : vector<64x128xf32>
    %448 = arith.select %443, %447, %441 : vector<64x128xi1>, vector<64x128xf32>
    %449 = arith.mulf %7, %448 : vector<64x128xf32>
    %450 = arith.addf %433, %449 : vector<64x128xf32>
    %cst_178 = arith.constant 0.000000e+00 : f32
    %451 = vector.broadcast %cst_178 : f32 to vector<64x128xf32>
    %452 = arith.cmpf olt, %450, %451 : vector<64x128xf32>
    %cst_179 = arith.constant 0.00999999977 : f32
    %453 = vector.broadcast %cst_179 : f32 to vector<64x128xf32>
    %454 = arith.mulf %450, %453 : vector<64x128xf32>
    %455 = arith.select %452, %454, %450 : vector<64x128xi1>, vector<64x128xf32>
    %cst_180 = arith.constant 1.000000e+00 : f32
    %456 = vector.broadcast %cst_180 : f32 to vector<64x128xf32>
    %457 = arith.cmpf ogt, %455, %456 : vector<64x128xf32>
    %cst_181 = arith.constant 0.00999999977 : f32
    %458 = vector.broadcast %cst_181 : f32 to vector<64x128xf32>
    %459 = arith.mulf %455, %458 : vector<64x128xf32>
    %cst_182 = arith.constant 9.900000e-01 : f32
    %460 = vector.broadcast %cst_182 : f32 to vector<64x128xf32>
    %461 = arith.addf %459, %460 : vector<64x128xf32>
    %462 = arith.select %457, %461, %455 : vector<64x128xi1>, vector<64x128xf32>
    %c11_i32 = arith.constant 11 : i32
    %cst_183 = arith.constant dense<0.000000e+00> : vector<64x128xf32>
    %463 = tpu.matmul %462, %1, %cst_183 {dimension_numbers = #tpu.dot_dimension_numbers<[1], [0], [0], [1], [0, 0, 1, 1], [], []>} : vector<64x128xf32>, vector<128x128xf32>, vector<64x128xf32> -> vector<64x128xf32>
    %c127_i32_184 = arith.constant 127 : i32
    %464 = tpu.dynamic_rotate %462 by %c127_i32_184 dim 1 : vector<64x128xf32>, i32 -> vector<64x128xf32>
    %c63_i32_185 = arith.constant 63 : i32
    %465 = tpu.dynamic_rotate %462 by %c63_i32_185 dim 0 : vector<64x128xf32>, i32 -> vector<64x128xf32>
    %466 = arith.mulf %465, %29 : vector<64x128xf32>
    %c63_i32_186 = arith.constant 63 : i32
    %467 = tpu.dynamic_rotate %464 by %c63_i32_186 dim 0 : vector<64x128xf32>, i32 -> vector<64x128xf32>
    %468 = arith.mulf %467, %29 : vector<64x128xf32>
    %469 = arith.addf %0, %463 : vector<64x128xf32>
    %470 = arith.mulf %4, %468 : vector<64x128xf32>
    %471 = arith.addf %469, %470 : vector<64x128xf32>
    %472 = arith.addf %464, %466 : vector<64x128xf32>
    %cst_187 = arith.constant 1.000000e+00 : f32
    %473 = vector.broadcast %cst_187 : f32 to vector<64x128xf32>
    %474 = arith.subf %472, %473 : vector<64x128xf32>
    %cst_188 = arith.constant 0.000000e+00 : f32
    %475 = vector.broadcast %cst_188 : f32 to vector<64x128xf32>
    %476 = arith.cmpf olt, %474, %475 : vector<64x128xf32>
    %cst_189 = arith.constant 0.00999999977 : f32
    %477 = vector.broadcast %cst_189 : f32 to vector<64x128xf32>
    %478 = arith.mulf %474, %477 : vector<64x128xf32>
    %479 = arith.select %476, %478, %474 : vector<64x128xi1>, vector<64x128xf32>
    %cst_190 = arith.constant 1.000000e+00 : f32
    %480 = vector.broadcast %cst_190 : f32 to vector<64x128xf32>
    %481 = arith.cmpf ogt, %479, %480 : vector<64x128xf32>
    %cst_191 = arith.constant 0.00999999977 : f32
    %482 = vector.broadcast %cst_191 : f32 to vector<64x128xf32>
    %483 = arith.mulf %479, %482 : vector<64x128xf32>
    %cst_192 = arith.constant 9.900000e-01 : f32
    %484 = vector.broadcast %cst_192 : f32 to vector<64x128xf32>
    %485 = arith.addf %483, %484 : vector<64x128xf32>
    %486 = arith.select %481, %485, %479 : vector<64x128xi1>, vector<64x128xf32>
    %487 = arith.mulf %7, %486 : vector<64x128xf32>
    %488 = arith.addf %471, %487 : vector<64x128xf32>
    %cst_193 = arith.constant 0.000000e+00 : f32
    %489 = vector.broadcast %cst_193 : f32 to vector<64x128xf32>
    %490 = arith.cmpf olt, %488, %489 : vector<64x128xf32>
    %cst_194 = arith.constant 0.00999999977 : f32
    %491 = vector.broadcast %cst_194 : f32 to vector<64x128xf32>
    %492 = arith.mulf %488, %491 : vector<64x128xf32>
    %493 = arith.select %490, %492, %488 : vector<64x128xi1>, vector<64x128xf32>
    %cst_195 = arith.constant 1.000000e+00 : f32
    %494 = vector.broadcast %cst_195 : f32 to vector<64x128xf32>
    %495 = arith.cmpf ogt, %493, %494 : vector<64x128xf32>
    %cst_196 = arith.constant 0.00999999977 : f32
    %496 = vector.broadcast %cst_196 : f32 to vector<64x128xf32>
    %497 = arith.mulf %493, %496 : vector<64x128xf32>
    %cst_197 = arith.constant 9.900000e-01 : f32
    %498 = vector.broadcast %cst_197 : f32 to vector<64x128xf32>
    %499 = arith.addf %497, %498 : vector<64x128xf32>
    %500 = arith.select %495, %499, %493 : vector<64x128xi1>, vector<64x128xf32>
    %c12_i32 = arith.constant 12 : i32
    %cst_198 = arith.constant dense<0.000000e+00> : vector<64x128xf32>
    %501 = tpu.matmul %500, %1, %cst_198 {dimension_numbers = #tpu.dot_dimension_numbers<[1], [0], [0], [1], [0, 0, 1, 1], [], []>} : vector<64x128xf32>, vector<128x128xf32>, vector<64x128xf32> -> vector<64x128xf32>
    %c127_i32_199 = arith.constant 127 : i32
    %502 = tpu.dynamic_rotate %500 by %c127_i32_199 dim 1 : vector<64x128xf32>, i32 -> vector<64x128xf32>
    %c63_i32_200 = arith.constant 63 : i32
    %503 = tpu.dynamic_rotate %500 by %c63_i32_200 dim 0 : vector<64x128xf32>, i32 -> vector<64x128xf32>
    %504 = arith.mulf %503, %29 : vector<64x128xf32>
    %c63_i32_201 = arith.constant 63 : i32
    %505 = tpu.dynamic_rotate %502 by %c63_i32_201 dim 0 : vector<64x128xf32>, i32 -> vector<64x128xf32>
    %506 = arith.mulf %505, %29 : vector<64x128xf32>
    %507 = arith.addf %0, %501 : vector<64x128xf32>
    %508 = arith.mulf %4, %506 : vector<64x128xf32>
    %509 = arith.addf %507, %508 : vector<64x128xf32>
    %510 = arith.addf %502, %504 : vector<64x128xf32>
    %cst_202 = arith.constant 1.000000e+00 : f32
    %511 = vector.broadcast %cst_202 : f32 to vector<64x128xf32>
    %512 = arith.subf %510, %511 : vector<64x128xf32>
    %cst_203 = arith.constant 0.000000e+00 : f32
    %513 = vector.broadcast %cst_203 : f32 to vector<64x128xf32>
    %514 = arith.cmpf olt, %512, %513 : vector<64x128xf32>
    %cst_204 = arith.constant 0.00999999977 : f32
    %515 = vector.broadcast %cst_204 : f32 to vector<64x128xf32>
    %516 = arith.mulf %512, %515 : vector<64x128xf32>
    %517 = arith.select %514, %516, %512 : vector<64x128xi1>, vector<64x128xf32>
    %cst_205 = arith.constant 1.000000e+00 : f32
    %518 = vector.broadcast %cst_205 : f32 to vector<64x128xf32>
    %519 = arith.cmpf ogt, %517, %518 : vector<64x128xf32>
    %cst_206 = arith.constant 0.00999999977 : f32
    %520 = vector.broadcast %cst_206 : f32 to vector<64x128xf32>
    %521 = arith.mulf %517, %520 : vector<64x128xf32>
    %cst_207 = arith.constant 9.900000e-01 : f32
    %522 = vector.broadcast %cst_207 : f32 to vector<64x128xf32>
    %523 = arith.addf %521, %522 : vector<64x128xf32>
    %524 = arith.select %519, %523, %517 : vector<64x128xi1>, vector<64x128xf32>
    %525 = arith.mulf %7, %524 : vector<64x128xf32>
    %526 = arith.addf %509, %525 : vector<64x128xf32>
    %cst_208 = arith.constant 0.000000e+00 : f32
    %527 = vector.broadcast %cst_208 : f32 to vector<64x128xf32>
    %528 = arith.cmpf olt, %526, %527 : vector<64x128xf32>
    %cst_209 = arith.constant 0.00999999977 : f32
    %529 = vector.broadcast %cst_209 : f32 to vector<64x128xf32>
    %530 = arith.mulf %526, %529 : vector<64x128xf32>
    %531 = arith.select %528, %530, %526 : vector<64x128xi1>, vector<64x128xf32>
    %cst_210 = arith.constant 1.000000e+00 : f32
    %532 = vector.broadcast %cst_210 : f32 to vector<64x128xf32>
    %533 = arith.cmpf ogt, %531, %532 : vector<64x128xf32>
    %cst_211 = arith.constant 0.00999999977 : f32
    %534 = vector.broadcast %cst_211 : f32 to vector<64x128xf32>
    %535 = arith.mulf %531, %534 : vector<64x128xf32>
    %cst_212 = arith.constant 9.900000e-01 : f32
    %536 = vector.broadcast %cst_212 : f32 to vector<64x128xf32>
    %537 = arith.addf %535, %536 : vector<64x128xf32>
    %538 = arith.select %533, %537, %531 : vector<64x128xi1>, vector<64x128xf32>
    %c13_i32 = arith.constant 13 : i32
    %cst_213 = arith.constant dense<0.000000e+00> : vector<64x128xf32>
    %539 = tpu.matmul %538, %1, %cst_213 {dimension_numbers = #tpu.dot_dimension_numbers<[1], [0], [0], [1], [0, 0, 1, 1], [], []>} : vector<64x128xf32>, vector<128x128xf32>, vector<64x128xf32> -> vector<64x128xf32>
    %c127_i32_214 = arith.constant 127 : i32
    %540 = tpu.dynamic_rotate %538 by %c127_i32_214 dim 1 : vector<64x128xf32>, i32 -> vector<64x128xf32>
    %c63_i32_215 = arith.constant 63 : i32
    %541 = tpu.dynamic_rotate %538 by %c63_i32_215 dim 0 : vector<64x128xf32>, i32 -> vector<64x128xf32>
    %542 = arith.mulf %541, %29 : vector<64x128xf32>
    %c63_i32_216 = arith.constant 63 : i32
    %543 = tpu.dynamic_rotate %540 by %c63_i32_216 dim 0 : vector<64x128xf32>, i32 -> vector<64x128xf32>
    %544 = arith.mulf %543, %29 : vector<64x128xf32>
    %545 = arith.addf %0, %539 : vector<64x128xf32>
    %546 = arith.mulf %4, %544 : vector<64x128xf32>
    %547 = arith.addf %545, %546 : vector<64x128xf32>
    %548 = arith.addf %540, %542 : vector<64x128xf32>
    %cst_217 = arith.constant 1.000000e+00 : f32
    %549 = vector.broadcast %cst_217 : f32 to vector<64x128xf32>
    %550 = arith.subf %548, %549 : vector<64x128xf32>
    %cst_218 = arith.constant 0.000000e+00 : f32
    %551 = vector.broadcast %cst_218 : f32 to vector<64x128xf32>
    %552 = arith.cmpf olt, %550, %551 : vector<64x128xf32>
    %cst_219 = arith.constant 0.00999999977 : f32
    %553 = vector.broadcast %cst_219 : f32 to vector<64x128xf32>
    %554 = arith.mulf %550, %553 : vector<64x128xf32>
    %555 = arith.select %552, %554, %550 : vector<64x128xi1>, vector<64x128xf32>
    %cst_220 = arith.constant 1.000000e+00 : f32
    %556 = vector.broadcast %cst_220 : f32 to vector<64x128xf32>
    %557 = arith.cmpf ogt, %555, %556 : vector<64x128xf32>
    %cst_221 = arith.constant 0.00999999977 : f32
    %558 = vector.broadcast %cst_221 : f32 to vector<64x128xf32>
    %559 = arith.mulf %555, %558 : vector<64x128xf32>
    %cst_222 = arith.constant 9.900000e-01 : f32
    %560 = vector.broadcast %cst_222 : f32 to vector<64x128xf32>
    %561 = arith.addf %559, %560 : vector<64x128xf32>
    %562 = arith.select %557, %561, %555 : vector<64x128xi1>, vector<64x128xf32>
    %563 = arith.mulf %7, %562 : vector<64x128xf32>
    %564 = arith.addf %547, %563 : vector<64x128xf32>
    %cst_223 = arith.constant 0.000000e+00 : f32
    %565 = vector.broadcast %cst_223 : f32 to vector<64x128xf32>
    %566 = arith.cmpf olt, %564, %565 : vector<64x128xf32>
    %cst_224 = arith.constant 0.00999999977 : f32
    %567 = vector.broadcast %cst_224 : f32 to vector<64x128xf32>
    %568 = arith.mulf %564, %567 : vector<64x128xf32>
    %569 = arith.select %566, %568, %564 : vector<64x128xi1>, vector<64x128xf32>
    %cst_225 = arith.constant 1.000000e+00 : f32
    %570 = vector.broadcast %cst_225 : f32 to vector<64x128xf32>
    %571 = arith.cmpf ogt, %569, %570 : vector<64x128xf32>
    %cst_226 = arith.constant 0.00999999977 : f32
    %572 = vector.broadcast %cst_226 : f32 to vector<64x128xf32>
    %573 = arith.mulf %569, %572 : vector<64x128xf32>
    %cst_227 = arith.constant 9.900000e-01 : f32
    %574 = vector.broadcast %cst_227 : f32 to vector<64x128xf32>
    %575 = arith.addf %573, %574 : vector<64x128xf32>
    %576 = arith.select %571, %575, %569 : vector<64x128xi1>, vector<64x128xf32>
    %c14_i32 = arith.constant 14 : i32
    %cst_228 = arith.constant dense<0.000000e+00> : vector<64x128xf32>
    %577 = tpu.matmul %576, %1, %cst_228 {dimension_numbers = #tpu.dot_dimension_numbers<[1], [0], [0], [1], [0, 0, 1, 1], [], []>} : vector<64x128xf32>, vector<128x128xf32>, vector<64x128xf32> -> vector<64x128xf32>
    %c127_i32_229 = arith.constant 127 : i32
    %578 = tpu.dynamic_rotate %576 by %c127_i32_229 dim 1 : vector<64x128xf32>, i32 -> vector<64x128xf32>
    %c63_i32_230 = arith.constant 63 : i32
    %579 = tpu.dynamic_rotate %576 by %c63_i32_230 dim 0 : vector<64x128xf32>, i32 -> vector<64x128xf32>
    %580 = arith.mulf %579, %29 : vector<64x128xf32>
    %c63_i32_231 = arith.constant 63 : i32
    %581 = tpu.dynamic_rotate %578 by %c63_i32_231 dim 0 : vector<64x128xf32>, i32 -> vector<64x128xf32>
    %582 = arith.mulf %581, %29 : vector<64x128xf32>
    %583 = arith.addf %0, %577 : vector<64x128xf32>
    %584 = arith.mulf %4, %582 : vector<64x128xf32>
    %585 = arith.addf %583, %584 : vector<64x128xf32>
    %586 = arith.addf %578, %580 : vector<64x128xf32>
    %cst_232 = arith.constant 1.000000e+00 : f32
    %587 = vector.broadcast %cst_232 : f32 to vector<64x128xf32>
    %588 = arith.subf %586, %587 : vector<64x128xf32>
    %cst_233 = arith.constant 0.000000e+00 : f32
    %589 = vector.broadcast %cst_233 : f32 to vector<64x128xf32>
    %590 = arith.cmpf olt, %588, %589 : vector<64x128xf32>
    %cst_234 = arith.constant 0.00999999977 : f32
    %591 = vector.broadcast %cst_234 : f32 to vector<64x128xf32>
    %592 = arith.mulf %588, %591 : vector<64x128xf32>
    %593 = arith.select %590, %592, %588 : vector<64x128xi1>, vector<64x128xf32>
    %cst_235 = arith.constant 1.000000e+00 : f32
    %594 = vector.broadcast %cst_235 : f32 to vector<64x128xf32>
    %595 = arith.cmpf ogt, %593, %594 : vector<64x128xf32>
    %cst_236 = arith.constant 0.00999999977 : f32
    %596 = vector.broadcast %cst_236 : f32 to vector<64x128xf32>
    %597 = arith.mulf %593, %596 : vector<64x128xf32>
    %cst_237 = arith.constant 9.900000e-01 : f32
    %598 = vector.broadcast %cst_237 : f32 to vector<64x128xf32>
    %599 = arith.addf %597, %598 : vector<64x128xf32>
    %600 = arith.select %595, %599, %593 : vector<64x128xi1>, vector<64x128xf32>
    %601 = arith.mulf %7, %600 : vector<64x128xf32>
    %602 = arith.addf %585, %601 : vector<64x128xf32>
    %cst_238 = arith.constant 0.000000e+00 : f32
    %603 = vector.broadcast %cst_238 : f32 to vector<64x128xf32>
    %604 = arith.cmpf olt, %602, %603 : vector<64x128xf32>
    %cst_239 = arith.constant 0.00999999977 : f32
    %605 = vector.broadcast %cst_239 : f32 to vector<64x128xf32>
    %606 = arith.mulf %602, %605 : vector<64x128xf32>
    %607 = arith.select %604, %606, %602 : vector<64x128xi1>, vector<64x128xf32>
    %cst_240 = arith.constant 1.000000e+00 : f32
    %608 = vector.broadcast %cst_240 : f32 to vector<64x128xf32>
    %609 = arith.cmpf ogt, %607, %608 : vector<64x128xf32>
    %cst_241 = arith.constant 0.00999999977 : f32
    %610 = vector.broadcast %cst_241 : f32 to vector<64x128xf32>
    %611 = arith.mulf %607, %610 : vector<64x128xf32>
    %cst_242 = arith.constant 9.900000e-01 : f32
    %612 = vector.broadcast %cst_242 : f32 to vector<64x128xf32>
    %613 = arith.addf %611, %612 : vector<64x128xf32>
    %614 = arith.select %609, %613, %607 : vector<64x128xi1>, vector<64x128xf32>
    %cst_243 = arith.constant 5.000000e-01 : f32
    %615 = vector.broadcast %cst_243 : f32 to vector<64x128xf32>
    %616 = arith.subf %614, %615 : vector<64x128xf32>
    %cst_244 = arith.constant 5.000000e+00 : f32
    %617 = vector.broadcast %cst_244 : f32 to vector<64x128xf32>
    %618 = arith.mulf %616, %617 : vector<64x128xf32>
    %619 = arith.negf %618 : vector<64x128xf32>
    %620 = math.exp %619 : vector<64x128xf32>
    %cst_245 = arith.constant 1.000000e+00 : f32
    %621 = vector.broadcast %cst_245 : f32 to vector<64x128xf32>
    %622 = arith.addf %621, %620 : vector<64x128xf32>
    %623 = arith.divf %621, %622 : vector<64x128xf32>
    %c0_246 = arith.constant 0 : index
    %c0_247 = arith.constant 0 : index
    %624 = vector.load %arg4[%c0_246, %c0_247] : memref<64x128xf32, #tpu.memory_space<vmem>>, vector<64x128xf32>
    tpu.vector_store %arg4[%c0_246, %c0_247], %623 {strides = array<i32>} : memref<64x128xf32, #tpu.memory_space<vmem>>, vector<64x128xf32>,
    return
  }
  func.func @transform_0(%arg0: i32) -> (i32, i32) {
    %c0_i32 = arith.constant 0 : i32
    %c0_i32_0 = arith.constant 0 : i32
    return %arg0, %c0_i32 : i32, i32
  }
  func.func @transform_1(%arg0: i32) -> (i32, i32) {
    %c0_i32 = arith.constant 0 : i32
    %c0_i32_0 = arith.constant 0 : i32
    %c0_i32_1 = arith.constant 0 : i32
    return %c0_i32, %c0_i32_0 : i32, i32
  }
  func.func @transform_2(%arg0: i32) -> (i32, i32) {
    %c0_i32 = arith.constant 0 : i32
    %c0_i32_0 = arith.constant 0 : i32
    %c0_i32_1 = arith.constant 0 : i32
    return %c0_i32, %c0_i32_0 : i32, i32
  }
  func.func @transform_3(%arg0: i32) -> (i32, i32) {
    %c0_i32 = arith.constant 0 : i32
    %c0_i32_0 = arith.constant 0 : i32
    return %arg0, %c0_i32 : i32, i32
  }
}

</mosaic_0001>

<bundles_post_ra>
// kernel: tpu_custom_call.1
= control target key start
LH: loop header
LB: loop body
LE: loop exit
PB: predicated region body
PF: predicated region fallthrough
CT: control target
= control target key end

     0   :  { %8 = vsyncpa [#allocation3], 0  ;;  %s7762_s0 = inlined_call_operand.hbm [shape: f32[64,128], index: 0, kind: input, shape index: {}]   ;;  %s7763_s1 = inlined_call_operand.hbm [shape: f32[128,128], index: 1, kind: input, shape index: {}]   ;;  %s7764_s2 = inlined_call_operand.hbm [shape: f32[8,128], index: 2, kind: input, shape index: {}]   ;;  %s7765_s3 = inlined_call_operand.hbm [shape: f32[64,128], index: 3, kind: output, shape index: {}]  }
   0x1   :  { %9 = vsyncpa [#allocation6], 0 }
   0x2   :  { %10 = vsyncpa [#allocation4], 0  ;;  %s28_s14 = sshll.u32 %s7763_s1, 4  ;;  %s5008_s15 = smov [#allocation5]   ;;  %s29_s14 = int_to_ptr.hbm [resolvable:$true] %s28_s14 }
   0x3   :  { %s30_s16 = sshll.u32 %s5008_s15, 4  ;;  %s15_s19 = sshll.u32 %s7762_s0, 4  ;;  %s31_s16 = int_to_ptr.vmem [resolvable:$true] %s30_s16  ;;  %s16_s19 = int_to_ptr.hbm [resolvable:$true] %s15_s19 }
   0x4   :  { %s5009_s20 = smov 128   ;;  %s5010_s21 = smov 8  }
   0x5   :  { %36 = dma.hbm_to_vmem [thread:$0]  %s29_s14, 2048, %s31_s16, [#allocation6], %s5009_s20, %s5009_s20, %s5010_s21  }
   0x6   :  { %s5011_s22 = smov [#allocation2]   ;;  %s42_s1 = sshll.u32 %s7764_s2, 4  ;;  %s43_s1 = int_to_ptr.hbm [resolvable:$true] %s42_s1 }
   0x7   :  { %s17_s23 = sshll.u32 %s5011_s22, 4  ;;  %s5012_s0 = smov [#allocation7]   ;;  %s18_s23 = int_to_ptr.vmem [resolvable:$true] %s17_s23 }
   0x8   :  { %23 = dma.hbm_to_vmem [thread:$0]  %s16_s19, 1024, %s18_s23, [#allocation3], %s5009_s20, %s5009_s20, %s5010_s21  }
   0x9   :  { %s44_s26 = sshll.u32 %s5012_s0, 4  ;;  %s45_s26 = int_to_ptr.vmem [resolvable:$true] %s44_s26 }
   0xa   :  { %47 = dma.hbm_to_vmem [thread:$0]  %s43_s1, 128, %s45_s26, [#allocation6]  }
   0xb   :  { %5002 = dma.done.wait [#allocation3], 1024  }
   0xc   :  { %5003 = vsyncadd [#allocation3], 4294966272 }
   0xd   :  { %5004 = dma.done.wait [#allocation6], 2176  }
   0xe   :  { %5005 = vsyncadd [#allocation6], 4294965120  ;;  %v5051_v0 = vld [vmem:[#allocation7 + $0x1] ss:$0 sm:$0xff]  ;;  %v5053_v1 = vld [vmem:[#allocation5 + $0x78] sm:$0xff]  ;;  %s5013_s2 = smov 127  }
   0xf   :  { %v5055_v2 = vld [vmem:[#allocation5 + $0x70] sm:$0xff]  ;;  %274 = vmatpush.msra.mxu0 %v5053_v1  ;;  %4702 = vmatpush.msra.mxu3 %v5053_v1  ;;  %v5059_v3 = vld [vmem:[#allocation5 + $0x68] sm:$0xff]  ;;  %v5062_v4 = vmul.f32 0.01, %v5051_v0  ;;  %v5070_v6 = vld [vmem:[#allocation5 + $0x60] sm:$0xff]  ;;  %s5015_s27 = smov [#allocation8]  }
  0x10   :  { %548 = vmatpush.msra.mxu1 %v5053_v1  ;;  %821 = vmatpush.msra.mxu2 %v5053_v1  ;;  %v5068_v5 = vld [vmem:[#allocation2 + $0x10] sm:$0xff]  ;;  %v5074_v8 = vld [vmem:[#allocation2 + $0x18] sm:$0xff]  ;;  %v5082_v10 = vld [vmem:[#allocation2] sm:$0xff]  ;;  %s4550_s28 = sshll.u32 %s5015_s27, 4  ;;  %s4552_s4 = sshll.u32 %s7765_s3, 4  ;;  %s4551_s28 = int_to_ptr.vmem [resolvable:$true] %s4550_s28  ;;  %s4553_s4 = int_to_ptr.hbm [resolvable:$true] %s4552_s4 }
  0x11   :  { %275 = vmatpush.msra.mxu0 %v5055_v2  ;;  %4703 = vmatpush.msra.mxu3 %v5055_v2  ;;  %v212_v7 = vsub.f32 %v5068_v5, %v5062_v4  ;;  %v213_v9 = vsub.f32 %v5074_v8, %v5062_v4  ;;  %v5084_v11 = vld [vmem:[#allocation5 + $0x58] sm:$0xff]  ;;  %v210_v13 = vsub.f32 %v5082_v10, %v5062_v4  ;;  %v5088_v14 = vld [vmem:[#allocation2 + $0x20] sm:$0xff]  ;;  %v5098_v18 = vld [vmem:[#allocation5 + $0x50] sm:$0xff] }
  0x12   :  { %549 = vmatpush.msra.mxu1 %v5055_v2  ;;  %822 = vmatpush.msra.mxu2 %v5055_v2  ;;  %v214_v16 = vsub.f32 %v5088_v14, %v5062_v4  ;;  %v5096_v17 = vld [vmem:[#allocation2 + $0x38] sm:$0xff]  ;;  %v5106_v24 = vld [vmem:[#allocation2 + $0x8] sm:$0xff]  ;;  %v5114_v31 = vld [vmem:[#allocation5 + $0x40] sm:$0xff] }
  0x13   :  { %276 = vmatpush.msra.mxu0 %v5059_v3  ;;  %4704 = vmatpush.msra.mxu3 %v5059_v3  ;;  %vm220_vm0 = vcmp.lt.f32.partialorder %v212_v7, 0.0  ;;  %v228_v12 = vmul.f32 0.01, %v212_v7  ;;  %vm221_vm1 = vcmp.lt.f32.partialorder %v213_v9, 0.0  ;;  %v229_v15 = vmul.f32 0.01, %v213_v9 }
  0x14   :  { %550 = vmatpush.msra.mxu1 %v5059_v3  ;;  %823 = vmatpush.msra.mxu2 %v5059_v3  ;;  %vm218_vm2 = vcmp.lt.f32.partialorder %v210_v13, 0.0  ;;  %v226_v20 = vmul.f32 0.01, %v210_v13  ;;  %v217_v21 = vsub.f32 %v5096_v17, %v5062_v4  ;;  %vm222_vm3 = vcmp.lt.f32.partialorder %v214_v16, 0.0  ;;  %v5108_v25 = vld [vmem:[#allocation5 + $0x48] sm:$0xff]  ;;  %v5129_v39 = vld [vmem:[#allocation5 + $0x38] sm:$0xff] }
  0x15   :  { %277 = vmatpush.msra.mxu0 %v5070_v6  ;;  %4705 = vmatpush.msra.mxu3 %v5070_v6  ;;  %v236_v19 = vsel %vm220_vm0, %v228_v12, %v212_v7  ;;  %v237_v23 = vsel %vm221_vm1, %v229_v15, %v213_v9  ;;  %v230_v28 = vmul.f32 0.01, %v214_v16  ;;  %v211_v34 = vsub.f32 %v5106_v24, %v5062_v4  ;;  %v5125_v38 = vld [vmem:[#allocation2 + $0x28] sm:$0xff]  ;;  %v5131_v41 = vld [vmem:[#allocation2 + $0x30] sm:$0xff]  ;;  %v5164_v56 = vld [vmem:[#allocation5 + $0x20] sm:$0xff] }
  0x16   :  { %551 = vmatpush.msra.mxu1 %v5070_v6  ;;  %824 = vmatpush.msra.mxu2 %v5070_v6  ;;  %v252_v22 = vmul.f32 0.01, %v236_v19  ;;  %vm244_vm4 = vcmp.gt.f32.partialorder %v236_v19, 1.0  ;;  %v253_v26 = vmul.f32 0.01, %v237_v23  ;;  %v234_v27 = vsel %vm218_vm2, %v226_v20, %v210_v13  ;;  %v5140_v45 = vld [vmem:[#allocation5 + $0x30] sm:$0xff] }
  0x17   :  { %278 = vmatpush.msra.mxu0 %v5084_v11  ;;  %4706 = vmatpush.msra.mxu3 %v5084_v11  ;;  %vm242_vm5 = vcmp.gt.f32.partialorder %v234_v27, 1.0  ;;  %v250_v30 = vmul.f32 0.01, %v234_v27  ;;  %v238_v32 = vsel %vm222_vm3, %v230_v28, %v214_v16  ;;  %vm225_vm6 = vcmp.lt.f32.partialorder %v217_v21, 0.0  ;;  %v5154_v50 = vld [vmem:[#allocation5 + $0x28] sm:$0xff]  ;;  %7781 = vst [vmem:[#allocation13_spill] sm:$0xff] %v5164_v56 }
  0x18   :  { %552 = vmatpush.msra.mxu1 %v5084_v11  ;;  %825 = vmatpush.msra.mxu2 %v5084_v11  ;;  %v260_v29 = vadd.f32 0.99, %v252_v22  ;;  %v233_v33 = vmul.f32 0.01, %v217_v21  ;;  %v254_v37 = vmul.f32 0.01, %v238_v32  ;;  %v215_v47 = vsub.f32 %v5125_v38, %v5062_v4 }
  0x19   :  { %279 = vmatpush.msra.mxu0 %v5098_v18  ;;  %4707 = vmatpush.msra.mxu3 %v5098_v18  ;;  %v258_v36 = vadd.f32 0.99, %v250_v30  ;;  %v261_v40 = vadd.f32 0.99, %v253_v26  ;;  %vm246_vm7 = vcmp.gt.f32.partialorder %v238_v32, 1.0  ;;  %vm219_vm8 = vcmp.lt.f32.partialorder %v211_v34, 0.0 }
  0x1a   :  { %553 = vmatpush.msra.mxu1 %v5098_v18  ;;  %826 = vmatpush.msra.mxu2 %v5098_v18  ;;  %v5123_v35 = vsel %vm244_vm4, %v260_v29, %v236_v19  ;;  %v262_v43 = vadd.f32 0.99, %v254_v37  ;;  %v241_v44 = vsel %vm225_vm6, %v233_v33, %v217_v21  ;;  %vm245_vm9 = vcmp.gt.f32.partialorder %v237_v23, 1.0  ;;  %7780 = vst [vmem:[#allocation12_spill] sm:$0xff] %v5154_v50  ;;  %v5173_v60 = vld [vmem:[#allocation5 + $0x18] sm:$0xff]  ;;  %v5178_v63 = vld [vmem:[#allocation5 + $0x10] sm:$0xff] }
  0x1b   :  { %280 = vmatpush.msra.mxu0 %v5108_v25  ;;  %4708 = vmatpush.msra.mxu3 %v5108_v25  ;;  %v5137_v42 = vsel %vm242_vm5, %v258_v36, %v234_v27  ;;  %v227_v46 = vmul.f32 0.01, %v211_v34  ;;  %v216_v49 = vsub.f32 %v5131_v41, %v5062_v4  ;;  %v257_v51 = vmul.f32 0.01, %v241_v44  ;;  %7782 = vst [vmem:[#allocation14_spill] sm:$0xff] %v5173_v60  ;;  %v5188_v13 = vld [vmem:[#allocation5 + $0x8] sm:$0xff] }
  0x1c   :  { %319 = vrot.lane.b32.xlu1 %v5123_v35, %s5013_s2  ;;  %554 = vmatpush.msra.mxu1 %v5108_v25  ;;  %v5150_v48 = vsel %vm246_vm7, %v262_v43, %v238_v32  ;;  %vm223_vm10 = vcmp.lt.f32.partialorder %v215_v47, 0.0  ;;  %v5162_v53 = vsel %vm245_vm9, %v261_v40, %v237_v23  ;;  %v231_v55 = vmul.f32 0.01, %v215_v47  ;;  %7783 = vst [vmem:[#allocation15_spill] sm:$0xff] %v5178_v63  ;;  %v5198_v19 = vld [vmem:[#allocation5] sm:$0xff] }
  0x1d   :  { %281 = vmatpush.msra.mxu0 %v5114_v31  ;;  %4709 = vmatpush.msra.mxu3 %v5114_v31  ;;  %v235_v52 = vsel %vm219_vm8, %v227_v46, %v211_v34  ;;  %vm224_vm11 = vcmp.lt.f32.partialorder %v216_v49, 0.0  ;;  %v232_v57 = vmul.f32 0.01, %v216_v49  ;;  %v265_v4 = vadd.f32 0.99, %v257_v51  ;;  %7784 = vst [vmem:[#allocation16_spill] sm:$0xff] %v5188_v13 }
  0x1e   :  { %315 = vrot.lane.b32.xlu0 %v5137_v42, %s5013_s2  ;;  %555 = vmatpush.msra.mxu1 %v5114_v31  ;;  %v251_v54 = vmul.f32 0.01, %v235_v52  ;;  %vm243_vm12 = vcmp.gt.f32.partialorder %v235_v52, 1.0  ;;  %v239_v59 = vsel %vm223_vm10, %v231_v55, %v215_v47  ;;  %vm249_vm13 = vcmp.gt.f32.partialorder %v241_v44, 1.0  ;;  %7785 = vst [vmem:[#allocation17_spill] sm:$0xff] %v5198_v19 }
  0x1f   :  { %282 = vmatpush.msra.mxu0 %v5129_v39  ;;  %4710 = vmatpush.msra.mxu3 %v5129_v39  ;;  %v255_v61 = vmul.f32 0.01, %v239_v59  ;;  %v240_v62 = vsel %vm224_vm11, %v232_v57, %v216_v49  ;;  %vm247_vm14 = vcmp.gt.f32.partialorder %v239_v59, 1.0  ;;  %v5194_v15 = vsel %vm249_vm13, %v265_v4, %v241_v44 }
  0x20   :  { %323 = vrot.lane.b32.xlu2 %v5150_v48, %s5013_s2  ;;  %556 = vmatpush.msra.mxu1 %v5129_v39  ;;  %v259_v58 = vadd.f32 0.99, %v251_v54  ;;  %v256_v12 = vmul.f32 0.01, %v240_v62  ;;  %vm248_vm15 = vcmp.gt.f32.partialorder %v240_v62, 1.0  ;;  %v88_v22 = vlaneseq }
  0x21   :  { %283 = vmatpush.msra.mxu0 %v5140_v45  ;;  %4711 = vmatpush.msra.mxu3 %v5140_v45  ;;  %v263_v9 = vadd.f32 0.99, %v255_v61  ;;  %v334_v23 = vrot.slane %v5162_v53, 1  ;;  %v333_v27 = vrot.slane %v5123_v35, 1  ;;  %v331_v29 = vrot.slane %v5137_v42, 1 }
  0x22   :  { %557 = vmatpush.msra.mxu1 %v5140_v45  ;;  %827 = vmatpush.msra.mxu2 %v5108_v25  ;;  %v5181_v7 = vsel %vm243_vm12, %v259_v58, %v235_v52  ;;  %v264_v20 = vadd.f32 0.99, %v256_v12  ;;  %v5320_v26 = vshrl.u32 %v88_v22, 7  ;;  %v335_v30 = vrot.slane %v5150_v48, 1 }
  0x23   :  { %284 = vmatpush.msra.mxu0 %v5154_v50  ;;  %4712 = vmatpush.msra.mxu3 %v5154_v50  ;;  %v5196_v16 = vsel %vm247_vm14, %v263_v9, %v239_v59  ;;  %v332_v32 = vrot.slane %v5181_v7, 1 }
  0x24   :  { %321 = vrot.lane.b32.xlu1 %v5162_v53, %s5013_s2  ;;  %558 = vmatpush.msra.mxu1 %v5154_v50  ;;  %v5212_v21 = vsel %vm248_vm15, %v264_v20, %v240_v62  ;;  %vm339_vm0 = vcmp.lt.s32.totalorder %v5320_v26, 7  ;;  %v336_v40 = vrot.slane %v5196_v16, 1  ;;  %v101_v43 = vand.u32 7, %v5320_v26 }
  0x25   :  { %285 = vmatpush.msra.mxu0 %v5164_v56  ;;  %4713 = vmatpush.msra.mxu3 %v5164_v56  ;;  %v344_v28 = vsel %vm339_vm0, %v333_v27, %v334_v23  ;;  %v343_v33 = vsel %vm339_vm0, %v334_v23, %v335_v30  ;;  %v346_v34 = vsel %vm339_vm0, %v331_v29, %v332_v32  ;;  %v93_v46 = vadd.s32 32, %v5320_v26 }
  0x26   :  { %317 = vrot.lane.b32.xlu0 %v5181_v7, %s5013_s2  ;;  %559 = vmatpush.msra.mxu1 %v5164_v56  ;;  %v345_v37 = vsel %vm339_vm0, %v332_v32, %v333_v27  ;;  %v342_v47 = vsel %vm339_vm0, %v335_v30, %v336_v40  ;;  %vm193_vm1 = vcmp.eq.s32.totalorder %v101_v43, 7  ;;  %v7766_v51 = vrot.slane %v5212_v21, 1 }
  0x27   :  { %286 = vmatpush.msra.mxu0 %v5173_v60  ;;  %4714 = vmatpush.msra.mxu3 %v5173_v60  ;;  %v129_v49 = vand.u32 7, %v93_v46  ;;  %v92_v52 = vadd.s32 24, %v5320_v26  ;;  %v94_v57 = vadd.s32 40, %v5320_v26  ;;  %v96_v30 = vadd.s32 56, %v5320_v26 }
  0x28   :  { %560 = vmatpush.msra.mxu1 %v5173_v60  ;;  %828 = vmatpush.msra.mxu2 %v5114_v31  ;;  %v341_v4 = vsel %vm339_vm0, %v336_v40, %v7766_v51 }
  0x29   :  { %287 = vmatpush.msra.mxu0 %v5178_v63  ;;  %4715 = vmatpush.msra.mxu3 %v5178_v63  ;;  %vm197_vm3 = vcmp.eq.s32.totalorder %v129_v49, 7  ;;  %v122_v59 = vand.u32 7, %v92_v52  ;;  %v136_v12 = vand.u32 7, %v94_v57  ;;  %v150_v46 = vand.u32 7, %v96_v30 }
  0x2a   :  { %325 = vrot.lane.b32.xlu2 %v5196_v16, %s5013_s2  ;;  %561 = vmatpush.msra.mxu1 %v5178_v63 }
  0x2b   :  { %288 = vmatpush.msra.mxu0 %v5188_v13  ;;  %4716 = vmatpush.msra.mxu3 %v5188_v13  ;;  %vm196_vm5 = vcmp.eq.s32.totalorder %v122_v59, 7  ;;  %vm198_vm6 = vcmp.eq.s32.totalorder %v136_v12, 7  ;;  %vm200_vm8 = vcmp.eq.s32.totalorder %v150_v46, 7  ;;  %v95_v12 = vadd.s32 48, %v5320_v26 }
  0x2c   :  { %329 = vrot.lane.b32.xlu1 %v5194_v15, %s5013_s2  ;;  %562 = vmatpush.msra.mxu1 %v5188_v13 }
  0x2d   :  { %289 = vmatpush.msra.mxu0 %v5198_v19  ;;  %4717 = vmatpush.msra.mxu3 %v5198_v19 }
  0x2e   :  { %302 = vmatmul.f32.vlgmr.msra.gmra.mxu3 %v5150_v48  ;;  %290 = vmatmul.f32.vlgmr.msra.gmra.mxu0 %v5137_v42  ;;  %v91_v42 = vadd.s32 16, %v5320_v26  ;;  %v90_v48 = vadd.s32 8, %v5320_v26 }
  0x2f   :  { %327 = vrot.lane.b32.xlu0 %v5212_v21, %s5013_s2  ;;  %563 = vmatpush.msra.mxu1 %v5198_v19 }
  0x30   :  { %829 = vmatpush.msra.mxu2 %v5129_v39  ;;  %1094 = vmatpush.msrb.mxu3 %v5053_v1  ;;  %v115_v44 = vand.u32 7, %v91_v42  ;;  %v108_v55 = vand.u32 7, %v90_v48 }
  0x31   :  { %1367 = vmatpush.msrb.mxu0 %v5053_v1  ;;  %1640 = vmatpush.msrb.mxu1 %v5053_v1 }
  0x32   :  { %830 = vmatpush.msra.mxu2 %v5140_v45  ;;  %1095 = vmatpush.msrb.mxu3 %v5055_v2  ;;  %vm195_vm2 = vcmp.eq.s32.totalorder %v115_v44, 7  ;;  %vm194_vm4 = vcmp.eq.s32.totalorder %v108_v55, 7 }
  0x33   :  { %1368 = vmatpush.msrb.mxu0 %v5055_v2  ;;  %1641 = vmatpush.msrb.mxu1 %v5055_v2 }
  0x34   :  { %831 = vmatpush.msra.mxu2 %v5154_v50  ;;  %1096 = vmatpush.msrb.mxu3 %v5059_v3 }
  0x35   :  { %1369 = vmatpush.msrb.mxu0 %v5059_v3  ;;  %1642 = vmatpush.msrb.mxu1 %v5059_v3 }
  0x36   :  { %293 = vmatmul.f32.gmra.mxu0 %v5181_v7  ;;  %305 = vmatmul.f32.gmra.mxu3 %v5196_v16 }
  0x37   :  { %832 = vmatpush.msra.mxu2 %v5164_v56  ;;  %1097 = vmatpush.msrb.mxu3 %v5070_v6 }
  0x38   :  { %1370 = vmatpush.msrb.mxu0 %v5070_v6  ;;  %1643 = vmatpush.msrb.mxu1 %v5070_v6 }
  0x39   :  { %833 = vmatpush.msra.mxu2 %v5173_v60  ;;  %1098 = vmatpush.msrb.mxu3 %v5084_v11 }
  0x3a   :  { %1371 = vmatpush.msrb.mxu0 %v5084_v11  ;;  %1644 = vmatpush.msrb.mxu1 %v5084_v11 }
  0x3b   :  { %834 = vmatpush.msra.mxu2 %v5178_v63  ;;  %1099 = vmatpush.msrb.mxu3 %v5098_v18 }
  0x3c   :  { %1372 = vmatpush.msrb.mxu0 %v5098_v18  ;;  %1645 = vmatpush.msrb.mxu1 %v5098_v18 }
  0x3d   :  { %835 = vmatpush.msra.mxu2 %v5188_v13  ;;  %1100 = vmatpush.msrb.mxu3 %v5108_v25 }
  0x3e   :  { %296 = vmatmul.f32.gmra.mxu0 %v5123_v35  ;;  %308 = vmatmul.f32.gmra.mxu3 %v5212_v21  ;;  %v7767_v35 = vrot.slane %v5194_v15, 1 }
  0x3f   :  { %836 = vmatpush.msra.mxu2 %v5198_v19  ;;  %1101 = vmatpush.msrb.mxu3 %v5114_v31 }
  0x40   :  { %1373 = vmatpush.msrb.mxu0 %v5108_v25  ;;  %1646 = vmatpush.msrb.mxu1 %v5108_v25  ;;  %v5346_v36 = vsel %vm339_vm0, %v7767_v35, %v331_v29 }
  0x41   :  { %1102 = vmatpush.msrb.mxu3 %v5129_v39  ;;  %1913 = vmatpush.msrb.mxu2 %v5053_v1 }
  0x42   :  { %1374 = vmatpush.msrb.mxu0 %v5114_v31  ;;  %1647 = vmatpush.msrb.mxu1 %v5114_v31 }
  0x43   :  { %1103 = vmatpush.msrb.mxu3 %v5140_v45  ;;  %1914 = vmatpush.msrb.mxu2 %v5055_v2 }
  0x44   :  { %1375 = vmatpush.msrb.mxu0 %v5129_v39  ;;  %1648 = vmatpush.msrb.mxu1 %v5129_v39 }
  0x45   :  { %1104 = vmatpush.msrb.mxu3 %v5154_v50  ;;  %1915 = vmatpush.msrb.mxu2 %v5059_v3 }
  0x46   :  { %299 = vmatmul.f32.gmra.mxu0 %v5162_v53  ;;  %311 = vmatmul.f32.gmra.mxu3 %v5194_v15  ;;  %v5014_v53 = vmov 1.0  }
  0x47   :  { %1105 = vmatpush.msrb.mxu3 %v5164_v56  ;;  %1376 = vmatpush.msrb.mxu0 %v5140_v45  ;;  %v5360_v54 = vsel %vm193_vm1, 0.0, %v5014_v53  ;;  %v5364_v58 = vsel %vm195_vm2, 0.0, %v5014_v53  ;;  %v5368_v62 = vsel %vm197_vm3, 0.0, %v5014_v53  ;;  %v5384_v27 = vsel %vm194_vm4, 0.0, %v5014_v53 }
  0x48   :  { %1649 = vmatpush.msrb.mxu1 %v5140_v45  ;;  %1916 = vmatpush.msrb.mxu2 %v5070_v6  ;;  %7786 = vst [vmem:[#allocation18_spill] sm:$0xff] %v5360_v54  ;;  %v348_v61 = vmul.f32 %v346_v34, %v5360_v54  ;;  %v350_v9 = vmul.f32 %v344_v28, %v5364_v58  ;;  %v5389_v28 = vsel %vm196_vm5, 0.0, %v5014_v53  ;;  %v5394_v42 = vsel %vm198_vm6, 0.0, %v5014_v53 }
  0x49   :  { %1106 = vmatpush.msrb.mxu3 %v5173_v60  ;;  %1377 = vmatpush.msrb.mxu0 %v5154_v50  ;;  %7787 = vst [vmem:[#allocation19_spill] sm:$0xff] %v5368_v62  ;;  %v352_v22 = vmul.f32 %v342_v47, %v5368_v62  ;;  %v349_v40 = vmul.f32 %v345_v37, %v5384_v27  ;;  %v5411_v51 = vsel %vm200_vm8, 0.0, %v5014_v53 }
  0x4a   :  { %1650 = vmatpush.msrb.mxu1 %v5154_v50  ;;  %1917 = vmatpush.msrb.mxu2 %v5084_v11  ;;  %v351_v44 = vmul.f32 %v343_v33, %v5389_v28  ;;  %v353_v55 = vmul.f32 %v341_v4, %v5394_v42  ;;  %v355_v35 = vmul.f32 %v5346_v36, %v5411_v51 }
  0x4b   :  { %1107 = vmatpush.msrb.mxu3 %v5178_v63  ;;  %1378 = vmatpush.msrb.mxu0 %v5164_v56 }
  0x4c   :  { %1651 = vmatpush.msrb.mxu1 %v5164_v56  ;;  %1918 = vmatpush.msrb.mxu2 %v5098_v18 }
  0x4d   :  { %1108 = vmatpush.msrb.mxu3 %v5188_v13  ;;  %1379 = vmatpush.msrb.mxu0 %v5173_v60 }
  0x4e   :  { %1652 = vmatpush.msrb.mxu1 %v5173_v60  ;;  %1919 = vmatpush.msrb.mxu2 %v5108_v25 }
  0x4f   :  { %1109 = vmatpush.msrb.mxu3 %v5198_v19  ;;  %1380 = vmatpush.msrb.mxu0 %v5178_v63 }
  0x50   :  { %1653 = vmatpush.msrb.mxu1 %v5178_v63  ;;  %1920 = vmatpush.msrb.mxu2 %v5114_v31 }
  0x51   :  { %1381 = vmatpush.msrb.mxu0 %v5188_v13  ;;  %2186 = vmatpush.msra.mxu3 %v5053_v1 }
  0x52   :  { %1654 = vmatpush.msrb.mxu1 %v5188_v13  ;;  %1921 = vmatpush.msrb.mxu2 %v5129_v39 }
  0x53   :  { %1382 = vmatpush.msrb.mxu0 %v5198_v19  ;;  %2187 = vmatpush.msra.mxu3 %v5055_v2 }
  0x54   :  { %1655 = vmatpush.msrb.mxu1 %v5198_v19  ;;  %1922 = vmatpush.msrb.mxu2 %v5140_v45 }
  0x55   :  { %2188 = vmatpush.msra.mxu3 %v5059_v3  ;;  %2459 = vmatpush.msra.mxu0 %v5053_v1 }
  0x56   :  { %1923 = vmatpush.msrb.mxu2 %v5154_v50 }
  0x57   :  { %2189 = vmatpush.msra.mxu3 %v5070_v6  ;;  %2460 = vmatpush.msra.mxu0 %v5055_v2 }
  0x58   :  { %1924 = vmatpush.msrb.mxu2 %v5164_v56 }
  0x59   :  { %2190 = vmatpush.msra.mxu3 %v5084_v11  ;;  %2461 = vmatpush.msra.mxu0 %v5059_v3 }
  0x5a   :  { %1925 = vmatpush.msrb.mxu2 %v5173_v60 }
  0x5b   :  { %2191 = vmatpush.msra.mxu3 %v5098_v18  ;;  %2462 = vmatpush.msra.mxu0 %v5070_v6 }
  0x5c   :  { %1926 = vmatpush.msrb.mxu2 %v5178_v63 }
  0x5d   :  { %2192 = vmatpush.msra.mxu3 %v5108_v25  ;;  %2463 = vmatpush.msra.mxu0 %v5084_v11 }
  0x5e   :  { %1927 = vmatpush.msrb.mxu2 %v5188_v13 }
  0x5f   :  { %2193 = vmatpush.msra.mxu3 %v5114_v31  ;;  %2464 = vmatpush.msra.mxu0 %v5098_v18 }
  0x60   :  { %1928 = vmatpush.msrb.mxu2 %v5198_v19 }
  0x61   :  { %2194 = vmatpush.msra.mxu3 %v5129_v39  ;;  %2465 = vmatpush.msra.mxu0 %v5108_v25 }
  0x63   :  { %2195 = vmatpush.msra.mxu3 %v5140_v45  ;;  %2466 = vmatpush.msra.mxu0 %v5114_v31 }
  0x65   :  { %2196 = vmatpush.msra.mxu3 %v5154_v50  ;;  %2467 = vmatpush.msra.mxu0 %v5129_v39 }
  0x67   :  { %2197 = vmatpush.msra.mxu3 %v5164_v56  ;;  %2468 = vmatpush.msra.mxu0 %v5140_v45 }
  0x69   :  { %2198 = vmatpush.msra.mxu3 %v5173_v60  ;;  %2469 = vmatpush.msra.mxu0 %v5154_v50 }
  0x6b   :  { %2199 = vmatpush.msra.mxu3 %v5178_v63  ;;  %2470 = vmatpush.msra.mxu0 %v5164_v56 }
  0x6d   :  { %2200 = vmatpush.msra.mxu3 %v5188_v13  ;;  %2471 = vmatpush.msra.mxu0 %v5173_v60 }
  0x6f   :  { %2201 = vmatpush.msra.mxu3 %v5198_v19  ;;  %2472 = vmatpush.msra.mxu0 %v5178_v63 }
  0x71   :  { %2473 = vmatpush.msra.mxu0 %v5188_v13 }
  0x73   :  { %2474 = vmatpush.msra.mxu0 %v5198_v19 }
  0x7a   :  { %v5379_v20 = vpop.permute.xlu2 %323 }
  0x7b   :  { %v408_v32 = vadd.f32 %v352_v22, %v5379_v20  ;;  %v360_v30 = vrot.slane %v5379_v20, 1 }
  0x7d   :  { %v4570_v48 = vadd.f32 -1.0, %v408_v32 }
  0x7f   :  { %vm424_vm10 = vcmp.lt.f32.partialorder %v4570_v48, 0.0  ;;  %v432_v33 = vmul.f32 0.01, %v4570_v48 }
  0x84   :  { %v5400_v59 = vpop.permute.xlu2 %325 }
  0x85   :  { %v409_v4 = vadd.f32 %v353_v55, %v5400_v59  ;;  %v7769_v32 = vrot.slane %v5400_v59, 1  ;;  %v7790_v55 = vrot.slane %v5212_v21, 1 }
  0x8e   :  { %v5377_v16 = vpop.permute.xlu1 %319 }
  0x8f   :  { %v406_v29 = vadd.f32 %v350_v9, %v5377_v16  ;;  %v440_v9 = vsel %vm424_vm10, %v432_v33, %v4570_v48  ;;  %v366_v48 = vsel %vm339_vm0, %v360_v30, %v7769_v32 }
  0x90   :  { %v5374_v7 = vpop.permute.xlu0 %315  ;;  %vm448_vm15 = vcmp.gt.f32.partialorder %v440_v9, 1.0 }
  0x91   :  { %v404_v23 = vadd.f32 %v348_v61, %v5374_v7  ;;  %v4568_v43 = vadd.f32 -1.0, %v406_v29 }
  0x93   :  { %v4566_v34 = vadd.f32 -1.0, %v404_v23  ;;  %v430_v61 = vmul.f32 0.01, %v4568_v43  ;;  %vm422_vm9 = vcmp.lt.f32.partialorder %v4568_v43, 0.0 }
  0x95   :  { %v428_v49 = vmul.f32 0.01, %v4566_v34  ;;  %vm420_vm7 = vcmp.lt.f32.partialorder %v4566_v34, 0.0 }
  0x96   :  { %v5398_v57 = vpop.permute.xlu1 %321 }
  0x97   :  { %v407_v37 = vadd.f32 %v351_v44, %v5398_v57  ;;  %v436_v22 = vsel %vm420_vm7, %v428_v49, %v4566_v34  ;;  %v143_v34 = vand.u32 7, %v95_v12  ;;  %v359_v33 = vrot.slane %v5398_v57, 1 }
  0x98   :  { %v318_v47 = vpop.permute.xlu0 %317  ;;  %v452_v46 = vmul.f32 0.01, %v436_v22  ;;  %vm444_vm14 = vcmp.gt.f32.partialorder %v436_v22, 1.0  ;;  %v376_v57 = vmul.f32 %v366_v48, %v5368_v62 }
  0x99   :  { %v405_v52 = vadd.f32 %v349_v40, %v318_v47  ;;  %v357_v23 = vrot.slane %v318_v47, 1  ;;  %v5408_v40 = vsel %vm422_vm9, %v430_v61, %v4568_v43  ;;  %v4569_v44 = vadd.f32 -1.0, %v407_v37 }
  0x9a   :  { %v7788_v47 = vrot.slane %v5374_v7, 1  ;;  %v7789_v43 = vrot.slane %v5194_v15, 1  ;;  %v358_v37 = vrot.slane %v5377_v16, 1  ;;  %v454_v36 = vmul.f32 0.01, %v5408_v40 }
  0x9b   :  { %v4567_v29 = vadd.f32 -1.0, %v405_v52  ;;  %v4571_v52 = vadd.f32 -1.0, %v409_v4  ;;  %v431_v12 = vmul.f32 0.01, %v4569_v44  ;;  %v456_v4 = vmul.f32 0.01, %v440_v9 }
  0x9c   :  { %v370_v49 = vsel %vm339_vm0, %v7788_v47, %v357_v23  ;;  %v340_v61 = vsel %vm339_vm0, %v7790_v55, %v7789_v43  ;;  %vm199_vm12 = vcmp.eq.s32.totalorder %v143_v34, 7  ;;  %v5432_v15 = vld [vmem:[#allocation7] ss:$0 sm:$0xff]  ;;  %vm423_vm13 = vcmp.lt.f32.partialorder %v4569_v44, 0.0 }
  0x9d   :  { %v429_v20 = vmul.f32 0.01, %v4567_v29  ;;  %vm421_vm11 = vcmp.lt.f32.partialorder %v4567_v29, 0.0  ;;  %v460_v21 = vadd.f32 0.99, %v452_v46  ;;  %v372_v47 = vmul.f32 %v370_v49, %v5360_v54 }
  0x9e   :  { %v5436_v16 = vsel %vm199_vm12, 0.0, %v5014_v53  ;;  %v433_v55 = vmul.f32 0.01, %v4571_v52  ;;  %v5439_v32 = vadd.f32 0.99, %v454_v36  ;;  %vm425_vm1 = vcmp.lt.f32.partialorder %v4571_v52, 0.0  ;;  %v330_v63 = vpop.permute.xlu1 %329 }
  0x9f   :  { %v437_v43 = vsel %vm421_vm11, %v429_v20, %v4567_v29  ;;  %v354_v19 = vmul.f32 %v340_v61, %v5436_v16  ;;  %v368_v46 = vsel %vm339_vm0, %v358_v37, %v359_v33  ;;  %v5444_v13 = vsel %vm423_vm13, %v431_v12, %v4569_v44 }
  0xa0   :  { %v464_v49 = vadd.f32 0.99, %v456_v4  ;;  %v369_v29 = vsel %vm339_vm0, %v357_v23, %v358_v37  ;;  %v453_v20 = vmul.f32 0.01, %v437_v43  ;;  %v388_v61 = vmul.f32 %v5432_v15, %v372_v47 }
  0xa1   :  { %v328_v34 = vpop.permute.xlu0 %327  ;;  %v468_v36 = vsel %vm444_vm14, %v460_v21, %v436_v22  ;;  %v441_v62 = vsel %vm425_vm1, %v433_v55, %v4571_v52  ;;  %v374_v44 = vmul.f32 %v368_v46, %v5364_v58  ;;  %v455_v12 = vmul.f32 0.01, %v5444_v13 }
  0xa2   :  { %v410_v53 = vadd.f32 %v354_v19, %v328_v34  ;;  %v362_v60 = vrot.slane %v328_v34, 1  ;;  %v411_v19 = vadd.f32 %v355_v35, %v330_v63  ;;  %v392_v4 = vmul.f32 %v5432_v15, %v376_v57 }
  0xa3   :  { %v373_v23 = vmul.f32 %v369_v29, %v5384_v27  ;;  %v472_v37 = vsel %vm448_vm15, %v464_v49, %v440_v9  ;;  %v476_v22 = vmul.f32 %v5051_v0, %v468_v36  ;;  %v363_v21 = vrot.slane %v330_v63, 1 }
  0xa4   :  { %v4572_v56 = vadd.f32 -1.0, %v410_v53  ;;  %v461_v50 = vadd.f32 0.99, %v453_v20  ;;  %vm446_vm2 = vcmp.gt.f32.partialorder %v5408_v40, 1.0  ;;  %vm445_vm3 = vcmp.gt.f32.partialorder %v437_v43, 1.0 }
  0xa5   :  { %v7791_v35 = vrot.slane %v5400_v59, 1  ;;  %v5464_v9 = vadd.f32 0.99, %v455_v12  ;;  %v4573_v34 = vadd.f32 -1.0, %v411_v19  ;;  %v480_v63 = vmul.f32 %v5051_v0, %v472_v37 }
  0xa6   :  { %v434_v57 = vmul.f32 0.01, %v4572_v56  ;;  %vm426_vm4 = vcmp.lt.f32.partialorder %v4572_v56, 0.0  ;;  %vm449_vm6 = vcmp.gt.f32.partialorder %v441_v62, 1.0  ;;  %v469_v29 = vsel %vm445_vm3, %v461_v50, %v437_v43 }
  0xa7   :  { %v365_v55 = vsel %vm339_vm0, %v7791_v35, %v362_v60  ;;  %vm427_vm7 = vcmp.lt.f32.partialorder %v4573_v34, 0.0  ;;  %v435_v19 = vmul.f32 0.01, %v4573_v34  ;;  %vm447_vm8 = vcmp.gt.f32.partialorder %v5444_v13, 1.0 }
  0xa8   :  { %v377_v20 = vmul.f32 %v365_v55, %v5394_v42  ;;  %v442_v36 = vsel %vm426_vm4, %v434_v57, %v4572_v56  ;;  %v364_v50 = vsel %vm339_vm0, %v362_v60, %v363_v21 }
  0xa9   :  { %v443_v55 = vsel %vm427_vm7, %v435_v19, %v4573_v34  ;;  %vm450_vm12 = vcmp.gt.f32.partialorder %v442_v36, 1.0 }
  0xaa   :  { %vm451_vm13 = vcmp.gt.f32.partialorder %v443_v55, 1.0 }
  0xab   :  { %v291_v54 = vpop.f32.mrf.mxu0 }
  0xac   :  { %v380_v48 = vadd.f32 %v291_v54, %v5082_v10  ;;  %v367_v10 = vsel %vm339_vm0, %v359_v33, %v360_v30  ;;  %v457_v54 = vmul.f32 0.01, %v441_v62  ;;  %v389_v33 = vmul.f32 %v5432_v15, %v373_v23 }
  0xae   :  { %v396_v47 = vadd.f32 %v388_v61, %v380_v48  ;;  %v465_v53 = vadd.f32 0.99, %v457_v54 }
  0xb0   :  { %v484_v52 = vadd.f32 %v476_v22, %v396_v47  ;;  %v477_v47 = vmul.f32 %v5051_v0, %v469_v29  ;;  %v458_v22 = vmul.f32 0.01, %v442_v36  ;;  %v473_v56 = vsel %vm449_vm6, %v465_v53, %v441_v62 }
  0xb1   :  { %v303_v46 = vpop.f32.mrf.mxu3  ;;  %v481_v62 = vmul.f32 %v5051_v0, %v473_v56  ;;  %v459_v29 = vmul.f32 0.01, %v443_v55 }
  0xb2   :  { %v384_v30 = vadd.f32 %v303_v46, %v5088_v14  ;;  %vm492_vm5 = vcmp.lt.f32.partialorder %v484_v52, 0.0  ;;  %v500_v49 = vmul.f32 0.01, %v484_v52  ;;  %v5473_v14 = vmul.f32 %v367_v10, %v5389_v28 }
  0xb3   :  { %v294_v59 = vpop.f32.mrf.mxu0 }
  0xb4   :  { %v381_v61 = vadd.f32 %v294_v59, %v5106_v24  ;;  %v508_v48 = vsel %vm492_vm5, %v500_v49, %v484_v52  ;;  %v400_v12 = vadd.f32 %v392_v4, %v384_v30  ;;  %v393_v24 = vmul.f32 %v5432_v15, %v377_v20 }
  0xb5   :  { %v524_v23 = vmul.f32 0.01, %v508_v48  ;;  %vm516_vm9 = vcmp.gt.f32.partialorder %v508_v48, 1.0  ;;  %v7792_v52 = vrot.slane %v5374_v7, 1  ;;  %v466_v30 = vadd.f32 0.99, %v458_v22 }
  0xb6   :  { %v397_v37 = vadd.f32 %v389_v33, %v381_v61  ;;  %v488_v43 = vadd.f32 %v480_v63, %v400_v12  ;;  %v390_v63 = vmul.f32 %v5432_v15, %v374_v44  ;;  %v470_v44 = vsel %vm446_vm2, %v5439_v32, %v5408_v40 }
  0xb7   :  { %v532_v4 = vadd.f32 0.99, %v524_v23  ;;  %v371_v35 = vsel %vm339_vm0, %v363_v21, %v7792_v52  ;;  %v378_v21 = vmul.f32 %v364_v50, %v5436_v16  ;;  %v478_v32 = vmul.f32 %v5051_v0, %v470_v44 }
  0xb8   :  { %v485_v54 = vadd.f32 %v477_v47, %v397_v37  ;;  %vm496_vm10 = vcmp.lt.f32.partialorder %v488_v43, 0.0  ;;  %v504_v10 = vmul.f32 0.01, %v488_v43  ;;  %v379_v59 = vmul.f32 %v371_v35, %v5411_v51 }
  0xb9   :  { %v306_v57 = vpop.f32.mrf.mxu3  ;;  %v5486_v60 = vsel %vm516_vm9, %v532_v4, %v508_v48  ;;  %v394_v40 = vmul.f32 %v5432_v15, %v378_v21  ;;  %v467_v47 = vadd.f32 0.99, %v459_v29  ;;  %v391_v4 = vmul.f32 %v5432_v15, %v5473_v14 }
  0xba   :  { %v385_v46 = vadd.f32 %v306_v57, %v5125_v38  ;;  %589 = vrot.lane.b32.xlu2 %v5486_v60, %s5013_s2  ;;  %564 = vmatmul.f32.vlgmr.msra.gmra.mxu1 %v5486_v60  ;;  %vm493_vm11 = vcmp.lt.f32.partialorder %v485_v54, 0.0  ;;  %v501_v7 = vmul.f32 0.01, %v485_v54  ;;  %v512_v38 = vsel %vm496_vm10, %v504_v10, %v488_v43 }
  0xbb   :  { %v297_v34 = vpop.f32.mrf.mxu0  ;;  %2732 = vmatpush.msra.mxu1 %v5053_v1  ;;  %v528_v61 = vmul.f32 0.01, %v512_v38  ;;  %v474_v1 = vsel %vm450_vm12, %v466_v30, %v442_v36  ;;  %vm520_vm1 = vcmp.gt.f32.partialorder %v512_v38, 1.0  ;;  %v475_v35 = vsel %vm451_vm13, %v467_v47, %v443_v55  ;;  %v7794_v47 = vld [vmem:[#allocation13_spill] sm:$0xff] }
  0xbc   :  { %v401_v33 = vadd.f32 %v393_v24, %v385_v46  ;;  %v382_v49 = vadd.f32 %v297_v34, %v5068_v5  ;;  %v509_v53 = vsel %vm493_vm11, %v501_v7, %v485_v54  ;;  %v482_v22 = vmul.f32 %v5051_v0, %v474_v1  ;;  %v5536_v34 = vld [vmem:[#allocation7 + $0x1] ss:$0 sm:$0xff] }
  0xbd   :  { %v525_v20 = vmul.f32 0.01, %v509_v53  ;;  %2733 = vmatpush.msra.mxu1 %v5055_v2  ;;  %vm517_vm14 = vcmp.gt.f32.partialorder %v509_v53, 1.0  ;;  %v536_v23 = vadd.f32 0.99, %v528_v61  ;;  %v471_v2 = vsel %vm447_vm8, %v5464_v9, %v5444_v13 }
  0xbe   :  { %v489_v48 = vadd.f32 %v481_v62, %v401_v33  ;;  %v398_v12 = vadd.f32 %v390_v63, %v382_v49  ;;  %v605_v24 = vrot.slane %v5486_v60, 1  ;;  %v479_v52 = vmul.f32 %v5051_v0, %v471_v2 }
  0xbf   :  { %v533_v19 = vadd.f32 0.99, %v525_v20  ;;  %2734 = vmatpush.msra.mxu1 %v5059_v3  ;;  %v5522_v9 = vsel %vm520_vm1, %v536_v23, %v512_v38  ;;  %v395_v30 = vmul.f32 %v5432_v15, %v379_v59 }
  0xc0   :  { %v486_v5 = vadd.f32 %v478_v32, %v398_v12  ;;  %vm497_vm15 = vcmp.lt.f32.partialorder %v489_v48, 0.0  ;;  %v505_v37 = vmul.f32 0.01, %v489_v48  ;;  %v609_v46 = vrot.slane %v5522_v9, 1 }
  0xc1   :  { %v309_v50 = vpop.f32.mrf.mxu3  ;;  %v541_v43 = vsel %vm517_vm14, %v533_v19, %v509_v53  ;;  %2735 = vmatpush.msra.mxu1 %v5070_v6 }
  0xc2   :  { %v386_v36 = vadd.f32 %v309_v50, %v5131_v41  ;;  %591 = vrot.lane.b32.xlu0 %v541_v43, %s5013_s2  ;;  %v606_v3 = vrot.slane %v541_v43, 1  ;;  %567 = vmatmul.f32.gmra.mxu1 %v541_v43  ;;  %vm494_vm2 = vcmp.lt.f32.partialorder %v486_v5, 0.0  ;;  %v502_v54 = vmul.f32 0.01, %v486_v5 }
  0xc3   :  { %v300_v56 = vpop.f32.mrf.mxu0  ;;  %v513_v13 = vsel %vm497_vm15, %v505_v37, %v489_v48  ;;  %2736 = vmatpush.msra.mxu1 %v5084_v11 }
  0xc4   :  { %v402_v6 = vadd.f32 %v394_v40, %v386_v36  ;;  %v383_v41 = vadd.f32 %v300_v56, %v5074_v8  ;;  %v529_v10 = vmul.f32 0.01, %v513_v13  ;;  %v510_v57 = vsel %vm494_vm2, %v502_v54, %v486_v5  ;;  %v7793_v5 = vld [vmem:[#allocation12_spill] sm:$0xff] }
  0xc5   :  { %v5530_v14 = vsel %vm339_vm0, %v605_v24, %v606_v3  ;;  %2737 = vmatpush.msra.mxu1 %v5098_v18  ;;  %v526_v8 = vmul.f32 0.01, %v510_v57  ;;  %vm521_vm3 = vcmp.gt.f32.partialorder %v513_v13, 1.0  ;;  %v483_v18 = vmul.f32 %v5536_v34, %v475_v35  ;;  %v7799_v35 = vld [vmem:[#allocation18_spill] sm:$0xff] }
  0xc6   :  { %v490_v11 = vadd.f32 %v482_v22, %v402_v6  ;;  %v399_v63 = vadd.f32 %v391_v4, %v383_v41  ;;  %v537_v62 = vadd.f32 0.99, %v529_v10  ;;  %vm518_vm5 = vcmp.gt.f32.partialorder %v510_v57, 1.0  ;;  %v7796_v4 = vld [vmem:[#allocation15_spill] sm:$0xff]  ;;  %v7798_v10 = vld [vmem:[#allocation17_spill] sm:$0xff] }
  0xc7   :  { %2738 = vmatpush.msra.mxu1 %v5108_v25  ;;  %v534_v55 = vadd.f32 0.99, %v526_v8 }
  0xc8   :  { %v487_v0 = vadd.f32 %v479_v52, %v399_v63  ;;  %vm498_vm4 = vcmp.lt.f32.partialorder %v490_v11, 0.0  ;;  %v506_v7 = vmul.f32 0.01, %v490_v11  ;;  %v545_v44 = vsel %vm521_vm3, %v537_v62, %v513_v13  ;;  %v7797_v13 = vld [vmem:[#allocation16_spill] sm:$0xff] }
  0xc9   :  { %v312_v21 = vpop.f32.mrf.mxu3  ;;  %2739 = vmatpush.msra.mxu1 %v5114_v31  ;;  %v542_v25 = vsel %vm518_vm5, %v534_v55, %v510_v57  ;;  %v610_v33 = vrot.slane %v545_v44, 1  ;;  %v621_v57 = vmul.f32 %v5530_v14, %v7799_v35 }
  0xca   :  { %v387_v38 = vadd.f32 %v312_v21, %v5096_v17  ;;  %597 = vrot.lane.b32.xlu0 %v5522_v9, %s5013_s2  ;;  %vm495_vm6 = vcmp.lt.f32.partialorder %v487_v0, 0.0  ;;  %593 = vrot.lane.b32.xlu1 %v542_v25, %s5013_s2  ;;  %v607_v49 = vrot.slane %v542_v25, 1  ;;  %v503_v53 = vmul.f32 0.01, %v487_v0 }
  0xcb   :  { %570 = vmatmul.f32.gmra.mxu1 %v542_v25  ;;  %v514_v59 = vsel %vm498_vm4, %v506_v7, %v490_v11  ;;  %v5547_v31 = vsel %vm339_vm0, %v609_v46, %v610_v33 }
  0xcc   :  { %v403_v29 = vadd.f32 %v395_v30, %v387_v38  ;;  %v530_v20 = vmul.f32 0.01, %v514_v59  ;;  %2740 = vmatpush.msra.mxu1 %v5129_v39  ;;  %v511_v17 = vsel %vm495_vm6, %v503_v53, %v487_v0  ;;  %vm522_vm7 = vcmp.gt.f32.partialorder %v514_v59, 1.0 }
  0xcd   :  { %v618_v61 = vsel %vm339_vm0, %v606_v3, %v607_v49  ;;  %v527_v12 = vmul.f32 0.01, %v511_v17  ;;  %vm519_vm9 = vcmp.gt.f32.partialorder %v511_v17, 1.0  ;;  %v7795_v3 = vld [vmem:[#allocation14_spill] sm:$0xff] }
  0xce   :  { %v491_v48 = vadd.f32 %v483_v18, %v403_v29  ;;  %v538_v32 = vadd.f32 0.99, %v530_v20  ;;  %2741 = vmatpush.msra.mxu1 %v5140_v45 }
  0xcf   :  { %v535_v40 = vadd.f32 0.99, %v527_v12 }
  0xd0   :  { %vm499_vm8 = vcmp.lt.f32.partialorder %v491_v48, 0.0  ;;  %v507_v1 = vmul.f32 0.01, %v491_v48  ;;  %v546_v19 = vsel %vm522_vm7, %v538_v32, %v514_v59  ;;  %2742 = vmatpush.msra.mxu1 %v7793_v5 }
  0xd1   :  { %v611_v23 = vrot.slane %v546_v19, 1  ;;  %v543_v37 = vsel %vm519_vm9, %v535_v40, %v511_v17 }
  0xd2   :  { %v515_v39 = vsel %vm499_vm8, %v507_v1, %v491_v48  ;;  %2743 = vmatpush.msra.mxu1 %v7794_v47  ;;  %599 = vrot.lane.b32.xlu1 %v545_v44, %s5013_s2  ;;  %v608_v50 = vrot.slane %v543_v37, 1 }
  0xd3   :  { %595 = vrot.lane.b32.xlu2 %v543_v37, %s5013_s2  ;;  %v531_v43 = vmul.f32 0.01, %v515_v39  ;;  %v5559_v45 = vsel %vm339_vm0, %v610_v33, %v611_v23  ;;  %573 = vmatmul.f32.gmra.mxu1 %v543_v37  ;;  %vm523_vm10 = vcmp.gt.f32.partialorder %v515_v39, 1.0 }
  0xd4   :  { %v616_v36 = vsel %vm339_vm0, %v608_v50, %v609_v46  ;;  %v617_v22 = vsel %vm339_vm0, %v607_v49, %v608_v50  ;;  %2744 = vmatpush.msra.mxu1 %v7795_v3  ;;  %v622_v46 = vmul.f32 %v618_v61, %v5384_v27  ;;  %v5598_v49 = vld [vmem:[#allocation2] sm:$0xff] }
  0xd5   :  { %v539_v2 = vadd.f32 0.99, %v531_v43  ;;  %v624_v55 = vmul.f32 %v616_v36, %v5389_v28  ;;  %v623_v12 = vmul.f32 %v617_v22, %v5364_v58 }
  0xd6   :  { %2745 = vmatpush.msra.mxu1 %v7796_v4 }
  0xd7   :  { %v547_v56 = vsel %vm523_vm10, %v539_v2, %v515_v39  ;;  %v7800_v39 = vld [vmem:[#allocation19_spill] sm:$0xff] }
  0xd8   :  { %v612_v54 = vrot.slane %v547_v56, 1  ;;  %603 = vrot.lane.b32.xlu0 %v547_v56, %s5013_s2  ;;  %2746 = vmatpush.msra.mxu1 %v7797_v13  ;;  %v625_v47 = vmul.f32 %v5547_v31, %v7800_v39 }
  0xda   :  { %v5571_v6 = vsel %vm339_vm0, %v611_v23, %v612_v54  ;;  %v5577_v41 = vsel %vm339_vm0, %v612_v54, %v605_v24  ;;  %2747 = vmatpush.msra.mxu1 %v7798_v10  ;;  %v5615_v10 = vld [vmem:[#allocation2 + $0x8] sm:$0xff] }
  0xdb   :  { %601 = vrot.lane.b32.xlu2 %v546_v19, %s5013_s2  ;;  %576 = vmatmul.f32.gmra.mxu1 %v5522_v9 }
  0xe3   :  { %579 = vmatmul.f32.gmra.mxu1 %v545_v44 }
  0xeb   :  { %582 = vmatmul.f32.gmra.mxu1 %v546_v19 }
  0xf3   :  { %585 = vmatmul.f32.gmra.mxu1 %v547_v56 }
 0x114   :  { %v5582_v52 = vpop.permute.xlu2 %589 }
 0x115   :  { %v677_v60 = vadd.f32 %v621_v57, %v5582_v52  ;;  %v629_v0 = vrot.slane %v5582_v52, 1 }
 0x117   :  { %v4574_v11 = vadd.f32 -1.0, %v677_v60 }
 0x119   :  { %v701_v63 = vmul.f32 0.01, %v4574_v11  ;;  %vm693_vm11 = vcmp.lt.f32.partialorder %v4574_v11, 0.0 }
 0x11b   :  { %v709_v24 = vsel %vm693_vm11, %v701_v63, %v4574_v11 }
 0x11c   :  { %v725_v8 = vmul.f32 0.01, %v709_v24  ;;  %vm717_vm13 = vcmp.gt.f32.partialorder %v709_v24, 1.0 }
 0x11e   :  { %v733_v30 = vadd.f32 0.99, %v725_v8 }
 0x120   :  { %v741_v17 = vsel %vm717_vm13, %v733_v30, %v709_v24 }
 0x121   :  { %v749_v1 = vmul.f32 %v5536_v34, %v741_v17 }
 0x12d   :  { %v5588_v62 = vpop.permute.xlu2 %595 }
 0x12e   :  { %v680_v14 = vadd.f32 %v624_v55, %v5588_v62  ;;  %v632_v23 = vrot.slane %v5588_v62, 1 }
 0x130   :  { %v4577_v29 = vadd.f32 -1.0, %v680_v14 }
 0x132   :  { %v704_v37 = vmul.f32 0.01, %v4577_v29  ;;  %vm696_vm14 = vcmp.lt.f32.partialorder %v4577_v29, 0.0 }
 0x134   :  { %v592_v9 = vpop.permute.xlu0 %591  ;;  %v712_v13 = vsel %vm696_vm14, %v704_v37, %v4577_v29 }
 0x135   :  { %v630_v7 = vrot.slane %v592_v9, 1  ;;  %v678_v21 = vadd.f32 %v622_v46, %v592_v9  ;;  %vm720_vm7 = vcmp.gt.f32.partialorder %v712_v13, 1.0 }
 0x137   :  { %v643_v18 = vsel %vm339_vm0, %v629_v0, %v630_v7  ;;  %v4575_v44 = vadd.f32 -1.0, %v678_v21  ;;  %v565_v38 = vpop.f32.mrf.mxu1 }
 0x138   :  { %v645_v25 = vmul.f32 %v643_v18, %v7799_v35  ;;  %v653_v53 = vadd.f32 %v5598_v49, %v565_v38  ;;  %v728_v18 = vmul.f32 0.01, %v712_v13 }
 0x139   :  { %vm694_vm12 = vcmp.lt.f32.partialorder %v4575_v44, 0.0  ;;  %v702_v33 = vmul.f32 0.01, %v4575_v44 }
 0x13a   :  { %v661_v59 = vmul.f32 %v5432_v15, %v645_v25 }
 0x13b   :  { %v710_v20 = vsel %vm694_vm12, %v702_v33, %v4575_v44  ;;  %v626_v44 = vmul.f32 %v5559_v45, %v5394_v42  ;;  %v5628_v33 = vld [vmem:[#allocation2 + $0x10] sm:$0xff]  ;;  %v736_v45 = vadd.f32 0.99, %v728_v18 }
 0x13c   :  { %v726_v61 = vmul.f32 0.01, %v710_v20  ;;  %v669_v48 = vadd.f32 %v661_v59, %v653_v53  ;;  %v594_v32 = vpop.permute.xlu1 %593  ;;  %v5607_v50 = vpop.permute.xlu0 %597  ;;  %vm718_vm15 = vcmp.gt.f32.partialorder %v710_v20, 1.0 }
 0x13d   :  { %v631_v19 = vrot.slane %v594_v32, 1  ;;  %v679_v5 = vadd.f32 %v623_v12, %v594_v32  ;;  %v681_v4 = vadd.f32 %v625_v47, %v5607_v50  ;;  %v633_v11 = vrot.slane %v5607_v50, 1 }
 0x13e   :  { %v734_v40 = vadd.f32 0.99, %v726_v61  ;;  %v757_v2 = vadd.f32 %v749_v1, %v669_v48  ;;  %v627_v32 = vmul.f32 %v5571_v6, %v5436_v16 }
 0x13f   :  { %v568_v43 = vpop.f32.mrf.mxu1  ;;  %v642_v36 = vsel %vm339_vm0, %v630_v7, %v631_v19  ;;  %v4576_v22 = vadd.f32 -1.0, %v679_v5  ;;  %v641_v3 = vsel %vm339_vm0, %v631_v19, %v632_v23  ;;  %v4578_v55 = vadd.f32 -1.0, %v681_v4  ;;  %v5636_v19 = vpop.permute.xlu2 %601 }
 0x140   :  { %v646_v56 = vmul.f32 %v642_v36, %v5384_v27  ;;  %v742_v31 = vsel %vm718_vm15, %v734_v40, %v710_v20  ;;  %v654_v57 = vadd.f32 %v5615_v10, %v568_v43  ;;  %v647_v63 = vmul.f32 %v641_v3, %v5364_v58 }
 0x141   :  { %vm695_vm1 = vcmp.lt.f32.partialorder %v4576_v22, 0.0  ;;  %v703_v54 = vmul.f32 0.01, %v4576_v22  ;;  %vm765_vm2 = vcmp.lt.f32.partialorder %v757_v2, 0.0  ;;  %v750_v62 = vmul.f32 %v5536_v34, %v742_v31 }
 0x142   :  { %v662_v60 = vmul.f32 %v5432_v15, %v646_v56  ;;  %v773_v9 = vmul.f32 0.01, %v757_v2  ;;  %v640_v25 = vsel %vm339_vm0, %v632_v23, %v633_v11  ;;  %v663_v59 = vmul.f32 %v5432_v15, %v647_v63  ;;  %v5646_v56 = vld [vmem:[#allocation5 + $0x78] sm:$0xff] }
 0x143   :  { %v711_v24 = vsel %vm695_vm1, %v703_v54, %v4576_v22  ;;  %v705_v20 = vmul.f32 0.01, %v4578_v55  ;;  %vm697_vm4 = vcmp.lt.f32.partialorder %v4578_v55, 0.0  ;;  %v648_v5 = vmul.f32 %v640_v25, %v5389_v28 }
 0x144   :  { %v727_v8 = vmul.f32 0.01, %v711_v24  ;;  %v670_v46 = vadd.f32 %v662_v60, %v654_v57  ;;  %v5622_v30 = vpop.permute.xlu1 %599  ;;  %v781_v14 = vsel %vm765_vm2, %v773_v9, %v757_v2  ;;  %vm719_vm3 = vcmp.gt.f32.partialorder %v711_v24, 1.0 }
 0x145   :  { %v682_v17 = vadd.f32 %v626_v44, %v5622_v30  ;;  %v797_v48 = vmul.f32 0.01, %v781_v14  ;;  %v634_v23 = vrot.slane %v5622_v30, 1  ;;  %vm789_vm6 = vcmp.gt.f32.partialorder %v781_v14, 1.0 }
 0x146   :  { %v735_v7 = vadd.f32 0.99, %v727_v8  ;;  %v758_v21 = vadd.f32 %v750_v62, %v670_v46  ;;  %v713_v47 = vsel %vm697_vm4, %v705_v20, %v4578_v55  ;;  %v683_v36 = vadd.f32 %v627_v32, %v5636_v19  ;;  %v5657_v46 = vld [vmem:[#allocation5 + $0x70] sm:$0xff]  ;;  %v5681_v32 = vld [vmem:[#allocation5 + $0x58] sm:$0xff] }
 0x147   :  { %v805_v40 = vadd.f32 0.99, %v797_v48  ;;  %v4579_v50 = vadd.f32 -1.0, %v682_v17  ;;  %v744_v22 = vsel %vm720_vm7, %v736_v45, %v712_v13  ;;  %v729_v4 = vmul.f32 0.01, %v713_v47  ;;  %v5675_v17 = vld [vmem:[#allocation5 + $0x60] sm:$0xff] }
 0x148   :  { %v571_v38 = vpop.f32.mrf.mxu1  ;;  %v743_v29 = vsel %vm719_vm3, %v735_v7, %v711_v24  ;;  %vm766_vm5 = vcmp.lt.f32.partialorder %v758_v21, 0.0  ;;  %v774_v1 = vmul.f32 0.01, %v758_v21  ;;  %v639_v54 = vsel %vm339_vm0, %v633_v11, %v634_v23  ;;  %v5654_v24 = vld [vmem:[#allocation2 + $0x18] sm:$0xff] }
 0x149   :  { %v655_v53 = vadd.f32 %v5628_v33, %v571_v38  ;;  %v751_v61 = vmul.f32 %v5536_v34, %v743_v29  ;;  %v5640_v43 = vsel %vm789_vm6, %v805_v40, %v781_v14  ;;  %v664_v57 = vmul.f32 %v5432_v15, %v648_v5  ;;  %v5663_v14 = vld [vmem:[#allocation5 + $0x68] sm:$0xff] }
 0x14a   :  { %v782_v2 = vsel %vm766_vm5, %v774_v1, %v758_v21  ;;  %837 = vmatmul.f32.vlgmr.msra.gmra.mxu2 %v5640_v43  ;;  %862 = vrot.lane.b32.xlu1 %v5640_v43, %s5013_s2  ;;  %v706_v63 = vmul.f32 0.01, %v4579_v50  ;;  %vm698_vm10 = vcmp.lt.f32.partialorder %v4579_v50, 0.0  ;;  %v752_v62 = vmul.f32 %v5536_v34, %v744_v22  ;;  %v5690_v22 = vld [vmem:[#allocation5 + $0x50] sm:$0xff] }
 0x14b   :  { %v671_v12 = vadd.f32 %v663_v59, %v655_v53  ;;  %v798_v6 = vmul.f32 0.01, %v782_v2  ;;  %3005 = vmatpush.msra.mxu2 %v5646_v56  ;;  %vm790_vm9 = vcmp.gt.f32.partialorder %v782_v2, 1.0  ;;  %v878_v11 = vrot.slane %v5640_v43, 1  ;;  %v5667_v53 = vpop.permute.xlu0 %603 }
 0x14c   :  { %v4580_v18 = vadd.f32 -1.0, %v683_v36  ;;  %v737_v44 = vadd.f32 0.99, %v729_v4  ;;  %v649_v38 = vmul.f32 %v639_v54, %v7800_v39  ;;  %v714_v25 = vsel %vm698_vm10, %v706_v63, %v4579_v50 }
 0x14d   :  { %v759_v37 = vadd.f32 %v751_v61, %v671_v12  ;;  %v806_v60 = vadd.f32 0.99, %v798_v6  ;;  %3006 = vmatpush.msra.mxu2 %v5657_v46  ;;  %v635_v61 = vrot.slane %v5636_v19, 1  ;;  %v628_v48 = vmul.f32 %v5577_v41, %v5411_v51  ;;  %v5686_v41 = vld [vmem:[#allocation2 + $0x20] sm:$0xff] }
 0x14e   :  { %vm721_vm12 = vcmp.gt.f32.partialorder %v713_v47, 1.0  ;;  %v730_v40 = vmul.f32 0.01, %v714_v25  ;;  %v707_v50 = vmul.f32 0.01, %v4580_v18  ;;  %v665_v6 = vmul.f32 %v5432_v15, %v649_v38 }
 0x14f   :  { %vm767_vm8 = vcmp.lt.f32.partialorder %v759_v37, 0.0  ;;  %v775_v3 = vmul.f32 0.01, %v759_v37  ;;  %v814_v9 = vsel %vm790_vm9, %v806_v60, %v782_v2  ;;  %3007 = vmatpush.msra.mxu2 %v5663_v14  ;;  %v684_v1 = vadd.f32 %v628_v48, %v5667_v53  ;;  %v5714_v48 = vld [vmem:[#allocation2 + $0x28] sm:$0xff] }
 0x150   :  { %v574_v31 = vpop.f32.mrf.mxu1  ;;  %v879_v7 = vrot.slane %v814_v9, 1  ;;  %864 = vrot.lane.b32.xlu2 %v814_v9, %s5013_s2  ;;  %vm699_vm14 = vcmp.lt.f32.partialorder %v4580_v18, 0.0  ;;  %v738_v60 = vadd.f32 0.99, %v730_v40  ;;  %vm722_vm1 = vcmp.gt.f32.partialorder %v714_v25, 1.0 }
 0x151   :  { %v656_v13 = vadd.f32 %v5654_v24, %v574_v31  ;;  %v783_v8 = vsel %vm767_vm8, %v775_v3, %v759_v37  ;;  %3008 = vmatpush.msra.mxu2 %v5675_v17  ;;  %v745_v37 = vsel %vm721_vm12, %v737_v44, %v713_v47  ;;  %v638_v3 = vsel %vm339_vm0, %v634_v23, %v635_v61  ;;  %v5706_v23 = vld [vmem:[#allocation5 + $0x40] sm:$0xff]  ;;  %v5711_v44 = vld [vmem:[#allocation5 + $0x38] sm:$0xff] }
 0x152   :  { %v799_v21 = vmul.f32 0.01, %v783_v8  ;;  %v5673_v20 = vsel %vm339_vm0, %v878_v11, %v879_v7  ;;  %840 = vmatmul.f32.gmra.mxu2 %v814_v9  ;;  %vm791_vm11 = vcmp.gt.f32.partialorder %v783_v8, 1.0  ;;  %v753_v31 = vmul.f32 %v5536_v34, %v745_v37 }
 0x153   :  { %v672_v55 = vadd.f32 %v664_v57, %v656_v13  ;;  %3009 = vmatpush.msra.mxu2 %v5681_v32  ;;  %v5702_v57 = vld [vmem:[#allocation5 + $0x48] sm:$0xff]  ;;  %v4581_v63 = vadd.f32 -1.0, %v684_v1  ;;  %v650_v30 = vmul.f32 %v638_v3, %v5394_v42  ;;  %v636_v9 = vrot.slane %v5667_v53, 1  ;;  %v5722_v1 = vld [vmem:[#allocation5 + $0x30] sm:$0xff] }
 0x154   :  { %v807_v29 = vadd.f32 0.99, %v799_v21 }
 0x155   :  { %v760_v59 = vadd.f32 %v752_v62, %v672_v55  ;;  %3010 = vmatpush.msra.mxu2 %v5690_v22  ;;  %v708_v38 = vmul.f32 0.01, %v4581_v63  ;;  %vm700_vm3 = vcmp.lt.f32.partialorder %v4581_v63, 0.0 }
 0x156   :  { %v815_v12 = vsel %vm791_vm11, %v807_v29, %v783_v8  ;;  %v715_v8 = vsel %vm699_vm14, %v707_v50, %v4580_v18  ;;  %v746_v29 = vsel %vm722_vm1, %v738_v60, %v714_v25 }
 0x157   :  { %vm768_vm13 = vcmp.lt.f32.partialorder %v760_v59, 0.0  ;;  %v776_v45 = vmul.f32 0.01, %v760_v59  ;;  %866 = vrot.lane.b32.xlu0 %v815_v12, %s5013_s2  ;;  %v880_v5 = vrot.slane %v815_v12, 1  ;;  %3011 = vmatpush.msra.mxu2 %v5702_v57  ;;  %v731_v18 = vmul.f32 0.01, %v715_v8 }
 0x158   :  { %v577_v19 = vpop.f32.mrf.mxu1  ;;  %v754_v50 = vmul.f32 %v5536_v34, %v746_v29  ;;  %vm723_vm5 = vcmp.gt.f32.partialorder %v715_v8, 1.0  ;;  %v5747_v29 = vld [vmem:[#allocation5 + $0x10] sm:$0xff] }
 0x159   :  { %v657_v2 = vadd.f32 %v5686_v41, %v577_v19  ;;  %v784_v36 = vsel %vm768_vm13, %v776_v45, %v760_v59  ;;  %v5699_v47 = vsel %vm339_vm0, %v879_v7, %v880_v5  ;;  %3012 = vmatpush.msra.mxu2 %v5706_v23  ;;  %v637_v19 = vsel %vm339_vm0, %v635_v61, %v636_v9 }
 0x15a   :  { %v800_v4 = vmul.f32 0.01, %v784_v36  ;;  %vm792_vm15 = vcmp.gt.f32.partialorder %v784_v36, 1.0  ;;  %843 = vmatmul.f32.gmra.mxu2 %v815_v12  ;;  %v666_v12 = vmul.f32 %v5432_v15, %v650_v30 }
 0x15b   :  { %v673_v54 = vadd.f32 %v665_v6, %v657_v2  ;;  %3013 = vmatpush.msra.mxu2 %v5711_v44  ;;  %v5728_v2 = vld [vmem:[#allocation5 + $0x28] sm:$0xff]  ;;  %v739_v6 = vadd.f32 0.99, %v731_v18 }
 0x15c   :  { %v808_v13 = vadd.f32 0.99, %v800_v4  ;;  %v651_v4 = vmul.f32 %v637_v19, %v5436_v16  ;;  %v5755_v19 = vld [vmem:[#allocation5 + $0x8] sm:$0xff] }
 0x15d   :  { %v761_v62 = vadd.f32 %v753_v31, %v673_v54  ;;  %3014 = vmatpush.msra.mxu2 %v5722_v1  ;;  %v5732_v54 = vld [vmem:[#allocation5 + $0x20] sm:$0xff] }
 0x15e   :  { %v816_v55 = vsel %vm792_vm15, %v808_v13, %v784_v36  ;;  %v5736_v13 = vld [vmem:[#allocation5 + $0x18] sm:$0xff] }
 0x15f   :  { %868 = vrot.lane.b32.xlu1 %v816_v55, %s5013_s2  ;;  %v881_v7 = vrot.slane %v816_v55, 1  ;;  %vm769_vm2 = vcmp.lt.f32.partialorder %v761_v62, 0.0  ;;  %v777_v21 = vmul.f32 0.01, %v761_v62  ;;  %3015 = vmatpush.msra.mxu2 %v5728_v2 }
 0x160   :  { %v580_v59 = vpop.f32.mrf.mxu1 }
 0x161   :  { %v658_v53 = vadd.f32 %v5714_v48, %v580_v59  ;;  %v785_v45 = vsel %vm769_vm2, %v777_v21, %v761_v62  ;;  %v5720_v40 = vsel %vm339_vm0, %v880_v5, %v881_v7  ;;  %v716_v5 = vsel %vm700_vm3, %v708_v38, %v4581_v63  ;;  %3016 = vmatpush.msra.mxu2 %v5732_v54  ;;  %v5739_v21 = vld [vmem:[#allocation2 + $0x30] sm:$0xff] }
 0x162   :  { %v801_v25 = vmul.f32 0.01, %v785_v45  ;;  %vm793_vm4 = vcmp.gt.f32.partialorder %v785_v45, 1.0  ;;  %846 = vmatmul.f32.gmra.mxu2 %v816_v55  ;;  %v732_v63 = vmul.f32 0.01, %v716_v5  ;;  %v747_v62 = vsel %vm723_vm5, %v739_v6, %v715_v8  ;;  %v5759_v6 = vld [vmem:[#allocation5] sm:$0xff] }
 0x163   :  { %v674_v37 = vadd.f32 %v666_v12, %v658_v53  ;;  %3017 = vmatpush.msra.mxu2 %v5736_v13  ;;  %v667_v55 = vmul.f32 %v5432_v15, %v651_v4  ;;  %v644_v8 = vsel %vm339_vm0, %v636_v9, %v629_v0  ;;  %vm724_vm8 = vcmp.gt.f32.partialorder %v716_v5, 1.0  ;;  %v5763_v4 = vld [vmem:[#allocation2 + $0x38] sm:$0xff] }
 0x164   :  { %v809_v36 = vadd.f32 0.99, %v801_v25  ;;  %v740_v25 = vadd.f32 0.99, %v732_v63 }
 0x165   :  { %v762_v3 = vadd.f32 %v754_v50, %v674_v37  ;;  %3018 = vmatpush.msra.mxu2 %v5747_v29  ;;  %v652_v50 = vmul.f32 %v644_v8, %v5411_v51 }
 0x166   :  { %v817_v61 = vsel %vm793_vm4, %v809_v36, %v785_v45  ;;  %v755_v45 = vmul.f32 %v5536_v34, %v747_v62 }
 0x167   :  { %870 = vrot.lane.b32.xlu2 %v817_v61, %s5013_s2  ;;  %v882_v31 = vrot.slane %v817_v61, 1  ;;  %vm770_vm6 = vcmp.lt.f32.partialorder %v762_v3, 0.0  ;;  %v778_v60 = vmul.f32 0.01, %v762_v3  ;;  %3019 = vmatpush.msra.mxu2 %v5755_v19  ;;  %v668_v63 = vmul.f32 %v5432_v15, %v652_v50 }
 0x168   :  { %v583_v30 = vpop.f32.mrf.mxu1 }
 0x169   :  { %v659_v18 = vadd.f32 %v5739_v21, %v583_v30  ;;  %v786_v38 = vsel %vm770_vm6, %v778_v60, %v762_v3  ;;  %v5745_v59 = vsel %vm339_vm0, %v881_v7, %v882_v31  ;;  %3020 = vmatpush.msra.mxu2 %v5759_v6  ;;  %v748_v3 = vsel %vm724_vm8, %v740_v25, %v716_v5 }
 0x16a   :  { %v802_v53 = vmul.f32 0.01, %v786_v38  ;;  %vm794_vm7 = vcmp.gt.f32.partialorder %v786_v38, 1.0  ;;  %849 = vmatmul.f32.gmra.mxu2 %v817_v61 }
 0x16b   :  { %v675_v12 = vadd.f32 %v667_v55, %v659_v18  ;;  %v756_v55 = vmul.f32 %v5536_v34, %v748_v3 }
 0x16c   :  { %v810_v7 = vadd.f32 0.99, %v802_v53 }
 0x16d   :  { %v763_v37 = vadd.f32 %v755_v45, %v675_v12 }
 0x16e   :  { %v818_v52 = vsel %vm794_vm7, %v810_v7, %v786_v38 }
 0x16f   :  { %872 = vrot.lane.b32.xlu0 %v818_v52, %s5013_s2  ;;  %v883_v0 = vrot.slane %v818_v52, 1  ;;  %vm771_vm9 = vcmp.lt.f32.partialorder %v763_v37, 0.0  ;;  %v779_v9 = vmul.f32 0.01, %v763_v37 }
 0x170   :  { %v586_v36 = vpop.f32.mrf.mxu1 }
 0x171   :  { %v660_v60 = vadd.f32 %v5763_v4, %v586_v36  ;;  %v787_v30 = vsel %vm771_vm9, %v779_v9, %v763_v37  ;;  %v5769_v62 = vsel %vm339_vm0, %v882_v31, %v883_v0  ;;  %v894_v9 = vmul.f32 %v5673_v20, %v7799_v35 }
 0x172   :  { %v803_v61 = vmul.f32 0.01, %v787_v30  ;;  %vm795_vm10 = vcmp.gt.f32.partialorder %v787_v30, 1.0  ;;  %852 = vmatmul.f32.gmra.mxu2 %v818_v52  ;;  %v895_v36 = vmul.f32 %v5699_v47, %v5384_v27  ;;  %v896_v20 = vmul.f32 %v5720_v40, %v5364_v58 }
 0x173   :  { %v676_v18 = vadd.f32 %v668_v63, %v660_v60 }
 0x174   :  { %v811_v38 = vadd.f32 0.99, %v803_v61 }
 0x175   :  { %v764_v8 = vadd.f32 %v756_v55, %v676_v18 }
 0x176   :  { %v819_v5 = vsel %vm795_vm10, %v811_v38, %v787_v30 }
 0x177   :  { %874 = vrot.lane.b32.xlu1 %v819_v5, %s5013_s2  ;;  %v884_v53 = vrot.slane %v819_v5, 1  ;;  %vm772_vm11 = vcmp.lt.f32.partialorder %v764_v8, 0.0  ;;  %v780_v12 = vmul.f32 0.01, %v764_v8 }
 0x179   :  { %v788_v15 = vsel %vm772_vm11, %v780_v12, %v764_v8  ;;  %v5775_v45 = vsel %vm339_vm0, %v883_v0, %v884_v53 }
 0x17a   :  { %v804_v31 = vmul.f32 0.01, %v788_v15  ;;  %vm796_vm12 = vcmp.gt.f32.partialorder %v788_v15, 1.0  ;;  %855 = vmatmul.f32.gmra.mxu2 %v819_v5 }
 0x17c   :  { %v812_v25 = vadd.f32 0.99, %v804_v31 }
 0x17e   :  { %v820_v7 = vsel %vm796_vm12, %v812_v25, %v788_v15 }
 0x17f   :  { %876 = vrot.lane.b32.xlu2 %v820_v7, %s5013_s2  ;;  %v885_v37 = vrot.slane %v820_v7, 1 }
 0x181   :  { %v5782_v50 = vsel %vm339_vm0, %v885_v37, %v878_v11  ;;  %v5786_v52 = vsel %vm339_vm0, %v884_v53, %v885_v37 }
 0x182   :  { %858 = vmatmul.f32.gmra.mxu2 %v820_v7 }
 0x1aa   :  { %v865_v0 = vpop.permute.xlu2 %864 }
 0x1ab   :  { %v951_v60 = vadd.f32 %v895_v36, %v865_v0  ;;  %v903_v55 = vrot.slane %v865_v0, 1  ;;  %v897_v36 = vmul.f32 %v5745_v59, %v5389_v28 }
 0x1ad   :  { %v4583_v30 = vadd.f32 -1.0, %v951_v60 }
 0x1af   :  { %v975_v8 = vmul.f32 0.01, %v4583_v30  ;;  %vm967_vm14 = vcmp.lt.f32.partialorder %v4583_v30, 0.0 }
 0x1b1   :  { %v983_v15 = vsel %vm967_vm14, %v975_v8, %v4583_v30 }
 0x1b2   :  { %v999_v37 = vmul.f32 0.01, %v983_v15  ;;  %vm991_vm2 = vcmp.gt.f32.partialorder %v983_v15, 1.0 }
 0x1bc   :  { %v5792_v3 = vpop.permute.xlu1 %862 }
 0x1bd   :  { %v950_v43 = vadd.f32 %v894_v9, %v5792_v3  ;;  %v7779_v61 = vrot.slane %v5792_v3, 1 }
 0x1bf   :  { %v4582_v63 = vadd.f32 -1.0, %v950_v43  ;;  %v916_v47 = vsel %vm339_vm0, %v7779_v61, %v903_v55 }
 0x1c0   :  { %v918_v31 = vmul.f32 %v916_v47, %v7799_v35 }
 0x1c1   :  { %vm966_vm13 = vcmp.lt.f32.partialorder %v4582_v63, 0.0  ;;  %v974_v11 = vmul.f32 0.01, %v4582_v63 }
 0x1c3   :  { %v982_v18 = vsel %vm966_vm13, %v974_v11, %v4582_v63  ;;  %v5806_v63 = vld [vmem:[#allocation7] ss:$0 sm:$0xff] }
 0x1c4   :  { %v998_v38 = vmul.f32 0.01, %v982_v18  ;;  %vm990_vm15 = vcmp.gt.f32.partialorder %v982_v18, 1.0  ;;  %v934_v11 = vmul.f32 %v5806_v63, %v918_v31 }
 0x1c6   :  { %v1006_v12 = vadd.f32 0.99, %v998_v38 }
 0x1c8   :  { %v1014_v9 = vsel %vm990_vm15, %v1006_v12, %v982_v18  ;;  %v1007_v18 = vadd.f32 0.99, %v999_v37  ;;  %v898_v12 = vmul.f32 %v5769_v62, %v7800_v39 }
 0x1c9   :  { %v867_v5 = vpop.permute.xlu0 %866  ;;  %v1022_v8 = vmul.f32 %v5536_v34, %v1014_v9 }
 0x1ca   :  { %v952_v53 = vadd.f32 %v896_v20, %v867_v5  ;;  %v904_v7 = vrot.slane %v867_v5, 1  ;;  %v5812_v5 = vpop.permute.xlu2 %870  ;;  %v1015_v9 = vsel %vm991_vm2, %v1007_v18, %v983_v15 }
 0x1cb   :  { %v906_v18 = vrot.slane %v5812_v5, 1 }
 0x1cc   :  { %v4584_v25 = vadd.f32 -1.0, %v952_v53  ;;  %v915_v30 = vsel %vm339_vm0, %v903_v55, %v904_v7 }
 0x1cd   :  { %v838_v0 = vpop.f32.mrf.mxu2  ;;  %v919_v59 = vmul.f32 %v915_v30, %v5384_v27 }
 0x1ce   :  { %v976_v43 = vmul.f32 0.01, %v4584_v25  ;;  %v926_v60 = vadd.f32 %v5598_v49, %v838_v0  ;;  %vm968_vm1 = vcmp.lt.f32.partialorder %v4584_v25, 0.0  ;;  %v954_v0 = vadd.f32 %v898_v12, %v5812_v5 }
 0x1cf   :  { %v935_v30 = vmul.f32 %v5806_v63, %v919_v59  ;;  %v899_v59 = vmul.f32 %v5775_v45, %v5394_v42 }
 0x1d0   :  { %v942_v20 = vadd.f32 %v934_v11, %v926_v60  ;;  %v984_v47 = vsel %vm968_vm1, %v976_v43, %v4584_v25 }
 0x1d1   :  { %v869_v40 = vpop.permute.xlu1 %868  ;;  %vm992_vm5 = vcmp.gt.f32.partialorder %v984_v47, 1.0 }
 0x1d2   :  { %v953_v38 = vadd.f32 %v897_v36, %v869_v40  ;;  %v1030_v53 = vadd.f32 %v1022_v8, %v942_v20  ;;  %v905_v31 = vrot.slane %v869_v40, 1  ;;  %v1000_v36 = vmul.f32 0.01, %v984_v47 }
 0x1d3   :  { %v1023_v40 = vmul.f32 %v5536_v34, %v1015_v9 }
 0x1d4   :  { %v4585_v49 = vadd.f32 -1.0, %v953_v38  ;;  %vm1038_vm3 = vcmp.lt.f32.partialorder %v1030_v53, 0.0  ;;  %v1046_v55 = vmul.f32 0.01, %v1030_v53  ;;  %v914_v25 = vsel %vm339_vm0, %v904_v7, %v905_v31 }
 0x1d5   :  { %v841_v60 = vpop.f32.mrf.mxu2  ;;  %v4586_v38 = vadd.f32 -1.0, %v954_v0  ;;  %v1008_v20 = vadd.f32 0.99, %v1000_v36  ;;  %v920_v12 = vmul.f32 %v914_v25, %v5364_v58  ;;  %v913_v5 = vsel %vm339_vm0, %v905_v31, %v906_v18 }
 0x1d6   :  { %v977_v37 = vmul.f32 0.01, %v4585_v49  ;;  %v927_v11 = vadd.f32 %v5615_v10, %v841_v60  ;;  %vm969_vm4 = vcmp.lt.f32.partialorder %v4585_v49, 0.0  ;;  %v1054_v43 = vsel %vm1038_vm3, %v1046_v55, %v1030_v53 }
 0x1d7   :  { %v1070_v8 = vmul.f32 0.01, %v1054_v43  ;;  %vm1062_vm6 = vcmp.gt.f32.partialorder %v1054_v43, 1.0  ;;  %v978_v53 = vmul.f32 0.01, %v4586_v38  ;;  %v1016_v36 = vsel %vm992_vm5, %v1008_v20, %v984_v47 }
 0x1d8   :  { %v943_v62 = vadd.f32 %v935_v30, %v927_v11  ;;  %v985_v61 = vsel %vm969_vm4, %v977_v37, %v4585_v49  ;;  %vm970_vm8 = vcmp.lt.f32.partialorder %v4586_v38, 0.0  ;;  %v936_v49 = vmul.f32 %v5806_v63, %v920_v12 }
 0x1d9   :  { %v1078_v10 = vadd.f32 0.99, %v1070_v8  ;;  %v1001_v55 = vmul.f32 0.01, %v985_v61  ;;  %v1024_v30 = vmul.f32 %v5536_v34, %v1016_v36  ;;  %v921_v31 = vmul.f32 %v913_v5, %v5389_v28 }
 0x1da   :  { %v1031_v15 = vadd.f32 %v1023_v40, %v943_v62  ;;  %v900_v12 = vmul.f32 %v5786_v52, %v5436_v16  ;;  %vm993_vm10 = vcmp.gt.f32.partialorder %v985_v61, 1.0 }
 0x1db   :  { %v5827_v60 = vsel %vm1062_vm6, %v1078_v10, %v1054_v43  ;;  %v986_v43 = vsel %vm970_vm8, %v978_v53, %v4586_v38  ;;  %v1009_v62 = vadd.f32 0.99, %v1001_v55  ;;  %v937_v5 = vmul.f32 %v5806_v63, %v921_v31 }
 0x1dc   :  { %vm1039_vm7 = vcmp.lt.f32.partialorder %v1031_v15, 0.0  ;;  %v1047_v7 = vmul.f32 0.01, %v1031_v15  ;;  %1110 = vmatmul.f32.vlgmr.msrb.gmra.mxu3 %v5827_v60  ;;  %1135 = vrot.lane.b32.xlu0 %v5827_v60, %s5013_s2  ;;  %v1002_v10 = vmul.f32 0.01, %v986_v43  ;;  %vm994_vm13 = vcmp.gt.f32.partialorder %v986_v43, 1.0 }
 0x1dd   :  { %v844_v0 = vpop.f32.mrf.mxu2  ;;  %3278 = vmatpush.msrb.mxu3 %v5646_v56  ;;  %v1017_v55 = vsel %vm993_vm10, %v1009_v62, %v985_v61 }
 0x1de   :  { %v928_v45 = vadd.f32 %v5628_v33, %v844_v0  ;;  %v1055_v11 = vsel %vm1039_vm7, %v1047_v7, %v1031_v15 }
 0x1df   :  { %v1071_v25 = vmul.f32 0.01, %v1055_v11  ;;  %3279 = vmatpush.msrb.mxu3 %v5657_v46  ;;  %vm1063_vm9 = vcmp.gt.f32.partialorder %v1055_v11, 1.0 }
 0x1e0   :  { %v944_v47 = vadd.f32 %v936_v49, %v928_v45 }
 0x1e1   :  { %v5829_v9 = vpop.permute.xlu0 %872  ;;  %v1079_v8 = vadd.f32 0.99, %v1071_v25  ;;  %3280 = vmatpush.msrb.mxu3 %v5663_v14 }
 0x1e2   :  { %v955_v37 = vadd.f32 %v899_v59, %v5829_v9  ;;  %v1032_v40 = vadd.f32 %v1024_v30, %v944_v47  ;;  %v907_v33 = vrot.slane %v5829_v9, 1  ;;  %v1151_v59 = vrot.slane %v5827_v60, 1  ;;  %v5867_v47 = vpop.permute.xlu2 %876 }
 0x1e3   :  { %v1087_v15 = vsel %vm1063_vm9, %v1079_v8, %v1055_v11  ;;  %3281 = vmatpush.msrb.mxu3 %v5675_v17  ;;  %v1010_v11 = vadd.f32 0.99, %v1002_v10 }
 0x1e4   :  { %v4587_v20 = vadd.f32 -1.0, %v955_v37  ;;  %vm1040_vm11 = vcmp.lt.f32.partialorder %v1032_v40, 0.0  ;;  %v1048_v38 = vmul.f32 0.01, %v1032_v40  ;;  %v1152_v7 = vrot.slane %v1087_v15, 1  ;;  %1137 = vrot.lane.b32.xlu1 %v1087_v15, %s5013_s2  ;;  %1113 = vmatmul.f32.gmra.mxu3 %v1087_v15 }
 0x1e5   :  { %v847_v53 = vpop.f32.mrf.mxu2  ;;  %v912_v52 = vsel %vm339_vm0, %v906_v18, %v907_v33  ;;  %3282 = vmatpush.msrb.mxu3 %v5681_v32  ;;  %v1025_v37 = vmul.f32 %v5536_v34, %v1017_v55 }
 0x1e6   :  { %v979_v36 = vmul.f32 0.01, %v4587_v20  ;;  %v929_v9 = vadd.f32 %v5654_v24, %v847_v53  ;;  %vm971_vm12 = vcmp.lt.f32.partialorder %v4587_v20, 0.0  ;;  %v1056_v49 = vsel %vm1040_vm11, %v1048_v38, %v1032_v40 }
 0x1e7   :  { %v5862_v61 = vsel %vm339_vm0, %v1151_v59, %v1152_v7  ;;  %v1072_v24 = vmul.f32 0.01, %v1056_v49  ;;  %3283 = vmatpush.msrb.mxu3 %v5690_v22  ;;  %v922_v30 = vmul.f32 %v912_v52, %v7800_v39  ;;  %v901_v40 = vmul.f32 %v5782_v50, %v5411_v51 }
 0x1e8   :  { %v945_v18 = vadd.f32 %v937_v5, %v929_v9  ;;  %v987_v25 = vsel %vm971_vm12, %v979_v36, %v4587_v20  ;;  %vm1064_vm14 = vcmp.gt.f32.partialorder %v1056_v49, 1.0  ;;  %v1018_v20 = vsel %vm994_vm13, %v1010_v11, %v986_v43 }
 0x1e9   :  { %v5849_v0 = vpop.permute.xlu1 %874  ;;  %3284 = vmatpush.msrb.mxu3 %v5702_v57  ;;  %v957_v38 = vadd.f32 %v901_v40, %v5867_v47  ;;  %v1003_v10 = vmul.f32 0.01, %v987_v25  ;;  %v938_v36 = vmul.f32 %v5806_v63, %v922_v30  ;;  %vm995_vm3 = vcmp.gt.f32.partialorder %v987_v25, 1.0 }
 0x1ea   :  { %v956_v45 = vadd.f32 %v900_v12, %v5849_v0  ;;  %v1033_v31 = vadd.f32 %v1025_v37, %v945_v18  ;;  %v908_v8 = vrot.slane %v5849_v0, 1  ;;  %v1080_v12 = vadd.f32 0.99, %v1072_v24 }
 0x1eb   :  { %3285 = vmatpush.msrb.mxu3 %v5706_v23  ;;  %v4589_v18 = vadd.f32 -1.0, %v957_v38  ;;  %v1011_v37 = vadd.f32 0.99, %v1003_v10  ;;  %v909_v40 = vrot.slane %v5867_v47, 1 }
 0x1ec   :  { %v4588_v62 = vadd.f32 -1.0, %v956_v45  ;;  %vm1041_vm15 = vcmp.lt.f32.partialorder %v1033_v31, 0.0  ;;  %v1049_v15 = vmul.f32 0.01, %v1033_v31  ;;  %v1088_v53 = vsel %vm1064_vm14, %v1080_v12, %v1056_v49 }
 0x1ed   :  { %v850_v55 = vpop.f32.mrf.mxu2  ;;  %1116 = vmatmul.f32.gmra.mxu3 %v1088_v53  ;;  %v1153_v50 = vrot.slane %v1088_v53, 1  ;;  %1139 = vrot.lane.b32.xlu2 %v1088_v53, %s5013_s2  ;;  %v911_v9 = vsel %vm339_vm0, %v907_v33, %v908_v8  ;;  %v1026_v45 = vmul.f32 %v5536_v34, %v1018_v20  ;;  %v1019_v38 = vsel %vm995_vm3, %v1011_v37, %v987_v25 }
 0x1ee   :  { %v980_v52 = vmul.f32 0.01, %v4588_v62  ;;  %v930_v0 = vadd.f32 %v5686_v41, %v850_v55  ;;  %vm972_vm1 = vcmp.lt.f32.partialorder %v4588_v62, 0.0  ;;  %v1057_v5 = vsel %vm1041_vm15, %v1049_v15, %v1033_v31  ;;  %3286 = vmatpush.msrb.mxu3 %v5711_v44 }
 0x1ef   :  { %v1073_v49 = vmul.f32 0.01, %v1057_v5  ;;  %v5886_v11 = vsel %vm339_vm0, %v1152_v7, %v1153_v50  ;;  %v923_v41 = vmul.f32 %v911_v9, %v5394_v42  ;;  %vm1065_vm2 = vcmp.gt.f32.partialorder %v1057_v5, 1.0 }
 0x1f0   :  { %v946_v43 = vadd.f32 %v938_v36, %v930_v0  ;;  %3287 = vmatpush.msrb.mxu3 %v5722_v1  ;;  %v988_v33 = vsel %vm972_vm1, %v980_v52, %v4588_v62  ;;  %v981_v62 = vmul.f32 0.01, %v4589_v18  ;;  %vm973_vm5 = vcmp.lt.f32.partialorder %v4589_v18, 0.0 }
 0x1f1   :  { %v1081_v30 = vadd.f32 0.99, %v1073_v49  ;;  %v1004_v12 = vmul.f32 0.01, %v988_v33  ;;  %v939_v53 = vmul.f32 %v5806_v63, %v923_v41  ;;  %v910_v20 = vsel %vm339_vm0, %v908_v8, %v909_v40 }
 0x1f2   :  { %v1034_v24 = vadd.f32 %v1026_v45, %v946_v43  ;;  %3288 = vmatpush.msrb.mxu3 %v5728_v2  ;;  %v989_v9 = vsel %vm973_vm5, %v981_v62, %v4589_v18  ;;  %v924_v8 = vmul.f32 %v910_v20, %v5436_v16  ;;  %vm996_vm7 = vcmp.gt.f32.partialorder %v988_v33, 1.0 }
 0x1f3   :  { %v1089_v31 = vsel %vm1065_vm2, %v1081_v30, %v1057_v5  ;;  %v1005_v45 = vmul.f32 0.01, %v989_v9  ;;  %v7801_v30 = vrot.slane %v5792_v3, 1  ;;  %vm997_vm10 = vcmp.gt.f32.partialorder %v989_v9, 1.0 }
 0x1f4   :  { %vm1042_vm4 = vcmp.lt.f32.partialorder %v1034_v24, 0.0  ;;  %v1050_v34 = vmul.f32 0.01, %v1034_v24  ;;  %v1154_v15 = vrot.slane %v1089_v31, 1  ;;  %1141 = vrot.lane.b32.xlu0 %v1089_v31, %s5013_s2  ;;  %3289 = vmatpush.msrb.mxu3 %v5732_v54  ;;  %v5903_v54 = vld [vmem:[#allocation7 + $0x1] ss:$0 sm:$0xff]  ;;  %v940_v41 = vmul.f32 %v5806_v63, %v924_v8 }
 0x1f5   :  { %v853_v7 = vpop.f32.mrf.mxu2  ;;  %1119 = vmatmul.f32.gmra.mxu3 %v1089_v31  ;;  %v1027_v0 = vmul.f32 %v5903_v54, %v1019_v38  ;;  %v917_v31 = vsel %vm339_vm0, %v909_v40, %v7801_v30 }
 0x1f6   :  { %v931_v10 = vadd.f32 %v5714_v48, %v853_v7  ;;  %v1058_v55 = vsel %vm1042_vm4, %v1050_v34, %v1034_v24  ;;  %v5900_v52 = vsel %vm339_vm0, %v1153_v50, %v1154_v15  ;;  %3290 = vmatpush.msrb.mxu3 %v5736_v13  ;;  %v1012_v48 = vadd.f32 0.99, %v1004_v12 }
 0x1f7   :  { %v1074_v47 = vmul.f32 0.01, %v1058_v55  ;;  %vm1066_vm6 = vcmp.gt.f32.partialorder %v1058_v55, 1.0 }
 0x1f8   :  { %v947_v25 = vadd.f32 %v939_v53, %v931_v10  ;;  %3291 = vmatpush.msrb.mxu3 %v5747_v29  ;;  %v1020_v37 = vsel %vm996_vm7, %v1012_v48, %v988_v33 }
 0x1f9   :  { %v1082_v36 = vadd.f32 0.99, %v1074_v47  ;;  %v1028_v33 = vmul.f32 %v5903_v54, %v1020_v37 }
 0x1fa   :  { %v1035_v5 = vadd.f32 %v1027_v0, %v947_v25  ;;  %3292 = vmatpush.msrb.mxu3 %v5755_v19 }
 0x1fb   :  { %v1090_v43 = vsel %vm1066_vm6, %v1082_v36, %v1058_v55 }
 0x1fc   :  { %v1155_v50 = vrot.slane %v1090_v43, 1  ;;  %1143 = vrot.lane.b32.xlu1 %v1090_v43, %s5013_s2  ;;  %vm1043_vm8 = vcmp.lt.f32.partialorder %v1035_v5, 0.0  ;;  %v1051_v13 = vmul.f32 0.01, %v1035_v5  ;;  %3293 = vmatpush.msrb.mxu3 %v5759_v6  ;;  %v1013_v6 = vadd.f32 0.99, %v1005_v45 }
 0x1fd   :  { %v856_v49 = vpop.f32.mrf.mxu2  ;;  %1122 = vmatmul.f32.gmra.mxu3 %v1090_v43 }
 0x1fe   :  { %v932_v18 = vadd.f32 %v5739_v21, %v856_v49  ;;  %v1059_v24 = vsel %vm1043_vm8, %v1051_v13, %v1035_v5  ;;  %v5915_v19 = vsel %vm339_vm0, %v1154_v15, %v1155_v50  ;;  %v925_v21 = vmul.f32 %v917_v31, %v5411_v51 }
 0x1ff   :  { %v1075_v34 = vmul.f32 0.01, %v1059_v24  ;;  %vm1067_vm9 = vcmp.gt.f32.partialorder %v1059_v24, 1.0  ;;  %v1021_v53 = vsel %vm997_vm10, %v1013_v6, %v989_v9 }
 0x200   :  { %v948_v12 = vadd.f32 %v940_v41, %v932_v18  ;;  %v941_v55 = vmul.f32 %v5806_v63, %v925_v21  ;;  %v1029_v48 = vmul.f32 %v5903_v54, %v1021_v53 }
 0x201   :  { %v1083_v7 = vadd.f32 0.99, %v1075_v34 }
 0x202   :  { %v1036_v38 = vadd.f32 %v1028_v33, %v948_v12  ;;  %v1168_v33 = vmul.f32 %v5886_v11, %v5384_v27 }
 0x203   :  { %v1091_v62 = vsel %vm1067_vm9, %v1083_v7, %v1059_v24  ;;  %v1167_v24 = vmul.f32 %v5862_v61, %v7799_v35 }
 0x204   :  { %v1156_v10 = vrot.slane %v1091_v62, 1  ;;  %1145 = vrot.lane.b32.xlu2 %v1091_v62, %s5013_s2  ;;  %vm1044_vm11 = vcmp.lt.f32.partialorder %v1036_v38, 0.0  ;;  %v1052_v3 = vmul.f32 0.01, %v1036_v38 }
 0x205   :  { %v859_v15 = vpop.f32.mrf.mxu2  ;;  %1125 = vmatmul.f32.gmra.mxu3 %v1091_v62 }
 0x206   :  { %v933_v40 = vadd.f32 %v5763_v4, %v859_v15  ;;  %v1060_v20 = vsel %vm1044_vm11, %v1052_v3, %v1036_v38  ;;  %v5928_v47 = vsel %vm339_vm0, %v1155_v50, %v1156_v10 }
 0x207   :  { %v1076_v25 = vmul.f32 0.01, %v1060_v20  ;;  %vm1068_vm12 = vcmp.gt.f32.partialorder %v1060_v20, 1.0 }
 0x208   :  { %v949_v0 = vadd.f32 %v941_v55, %v933_v40 }
 0x209   :  { %v1084_v36 = vadd.f32 0.99, %v1076_v25 }
 0x20a   :  { %v1037_v5 = vadd.f32 %v1029_v48, %v949_v0 }
 0x20b   :  { %v1092_v8 = vsel %vm1068_vm12, %v1084_v36, %v1060_v20 }
 0x20c   :  { %1147 = vrot.lane.b32.xlu0 %v1092_v8, %s5013_s2  ;;  %v1157_v9 = vrot.slane %v1092_v8, 1  ;;  %vm1045_vm13 = vcmp.lt.f32.partialorder %v1037_v5, 0.0  ;;  %v1053_v4 = vmul.f32 0.01, %v1037_v5 }
 0x20d   :  { %1128 = vmatmul.f32.gmra.mxu3 %v1092_v8 }
 0x20e   :  { %v1061_v43 = vsel %vm1045_vm13, %v1053_v4, %v1037_v5  ;;  %v5934_v13 = vsel %vm339_vm0, %v1156_v10, %v1157_v9  ;;  %v5962_v5 = vld [vmem:[#allocation2] sm:$0xff] }
 0x20f   :  { %v1077_v50 = vmul.f32 0.01, %v1061_v43  ;;  %vm1069_vm14 = vcmp.gt.f32.partialorder %v1061_v43, 1.0 }
 0x211   :  { %v1085_v45 = vadd.f32 0.99, %v1077_v50 }
 0x213   :  { %v1093_v49 = vsel %vm1069_vm14, %v1085_v45, %v1061_v43 }
 0x214   :  { %1149 = vrot.lane.b32.xlu1 %v1093_v49, %s5013_s2  ;;  %v1158_v37 = vrot.slane %v1093_v49, 1 }
 0x215   :  { %1131 = vmatmul.f32.gmra.mxu3 %v1093_v49 }
 0x216   :  { %v5939_v18 = vsel %vm339_vm0, %v1157_v9, %v1158_v37  ;;  %v5945_v41 = vsel %vm339_vm0, %v1158_v37, %v1151_v59  ;;  %v1169_v59 = vmul.f32 %v5900_v52, %v5364_v58 }
 0x247   :  { %v1140_v6 = vpop.permute.xlu2 %1139 }
 0x248   :  { %v1225_v10 = vadd.f32 %v1169_v59, %v1140_v6  ;;  %v1177_v52 = vrot.slane %v1140_v6, 1 }
 0x24a   :  { %v4592_v40 = vadd.f32 -1.0, %v1225_v10 }
 0x24c   :  { %v1249_v36 = vmul.f32 0.01, %v4592_v40  ;;  %vm1241_vm3 = vcmp.lt.f32.partialorder %v4592_v40, 0.0 }
 0x24e   :  { %v5949_v30 = vpop.permute.xlu0 %1135  ;;  %v1257_v49 = vsel %vm1241_vm3, %v1249_v36, %v4592_v40  ;;  %v1171_v36 = vmul.f32 %v5928_v47, %v7800_v39 }
 0x24f   :  { %v1223_v31 = vadd.f32 %v1167_v24, %v5949_v30  ;;  %v1175_v61 = vrot.slane %v5949_v30, 1  ;;  %v1273_v6 = vmul.f32 0.01, %v1257_v49  ;;  %vm1265_vm7 = vcmp.gt.f32.partialorder %v1257_v49, 1.0 }
 0x251   :  { %v4590_v34 = vadd.f32 -1.0, %v1223_v31  ;;  %v1170_v31 = vmul.f32 %v5915_v19, %v5389_v28  ;;  %v1281_v40 = vadd.f32 0.99, %v1273_v6 }
 0x253   :  { %vm1239_vm15 = vcmp.lt.f32.partialorder %v4590_v34, 0.0  ;;  %v1247_v12 = vmul.f32 0.01, %v4590_v34 }
 0x255   :  { %v1255_v7 = vsel %vm1239_vm15, %v1247_v12, %v4590_v34 }
 0x256   :  { %v1138_v60 = vpop.permute.xlu1 %1137  ;;  %v1271_v62 = vmul.f32 0.01, %v1255_v7  ;;  %vm1263_vm2 = vcmp.gt.f32.partialorder %v1255_v7, 1.0 }
 0x257   :  { %v1176_v38 = vrot.slane %v1138_v60, 1  ;;  %v1224_v21 = vadd.f32 %v1168_v33, %v1138_v60 }
 0x258   :  { %v1279_v53 = vadd.f32 0.99, %v1271_v62 }
 0x259   :  { %v4591_v3 = vadd.f32 -1.0, %v1224_v21  ;;  %v1189_v15 = vsel %vm339_vm0, %v1175_v61, %v1176_v38  ;;  %v1188_v4 = vsel %vm339_vm0, %v1176_v38, %v1177_v52  ;;  %v5972_v21 = vld [vmem:[#allocation2 + $0x8] sm:$0xff] }
 0x25a   :  { %v1191_v55 = vmul.f32 %v1189_v15, %v7799_v35  ;;  %v1287_v48 = vsel %vm1263_vm2, %v1279_v53, %v1255_v7  ;;  %v1192_v37 = vmul.f32 %v1188_v4, %v5384_v27 }
 0x25b   :  { %vm1240_vm1 = vcmp.lt.f32.partialorder %v4591_v3, 0.0  ;;  %v1248_v11 = vmul.f32 0.01, %v4591_v3  ;;  %v1295_v50 = vmul.f32 %v5903_v54, %v1287_v48 }
 0x25c   :  { %v1207_v9 = vmul.f32 %v5806_v63, %v1191_v55  ;;  %v1208_v10 = vmul.f32 %v5806_v63, %v1192_v37 }
 0x25d   :  { %v1256_v20 = vsel %vm1240_vm1, %v1248_v11, %v4591_v3 }
 0x25e   :  { %v1272_v25 = vmul.f32 0.01, %v1256_v20  ;;  %vm1264_vm4 = vcmp.gt.f32.partialorder %v1256_v20, 1.0 }
 0x25f   :  { %v1111_v0 = vpop.f32.mrf.mxu3 }
 0x260   :  { %v1199_v8 = vadd.f32 %v5962_v5, %v1111_v0  ;;  %v1280_v45 = vadd.f32 0.99, %v1272_v25 }
 0x262   :  { %v1215_v43 = vadd.f32 %v1207_v9, %v1199_v8  ;;  %v1288_v60 = vsel %vm1264_vm4, %v1280_v45, %v1256_v20  ;;  %v5979_v20 = vpop.permute.xlu2 %1145 }
 0x263   :  { %v1296_v53 = vmul.f32 %v5903_v54, %v1288_v60 }
 0x264   :  { %v1303_v24 = vadd.f32 %v1295_v50, %v1215_v43 }
 0x266   :  { %v1142_v34 = vpop.permute.xlu0 %1141  ;;  %vm1311_vm5 = vcmp.lt.f32.partialorder %v1303_v24, 0.0  ;;  %v1319_v59 = vmul.f32 0.01, %v1303_v24 }
 0x267   :  { %v1178_v12 = vrot.slane %v1142_v34, 1  ;;  %v1226_v33 = vadd.f32 %v1170_v31, %v1142_v34  ;;  %v1114_v7 = vpop.f32.mrf.mxu3  ;;  %v1289_v34 = vsel %vm1265_vm7, %v1281_v40, %v1257_v49 }
 0x268   :  { %v1200_v62 = vadd.f32 %v5972_v21, %v1114_v7  ;;  %v1327_v19 = vsel %vm1311_vm5, %v1319_v59, %v1303_v24 }
 0x269   :  { %v4593_v38 = vadd.f32 -1.0, %v1226_v33  ;;  %v1187_v3 = vsel %vm339_vm0, %v1177_v52, %v1178_v12  ;;  %v1343_v55 = vmul.f32 0.01, %v1327_v19  ;;  %v1172_v52 = vmul.f32 %v5934_v13, %v5394_v42  ;;  %v5992_v13 = vld [vmem:[#allocation2 + $0x10] sm:$0xff] }
 0x26a   :  { %v1216_v11 = vadd.f32 %v1208_v10, %v1200_v62  ;;  %v1193_v8 = vmul.f32 %v1187_v3, %v5364_v58  ;;  %vm1335_vm8 = vcmp.gt.f32.partialorder %v1327_v19, 1.0  ;;  %v1297_v62 = vmul.f32 %v5903_v54, %v1289_v34 }
 0x26b   :  { %vm1242_vm6 = vcmp.lt.f32.partialorder %v4593_v38, 0.0  ;;  %v1250_v15 = vmul.f32 0.01, %v4593_v38  ;;  %v1351_v9 = vadd.f32 0.99, %v1343_v55  ;;  %v1228_v45 = vadd.f32 %v1172_v52, %v5979_v20  ;;  %v6007_v52 = vld [vmem:[#allocation2 + $0x18] sm:$0xff] }
 0x26c   :  { %v1304_v0 = vadd.f32 %v1296_v53, %v1216_v11  ;;  %v1209_v6 = vmul.f32 %v5806_v63, %v1193_v8  ;;  %v1173_v34 = vmul.f32 %v5939_v18, %v5436_v16 }
 0x26d   :  { %v1258_v25 = vsel %vm1242_vm6, %v1250_v15, %v4593_v38  ;;  %v5987_v24 = vsel %vm1335_vm8, %v1351_v9, %v1327_v19  ;;  %v4595_v10 = vadd.f32 -1.0, %v1228_v45 }
 0x26e   :  { %v1144_v48 = vpop.permute.xlu1 %1143  ;;  %vm1312_vm9 = vcmp.lt.f32.partialorder %v1304_v0, 0.0  ;;  %v1320_v50 = vmul.f32 0.01, %v1304_v0  ;;  %v1274_v37 = vmul.f32 0.01, %v1258_v25  ;;  %1383 = vmatmul.f32.vlgmr.msrb.gmra.mxu0 %v5987_v24  ;;  %1408 = vrot.lane.b32.xlu2 %v5987_v24, %s5013_s2  ;;  %vm1266_vm12 = vcmp.gt.f32.partialorder %v1258_v25, 1.0 }
 0x26f   :  { %v1179_v4 = vrot.slane %v1144_v48, 1  ;;  %v1227_v43 = vadd.f32 %v1171_v36, %v1144_v48  ;;  %3551 = vmatpush.msrb.mxu0 %v5646_v56  ;;  %v1424_v56 = vrot.slane %v5987_v24, 1  ;;  %v1252_v48 = vmul.f32 0.01, %v4595_v10 }
 0x270   :  { %v1117_v31 = vpop.f32.mrf.mxu3  ;;  %v1328_v7 = vsel %vm1312_vm9, %v1320_v50, %v1304_v0  ;;  %v1282_v3 = vadd.f32 0.99, %v1274_v37  ;;  %v1180_v0 = vrot.slane %v5979_v20, 1  ;;  %vm1244_vm14 = vcmp.lt.f32.partialorder %v4595_v10, 0.0 }
 0x271   :  { %v4594_v47 = vadd.f32 -1.0, %v1227_v43  ;;  %v1201_v33 = vadd.f32 %v5992_v13, %v1117_v31  ;;  %v1186_v60 = vsel %vm339_vm0, %v1178_v12, %v1179_v4  ;;  %v1344_v59 = vmul.f32 0.01, %v1328_v7  ;;  %3552 = vmatpush.msrb.mxu0 %v5657_v46 }
 0x272   :  { %vm1336_vm11 = vcmp.gt.f32.partialorder %v1328_v7, 1.0  ;;  %v1194_v53 = vmul.f32 %v1186_v60, %v5389_v28  ;;  %v1290_v8 = vsel %vm1266_vm12, %v1282_v3, %v1258_v25  ;;  %v1185_v20 = vsel %vm339_vm0, %v1179_v4, %v1180_v0 }
 0x273   :  { %vm1243_vm10 = vcmp.lt.f32.partialorder %v4594_v47, 0.0  ;;  %v1251_v49 = vmul.f32 0.01, %v4594_v47  ;;  %v1217_v38 = vadd.f32 %v1209_v6, %v1201_v33  ;;  %v1352_v19 = vadd.f32 0.99, %v1344_v59  ;;  %3553 = vmatpush.msrb.mxu0 %v5663_v14 }
 0x274   :  { %v1210_v9 = vmul.f32 %v5806_v63, %v1194_v53  ;;  %v1298_v45 = vmul.f32 %v5903_v54, %v1290_v8 }
 0x275   :  { %v1259_v15 = vsel %vm1243_vm10, %v1251_v49, %v4594_v47  ;;  %v1305_v11 = vadd.f32 %v1297_v62, %v1217_v38  ;;  %v1360_v12 = vsel %vm1336_vm11, %v1352_v19, %v1328_v7  ;;  %3554 = vmatpush.msrb.mxu0 %v5675_v17  ;;  %v1260_v47 = vsel %vm1244_vm14, %v1252_v48, %v4595_v10  ;;  %v6033_v10 = vld [vmem:[#allocation2 + $0x20] sm:$0xff] }
 0x276   :  { %v1425_v40 = vrot.slane %v1360_v12, 1  ;;  %1410 = vrot.lane.b32.xlu0 %v1360_v12, %s5013_s2  ;;  %v1275_v46 = vmul.f32 0.01, %v1259_v15  ;;  %1386 = vmatmul.f32.gmra.mxu0 %v1360_v12  ;;  %v1195_v7 = vmul.f32 %v1185_v20, %v7800_v39  ;;  %vm1267_vm1 = vcmp.gt.f32.partialorder %v1259_v15, 1.0 }
 0x277   :  { %vm1313_vm13 = vcmp.lt.f32.partialorder %v1305_v11, 0.0  ;;  %v1321_v55 = vmul.f32 0.01, %v1305_v11  ;;  %3555 = vmatpush.msrb.mxu0 %v5681_v32  ;;  %v1276_v18 = vmul.f32 0.01, %v1260_v47  ;;  %vm1268_vm5 = vcmp.gt.f32.partialorder %v1260_v47, 1.0 }
 0x278   :  { %v1120_v36 = vpop.f32.mrf.mxu3  ;;  %v6015_v50 = vsel %vm339_vm0, %v1424_v56, %v1425_v40  ;;  %v1283_v37 = vadd.f32 0.99, %v1275_v46  ;;  %v1211_v3 = vmul.f32 %v5806_v63, %v1195_v7 }
 0x279   :  { %v1202_v14 = vadd.f32 %v6007_v52, %v1120_v36  ;;  %v1329_v43 = vsel %vm1313_vm13, %v1321_v55, %v1305_v11  ;;  %3556 = vmatpush.msrb.mxu0 %v5690_v22  ;;  %v1284_v48 = vadd.f32 0.99, %v1276_v18  ;;  %v1174_v36 = vmul.f32 %v5945_v41, %v5411_v51 }
 0x27a   :  { %v1345_v25 = vmul.f32 0.01, %v1329_v43  ;;  %vm1337_vm15 = vcmp.gt.f32.partialorder %v1329_v43, 1.0  ;;  %v1291_v62 = vsel %vm1267_vm1, %v1283_v37, %v1259_v15  ;;  %v6051_v37 = vld [vmem:[#allocation5 + $0x20] sm:$0xff] }
 0x27b   :  { %v1218_v17 = vadd.f32 %v1210_v9, %v1202_v14  ;;  %3557 = vmatpush.msrb.mxu0 %v5702_v57  ;;  %v1299_v55 = vmul.f32 %v5903_v54, %v1291_v62 }
 0x27c   :  { %v1353_v31 = vadd.f32 0.99, %v1345_v25 }
 0x27d   :  { %v1306_v33 = vadd.f32 %v1298_v45, %v1218_v17  ;;  %3558 = vmatpush.msrb.mxu0 %v5706_v23  ;;  %v1292_v45 = vsel %vm1268_vm5, %v1284_v48, %v1260_v47 }
 0x27e   :  { %v1148_v6 = vpop.permute.xlu0 %1147  ;;  %v6025_v4 = vsel %vm1337_vm15, %v1353_v31, %v1329_v43  ;;  %v6054_v31 = vld [vmem:[#allocation2 + $0x28] sm:$0xff] }
 0x27f   :  { %v1181_v60 = vrot.slane %v1148_v6, 1  ;;  %v1229_v32 = vadd.f32 %v1173_v34, %v1148_v6  ;;  %v1426_v59 = vrot.slane %v6025_v4, 1  ;;  %1412 = vrot.lane.b32.xlu1 %v6025_v4, %s5013_s2  ;;  %vm1314_vm2 = vcmp.lt.f32.partialorder %v1306_v33, 0.0  ;;  %1389 = vmatmul.f32.gmra.mxu0 %v6025_v4 }
 0x280   :  { %v1322_v22 = vmul.f32 0.01, %v1306_v33  ;;  %v1123_v38 = vpop.f32.mrf.mxu3  ;;  %3559 = vmatpush.msrb.mxu0 %v5711_v44 }
 0x281   :  { %v4596_v49 = vadd.f32 -1.0, %v1229_v32  ;;  %v1203_v57 = vadd.f32 %v6033_v10, %v1123_v38  ;;  %v6039_v11 = vsel %vm339_vm0, %v1425_v40, %v1426_v59  ;;  %v1184_v53 = vsel %vm339_vm0, %v1180_v0, %v1181_v60  ;;  %v6060_v32 = vld [vmem:[#allocation5 + $0x18] sm:$0xff] }
 0x282   :  { %v1330_v19 = vsel %vm1314_vm2, %v1322_v22, %v1306_v33  ;;  %3560 = vmatpush.msrb.mxu0 %v5722_v1  ;;  %v1196_v0 = vmul.f32 %v1184_v53, %v5394_v42  ;;  %v1300_v22 = vmul.f32 %v5903_v54, %v1292_v45 }
 0x283   :  { %vm1245_vm3 = vcmp.lt.f32.partialorder %v4596_v49, 0.0  ;;  %v1253_v15 = vmul.f32 0.01, %v4596_v49  ;;  %v1346_v12 = vmul.f32 0.01, %v1330_v19  ;;  %v1219_v23 = vadd.f32 %v1211_v3, %v1203_v57 }
 0x284   :  { %vm1338_vm4 = vcmp.gt.f32.partialorder %v1330_v19, 1.0  ;;  %3561 = vmatpush.msrb.mxu0 %v5728_v2  ;;  %v1212_v2 = vmul.f32 %v5806_v63, %v1196_v0 }
 0x285   :  { %v1354_v46 = vadd.f32 0.99, %v1346_v12  ;;  %v1261_v40 = vsel %vm1245_vm3, %v1253_v15, %v4596_v49  ;;  %v1307_v8 = vadd.f32 %v1299_v55, %v1219_v23  ;;  %v6077_v55 = vld [vmem:[#allocation2 + $0x30] sm:$0xff] }
 0x286   :  { %v1150_v14 = vpop.permute.xlu1 %1149  ;;  %v1277_v25 = vmul.f32 0.01, %v1261_v40  ;;  %3562 = vmatpush.msrb.mxu0 %v6051_v37  ;;  %vm1269_vm9 = vcmp.gt.f32.partialorder %v1261_v40, 1.0 }
 0x287   :  { %v1362_v9 = vsel %vm1338_vm4, %v1354_v46, %v1330_v19  ;;  %v1182_v43 = vrot.slane %v1150_v14, 1  ;;  %v1230_v20 = vadd.f32 %v1174_v36, %v1150_v14  ;;  %vm1315_vm6 = vcmp.lt.f32.partialorder %v1307_v8, 0.0  ;;  %v6070_v19 = vld [vmem:[#allocation5 + $0x8] sm:$0xff] }
 0x288   :  { %1414 = vrot.lane.b32.xlu2 %v1362_v9, %s5013_s2  ;;  %v1323_v44 = vmul.f32 0.01, %v1307_v8  ;;  %v1427_v41 = vrot.slane %v1362_v9, 1  ;;  %v1126_v1 = vpop.f32.mrf.mxu3  ;;  %1392 = vmatmul.f32.gmra.mxu0 %v1362_v9  ;;  %v1285_v18 = vadd.f32 0.99, %v1277_v25 }
 0x289   :  { %v4597_v17 = vadd.f32 -1.0, %v1230_v20  ;;  %v1204_v34 = vadd.f32 %v6054_v31, %v1126_v1  ;;  %v1183_v6 = vsel %vm339_vm0, %v1181_v60, %v1182_v43  ;;  %3563 = vmatpush.msrb.mxu0 %v6060_v32 }
 0x28a   :  { %v1331_v33 = vsel %vm1315_vm6, %v1323_v44, %v1307_v8  ;;  %v6066_v38 = vsel %vm339_vm0, %v1426_v59, %v1427_v41  ;;  %v1197_v57 = vmul.f32 %v1183_v6, %v5436_v16  ;;  %v1293_v23 = vsel %vm1269_vm9, %v1285_v18, %v1261_v40 }
 0x28b   :  { %vm1246_vm7 = vcmp.lt.f32.partialorder %v4597_v17, 0.0  ;;  %v1254_v7 = vmul.f32 0.01, %v4597_v17  ;;  %v1347_v4 = vmul.f32 0.01, %v1331_v33  ;;  %v1220_v47 = vadd.f32 %v1212_v2, %v1204_v34  ;;  %3564 = vmatpush.msrb.mxu0 %v5747_v29  ;;  %v6074_v29 = vld [vmem:[#allocation5] sm:$0xff] }
 0x28c   :  { %vm1339_vm8 = vcmp.gt.f32.partialorder %v1331_v33, 1.0  ;;  %v1213_v46 = vmul.f32 %v5806_v63, %v1197_v57  ;;  %v1190_v40 = vsel %vm339_vm0, %v1182_v43, %v1175_v61  ;;  %v1301_v9 = vmul.f32 %v5903_v54, %v1293_v23  ;;  %v6092_v61 = vld [vmem:[#allocation2 + $0x38] sm:$0xff] }
 0x28d   :  { %v1355_v49 = vadd.f32 0.99, %v1347_v4  ;;  %v1262_v62 = vsel %vm1246_vm7, %v1254_v7, %v4597_v17  ;;  %v1308_v60 = vadd.f32 %v1300_v22, %v1220_v47  ;;  %3565 = vmatpush.msrb.mxu0 %v6070_v19  ;;  %v1198_v17 = vmul.f32 %v1190_v40, %v5411_v51 }
 0x28e   :  { %v1278_v59 = vmul.f32 0.01, %v1262_v62  ;;  %vm1270_vm12 = vcmp.gt.f32.partialorder %v1262_v62, 1.0 }
 0x28f   :  { %v1363_v3 = vsel %vm1339_vm8, %v1355_v49, %v1331_v33  ;;  %vm1316_vm10 = vcmp.lt.f32.partialorder %v1308_v60, 0.0  ;;  %v1324_v15 = vmul.f32 0.01, %v1308_v60  ;;  %3566 = vmatpush.msrb.mxu0 %v6074_v29  ;;  %v1214_v2 = vmul.f32 %v5806_v63, %v1198_v17 }
 0x290   :  { %v1428_v53 = vrot.slane %v1363_v3, 1  ;;  %1416 = vrot.lane.b32.xlu0 %v1363_v3, %s5013_s2  ;;  %v1129_v12 = vpop.f32.mrf.mxu3  ;;  %1395 = vmatmul.f32.gmra.mxu0 %v1363_v3  ;;  %v1286_v20 = vadd.f32 0.99, %v1278_v59 }
 0x291   :  { %v1205_v48 = vadd.f32 %v6077_v55, %v1129_v12  ;;  %v1332_v36 = vsel %vm1316_vm10, %v1324_v15, %v1308_v60 }
 0x292   :  { %v6083_v8 = vsel %vm339_vm0, %v1427_v41, %v1428_v53  ;;  %v1348_v14 = vmul.f32 0.01, %v1332_v36  ;;  %vm1340_vm11 = vcmp.gt.f32.partialorder %v1332_v36, 1.0  ;;  %v1294_v34 = vsel %vm1270_vm12, %v1286_v20, %v1262_v62 }
 0x293   :  { %v1221_v0 = vadd.f32 %v1213_v46, %v1205_v48  ;;  %v1302_v47 = vmul.f32 %v5903_v54, %v1294_v34  ;;  %v1440_v46 = vmul.f32 %v6015_v50, %v7799_v35  ;;  %v1441_v20 = vmul.f32 %v6039_v11, %v5384_v27 }
 0x294   :  { %v1356_v44 = vadd.f32 0.99, %v1348_v14 }
 0x295   :  { %v1309_v25 = vadd.f32 %v1301_v9, %v1221_v0 }
 0x296   :  { %v1364_v1 = vsel %vm1340_vm11, %v1356_v44, %v1332_v36 }
 0x297   :  { %v1429_v45 = vrot.slane %v1364_v1, 1  ;;  %1418 = vrot.lane.b32.xlu1 %v1364_v1, %s5013_s2  ;;  %vm1317_vm13 = vcmp.lt.f32.partialorder %v1309_v25, 0.0  ;;  %v1325_v30 = vmul.f32 0.01, %v1309_v25 }
 0x298   :  { %v1132_v41 = vpop.f32.mrf.mxu3  ;;  %1398 = vmatmul.f32.gmra.mxu0 %v1364_v1 }
 0x299   :  { %v1206_v43 = vadd.f32 %v6092_v61, %v1132_v41  ;;  %v1333_v33 = vsel %vm1317_vm13, %v1325_v30, %v1309_v25  ;;  %v6098_v6 = vsel %vm339_vm0, %v1428_v53, %v1429_v45  ;;  %v1443_v30 = vmul.f32 %v6083_v8, %v5389_v28 }
 0x29a   :  { %v1349_v7 = vmul.f32 0.01, %v1333_v33  ;;  %vm1341_vm14 = vcmp.gt.f32.partialorder %v1333_v33, 1.0 }
 0x29b   :  { %v1222_v4 = vadd.f32 %v1214_v2, %v1206_v43 }
 0x29c   :  { %v1357_v22 = vadd.f32 0.99, %v1349_v7  ;;  %v6136_v7 = vld [vmem:[#allocation7] ss:$0 sm:$0xff] }
 0x29d   :  { %v1310_v18 = vadd.f32 %v1302_v47, %v1222_v4 }
 0x29e   :  { %v1365_v49 = vsel %vm1341_vm14, %v1357_v22, %v1333_v33  ;;  %v1442_v22 = vmul.f32 %v6066_v38, %v5364_v58 }
 0x29f   :  { %1420 = vrot.lane.b32.xlu2 %v1365_v49, %s5013_s2  ;;  %v1430_v62 = vrot.slane %v1365_v49, 1  ;;  %vm1318_vm15 = vcmp.lt.f32.partialorder %v1310_v18, 0.0  ;;  %v1326_v60 = vmul.f32 0.01, %v1310_v18 }
 0x2a0   :  { %1401 = vmatmul.f32.gmra.mxu0 %v1365_v49 }
 0x2a1   :  { %v1334_v63 = vsel %vm1318_vm15, %v1326_v60, %v1310_v18  ;;  %v6104_v57 = vsel %vm339_vm0, %v1429_v45, %v1430_v62 }
 0x2a2   :  { %v1350_v3 = vmul.f32 0.01, %v1334_v63  ;;  %vm1342_vm1 = vcmp.gt.f32.partialorder %v1334_v63, 1.0 }
 0x2a4   :  { %v1358_v53 = vadd.f32 0.99, %v1350_v3 }
 0x2a6   :  { %v1366_v15 = vsel %vm1342_vm1, %v1358_v53, %v1334_v63 }
 0x2a7   :  { %1422 = vrot.lane.b32.xlu0 %v1366_v15, %s5013_s2  ;;  %v1431_v59 = vrot.slane %v1366_v15, 1 }
 0x2a8   :  { %1404 = vmatmul.f32.gmra.mxu0 %v1366_v15 }
 0x2a9   :  { %v6109_v12 = vsel %vm339_vm0, %v1430_v62, %v1431_v59  ;;  %v6115_v23 = vsel %vm339_vm0, %v1431_v59, %v1424_v56 }
 0x2c8   :  { %v6117_v48 = vpop.permute.xlu2 %1408 }
 0x2c9   :  { %v1496_v36 = vadd.f32 %v1440_v46, %v6117_v48  ;;  %v1448_v44 = vrot.slane %v6117_v48, 1 }
 0x2cb   :  { %v4598_v40 = vadd.f32 -1.0, %v1496_v36 }
 0x2cd   :  { %v1520_v14 = vmul.f32 0.01, %v4598_v40  ;;  %vm1512_vm2 = vcmp.lt.f32.partialorder %v4598_v40, 0.0 }
 0x2cf   :  { %v1528_v0 = vsel %vm1512_vm2, %v1520_v14, %v4598_v40 }
 0x2d0   :  { %v1544_v9 = vmul.f32 0.01, %v1528_v0  ;;  %vm1536_vm3 = vcmp.gt.f32.partialorder %v1528_v0, 1.0 }
 0x2d2   :  { %v1552_v56 = vadd.f32 0.99, %v1544_v9 }
 0x2d4   :  { %v1560_v43 = vsel %vm1536_vm3, %v1552_v56, %v1528_v0 }
 0x2d5   :  { %v1568_v49 = vmul.f32 %v5903_v54, %v1560_v43 }
 0x2e2   :  { %v6125_v1 = vpop.permute.xlu2 %1414 }
 0x2e3   :  { %v1499_v2 = vadd.f32 %v1443_v30, %v6125_v1  ;;  %v1451_v46 = vrot.slane %v6125_v1, 1 }
 0x2e5   :  { %v4601_v3 = vadd.f32 -1.0, %v1499_v2 }
 0x2e7   :  { %v1523_v9 = vmul.f32 0.01, %v4601_v3  ;;  %vm1515_vm8 = vcmp.lt.f32.partialorder %v4601_v3, 0.0 }
 0x2e8   :  { %v1411_v24 = vpop.permute.xlu0 %1410 }
 0x2e9   :  { %v1449_v25 = vrot.slane %v1411_v24, 1  ;;  %v1497_v17 = vadd.f32 %v1441_v20, %v1411_v24 }
 0x2eb   :  { %v1462_v50 = vsel %vm339_vm0, %v1448_v44, %v1449_v25  ;;  %v4599_v45 = vadd.f32 -1.0, %v1497_v17  ;;  %v1384_v34 = vpop.f32.mrf.mxu0 }
 0x2ec   :  { %v1464_v11 = vmul.f32 %v1462_v50, %v7799_v35  ;;  %v1472_v33 = vadd.f32 %v5962_v5, %v1384_v34 }
 0x2ed   :  { %vm1513_vm4 = vcmp.lt.f32.partialorder %v4599_v45, 0.0  ;;  %v1521_v41 = vmul.f32 0.01, %v4599_v45 }
 0x2ee   :  { %v1480_v4 = vmul.f32 %v6136_v7, %v1464_v11 }
 0x2ef   :  { %v1529_v47 = vsel %vm1513_vm4, %v1521_v41, %v4599_v45  ;;  %v1531_v41 = vsel %vm1515_vm8, %v1523_v9, %v4601_v3  ;;  %v6162_v3 = vld [vmem:[#allocation5 + $0x78] sm:$0xff] }
 0x2f0   :  { %v1545_v18 = vmul.f32 0.01, %v1529_v47  ;;  %v1488_v8 = vadd.f32 %v1480_v4, %v1472_v33  ;;  %vm1537_vm5 = vcmp.gt.f32.partialorder %v1529_v47, 1.0  ;;  %v1547_v4 = vmul.f32 0.01, %v1531_v41 }
 0x2f1   :  { %v1413_v62 = vpop.permute.xlu1 %1412  ;;  %vm1539_vm12 = vcmp.gt.f32.partialorder %v1531_v41, 1.0 }
 0x2f2   :  { %v1450_v60 = vrot.slane %v1413_v62, 1  ;;  %v1498_v63 = vadd.f32 %v1442_v22, %v1413_v62  ;;  %v1553_v53 = vadd.f32 0.99, %v1545_v18  ;;  %v1576_v15 = vadd.f32 %v1568_v49, %v1488_v8 }
 0x2f3   :  { %v1387_v40 = vpop.f32.mrf.mxu0 }
 0x2f4   :  { %v1461_v5 = vsel %vm339_vm0, %v1449_v25, %v1450_v60  ;;  %v4600_v59 = vadd.f32 -1.0, %v1498_v63  ;;  %vm1584_vm6 = vcmp.lt.f32.partialorder %v1576_v15, 0.0  ;;  %v1561_v14 = vsel %vm1537_vm5, %v1553_v53, %v1529_v47 }
 0x2f5   :  { %v1465_v36 = vmul.f32 %v1461_v5, %v5384_v27  ;;  %v1592_v0 = vmul.f32 0.01, %v1576_v15  ;;  %v1460_v20 = vsel %vm339_vm0, %v1450_v60, %v1451_v46  ;;  %v1473_v24 = vadd.f32 %v5972_v21, %v1387_v40 }
 0x2f6   :  { %vm1514_vm7 = vcmp.lt.f32.partialorder %v4600_v59, 0.0  ;;  %v1522_v38 = vmul.f32 0.01, %v4600_v59  ;;  %v1569_v45 = vmul.f32 %v5903_v54, %v1561_v14  ;;  %v1466_v30 = vmul.f32 %v1460_v20, %v5364_v58  ;;  %v6169_v14 = vld [vmem:[#allocation5 + $0x70] sm:$0xff] }
 0x2f7   :  { %v1481_v56 = vmul.f32 %v6136_v7, %v1465_v36  ;;  %v1600_v17 = vsel %vm1584_vm6, %v1592_v0, %v1576_v15  ;;  %v1444_v60 = vmul.f32 %v6098_v6, %v7800_v39 }
 0x2f8   :  { %v1530_v25 = vsel %vm1514_vm7, %v1522_v38, %v4600_v59  ;;  %v1616_v11 = vmul.f32 0.01, %v1600_v17  ;;  %vm1608_vm10 = vcmp.gt.f32.partialorder %v1600_v17, 1.0  ;;  %v1482_v22 = vmul.f32 %v6136_v7, %v1466_v30  ;;  %v6186_v30 = vld [vmem:[#allocation5 + $0x60] sm:$0xff] }
 0x2f9   :  { %v1546_v1 = vmul.f32 0.01, %v1530_v25  ;;  %v1489_v50 = vadd.f32 %v1481_v56, %v1473_v24  ;;  %vm1538_vm9 = vcmp.gt.f32.partialorder %v1530_v25, 1.0  ;;  %v6165_v53 = vpop.permute.xlu2 %1420  ;;  %v1555_v59 = vadd.f32 0.99, %v1547_v4  ;;  %v6177_v24 = vld [vmem:[#allocation5 + $0x68] sm:$0xff] }
 0x2fa   :  { %v1624_v2 = vadd.f32 0.99, %v1616_v11  ;;  %v6200_v4 = vld [vmem:[#allocation5 + $0x58] sm:$0xff] }
 0x2fb   :  { %v1554_v34 = vadd.f32 0.99, %v1546_v1  ;;  %v1577_v43 = vadd.f32 %v1569_v45, %v1489_v50  ;;  %v1563_v45 = vsel %vm1539_vm12, %v1555_v59, %v1531_v41 }
 0x2fc   :  { %v1390_v47 = vpop.f32.mrf.mxu0  ;;  %v6153_v18 = vsel %vm1608_vm10, %v1624_v2, %v1600_v17 }
 0x2fd   :  { %v1562_v33 = vsel %vm1538_vm9, %v1554_v34, %v1530_v25  ;;  %vm1585_vm11 = vcmp.lt.f32.partialorder %v1577_v43, 0.0  ;;  %v1593_v21 = vmul.f32 0.01, %v1577_v43  ;;  %v1474_v8 = vadd.f32 %v5992_v13, %v1390_v47  ;;  %1656 = vmatmul.f32.vlgmr.msrb.gmra.mxu1 %v6153_v18  ;;  %1681 = vrot.lane.b32.xlu1 %v6153_v18, %s5013_s2 }
 0x2fe   :  { %v1570_v49 = vmul.f32 %v5903_v54, %v1562_v33  ;;  %4718 = vmatpush.msrb.mxu1 %v6162_v3  ;;  %v1446_v13 = vmul.f32 %v6109_v12, %v5436_v16  ;;  %v1697_v1 = vrot.slane %v6153_v18, 1  ;;  %v1445_v33 = vmul.f32 %v6104_v57, %v5394_v42 }
 0x2ff   :  { %v1601_v62 = vsel %vm1585_vm11, %v1593_v21, %v1577_v43  ;;  %v1490_v15 = vadd.f32 %v1482_v22, %v1474_v8  ;;  %v1571_v8 = vmul.f32 %v5903_v54, %v1563_v45 }
 0x300   :  { %v1617_v63 = vmul.f32 0.01, %v1601_v62  ;;  %4719 = vmatpush.msrb.mxu1 %v6169_v14  ;;  %vm1609_vm13 = vcmp.gt.f32.partialorder %v1601_v62, 1.0  ;;  %v1502_v0 = vadd.f32 %v1446_v13, %v6165_v53 }
 0x301   :  { %v1578_v6 = vadd.f32 %v1570_v49, %v1490_v15 }
 0x302   :  { %v1417_v5 = vpop.permute.xlu0 %1416  ;;  %v1625_v40 = vadd.f32 0.99, %v1617_v63  ;;  %4720 = vmatpush.msrb.mxu1 %v6177_v24  ;;  %v6204_v63 = vld [vmem:[#allocation5 + $0x50] sm:$0xff] }
 0x303   :  { %v1452_v36 = vrot.slane %v1417_v5, 1  ;;  %v1500_v38 = vadd.f32 %v1444_v60, %v1417_v5  ;;  %vm1586_vm14 = vcmp.lt.f32.partialorder %v1578_v6, 0.0  ;;  %v1594_v17 = vmul.f32 0.01, %v1578_v6 }
 0x304   :  { %v6175_v12 = vsel %vm1609_vm13, %v1625_v40, %v1601_v62  ;;  %4721 = vmatpush.msrb.mxu1 %v6186_v30  ;;  %v1454_v5 = vrot.slane %v6165_v53, 1 }
 0x305   :  { %v1459_v9 = vsel %vm339_vm0, %v1451_v46, %v1452_v36  ;;  %v4602_v20 = vadd.f32 -1.0, %v1500_v38  ;;  %v1698_v25 = vrot.slane %v6175_v12, 1  ;;  %1683 = vrot.lane.b32.xlu2 %v6175_v12, %s5013_s2  ;;  %v1393_v50 = vpop.f32.mrf.mxu0  ;;  %1659 = vmatmul.f32.gmra.mxu1 %v6175_v12  ;;  %v1602_v43 = vsel %vm1586_vm14, %v1594_v17, %v1578_v6  ;;  %v6212_v6 = vld [vmem:[#allocation5 + $0x48] sm:$0xff]  ;;  %v6219_v17 = vld [vmem:[#allocation5 + $0x40] sm:$0xff] }
 0x306   :  { %v1467_v56 = vmul.f32 %v1459_v9, %v5389_v28  ;;  %v1475_v11 = vadd.f32 %v6007_v52, %v1393_v50  ;;  %v1618_v21 = vmul.f32 0.01, %v1602_v43  ;;  %4722 = vmatpush.msrb.mxu1 %v6200_v4  ;;  %v4604_v52 = vadd.f32 -1.0, %v1502_v0 }
 0x307   :  { %vm1516_vm15 = vcmp.lt.f32.partialorder %v4602_v20, 0.0  ;;  %v1524_v46 = vmul.f32 0.01, %v4602_v20  ;;  %v6198_v41 = vsel %vm339_vm0, %v1697_v1, %v1698_v25  ;;  %vm1610_vm1 = vcmp.gt.f32.partialorder %v1602_v43, 1.0 }
 0x308   :  { %v1483_v34 = vmul.f32 %v6136_v7, %v1467_v56  ;;  %v1626_v57 = vadd.f32 0.99, %v1618_v21  ;;  %4723 = vmatpush.msrb.mxu1 %v6204_v63  ;;  %v1526_v0 = vmul.f32 0.01, %v4604_v52  ;;  %vm1518_vm5 = vcmp.lt.f32.partialorder %v4604_v52, 0.0 }
 0x309   :  { %v1532_v2 = vsel %vm1516_vm15, %v1524_v46, %v4602_v20  ;;  %v1419_v49 = vpop.permute.xlu1 %1418 }
 0x30a   :  { %v1548_v47 = vmul.f32 0.01, %v1532_v2  ;;  %v1491_v22 = vadd.f32 %v1483_v34, %v1475_v11  ;;  %v1453_v62 = vrot.slane %v1419_v49, 1  ;;  %v1501_v60 = vadd.f32 %v1445_v33, %v1419_v49  ;;  %4724 = vmatpush.msrb.mxu1 %v6212_v6  ;;  %v6239_v49 = vld [vmem:[#allocation5 + $0x30] sm:$0xff] }
 0x30b   :  { %v6210_v40 = vsel %vm1610_vm1, %v1626_v57, %v1602_v43  ;;  %vm1540_vm2 = vcmp.gt.f32.partialorder %v1532_v2, 1.0 }
 0x30c   :  { %v1556_v13 = vadd.f32 0.99, %v1548_v47  ;;  %v1579_v15 = vadd.f32 %v1571_v8, %v1491_v22  ;;  %v1458_v59 = vsel %vm339_vm0, %v1452_v36, %v1453_v62  ;;  %v4603_v38 = vadd.f32 -1.0, %v1501_v60  ;;  %1685 = vrot.lane.b32.xlu0 %v6210_v40, %s5013_s2  ;;  %4725 = vmatpush.msrb.mxu1 %v6219_v17 }
 0x30d   :  { %v1699_v9 = vrot.slane %v6210_v40, 1  ;;  %v1468_v20 = vmul.f32 %v1458_v59, %v7800_v39  ;;  %v1396_v56 = vpop.f32.mrf.mxu0  ;;  %v1457_v46 = vsel %vm339_vm0, %v1453_v62, %v1454_v5  ;;  %1662 = vmatmul.f32.gmra.mxu1 %v6210_v40  ;;  %v1534_v62 = vsel %vm1518_vm5, %v1526_v0, %v4604_v52  ;;  %v6248_v0 = vld [vmem:[#allocation7 + $0x1] ss:$0 sm:$0xff] }
 0x30e   :  { %vm1517_vm3 = vcmp.lt.f32.partialorder %v4603_v38, 0.0  ;;  %v1525_v12 = vmul.f32 0.01, %v4603_v38  ;;  %v1564_v36 = vsel %vm1540_vm2, %v1556_v13, %v1532_v2  ;;  %vm1587_vm4 = vcmp.lt.f32.partialorder %v1579_v15, 0.0  ;;  %v6233_v2 = vld [vmem:[#allocation5 + $0x38] sm:$0xff]  ;;  %v6242_v13 = vld [vmem:[#allocation5 + $0x28] sm:$0xff] }
 0x30f   :  { %v1476_v50 = vadd.f32 %v6033_v10, %v1396_v56  ;;  %v1484_v45 = vmul.f32 %v6136_v7, %v1468_v20  ;;  %v1595_v11 = vmul.f32 0.01, %v1579_v15  ;;  %v6231_v43 = vsel %vm339_vm0, %v1698_v25, %v1699_v9  ;;  %4726 = vmatpush.msrb.mxu1 %v6233_v2 }
 0x310   :  { %v1533_v34 = vsel %vm1517_vm3, %v1525_v12, %v4603_v38  ;;  %v1572_v47 = vmul.f32 %v5903_v54, %v1564_v36  ;;  %v1469_v22 = vmul.f32 %v1457_v46, %v5394_v42  ;;  %v1447_v46 = vmul.f32 %v6115_v23, %v5411_v51 }
 0x311   :  { %v1549_v33 = vmul.f32 0.01, %v1533_v34  ;;  %v1492_v21 = vadd.f32 %v1484_v45, %v1476_v50  ;;  %v1603_v10 = vsel %vm1587_vm4, %v1595_v11, %v1579_v15  ;;  %4727 = vmatpush.msrb.mxu1 %v6239_v49  ;;  %vm1541_vm6 = vcmp.gt.f32.partialorder %v1533_v34, 1.0 }
 0x312   :  { %v1619_v8 = vmul.f32 0.01, %v1603_v10  ;;  %vm1611_vm7 = vcmp.gt.f32.partialorder %v1603_v10, 1.0  ;;  %v1550_v15 = vmul.f32 0.01, %v1534_v62  ;;  %v1485_v40 = vmul.f32 %v6136_v7, %v1469_v22 }
 0x313   :  { %v1557_v25 = vadd.f32 0.99, %v1549_v33  ;;  %v1580_v60 = vadd.f32 %v1572_v47, %v1492_v21  ;;  %4728 = vmatpush.msrb.mxu1 %v6242_v13  ;;  %v6259_v47 = vld [vmem:[#allocation5 + $0x10] sm:$0xff]  ;;  %vm1542_vm10 = vcmp.gt.f32.partialorder %v1534_v62, 1.0 }
 0x314   :  { %v1627_v57 = vadd.f32 0.99, %v1619_v8 }
 0x315   :  { %v1565_v59 = vsel %vm1541_vm6, %v1557_v25, %v1533_v34  ;;  %vm1588_vm8 = vcmp.lt.f32.partialorder %v1580_v60, 0.0  ;;  %v1596_v54 = vmul.f32 0.01, %v1580_v60  ;;  %v1399_v38 = vpop.f32.mrf.mxu0  ;;  %4729 = vmatpush.msrb.mxu1 %v6051_v37 }
 0x316   :  { %v1635_v20 = vsel %vm1611_vm7, %v1627_v57, %v1603_v10  ;;  %v1477_v52 = vadd.f32 %v6054_v31, %v1399_v38  ;;  %v1573_v12 = vmul.f32 %v6248_v0, %v1565_v59  ;;  %v1558_v31 = vadd.f32 0.99, %v1550_v15 }
 0x317   :  { %v1700_v56 = vrot.slane %v1635_v20, 1  ;;  %1687 = vrot.lane.b32.xlu1 %v1635_v20, %s5013_s2  ;;  %1665 = vmatmul.f32.gmra.mxu1 %v1635_v20  ;;  %v1604_v36 = vsel %vm1588_vm8, %v1596_v54, %v1580_v60 }
 0x318   :  { %v1620_v50 = vmul.f32 0.01, %v1604_v36  ;;  %4730 = vmatpush.msrb.mxu1 %v6060_v32  ;;  %v1493_v45 = vadd.f32 %v1485_v40, %v1477_v52  ;;  %vm1612_vm9 = vcmp.gt.f32.partialorder %v1604_v36, 1.0 }
 0x319   :  { %v1423_v11 = vpop.permute.xlu0 %1422  ;;  %v6257_v37 = vsel %vm339_vm0, %v1699_v9, %v1700_v56 }
 0x31a   :  { %v1455_v34 = vrot.slane %v1423_v11, 1  ;;  %v1503_v33 = vadd.f32 %v1447_v46, %v1423_v11  ;;  %v1628_v21 = vadd.f32 0.99, %v1620_v50  ;;  %4731 = vmatpush.msrb.mxu1 %v6259_v47  ;;  %v1581_v10 = vadd.f32 %v1573_v12, %v1493_v45 }
 0x31c   :  { %v1456_v32 = vsel %vm339_vm0, %v1454_v5, %v1455_v34  ;;  %v4605_v23 = vadd.f32 -1.0, %v1503_v33  ;;  %v1636_v22 = vsel %vm1612_vm9, %v1628_v21, %v1604_v36  ;;  %4732 = vmatpush.msrb.mxu1 %v6070_v19  ;;  %vm1589_vm11 = vcmp.lt.f32.partialorder %v1581_v10, 0.0 }
 0x31d   :  { %v1470_v9 = vmul.f32 %v1456_v32, %v5436_v16  ;;  %v1701_v8 = vrot.slane %v1636_v22, 1  ;;  %1689 = vrot.lane.b32.xlu2 %v1636_v22, %s5013_s2  ;;  %v1597_v25 = vmul.f32 0.01, %v1581_v10  ;;  %v1463_v60 = vsel %vm339_vm0, %v1455_v34, %v1448_v44  ;;  %v1402_v57 = vpop.f32.mrf.mxu0 }
 0x31e   :  { %vm1519_vm12 = vcmp.lt.f32.partialorder %v4605_v23, 0.0  ;;  %v1527_v53 = vmul.f32 0.01, %v4605_v23  ;;  %v1566_v5 = vsel %vm1542_vm10, %v1558_v31, %v1534_v62  ;;  %4733 = vmatpush.msrb.mxu1 %v6074_v29  ;;  %v1478_v19 = vadd.f32 %v6077_v55, %v1402_v57 }
 0x31f   :  { %v1486_v59 = vmul.f32 %v6136_v7, %v1470_v9  ;;  %1668 = vmatmul.f32.gmra.mxu1 %v1636_v22  ;;  %v1605_v54 = vsel %vm1589_vm11, %v1597_v25, %v1581_v10  ;;  %v6278_v15 = vsel %vm339_vm0, %v1700_v56, %v1701_v8  ;;  %v1574_v20 = vmul.f32 %v6248_v0, %v1566_v5 }
 0x320   :  { %v1535_v48 = vsel %vm1519_vm12, %v1527_v53, %v4605_v23  ;;  %v1621_v38 = vmul.f32 0.01, %v1605_v54  ;;  %v1471_v62 = vmul.f32 %v1463_v60, %v5411_v51  ;;  %vm1613_vm13 = vcmp.gt.f32.partialorder %v1605_v54, 1.0 }
 0x321   :  { %v1551_v40 = vmul.f32 0.01, %v1535_v48  ;;  %v1494_v44 = vadd.f32 %v1486_v59, %v1478_v19  ;;  %vm1543_vm14 = vcmp.gt.f32.partialorder %v1535_v48, 1.0 }
 0x322   :  { %v1629_v52 = vadd.f32 0.99, %v1621_v38  ;;  %v1487_v45 = vmul.f32 %v6136_v7, %v1471_v62 }
 0x323   :  { %v1559_v29 = vadd.f32 0.99, %v1551_v40  ;;  %v1582_v12 = vadd.f32 %v1574_v20, %v1494_v44  ;;  %v1713_v40 = vmul.f32 %v6198_v41, %v7799_v35 }
 0x324   :  { %v1637_v55 = vsel %vm1613_vm13, %v1629_v52, %v1605_v54 }
 0x325   :  { %v1702_v36 = vrot.slane %v1637_v55, 1  ;;  %1691 = vrot.lane.b32.xlu0 %v1637_v55, %s5013_s2  ;;  %v1567_v46 = vsel %vm1543_vm14, %v1559_v29, %v1535_v48  ;;  %vm1590_vm15 = vcmp.lt.f32.partialorder %v1582_v12, 0.0  ;;  %v1598_v56 = vmul.f32 0.01, %v1582_v12  ;;  %v1405_v50 = vpop.f32.mrf.mxu0 }
 0x326   :  { %v1479_v11 = vadd.f32 %v6092_v61, %v1405_v50  ;;  %v1575_v31 = vmul.f32 %v6248_v0, %v1567_v46  ;;  %v1714_v48 = vmul.f32 %v6231_v43, %v5384_v27 }
 0x327   :  { %1671 = vmatmul.f32.gmra.mxu1 %v1637_v55  ;;  %v1606_v34 = vsel %vm1590_vm15, %v1598_v56, %v1582_v12  ;;  %v1707_v33 = vsel %vm339_vm0, %v1701_v8, %v1702_v36 }
 0x328   :  { %v1622_v21 = vmul.f32 0.01, %v1606_v34  ;;  %v1495_v10 = vadd.f32 %v1487_v45, %v1479_v11  ;;  %vm1614_vm1 = vcmp.gt.f32.partialorder %v1606_v34, 1.0  ;;  %v6317_v11 = vld [vmem:[#allocation2] sm:$0xff] }
 0x32a   :  { %v1630_v32 = vadd.f32 0.99, %v1622_v21  ;;  %v1583_v23 = vadd.f32 %v1575_v31, %v1495_v10 }
 0x32c   :  { %v1638_v22 = vsel %vm1614_vm1, %v1630_v32, %v1606_v34  ;;  %vm1591_vm2 = vcmp.lt.f32.partialorder %v1583_v23, 0.0  ;;  %v1599_v25 = vmul.f32 0.01, %v1583_v23  ;;  %v1715_v32 = vmul.f32 %v6257_v37, %v5364_v58 }
 0x32d   :  { %1693 = vrot.lane.b32.xlu1 %v1638_v22, %s5013_s2  ;;  %v1703_v9 = vrot.slane %v1638_v22, 1 }
 0x32e   :  { %v1607_v61 = vsel %vm1591_vm2, %v1599_v25, %v1583_v23 }
 0x32f   :  { %1674 = vmatmul.f32.gmra.mxu1 %v1638_v22  ;;  %v6291_v60 = vsel %vm339_vm0, %v1702_v36, %v1703_v9  ;;  %v1623_v53 = vmul.f32 0.01, %v1607_v61  ;;  %vm1615_vm3 = vcmp.gt.f32.partialorder %v1607_v61, 1.0 }
 0x331   :  { %v1631_v57 = vadd.f32 0.99, %v1623_v53 }
 0x333   :  { %v1639_v8 = vsel %vm1615_vm3, %v1631_v57, %v1607_v61 }
 0x334   :  { %1695 = vrot.lane.b32.xlu2 %v1639_v8, %s5013_s2  ;;  %v1704_v5 = vrot.slane %v1639_v8, 1 }
 0x336   :  { %v6298_v19 = vsel %vm339_vm0, %v1704_v5, %v1697_v1  ;;  %v6302_v59 = vsel %vm339_vm0, %v1703_v9, %v1704_v5 }
 0x337   :  { %1677 = vmatmul.f32.gmra.mxu1 %v1639_v8  ;;  %v1717_v8 = vmul.f32 %v1707_v33, %v7800_v39 }
 0x35f   :  { %v1684_v54 = vpop.permute.xlu2 %1683 }
 0x360   :  { %v1770_v38 = vadd.f32 %v1714_v48, %v1684_v54  ;;  %v1722_v52 = vrot.slane %v1684_v54, 1 }
 0x362   :  { %v4607_v44 = vadd.f32 -1.0, %v1770_v38 }
 0x364   :  { %v1794_v29 = vmul.f32 0.01, %v4607_v44  ;;  %vm1786_vm4 = vcmp.lt.f32.partialorder %v4607_v44, 0.0 }
 0x366   :  { %v1802_v41 = vsel %vm1786_vm4, %v1794_v29, %v4607_v44 }
 0x367   :  { %v1818_v50 = vmul.f32 0.01, %v1802_v41  ;;  %vm1810_vm7 = vcmp.gt.f32.partialorder %v1802_v41, 1.0 }
 0x369   :  { %v1826_v9 = vadd.f32 0.99, %v1818_v50  ;;  %v1716_v50 = vmul.f32 %v6278_v15, %v5389_v28 }
 0x36f   :  { %v6308_v20 = vpop.permute.xlu1 %1681 }
 0x370   :  { %v1721_v18 = vrot.slane %v6308_v20, 1  ;;  %v1769_v1 = vadd.f32 %v1713_v40, %v6308_v20 }
 0x372   :  { %v4606_v62 = vadd.f32 -1.0, %v1769_v1  ;;  %v1735_v43 = vsel %vm339_vm0, %v1721_v18, %v1722_v52  ;;  %v1834_v1 = vsel %vm1810_vm7, %v1826_v9, %v1802_v41 }
 0x373   :  { %v1737_v46 = vmul.f32 %v1735_v43, %v7799_v35 }
 0x374   :  { %vm1785_vm5 = vcmp.lt.f32.partialorder %v4606_v62, 0.0  ;;  %v1793_v12 = vmul.f32 0.01, %v4606_v62 }
 0x375   :  { %v1753_v34 = vmul.f32 %v6136_v7, %v1737_v46  ;;  %v1842_v46 = vmul.f32 %v6248_v0, %v1834_v1 }
 0x376   :  { %v1801_v55 = vsel %vm1785_vm5, %v1793_v12, %v4606_v62  ;;  %v6331_v62 = vld [vmem:[#allocation2 + $0x8] sm:$0xff] }
 0x377   :  { %v1817_v36 = vmul.f32 0.01, %v1801_v55  ;;  %vm1809_vm6 = vcmp.gt.f32.partialorder %v1801_v55, 1.0  ;;  %v6324_v53 = vpop.permute.xlu2 %1689 }
 0x378   :  { %v1773_v37 = vadd.f32 %v1717_v8, %v6324_v53 }
 0x379   :  { %v1825_v56 = vadd.f32 0.99, %v1817_v36 }
 0x37a   :  { %v1657_v45 = vpop.f32.mrf.mxu1 }
 0x37b   :  { %v1745_v31 = vadd.f32 %v6317_v11, %v1657_v45  ;;  %v1833_v21 = vsel %vm1809_vm6, %v1825_v56, %v1801_v55  ;;  %v4610_v56 = vadd.f32 -1.0, %v1773_v37 }
 0x37c   :  { %v1841_v10 = vmul.f32 %v6248_v0, %v1833_v21 }
 0x37d   :  { %v1761_v23 = vadd.f32 %v1753_v34, %v1745_v31  ;;  %vm1789_vm12 = vcmp.lt.f32.partialorder %v4610_v56, 0.0  ;;  %v1797_v15 = vmul.f32 0.01, %v4610_v56 }
 0x37e   :  { %v1686_v22 = vpop.permute.xlu0 %1685 }
 0x37f   :  { %v1723_v25 = vrot.slane %v1686_v22, 1  ;;  %v1771_v61 = vadd.f32 %v1715_v32, %v1686_v22  ;;  %v1849_v57 = vadd.f32 %v1841_v10, %v1761_v23  ;;  %v1725_v23 = vrot.slane %v6324_v53, 1  ;;  %v6397_v53 = vld [vmem:[#allocation2 + $0x20] sm:$0xff] }
 0x381   :  { %v1734_v5 = vsel %vm339_vm0, %v1722_v52, %v1723_v25  ;;  %v4608_v54 = vadd.f32 -1.0, %v1771_v61  ;;  %vm1857_vm8 = vcmp.lt.f32.partialorder %v1849_v57, 0.0  ;;  %v1865_v38 = vmul.f32 0.01, %v1849_v57 }
 0x382   :  { %v1738_v48 = vmul.f32 %v1734_v5, %v5384_v27  ;;  %v1660_v44 = vpop.f32.mrf.mxu1 }
 0x383   :  { %vm1787_vm9 = vcmp.lt.f32.partialorder %v4608_v54, 0.0  ;;  %v1795_v40 = vmul.f32 0.01, %v4608_v54  ;;  %v1746_v29 = vadd.f32 %v6331_v62, %v1660_v44  ;;  %v1873_v43 = vsel %vm1857_vm8, %v1865_v38, %v1849_v57 }
 0x384   :  { %v1754_v33 = vmul.f32 %v6136_v7, %v1738_v48  ;;  %v1889_v12 = vmul.f32 0.01, %v1873_v43  ;;  %vm1881_vm10 = vcmp.gt.f32.partialorder %v1873_v43, 1.0  ;;  %v1805_v44 = vsel %vm1789_vm12, %v1797_v15, %v4610_v56 }
 0x385   :  { %v1803_v52 = vsel %vm1787_vm9, %v1795_v40, %v4608_v54  ;;  %v1821_v56 = vmul.f32 0.01, %v1805_v44  ;;  %v1720_v15 = vmul.f32 %v6298_v19, %v5411_v51  ;;  %vm1813_vm3 = vcmp.gt.f32.partialorder %v1805_v44, 1.0 }
 0x386   :  { %v1819_v55 = vmul.f32 0.01, %v1803_v52  ;;  %v1762_v36 = vadd.f32 %v1754_v33, %v1746_v29  ;;  %v1897_v45 = vadd.f32 0.99, %v1889_v12  ;;  %vm1811_vm13 = vcmp.gt.f32.partialorder %v1803_v52, 1.0 }
 0x388   :  { %v1850_v31 = vadd.f32 %v1842_v46, %v1762_v36  ;;  %v1827_v34 = vadd.f32 0.99, %v1819_v55  ;;  %v6338_v32 = vsel %vm1881_vm10, %v1897_v45, %v1873_v43 }
 0x389   :  { %v1688_v41 = vpop.permute.xlu1 %1687  ;;  %1929 = vmatmul.f32.vlgmr.msrb.gmra.mxu2 %v6338_v32  ;;  %1954 = vrot.lane.b32.xlu0 %v6338_v32, %s5013_s2 }
 0x38a   :  { %v1724_v21 = vrot.slane %v1688_v41, 1  ;;  %v1772_v10 = vadd.f32 %v1716_v50, %v1688_v41  ;;  %vm1858_vm11 = vcmp.lt.f32.partialorder %v1850_v31, 0.0  ;;  %v1866_v22 = vmul.f32 0.01, %v1850_v31  ;;  %v1663_v57 = vpop.f32.mrf.mxu1  ;;  %4097 = vmatpush.msrb.mxu2 %v6162_v3 }
 0x38b   :  { %v1835_v38 = vsel %vm1811_vm13, %v1827_v34, %v1803_v52 }
 0x38c   :  { %v1733_v9 = vsel %vm339_vm0, %v1723_v25, %v1724_v21  ;;  %v4609_v61 = vadd.f32 -1.0, %v1772_v10  ;;  %v1732_v8 = vsel %vm339_vm0, %v1724_v21, %v1725_v23  ;;  %v1874_v54 = vsel %vm1858_vm11, %v1866_v22, %v1850_v31  ;;  %4098 = vmatpush.msrb.mxu2 %v6169_v14  ;;  %v6353_v25 = vld [vmem:[#allocation2 + $0x10] sm:$0xff]  ;;  %v6371_v31 = vld [vmem:[#allocation2 + $0x18] sm:$0xff] }
 0x38d   :  { %v1739_v5 = vmul.f32 %v1733_v9, %v5364_v58  ;;  %v1890_v37 = vmul.f32 0.01, %v1874_v54  ;;  %v1747_v40 = vadd.f32 %v6353_v25, %v1663_v57  ;;  %v1740_v33 = vmul.f32 %v1732_v8, %v5389_v28 }
 0x38e   :  { %vm1788_vm14 = vcmp.lt.f32.partialorder %v4609_v61, 0.0  ;;  %v1796_v48 = vmul.f32 0.01, %v4609_v61  ;;  %4099 = vmatpush.msrb.mxu2 %v6177_v24  ;;  %v1843_v52 = vmul.f32 %v6248_v0, %v1835_v38  ;;  %vm1882_vm15 = vcmp.gt.f32.partialorder %v1874_v54, 1.0 }
 0x38f   :  { %v1755_v3 = vmul.f32 %v6136_v7, %v1739_v5  ;;  %v1898_v29 = vadd.f32 0.99, %v1890_v37  ;;  %v1970_v24 = vrot.slane %v6338_v32, 1  ;;  %v1756_v45 = vmul.f32 %v6136_v7, %v1740_v33 }
 0x390   :  { %v1804_v1 = vsel %vm1788_vm14, %v1796_v48, %v4609_v61  ;;  %4100 = vmatpush.msrb.mxu2 %v6186_v30  ;;  %v1718_v10 = vmul.f32 %v6291_v60, %v5394_v42  ;;  %v1829_v8 = vadd.f32 0.99, %v1821_v56 }
 0x391   :  { %v1820_v43 = vmul.f32 0.01, %v1804_v1  ;;  %v1763_v12 = vadd.f32 %v1755_v3, %v1747_v40  ;;  %v6361_v14 = vsel %vm1882_vm15, %v1898_v29, %v1874_v54  ;;  %vm1812_vm1 = vcmp.gt.f32.partialorder %v1804_v1, 1.0 }
 0x392   :  { %1932 = vmatmul.f32.gmra.mxu2 %v6361_v14  ;;  %v1971_v46 = vrot.slane %v6361_v14, 1  ;;  %1956 = vrot.lane.b32.xlu1 %v6361_v14, %s5013_s2  ;;  %v1837_v29 = vsel %vm1813_vm3, %v1829_v8, %v1805_v44 }
 0x393   :  { %v1828_v55 = vadd.f32 0.99, %v1820_v43  ;;  %v1851_v36 = vadd.f32 %v1843_v52, %v1763_v12  ;;  %4101 = vmatpush.msrb.mxu2 %v6200_v4  ;;  %v6384_v4 = vpop.permute.xlu2 %1695  ;;  %v1845_v56 = vmul.f32 %v6248_v0, %v1837_v29 }
 0x394   :  { %v1666_v50 = vpop.f32.mrf.mxu1  ;;  %v6381_v22 = vsel %vm339_vm0, %v1970_v24, %v1971_v46  ;;  %v1776_v38 = vadd.f32 %v1720_v15, %v6384_v4 }
 0x395   :  { %v1748_v30 = vadd.f32 %v6371_v31, %v1666_v50  ;;  %v1836_v41 = vsel %vm1812_vm1, %v1828_v55, %v1804_v1  ;;  %vm1859_vm2 = vcmp.lt.f32.partialorder %v1851_v36, 0.0  ;;  %v1867_v34 = vmul.f32 0.01, %v1851_v36  ;;  %4102 = vmatpush.msrb.mxu2 %v6204_v63 }
 0x396   :  { %v1844_v21 = vmul.f32 %v6248_v0, %v1836_v41  ;;  %v4613_v52 = vadd.f32 -1.0, %v1776_v38  ;;  %v1719_v55 = vmul.f32 %v6302_v59, %v5436_v16  ;;  %v6424_v38 = vld [vmem:[#allocation2 + $0x28] sm:$0xff] }
 0x397   :  { %v1764_v9 = vadd.f32 %v1756_v45, %v1748_v30  ;;  %v1692_v61 = vpop.permute.xlu0 %1691  ;;  %v1875_v57 = vsel %vm1859_vm2, %v1867_v34, %v1851_v36  ;;  %4103 = vmatpush.msrb.mxu2 %v6212_v6 }
 0x398   :  { %v1726_v5 = vrot.slane %v1692_v61, 1  ;;  %v1774_v54 = vadd.f32 %v1718_v10, %v1692_v61  ;;  %v1891_v60 = vmul.f32 0.01, %v1875_v57  ;;  %vm1883_vm4 = vcmp.gt.f32.partialorder %v1875_v57, 1.0 }
 0x399   :  { %v1852_v48 = vadd.f32 %v1844_v21, %v1764_v9  ;;  %4104 = vmatpush.msrb.mxu2 %v6219_v17  ;;  %v1728_v21 = vrot.slane %v6384_v4, 1  ;;  %vm1792_vm11 = vcmp.lt.f32.partialorder %v4613_v52, 0.0 }
 0x39a   :  { %v1731_v63 = vsel %vm339_vm0, %v1725_v23, %v1726_v5  ;;  %v4611_v37 = vadd.f32 -1.0, %v1774_v54  ;;  %v1899_v19 = vadd.f32 0.99, %v1891_v60 }
 0x39b   :  { %v1741_v40 = vmul.f32 %v1731_v63, %v7800_v39  ;;  %vm1860_vm5 = vcmp.lt.f32.partialorder %v1852_v48, 0.0  ;;  %v1868_v3 = vmul.f32 0.01, %v1852_v48  ;;  %4105 = vmatpush.msrb.mxu2 %v6233_v2 }
 0x39c   :  { %vm1790_vm6 = vcmp.lt.f32.partialorder %v4611_v37, 0.0  ;;  %v1798_v6 = vmul.f32 0.01, %v4611_v37  ;;  %v1669_v1 = vpop.f32.mrf.mxu1  ;;  %v1907_v33 = vsel %vm1883_vm4, %v1899_v19, %v1875_v57  ;;  %v6414_v57 = vld [vmem:[#allocation5 + $0x20] sm:$0xff] }
 0x39d   :  { %v1749_v23 = vadd.f32 %v6397_v53, %v1669_v1  ;;  %v1757_v43 = vmul.f32 %v6136_v7, %v1741_v40  ;;  %1935 = vmatmul.f32.gmra.mxu2 %v1907_v33  ;;  %v1972_v17 = vrot.slane %v1907_v33, 1  ;;  %1958 = vrot.lane.b32.xlu2 %v1907_v33, %s5013_s2  ;;  %v1876_v12 = vsel %vm1860_vm5, %v1868_v3, %v1852_v48  ;;  %v6419_v48 = vld [vmem:[#allocation5 + $0x18] sm:$0xff] }
 0x39e   :  { %v1806_v14 = vsel %vm1790_vm6, %v1798_v6, %v4611_v37  ;;  %v1892_v44 = vmul.f32 0.01, %v1876_v12  ;;  %4106 = vmatpush.msrb.mxu2 %v6239_v49  ;;  %vm1884_vm7 = vcmp.gt.f32.partialorder %v1876_v12, 1.0  ;;  %v1800_v49 = vmul.f32 0.01, %v4613_v52 }
 0x39f   :  { %v1822_v2 = vmul.f32 0.01, %v1806_v14  ;;  %v1765_v36 = vadd.f32 %v1757_v43, %v1749_v23  ;;  %v1694_v50 = vpop.permute.xlu1 %1693  ;;  %v6408_v45 = vsel %vm339_vm0, %v1971_v46, %v1972_v17  ;;  %vm1814_vm8 = vcmp.gt.f32.partialorder %v1806_v14, 1.0  ;;  %v6436_v43 = vld [vmem:[#allocation5 + $0x8] sm:$0xff] }
 0x3a0   :  { %v1727_v30 = vrot.slane %v1694_v50, 1  ;;  %v1775_v41 = vadd.f32 %v1719_v55, %v1694_v50  ;;  %v1900_v34 = vadd.f32 0.99, %v1892_v44  ;;  %4107 = vmatpush.msrb.mxu2 %v6242_v13  ;;  %v6439_v44 = vld [vmem:[#allocation5] sm:$0xff] }
 0x3a1   :  { %v1830_v59 = vadd.f32 0.99, %v1822_v2  ;;  %v1853_v10 = vadd.f32 %v1845_v56, %v1765_v36 }
 0x3a2   :  { %v1730_v15 = vsel %vm339_vm0, %v1726_v5, %v1727_v30  ;;  %v4612_v9 = vadd.f32 -1.0, %v1775_v41  ;;  %v1908_v61 = vsel %vm1884_vm7, %v1900_v34, %v1876_v12  ;;  %4108 = vmatpush.msrb.mxu2 %v6414_v57  ;;  %v1729_v5 = vsel %vm339_vm0, %v1727_v30, %v1728_v21 }
 0x3a3   :  { %v1973_v46 = vrot.slane %v1908_v61, 1  ;;  %1960 = vrot.lane.b32.xlu0 %v1908_v61, %s5013_s2  ;;  %v1742_v13 = vmul.f32 %v1730_v15, %v5394_v42  ;;  %vm1861_vm9 = vcmp.lt.f32.partialorder %v1853_v10, 0.0  ;;  %v1838_v54 = vsel %vm1814_vm8, %v1830_v59, %v1806_v14 }
 0x3a4   :  { %vm1791_vm10 = vcmp.lt.f32.partialorder %v4612_v9, 0.0  ;;  %v1799_v4 = vmul.f32 0.01, %v4612_v9  ;;  %v1672_v8 = vpop.f32.mrf.mxu1  ;;  %v1869_v60 = vmul.f32 0.01, %v1853_v10  ;;  %4109 = vmatpush.msrb.mxu2 %v6419_v48  ;;  %v1846_v29 = vmul.f32 %v6248_v0, %v1838_v54 }
 0x3a5   :  { %v1750_v63 = vadd.f32 %v6424_v38, %v1672_v8  ;;  %v1758_v37 = vmul.f32 %v6136_v7, %v1742_v13  ;;  %1938 = vmatmul.f32.gmra.mxu2 %v1908_v61  ;;  %v6430_v19 = vsel %vm339_vm0, %v1972_v17, %v1973_v46  ;;  %v1743_v23 = vmul.f32 %v1729_v5, %v5436_v16 }
 0x3a6   :  { %v1807_v40 = vsel %vm1791_vm10, %v1799_v4, %v4612_v9  ;;  %v1877_v3 = vsel %vm1861_vm9, %v1869_v60, %v1853_v10  ;;  %4110 = vmatpush.msrb.mxu2 %v6259_v47  ;;  %v1808_v12 = vsel %vm1792_vm11, %v1800_v49, %v4613_v52  ;;  %v6444_v52 = vld [vmem:[#allocation2 + $0x30] sm:$0xff]  ;;  %v1736_v49 = vsel %vm339_vm0, %v1728_v21, %v1721_v18 }
 0x3a7   :  { %v1823_v6 = vmul.f32 0.01, %v1807_v40  ;;  %v1766_v1 = vadd.f32 %v1758_v37, %v1750_v63  ;;  %v1893_v33 = vmul.f32 0.01, %v1877_v3  ;;  %vm1815_vm12 = vcmp.gt.f32.partialorder %v1807_v40, 1.0  ;;  %v6458_v63 = vld [vmem:[#allocation2 + $0x38] sm:$0xff] }
 0x3a8   :  { %4111 = vmatpush.msrb.mxu2 %v6436_v43  ;;  %vm1885_vm13 = vcmp.gt.f32.partialorder %v1877_v3, 1.0  ;;  %v1824_v36 = vmul.f32 0.01, %v1808_v12  ;;  %v1759_v30 = vmul.f32 %v6136_v7, %v1743_v23  ;;  %v1744_v54 = vmul.f32 %v1736_v49, %v5411_v51 }
 0x3a9   :  { %v1831_v17 = vadd.f32 0.99, %v1823_v6  ;;  %v1854_v14 = vadd.f32 %v1846_v29, %v1766_v1  ;;  %v1901_v55 = vadd.f32 0.99, %v1893_v33  ;;  %vm1816_vm1 = vcmp.gt.f32.partialorder %v1808_v12, 1.0 }
 0x3aa   :  { %4112 = vmatpush.msrb.mxu2 %v6439_v44  ;;  %v1832_v13 = vadd.f32 0.99, %v1824_v36  ;;  %v1760_v37 = vmul.f32 %v6136_v7, %v1744_v54  ;;  %v1988_v32 = vmul.f32 %v6430_v19, %v5364_v58 }
 0x3ab   :  { %v1839_v47 = vsel %vm1815_vm12, %v1831_v17, %v1807_v40  ;;  %vm1862_vm14 = vcmp.lt.f32.partialorder %v1854_v14, 0.0  ;;  %v1870_v2 = vmul.f32 0.01, %v1854_v14  ;;  %v1909_v56 = vsel %vm1885_vm13, %v1901_v55, %v1877_v3 }
 0x3ac   :  { %v1675_v50 = vpop.f32.mrf.mxu1  ;;  %v1974_v41 = vrot.slane %v1909_v56, 1  ;;  %1962 = vrot.lane.b32.xlu1 %v1909_v56, %s5013_s2  ;;  %v1847_v59 = vmul.f32 %v6248_v0, %v1839_v47  ;;  %v1840_v21 = vsel %vm1816_vm1, %v1832_v13, %v1808_v12 }
 0x3ad   :  { %v1751_v34 = vadd.f32 %v6444_v52, %v1675_v50  ;;  %1941 = vmatmul.f32.gmra.mxu2 %v1909_v56  ;;  %v1878_v10 = vsel %vm1862_vm14, %v1870_v2, %v1854_v14  ;;  %v1848_v29 = vmul.f32 %v6248_v0, %v1840_v21 }
 0x3ae   :  { %v1894_v15 = vmul.f32 0.01, %v1878_v10  ;;  %v6454_v61 = vsel %vm339_vm0, %v1973_v46, %v1974_v41  ;;  %vm1886_vm15 = vcmp.gt.f32.partialorder %v1878_v10, 1.0 }
 0x3af   :  { %v1767_v9 = vadd.f32 %v1759_v30, %v1751_v34 }
 0x3b0   :  { %v1902_v4 = vadd.f32 0.99, %v1894_v15 }
 0x3b1   :  { %v1855_v8 = vadd.f32 %v1847_v59, %v1767_v9  ;;  %v1987_v9 = vmul.f32 %v6408_v45, %v5384_v27 }
 0x3b2   :  { %v1910_v60 = vsel %vm1886_vm15, %v1902_v4, %v1878_v10 }
 0x3b3   :  { %v1975_v5 = vrot.slane %v1910_v60, 1  ;;  %1964 = vrot.lane.b32.xlu2 %v1910_v60, %s5013_s2  ;;  %vm1863_vm2 = vcmp.lt.f32.partialorder %v1855_v8, 0.0  ;;  %v1871_v20 = vmul.f32 0.01, %v1855_v8 }
 0x3b4   :  { %v1678_v18 = vpop.f32.mrf.mxu1 }
 0x3b5   :  { %v1752_v46 = vadd.f32 %v6458_v63, %v1678_v18  ;;  %1944 = vmatmul.f32.gmra.mxu2 %v1910_v60  ;;  %v1879_v40 = vsel %vm1863_vm2, %v1871_v20, %v1855_v8  ;;  %v6464_v3 = vsel %vm339_vm0, %v1974_v41, %v1975_v5  ;;  %v1986_v41 = vmul.f32 %v6381_v22, %v7799_v35 }
 0x3b6   :  { %v1895_v6 = vmul.f32 0.01, %v1879_v40  ;;  %vm1887_vm3 = vcmp.gt.f32.partialorder %v1879_v40, 1.0 }
 0x3b7   :  { %v1768_v1 = vadd.f32 %v1760_v37, %v1752_v46 }
 0x3b8   :  { %v1903_v33 = vadd.f32 0.99, %v1895_v6 }
 0x3b9   :  { %v1856_v23 = vadd.f32 %v1848_v29, %v1768_v1 }
 0x3ba   :  { %v1911_v12 = vsel %vm1887_vm3, %v1903_v33, %v1879_v40  ;;  %v6499_v33 = vld [vmem:[#allocation7] ss:$0 sm:$0xff] }
 0x3bb   :  { %1966 = vrot.lane.b32.xlu0 %v1911_v12, %s5013_s2  ;;  %v1976_v17 = vrot.slane %v1911_v12, 1  ;;  %vm1864_vm4 = vcmp.lt.f32.partialorder %v1856_v23, 0.0  ;;  %v1872_v14 = vmul.f32 0.01, %v1856_v23 }
 0x3bd   :  { %1947 = vmatmul.f32.gmra.mxu2 %v1911_v12  ;;  %v1880_v7 = vsel %vm1864_vm4, %v1872_v14, %v1856_v23  ;;  %v6470_v55 = vsel %vm339_vm0, %v1975_v5, %v1976_v17 }
 0x3be   :  { %v1896_v47 = vmul.f32 0.01, %v1880_v7  ;;  %vm1888_vm5 = vcmp.gt.f32.partialorder %v1880_v7, 1.0 }
 0x3c0   :  { %v1904_v2 = vadd.f32 0.99, %v1896_v47 }
 0x3c2   :  { %v1912_v36 = vsel %vm1888_vm5, %v1904_v2, %v1880_v7 }
 0x3c3   :  { %1968 = vrot.lane.b32.xlu1 %v1912_v36, %s5013_s2  ;;  %v1977_v56 = vrot.slane %v1912_v36, 1 }
 0x3c5   :  { %1950 = vmatmul.f32.gmra.mxu2 %v1912_v36  ;;  %v6475_v50 = vsel %vm339_vm0, %v1976_v17, %v1977_v56  ;;  %v6481_v30 = vsel %vm339_vm0, %v1977_v56, %v1970_v24 }
 0x3f7   :  { %v1959_v13 = vpop.permute.xlu2 %1958 }
 0x3f8   :  { %v2044_v60 = vadd.f32 %v1988_v32, %v1959_v13  ;;  %v1996_v37 = vrot.slane %v1959_v13, 1 }
 0x3fa   :  { %v4616_v19 = vadd.f32 -1.0, %v2044_v60 }
 0x3fb   :  { %v6485_v34 = vpop.permute.xlu0 %1954 }
 0x3fc   :  { %v2042_v59 = vadd.f32 %v1986_v41, %v6485_v34  ;;  %v1994_v4 = vrot.slane %v6485_v34, 1  ;;  %v2068_v12 = vmul.f32 0.01, %v4616_v19  ;;  %vm2060_vm9 = vcmp.lt.f32.partialorder %v4616_v19, 0.0 }
 0x3fe   :  { %v4614_v10 = vadd.f32 -1.0, %v2042_v59  ;;  %v2076_v56 = vsel %vm2060_vm9, %v2068_v12, %v4616_v19 }
 0x3ff   :  { %v2092_v32 = vmul.f32 0.01, %v2076_v56  ;;  %vm2084_vm15 = vcmp.gt.f32.partialorder %v2076_v56, 1.0 }
 0x400   :  { %vm2058_vm6 = vcmp.lt.f32.partialorder %v4614_v10, 0.0  ;;  %v2066_v49 = vmul.f32 0.01, %v4614_v10 }
 0x402   :  { %v2074_v15 = vsel %vm2058_vm6, %v2066_v49, %v4614_v10 }
 0x403   :  { %v2090_v8 = vmul.f32 0.01, %v2074_v15  ;;  %vm2082_vm8 = vcmp.gt.f32.partialorder %v2074_v15, 1.0 }
 0x404   :  { %v1957_v24 = vpop.permute.xlu1 %1956 }
 0x405   :  { %v1995_v22 = vrot.slane %v1957_v24, 1  ;;  %v2043_v54 = vadd.f32 %v1987_v9, %v1957_v24  ;;  %v2098_v18 = vadd.f32 0.99, %v2090_v8 }
 0x407   :  { %v2008_v5 = vsel %vm339_vm0, %v1994_v4, %v1995_v22  ;;  %v4615_v20 = vadd.f32 -1.0, %v2043_v54  ;;  %v2106_v1 = vsel %vm2082_vm8, %v2098_v18, %v2074_v15  ;;  %v2007_v17 = vsel %vm339_vm0, %v1995_v22, %v1996_v37 }
 0x408   :  { %v2010_v21 = vmul.f32 %v2008_v5, %v7799_v35  ;;  %v2114_v7 = vmul.f32 %v6248_v0, %v2106_v1  ;;  %v2011_v36 = vmul.f32 %v2007_v17, %v5384_v27  ;;  %v6523_v1 = vld [vmem:[#allocation5 + $0x78] sm:$0xff] }
 0x409   :  { %vm2059_vm7 = vcmp.lt.f32.partialorder %v4615_v20, 0.0  ;;  %v2067_v45 = vmul.f32 0.01, %v4615_v20 }
 0x40a   :  { %v2026_v23 = vmul.f32 %v6499_v33, %v2010_v21  ;;  %v2027_v24 = vmul.f32 %v6499_v33, %v2011_v36  ;;  %v6528_v36 = vld [vmem:[#allocation5 + $0x70] sm:$0xff] }
 0x40b   :  { %v2075_v46 = vsel %vm2059_vm7, %v2067_v45, %v4615_v20  ;;  %v2100_v45 = vadd.f32 0.99, %v2092_v32 }
 0x40c   :  { %v2091_v40 = vmul.f32 0.01, %v2075_v46  ;;  %v1930_v6 = vpop.f32.mrf.mxu2  ;;  %vm2083_vm10 = vcmp.gt.f32.partialorder %v2075_v46, 1.0 }
 0x40d   :  { %v2018_v29 = vadd.f32 %v6317_v11, %v1930_v6  ;;  %v1989_v11 = vmul.f32 %v6454_v61, %v5389_v28  ;;  %v2108_v12 = vsel %vm2084_vm15, %v2100_v45, %v2076_v56 }
 0x40e   :  { %v2099_v47 = vadd.f32 0.99, %v2091_v40  ;;  %v6519_v40 = vpop.permute.xlu2 %1964 }
 0x40f   :  { %v2034_v14 = vadd.f32 %v2026_v23, %v2018_v29  ;;  %v1991_v29 = vmul.f32 %v6470_v55, %v5394_v42  ;;  %v1999_v45 = vrot.slane %v6519_v40, 1 }
 0x410   :  { %v2107_v9 = vsel %vm2083_vm10, %v2099_v47, %v2075_v46 }
 0x411   :  { %v2122_v2 = vadd.f32 %v2114_v7, %v2034_v14  ;;  %v2115_v5 = vmul.f32 %v6248_v0, %v2107_v9  ;;  %v2116_v9 = vmul.f32 %v6248_v0, %v2108_v12 }
 0x413   :  { %v2138_v41 = vmul.f32 0.01, %v2122_v2  ;;  %vm2130_vm11 = vcmp.lt.f32.partialorder %v2122_v2, 0.0 }
 0x415   :  { %v1961_v59 = vpop.permute.xlu0 %1960  ;;  %v1933_v15 = vpop.f32.mrf.mxu2  ;;  %v2146_v8 = vsel %vm2130_vm11, %v2138_v41, %v2122_v2 }
 0x416   :  { %v1997_v10 = vrot.slane %v1961_v59, 1  ;;  %v2045_v49 = vadd.f32 %v1989_v11, %v1961_v59  ;;  %v2019_v13 = vadd.f32 %v6331_v62, %v1933_v15  ;;  %v2162_v54 = vmul.f32 0.01, %v2146_v8 }
 0x417   :  { %vm2154_vm13 = vcmp.gt.f32.partialorder %v2146_v8, 1.0 }
 0x418   :  { %v4617_v22 = vadd.f32 -1.0, %v2045_v49  ;;  %v2035_v60 = vadd.f32 %v2027_v24, %v2019_v13  ;;  %v2006_v61 = vsel %vm339_vm0, %v1996_v37, %v1997_v10  ;;  %v2170_v18 = vadd.f32 0.99, %v2162_v54  ;;  %v6536_v49 = vld [vmem:[#allocation5 + $0x68] sm:$0xff] }
 0x419   :  { %v2012_v46 = vmul.f32 %v2006_v61, %v5364_v58  ;;  %v1990_v37 = vmul.f32 %v6464_v3, %v7800_v39  ;;  %v2047_v3 = vadd.f32 %v1991_v29, %v6519_v40 }
 0x41a   :  { %vm2061_vm12 = vcmp.lt.f32.partialorder %v4617_v22, 0.0  ;;  %v2069_v20 = vmul.f32 0.01, %v4617_v22  ;;  %v2123_v21 = vadd.f32 %v2115_v5, %v2035_v60  ;;  %v6513_v19 = vsel %vm2154_vm13, %v2170_v18, %v2146_v8  ;;  %v6546_v18 = vld [vmem:[#allocation5 + $0x58] sm:$0xff] }
 0x41b   :  { %2202 = vmatmul.f32.vlgmr.msra.gmra.mxu3 %v6513_v19  ;;  %2227 = vrot.lane.b32.xlu2 %v6513_v19, %s5013_s2  ;;  %v2028_v41 = vmul.f32 %v6499_v33, %v2012_v46  ;;  %v4619_v8 = vadd.f32 -1.0, %v2047_v3  ;;  %v2243_v60 = vrot.slane %v6513_v19, 1  ;;  %v6564_v3 = vld [vmem:[#allocation5 + $0x48] sm:$0xff] }
 0x41c   :  { %v2077_v62 = vsel %vm2061_vm12, %v2069_v20, %v4617_v22  ;;  %vm2131_vm14 = vcmp.lt.f32.partialorder %v2123_v21, 0.0  ;;  %v2139_v6 = vmul.f32 0.01, %v2123_v21  ;;  %4734 = vmatpush.msra.mxu3 %v6523_v1 }
 0x41d   :  { %v2093_v17 = vmul.f32 0.01, %v2077_v62  ;;  %vm2085_vm3 = vcmp.gt.f32.partialorder %v2077_v62, 1.0  ;;  %v2071_v29 = vmul.f32 0.01, %v4619_v8  ;;  %vm2063_vm5 = vcmp.lt.f32.partialorder %v4619_v8, 0.0 }
 0x41e   :  { %v1963_v23 = vpop.permute.xlu1 %1962  ;;  %v2147_v2 = vsel %vm2131_vm14, %v2139_v6, %v2123_v21  ;;  %4735 = vmatpush.msra.mxu3 %v6528_v36 }
 0x41f   :  { %v1998_v14 = vrot.slane %v1963_v23, 1  ;;  %v2046_v7 = vadd.f32 %v1990_v37, %v1963_v23  ;;  %v2163_v59 = vmul.f32 0.01, %v2147_v2  ;;  %v2101_v13 = vadd.f32 0.99, %v2093_v17 }
 0x420   :  { %v1936_v47 = vpop.f32.mrf.mxu2  ;;  %4736 = vmatpush.msra.mxu3 %v6536_v49  ;;  %vm2155_vm2 = vcmp.gt.f32.partialorder %v2147_v2, 1.0 }
 0x421   :  { %v2020_v11 = vadd.f32 %v6353_v25, %v1936_v47  ;;  %v2005_v55 = vsel %vm339_vm0, %v1997_v10, %v1998_v14  ;;  %v4618_v56 = vadd.f32 -1.0, %v2046_v7  ;;  %v2171_v32 = vadd.f32 0.99, %v2163_v59  ;;  %v6540_v25 = vld [vmem:[#allocation5 + $0x60] sm:$0xff]  ;;  %v6558_v7 = vld [vmem:[#allocation5 + $0x50] sm:$0xff] }
 0x422   :  { %4737 = vmatpush.msra.mxu3 %v6540_v25  ;;  %v2013_v54 = vmul.f32 %v2005_v55, %v5389_v28  ;;  %v2109_v37 = vsel %vm2085_vm3, %v2101_v13, %v2077_v62  ;;  %v2004_v62 = vsel %vm339_vm0, %v1998_v14, %v1999_v45  ;;  %v2079_v59 = vsel %vm2063_vm5, %v2071_v29, %v4619_v8  ;;  %v6570_v14 = vld [vmem:[#allocation5 + $0x40] sm:$0xff] }
 0x423   :  { %v2036_v15 = vadd.f32 %v2028_v41, %v2020_v11  ;;  %vm2062_vm1 = vcmp.lt.f32.partialorder %v4618_v56, 0.0  ;;  %v2070_v24 = vmul.f32 0.01, %v4618_v56  ;;  %v2179_v10 = vsel %vm2155_vm2, %v2171_v32, %v2147_v2 }
 0x424   :  { %2205 = vmatmul.f32.gmra.mxu3 %v2179_v10  ;;  %v2244_v61 = vrot.slane %v2179_v10, 1  ;;  %2229 = vrot.lane.b32.xlu0 %v2179_v10, %s5013_s2  ;;  %v2029_v12 = vmul.f32 %v6499_v33, %v2013_v54  ;;  %v2117_v2 = vmul.f32 %v6248_v0, %v2109_v37  ;;  %v1992_v11 = vmul.f32 %v6475_v50, %v5436_v16 }
 0x425   :  { %v2124_v22 = vadd.f32 %v2116_v9, %v2036_v15  ;;  %v2078_v5 = vsel %vm2062_vm1, %v2070_v24, %v4618_v56  ;;  %4738 = vmatpush.msra.mxu3 %v6546_v18  ;;  %v2014_v15 = vmul.f32 %v2004_v62, %v7800_v39  ;;  %v2095_v8 = vmul.f32 0.01, %v2079_v59 }
 0x426   :  { %v2094_v21 = vmul.f32 0.01, %v2078_v5  ;;  %v6554_v6 = vsel %vm339_vm0, %v2243_v60, %v2244_v61  ;;  %vm2086_vm7 = vcmp.gt.f32.partialorder %v2078_v5, 1.0  ;;  %vm2087_vm11 = vcmp.gt.f32.partialorder %v2079_v59, 1.0 }
 0x427   :  { %vm2132_vm4 = vcmp.lt.f32.partialorder %v2124_v22, 0.0  ;;  %v2140_v20 = vmul.f32 0.01, %v2124_v22  ;;  %4739 = vmatpush.msra.mxu3 %v6558_v7 }
 0x428   :  { %v1939_v46 = vpop.f32.mrf.mxu2 }
 0x429   :  { %v2021_v23 = vadd.f32 %v6371_v31, %v1939_v46  ;;  %v2148_v17 = vsel %vm2132_vm4, %v2140_v20, %v2124_v22  ;;  %4740 = vmatpush.msra.mxu3 %v6564_v3  ;;  %v2102_v31 = vadd.f32 0.99, %v2094_v21  ;;  %v6579_v20 = vld [vmem:[#allocation5 + $0x38] sm:$0xff]  ;;  %v2030_v46 = vmul.f32 %v6499_v33, %v2014_v15 }
 0x42a   :  { %v2164_v40 = vmul.f32 0.01, %v2148_v17  ;;  %vm2156_vm6 = vcmp.gt.f32.partialorder %v2148_v17, 1.0 }
 0x42b   :  { %v2037_v47 = vadd.f32 %v2029_v12, %v2021_v23  ;;  %4741 = vmatpush.msra.mxu3 %v6570_v14  ;;  %v2110_v54 = vsel %vm2086_vm7, %v2102_v31, %v2078_v5  ;;  %v6590_v5 = vld [vmem:[#allocation5 + $0x30] sm:$0xff] }
 0x42c   :  { %v2172_v41 = vadd.f32 0.99, %v2164_v40  ;;  %v2103_v40 = vadd.f32 0.99, %v2095_v8 }
 0x42d   :  { %v2125_v55 = vadd.f32 %v2117_v2, %v2037_v47  ;;  %v1967_v56 = vpop.permute.xlu0 %1966  ;;  %4742 = vmatpush.msra.mxu3 %v6579_v20  ;;  %v1993_v47 = vmul.f32 %v6481_v30, %v5411_v51 }
 0x42e   :  { %v2000_v9 = vrot.slane %v1967_v56, 1  ;;  %v2048_v32 = vadd.f32 %v1992_v11, %v1967_v56  ;;  %v6573_v13 = vsel %vm2156_vm6, %v2172_v41, %v2148_v17  ;;  %v2111_v8 = vsel %vm2087_vm11, %v2103_v40, %v2079_v59 }
 0x42f   :  { %2208 = vmatmul.f32.gmra.mxu3 %v6573_v13  ;;  %v2245_v50 = vrot.slane %v6573_v13, 1  ;;  %2231 = vrot.lane.b32.xlu1 %v6573_v13, %s5013_s2  ;;  %vm2133_vm8 = vcmp.lt.f32.partialorder %v2125_v55, 0.0  ;;  %v2141_v24 = vmul.f32 0.01, %v2125_v55 }
 0x430   :  { %v4620_v22 = vadd.f32 -1.0, %v2048_v32  ;;  %v1942_v10 = vpop.f32.mrf.mxu2  ;;  %v2003_v23 = vsel %vm339_vm0, %v1999_v45, %v2000_v9  ;;  %4743 = vmatpush.msra.mxu3 %v6590_v5 }
 0x431   :  { %v2022_v21 = vadd.f32 %v6397_v53, %v1942_v10  ;;  %v2149_v37 = vsel %vm2133_vm8, %v2141_v24, %v2125_v55  ;;  %v6586_v29 = vsel %vm339_vm0, %v2244_v61, %v2245_v50  ;;  %v2118_v53 = vmul.f32 %v6248_v0, %v2110_v54  ;;  %v6596_v61 = vld [vmem:[#allocation5 + $0x28] sm:$0xff] }
 0x432   :  { %vm2064_vm9 = vcmp.lt.f32.partialorder %v4620_v22, 0.0  ;;  %v2072_v12 = vmul.f32 0.01, %v4620_v22  ;;  %v2165_v17 = vmul.f32 0.01, %v2149_v37  ;;  %4744 = vmatpush.msra.mxu3 %v6596_v61  ;;  %vm2157_vm10 = vcmp.gt.f32.partialorder %v2149_v37, 1.0 }
 0x433   :  { %v2038_v62 = vadd.f32 %v2030_v46, %v2022_v21  ;;  %v2015_v41 = vmul.f32 %v2003_v23, %v5394_v42 }
 0x434   :  { %v2173_v2 = vadd.f32 0.99, %v2165_v17  ;;  %v2080_v45 = vsel %vm2064_vm9, %v2072_v12, %v4620_v22  ;;  %4745 = vmatpush.msra.mxu3 %v6414_v57  ;;  %v6610_v12 = vld [vmem:[#allocation7 + $0x1] ss:$0 sm:$0xff] }
 0x435   :  { %v2126_v31 = vadd.f32 %v2118_v53, %v2038_v62  ;;  %v1969_v11 = vpop.permute.xlu1 %1968  ;;  %v2096_v30 = vmul.f32 0.01, %v2080_v45  ;;  %v2031_v10 = vmul.f32 %v6499_v33, %v2015_v41  ;;  %vm2088_vm15 = vcmp.gt.f32.partialorder %v2080_v45, 1.0 }
 0x436   :  { %v2001_v55 = vrot.slane %v1969_v11, 1  ;;  %v2049_v56 = vadd.f32 %v1993_v47, %v1969_v11  ;;  %v2181_v15 = vsel %vm2157_vm10, %v2173_v2, %v2149_v37  ;;  %4746 = vmatpush.msra.mxu3 %v6419_v48  ;;  %v6607_v37 = vld [vmem:[#allocation5 + $0x10] sm:$0xff]  ;;  %v2119_v48 = vmul.f32 %v6610_v12, %v2111_v8 }
 0x437   :  { %2233 = vrot.lane.b32.xlu2 %v2181_v15, %s5013_s2  ;;  %2211 = vmatmul.f32.gmra.mxu3 %v2181_v15  ;;  %vm2134_vm12 = vcmp.lt.f32.partialorder %v2126_v31, 0.0  ;;  %v2142_v0 = vmul.f32 0.01, %v2126_v31  ;;  %v2246_v13 = vrot.slane %v2181_v15, 1  ;;  %v2104_v59 = vadd.f32 0.99, %v2096_v30 }
 0x438   :  { %v4621_v32 = vadd.f32 -1.0, %v2049_v56  ;;  %v1945_v24 = vpop.f32.mrf.mxu2  ;;  %v2002_v57 = vsel %vm339_vm0, %v2000_v9, %v2001_v55  ;;  %4747 = vmatpush.msra.mxu3 %v6607_v37 }
 0x439   :  { %v2023_v22 = vadd.f32 %v6424_v38, %v1945_v24  ;;  %v2150_v54 = vsel %vm2134_vm12, %v2142_v0, %v2126_v31  ;;  %v6615_v17 = vsel %vm339_vm0, %v2245_v50, %v2246_v13  ;;  %v2016_v53 = vmul.f32 %v2002_v57, %v5436_v16 }
 0x43a   :  { %vm2065_vm13 = vcmp.lt.f32.partialorder %v4621_v32, 0.0  ;;  %v2073_v21 = vmul.f32 0.01, %v4621_v32  ;;  %v2166_v46 = vmul.f32 0.01, %v2150_v54  ;;  %4748 = vmatpush.msra.mxu3 %v6436_v43  ;;  %vm2158_vm14 = vcmp.gt.f32.partialorder %v2150_v54, 1.0 }
 0x43b   :  { %v2039_v23 = vadd.f32 %v2031_v10, %v2023_v22  ;;  %v2112_v11 = vsel %vm2088_vm15, %v2104_v59, %v2080_v45  ;;  %v2032_v41 = vmul.f32 %v6499_v33, %v2016_v53 }
 0x43c   :  { %v2174_v38 = vadd.f32 0.99, %v2166_v46  ;;  %v2081_v9 = vsel %vm2065_vm13, %v2073_v21, %v4621_v32  ;;  %4749 = vmatpush.msra.mxu3 %v6439_v44  ;;  %v2009_v44 = vsel %vm339_vm0, %v2001_v55, %v1994_v4  ;;  %v2120_v32 = vmul.f32 %v6610_v12, %v2112_v11 }
 0x43d   :  { %v2127_v62 = vadd.f32 %v2119_v48, %v2039_v23  ;;  %v2097_v31 = vmul.f32 0.01, %v2081_v9  ;;  %vm2089_vm3 = vcmp.gt.f32.partialorder %v2081_v9, 1.0 }
 0x43e   :  { %v2182_v40 = vsel %vm2158_vm14, %v2174_v38, %v2150_v54 }
 0x43f   :  { %2214 = vmatmul.f32.gmra.mxu3 %v2182_v40  ;;  %v2247_v47 = vrot.slane %v2182_v40, 1  ;;  %2235 = vrot.lane.b32.xlu0 %v2182_v40, %s5013_s2  ;;  %vm2135_vm1 = vcmp.lt.f32.partialorder %v2127_v62, 0.0  ;;  %v2143_v2 = vmul.f32 0.01, %v2127_v62  ;;  %v2105_v24 = vadd.f32 0.99, %v2097_v31 }
 0x440   :  { %v1948_v50 = vpop.f32.mrf.mxu2 }
 0x441   :  { %v2024_v43 = vadd.f32 %v6444_v52, %v1948_v50  ;;  %v2151_v56 = vsel %vm2135_vm1, %v2143_v2, %v2127_v62  ;;  %v6625_v15 = vsel %vm339_vm0, %v2246_v13, %v2247_v47  ;;  %v2017_v52 = vmul.f32 %v2009_v44, %v5411_v51 }
 0x442   :  { %v2167_v0 = vmul.f32 0.01, %v2151_v56  ;;  %vm2159_vm2 = vcmp.gt.f32.partialorder %v2151_v56, 1.0  ;;  %v2113_v4 = vsel %vm2089_vm3, %v2105_v24, %v2081_v9  ;;  %v2260_v24 = vmul.f32 %v6586_v29, %v5384_v27 }
 0x443   :  { %v2040_v30 = vadd.f32 %v2032_v41, %v2024_v43  ;;  %v2033_v54 = vmul.f32 %v6499_v33, %v2017_v52  ;;  %v2121_v48 = vmul.f32 %v6610_v12, %v2113_v4 }
 0x444   :  { %v2175_v45 = vadd.f32 0.99, %v2167_v0 }
 0x445   :  { %v2128_v8 = vadd.f32 %v2120_v32, %v2040_v30 }
 0x446   :  { %v2183_v22 = vsel %vm2159_vm2, %v2175_v45, %v2151_v56  ;;  %v2259_v56 = vmul.f32 %v6554_v6, %v7799_v35 }
 0x447   :  { %2217 = vmatmul.f32.gmra.mxu3 %v2183_v22  ;;  %v2248_v13 = vrot.slane %v2183_v22, 1  ;;  %2237 = vrot.lane.b32.xlu1 %v2183_v22, %s5013_s2  ;;  %vm2136_vm4 = vcmp.lt.f32.partialorder %v2128_v8, 0.0  ;;  %v2144_v34 = vmul.f32 0.01, %v2128_v8 }
 0x448   :  { %v1951_v10 = vpop.f32.mrf.mxu2 }
 0x449   :  { %v2025_v55 = vadd.f32 %v6458_v63, %v1951_v10  ;;  %v2152_v57 = vsel %vm2136_vm4, %v2144_v34, %v2128_v8  ;;  %v6638_v21 = vsel %vm339_vm0, %v2247_v47, %v2248_v13 }
 0x44a   :  { %v2168_v46 = vmul.f32 0.01, %v2152_v57  ;;  %vm2160_vm5 = vcmp.gt.f32.partialorder %v2152_v57, 1.0 }
 0x44b   :  { %v2041_v23 = vadd.f32 %v2033_v54, %v2025_v55  ;;  %v2262_v55 = vmul.f32 %v6625_v15, %v5389_v28 }
 0x44c   :  { %v2176_v59 = vadd.f32 0.99, %v2168_v46  ;;  %v2261_v46 = vmul.f32 %v6615_v17, %v5364_v58 }
 0x44d   :  { %v2129_v38 = vadd.f32 %v2121_v48, %v2041_v23  ;;  %v6676_v48 = vld [vmem:[#allocation2] sm:$0xff] }
 0x44e   :  { %v2184_v62 = vsel %vm2160_vm5, %v2176_v59, %v2152_v57 }
 0x44f   :  { %2239 = vrot.lane.b32.xlu2 %v2184_v62, %s5013_s2  ;;  %v2249_v9 = vrot.slane %v2184_v62, 1  ;;  %2220 = vmatmul.f32.gmra.mxu3 %v2184_v62  ;;  %vm2137_vm6 = vcmp.lt.f32.partialorder %v2129_v38, 0.0  ;;  %v2145_v63 = vmul.f32 0.01, %v2129_v38 }
 0x451   :  { %v2153_v53 = vsel %vm2137_vm6, %v2145_v63, %v2129_v38  ;;  %v6644_v40 = vsel %vm339_vm0, %v2248_v13, %v2249_v9 }
 0x452   :  { %v2169_v47 = vmul.f32 0.01, %v2153_v53  ;;  %vm2161_vm7 = vcmp.gt.f32.partialorder %v2153_v53, 1.0 }
 0x454   :  { %v2177_v2 = vadd.f32 0.99, %v2169_v47 }
 0x456   :  { %v2185_v31 = vsel %vm2161_vm7, %v2177_v2, %v2153_v53 }
 0x457   :  { %2241 = vrot.lane.b32.xlu0 %v2185_v31, %s5013_s2  ;;  %v2250_v50 = vrot.slane %v2185_v31, 1  ;;  %2223 = vmatmul.f32.gmra.mxu3 %v2185_v31 }
 0x459   :  { %v6649_v11 = vsel %vm339_vm0, %v2249_v9, %v2250_v50  ;;  %v6655_v43 = vsel %vm339_vm0, %v2250_v50, %v2243_v60 }
 0x475   :  { %v6657_v41 = vpop.permute.xlu2 %2227 }
 0x476   :  { %v2315_v44 = vadd.f32 %v2259_v56, %v6657_v41  ;;  %v2267_v8 = vrot.slane %v6657_v41, 1 }
 0x478   :  { %v4622_v0 = vadd.f32 -1.0, %v2315_v44 }
 0x47a   :  { %v2339_v30 = vmul.f32 0.01, %v4622_v0  ;;  %vm2331_vm8 = vcmp.lt.f32.partialorder %v4622_v0, 0.0 }
 0x47c   :  { %v2347_v32 = vsel %vm2331_vm8, %v2339_v30, %v4622_v0 }
 0x47d   :  { %v2363_v45 = vmul.f32 0.01, %v2347_v32  ;;  %vm2355_vm10 = vcmp.gt.f32.partialorder %v2347_v32, 1.0 }
 0x47f   :  { %v2371_v13 = vadd.f32 0.99, %v2363_v45 }
 0x481   :  { %v2379_v57 = vsel %vm2355_vm10, %v2371_v13, %v2347_v32 }
 0x482   :  { %v2387_v15 = vmul.f32 %v6610_v12, %v2379_v57 }
 0x491   :  { %v6670_v4 = vpop.permute.xlu2 %2233 }
 0x492   :  { %v2318_v9 = vadd.f32 %v2262_v55, %v6670_v4 }
 0x494   :  { %v4625_v56 = vadd.f32 -1.0, %v2318_v9 }
 0x496   :  { %v2230_v19 = vpop.permute.xlu0 %2229  ;;  %vm2334_vm14 = vcmp.lt.f32.partialorder %v4625_v56, 0.0 }
 0x497   :  { %v2268_v60 = vrot.slane %v2230_v19, 1  ;;  %v2316_v52 = vadd.f32 %v2260_v24, %v2230_v19  ;;  %v2270_v24 = vrot.slane %v6670_v4, 1 }
 0x499   :  { %v2281_v6 = vsel %vm339_vm0, %v2267_v8, %v2268_v60  ;;  %v4623_v22 = vadd.f32 -1.0, %v2316_v52 }
 0x49a   :  { %v2283_v10 = vmul.f32 %v2281_v6, %v7799_v35  ;;  %v2342_v6 = vmul.f32 0.01, %v4625_v56 }
 0x49b   :  { %vm2332_vm9 = vcmp.lt.f32.partialorder %v4623_v22, 0.0  ;;  %v2340_v34 = vmul.f32 0.01, %v4623_v22 }
 0x49c   :  { %v2299_v38 = vmul.f32 %v6499_v33, %v2283_v10 }
 0x49d   :  { %v2348_v29 = vsel %vm2332_vm9, %v2340_v34, %v4623_v22 }
 0x49e   :  { %v2203_v54 = vpop.f32.mrf.mxu3  ;;  %v2364_v23 = vmul.f32 0.01, %v2348_v29  ;;  %vm2356_vm13 = vcmp.gt.f32.partialorder %v2348_v29, 1.0 }
 0x49f   :  { %v2291_v59 = vadd.f32 %v6676_v48, %v2203_v54 }
 0x4a0   :  { %v2372_v17 = vadd.f32 0.99, %v2364_v23 }
 0x4a1   :  { %v2232_v62 = vpop.permute.xlu1 %2231  ;;  %v2307_v47 = vadd.f32 %v2299_v38, %v2291_v59 }
 0x4a2   :  { %v2269_v63 = vrot.slane %v2232_v62, 1  ;;  %v2317_v53 = vadd.f32 %v2261_v46, %v2232_v62  ;;  %v2380_v19 = vsel %vm2356_vm13, %v2372_v17, %v2348_v29  ;;  %v2350_v46 = vsel %vm2334_vm14, %v2342_v6, %v4625_v56 }
 0x4a3   :  { %v2395_v50 = vadd.f32 %v2387_v15, %v2307_v47  ;;  %v2388_v57 = vmul.f32 %v6610_v12, %v2380_v19  ;;  %v2263_v62 = vmul.f32 %v6638_v21, %v7800_v39  ;;  %vm2358_vm5 = vcmp.gt.f32.partialorder %v2350_v46, 1.0 }
 0x4a4   :  { %v2280_v2 = vsel %vm339_vm0, %v2268_v60, %v2269_v63  ;;  %v4624_v31 = vadd.f32 -1.0, %v2317_v53  ;;  %v6686_v60 = vld [vmem:[#allocation2 + $0x8] sm:$0xff]  ;;  %v2279_v55 = vsel %vm339_vm0, %v2269_v63, %v2270_v24  ;;  %v2366_v63 = vmul.f32 0.01, %v2350_v46 }
 0x4a5   :  { %v2284_v0 = vmul.f32 %v2280_v2, %v5384_v27  ;;  %v2411_v30 = vmul.f32 0.01, %v2395_v50  ;;  %vm2403_vm12 = vcmp.lt.f32.partialorder %v2395_v50, 0.0  ;;  %v2285_v38 = vmul.f32 %v2279_v55, %v5364_v58 }
 0x4a6   :  { %vm2333_vm11 = vcmp.lt.f32.partialorder %v4624_v31, 0.0  ;;  %v2341_v44 = vmul.f32 0.01, %v4624_v31 }
 0x4a7   :  { %v2206_v45 = vpop.f32.mrf.mxu3  ;;  %v2419_v52 = vsel %vm2403_vm12, %v2411_v30, %v2395_v50  ;;  %v2300_v34 = vmul.f32 %v6499_v33, %v2284_v0  ;;  %v6702_v50 = vld [vmem:[#allocation2 + $0x10] sm:$0xff] }
 0x4a8   :  { %v2349_v32 = vsel %vm2333_vm11, %v2341_v44, %v4624_v31  ;;  %v2292_v13 = vadd.f32 %v6686_v60, %v2206_v45  ;;  %v2435_v10 = vmul.f32 0.01, %v2419_v52  ;;  %vm2427_vm15 = vcmp.gt.f32.partialorder %v2419_v52, 1.0 }
 0x4a9   :  { %v2365_v22 = vmul.f32 0.01, %v2349_v32  ;;  %vm2357_vm2 = vcmp.gt.f32.partialorder %v2349_v32, 1.0  ;;  %v2301_v44 = vmul.f32 %v6499_v33, %v2285_v38  ;;  %v2374_v45 = vadd.f32 0.99, %v2366_v63  ;;  %v6711_v19 = vpop.permute.xlu2 %2239 }
 0x4aa   :  { %v2308_v54 = vadd.f32 %v2300_v34, %v2292_v13  ;;  %v2443_v4 = vadd.f32 0.99, %v2435_v10 }
 0x4ab   :  { %v2373_v29 = vadd.f32 0.99, %v2365_v22  ;;  %v2265_v22 = vmul.f32 %v6649_v11, %v5436_v16 }
 0x4ac   :  { %v2396_v23 = vadd.f32 %v2388_v57, %v2308_v54  ;;  %v6693_v59 = vsel %vm2427_vm15, %v2443_v4, %v2419_v52  ;;  %v2382_v54 = vsel %vm2358_vm5, %v2374_v45, %v2350_v46 }
 0x4ad   :  { %2475 = vmatmul.f32.vlgmr.msra.gmra.mxu0 %v6693_v59  ;;  %2500 = vrot.lane.b32.xlu1 %v6693_v59, %s5013_s2  ;;  %v2381_v31 = vsel %vm2357_vm2, %v2373_v29, %v2349_v32  ;;  %v2321_v34 = vadd.f32 %v2265_v22, %v6711_v19  ;;  %v2516_v10 = vrot.slane %v6693_v59, 1 }
 0x4ae   :  { %vm2404_vm1 = vcmp.lt.f32.partialorder %v2396_v23, 0.0  ;;  %v2412_v9 = vmul.f32 0.01, %v2396_v23  ;;  %3824 = vmatpush.msra.mxu0 %v6523_v1  ;;  %v2264_v1 = vmul.f32 %v6644_v40, %v5394_v42  ;;  %v2389_v52 = vmul.f32 %v6610_v12, %v2381_v31 }
 0x4af   :  { %v2390_v31 = vmul.f32 %v6610_v12, %v2382_v54 }
 0x4b0   :  { %v2420_v17 = vsel %vm2404_vm1, %v2412_v9, %v2396_v23  ;;  %3825 = vmatpush.msra.mxu0 %v6528_v36 }
 0x4b1   :  { %v2236_v53 = vpop.permute.xlu0 %2235  ;;  %v2436_v0 = vmul.f32 0.01, %v2420_v17  ;;  %vm2428_vm4 = vcmp.gt.f32.partialorder %v2420_v17, 1.0 }
 0x4b2   :  { %v2271_v47 = vrot.slane %v2236_v53, 1  ;;  %v2319_v15 = vadd.f32 %v2263_v62, %v2236_v53  ;;  %v2209_v2 = vpop.f32.mrf.mxu3  ;;  %3826 = vmatpush.msra.mxu0 %v6536_v49  ;;  %v6729_v62 = vld [vmem:[#allocation2 + $0x18] sm:$0xff] }
 0x4b3   :  { %v2293_v56 = vadd.f32 %v6702_v50, %v2209_v2  ;;  %v2444_v6 = vadd.f32 0.99, %v2436_v0 }
 0x4b4   :  { %v2278_v21 = vsel %vm339_vm0, %v2270_v24, %v2271_v47  ;;  %v4626_v30 = vadd.f32 -1.0, %v2319_v15  ;;  %3827 = vmatpush.msra.mxu0 %v6540_v25 }
 0x4b5   :  { %v2309_v32 = vadd.f32 %v2301_v44, %v2293_v56  ;;  %v2452_v13 = vsel %vm2428_vm4, %v2444_v6, %v2420_v17  ;;  %v2286_v40 = vmul.f32 %v2278_v21, %v5389_v28 }
 0x4b6   :  { %vm2335_vm3 = vcmp.lt.f32.partialorder %v4626_v30, 0.0  ;;  %v2343_v36 = vmul.f32 0.01, %v4626_v30  ;;  %2478 = vmatmul.f32.gmra.mxu0 %v2452_v13  ;;  %v2517_v49 = vrot.slane %v2452_v13, 1  ;;  %2502 = vrot.lane.b32.xlu2 %v2452_v13, %s5013_s2 }
 0x4b7   :  { %v2397_v24 = vadd.f32 %v2389_v52, %v2309_v32  ;;  %3828 = vmatpush.msra.mxu0 %v6546_v18  ;;  %v2302_v46 = vmul.f32 %v6499_v33, %v2286_v40  ;;  %v4628_v18 = vadd.f32 -1.0, %v2321_v34 }
 0x4b8   :  { %v2351_v55 = vsel %vm2335_vm3, %v2343_v36, %v4626_v30  ;;  %v6727_v25 = vsel %vm339_vm0, %v2516_v10, %v2517_v49 }
 0x4b9   :  { %v2238_v11 = vpop.permute.xlu1 %2237  ;;  %vm2405_vm6 = vcmp.lt.f32.partialorder %v2397_v24, 0.0  ;;  %v2413_v57 = vmul.f32 0.01, %v2397_v24  ;;  %v2367_v4 = vmul.f32 0.01, %v2351_v55  ;;  %3829 = vmatpush.msra.mxu0 %v6558_v7  ;;  %v2273_v7 = vrot.slane %v6711_v19, 1 }
 0x4ba   :  { %v2272_v29 = vrot.slane %v2238_v11, 1  ;;  %v2320_v23 = vadd.f32 %v2264_v1, %v2238_v11  ;;  %v2212_v38 = vpop.f32.mrf.mxu3  ;;  %vm2337_vm8 = vcmp.lt.f32.partialorder %v4628_v18, 0.0  ;;  %v2345_v1 = vmul.f32 0.01, %v4628_v18 }
 0x4bb   :  { %v2294_v9 = vadd.f32 %v6729_v62, %v2212_v38  ;;  %v2421_v63 = vsel %vm2405_vm6, %v2413_v57, %v2397_v24  ;;  %3830 = vmatpush.msra.mxu0 %v6564_v3  ;;  %v2375_v56 = vadd.f32 0.99, %v2367_v4  ;;  %vm2359_vm10 = vcmp.gt.f32.partialorder %v2351_v55, 1.0 }
 0x4bc   :  { %v2277_v53 = vsel %vm339_vm0, %v2271_v47, %v2272_v29  ;;  %v4627_v15 = vadd.f32 -1.0, %v2320_v23  ;;  %v2437_v17 = vmul.f32 0.01, %v2421_v63  ;;  %vm2429_vm9 = vcmp.gt.f32.partialorder %v2421_v63, 1.0  ;;  %v4876_v23 = vld [vmem:[#allocation5 + $0x20] sm:$0xff] }
 0x4bd   :  { %v2310_v2 = vadd.f32 %v2302_v46, %v2294_v9  ;;  %v2287_v30 = vmul.f32 %v2277_v53, %v7800_v39  ;;  %3831 = vmatpush.msra.mxu0 %v6570_v14  ;;  %v2383_v6 = vsel %vm2359_vm10, %v2375_v56, %v2351_v55  ;;  %v6743_v14 = vld [vmem:[#allocation2 + $0x20] sm:$0xff]  ;;  %v2276_v24 = vsel %vm339_vm0, %v2272_v29, %v2273_v7 }
 0x4be   :  { %vm2336_vm7 = vcmp.lt.f32.partialorder %v4627_v15, 0.0  ;;  %v2344_v44 = vmul.f32 0.01, %v4627_v15  ;;  %v2445_v21 = vadd.f32 0.99, %v2437_v17  ;;  %v2353_v40 = vsel %vm2337_vm8, %v2345_v1, %v4628_v18 }
 0x4bf   :  { %v2398_v0 = vadd.f32 %v2390_v31, %v2310_v2  ;;  %3832 = vmatpush.msra.mxu0 %v6579_v20  ;;  %v2303_v36 = vmul.f32 %v6499_v33, %v2287_v30  ;;  %v2391_v55 = vmul.f32 %v6610_v12, %v2383_v6  ;;  %v2369_v29 = vmul.f32 0.01, %v2353_v40  ;;  %v6761_v31 = vld [vmem:[#allocation2 + $0x28] sm:$0xff] }
 0x4c0   :  { %v2352_v47 = vsel %vm2336_vm7, %v2344_v44, %v4627_v15  ;;  %v2453_v45 = vsel %vm2429_vm9, %v2445_v21, %v2421_v63  ;;  %v4877_v63 = vld [vmem:[#allocation5 + $0x18] sm:$0xff]  ;;  %vm2361_vm2 = vcmp.gt.f32.partialorder %v2353_v40, 1.0 }
 0x4c1   :  { %vm2406_vm11 = vcmp.lt.f32.partialorder %v2398_v0, 0.0  ;;  %v2368_v3 = vmul.f32 0.01, %v2352_v47  ;;  %2481 = vmatmul.f32.gmra.mxu0 %v2453_v45  ;;  %v2518_v32 = vrot.slane %v2453_v45, 1  ;;  %2504 = vrot.lane.b32.xlu0 %v2453_v45, %s5013_s2  ;;  %v2414_v22 = vmul.f32 0.01, %v2398_v0 }
 0x4c2   :  { %v2215_v52 = vpop.f32.mrf.mxu3  ;;  %3833 = vmatpush.msra.mxu0 %v6590_v5  ;;  %v2288_v5 = vmul.f32 %v2276_v24, %v5394_v42  ;;  %vm2360_vm13 = vcmp.gt.f32.partialorder %v2352_v47, 1.0  ;;  %v4879_v45 = vld [vmem:[#allocation5 + $0x8] sm:$0xff] }
 0x4c3   :  { %v2295_v19 = vadd.f32 %v6743_v14, %v2215_v52  ;;  %v2422_v20 = vsel %vm2406_vm11, %v2414_v22, %v2398_v0  ;;  %v6752_v13 = vsel %vm339_vm0, %v2517_v49, %v2518_v32  ;;  %v2376_v54 = vadd.f32 0.99, %v2368_v3 }
 0x4c4   :  { %v2438_v11 = vmul.f32 0.01, %v2422_v20  ;;  %3834 = vmatpush.msra.mxu0 %v6596_v61  ;;  %vm2430_vm12 = vcmp.gt.f32.partialorder %v2422_v20, 1.0  ;;  %v2266_v49 = vmul.f32 %v6655_v43, %v5411_v51  ;;  %v2304_v43 = vmul.f32 %v6499_v33, %v2288_v5 }
 0x4c5   :  { %v2311_v34 = vadd.f32 %v2303_v36, %v2295_v19  ;;  %v2384_v2 = vsel %vm2360_vm13, %v2376_v54, %v2352_v47  ;;  %v2377_v47 = vadd.f32 0.99, %v2369_v29  ;;  %v4880_v19 = vld [vmem:[#allocation5] sm:$0xff] }
 0x4c6   :  { %v2446_v4 = vadd.f32 0.99, %v2438_v11  ;;  %3835 = vmatpush.msra.mxu0 %v4876_v23  ;;  %v2392_v30 = vmul.f32 %v6610_v12, %v2384_v2  ;;  %v6775_v11 = vld [vmem:[#allocation2 + $0x30] sm:$0xff] }
 0x4c7   :  { %v2399_v57 = vadd.f32 %v2391_v55, %v2311_v34  ;;  %v2385_v55 = vsel %vm2361_vm2, %v2377_v47, %v2353_v40 }
 0x4c8   :  { %v2454_v38 = vsel %vm2430_vm12, %v2446_v4, %v2422_v20  ;;  %3836 = vmatpush.msra.mxu0 %v4877_v63  ;;  %v2393_v40 = vmul.f32 %v6610_v12, %v2385_v55  ;;  %v2532_v55 = vmul.f32 %v6727_v25, %v7799_v35 }
 0x4c9   :  { %v2242_v9 = vpop.permute.xlu0 %2241  ;;  %vm2407_vm14 = vcmp.lt.f32.partialorder %v2399_v57, 0.0  ;;  %v2415_v46 = vmul.f32 0.01, %v2399_v57  ;;  %v2519_v61 = vrot.slane %v2454_v38, 1  ;;  %2506 = vrot.lane.b32.xlu1 %v2454_v38, %s5013_s2  ;;  %2484 = vmatmul.f32.gmra.mxu0 %v2454_v38 }
 0x4ca   :  { %v2274_v18 = vrot.slane %v2242_v9, 1  ;;  %v2322_v53 = vadd.f32 %v2266_v49, %v2242_v9  ;;  %v2218_v15 = vpop.f32.mrf.mxu3  ;;  %3837 = vmatpush.msra.mxu0 %v6607_v37 }
 0x4cb   :  { %v2296_v17 = vadd.f32 %v6761_v31, %v2218_v15  ;;  %v2423_v56 = vsel %vm2407_vm14, %v2415_v46, %v2399_v57  ;;  %v6771_v52 = vsel %vm339_vm0, %v2518_v32, %v2519_v61  ;;  %v6790_v15 = vld [vmem:[#allocation2 + $0x38] sm:$0xff] }
 0x4cc   :  { %v2275_v44 = vsel %vm339_vm0, %v2273_v7, %v2274_v18  ;;  %v4629_v0 = vadd.f32 -1.0, %v2322_v53  ;;  %v2439_v1 = vmul.f32 0.01, %v2423_v56  ;;  %3838 = vmatpush.msra.mxu0 %v4879_v45  ;;  %vm2431_vm1 = vcmp.gt.f32.partialorder %v2423_v56, 1.0 }
 0x4cd   :  { %v2312_v21 = vadd.f32 %v2304_v43, %v2296_v17  ;;  %v2289_v37 = vmul.f32 %v2275_v44, %v5436_v16  ;;  %v2282_v4 = vsel %vm339_vm0, %v2274_v18, %v2267_v8 }
 0x4ce   :  { %vm2338_vm15 = vcmp.lt.f32.partialorder %v4629_v0, 0.0  ;;  %v2346_v3 = vmul.f32 0.01, %v4629_v0  ;;  %v2447_v22 = vadd.f32 0.99, %v2439_v1  ;;  %3839 = vmatpush.msra.mxu0 %v4880_v19  ;;  %v2290_v63 = vmul.f32 %v2282_v4, %v5411_v51 }
 0x4cf   :  { %v2400_v6 = vadd.f32 %v2392_v30, %v2312_v21  ;;  %v2305_v57 = vmul.f32 %v6499_v33, %v2289_v37 }
 0x4d0   :  { %v2354_v7 = vsel %vm2338_vm15, %v2346_v3, %v4629_v0  ;;  %v2455_v36 = vsel %vm2431_vm1, %v2447_v22, %v2423_v56  ;;  %v2306_v17 = vmul.f32 %v6499_v33, %v2290_v63 }
 0x4d1   :  { %vm2408_vm3 = vcmp.lt.f32.partialorder %v2400_v6, 0.0  ;;  %v2370_v24 = vmul.f32 0.01, %v2354_v7  ;;  %2487 = vmatmul.f32.gmra.mxu0 %v2455_v36  ;;  %v2520_v20 = vrot.slane %v2455_v36, 1  ;;  %2508 = vrot.lane.b32.xlu2 %v2455_v36, %s5013_s2  ;;  %v2416_v32 = vmul.f32 0.01, %v2400_v6 }
 0x4d2   :  { %v2221_v34 = vpop.f32.mrf.mxu3  ;;  %vm2362_vm5 = vcmp.gt.f32.partialorder %v2354_v7, 1.0 }
 0x4d3   :  { %v2297_v54 = vadd.f32 %v6775_v11, %v2221_v34  ;;  %v2424_v5 = vsel %vm2408_vm3, %v2416_v32, %v2400_v6  ;;  %v6785_v23 = vsel %vm339_vm0, %v2519_v61, %v2520_v20  ;;  %v2378_v38 = vadd.f32 0.99, %v2370_v24 }
 0x4d4   :  { %v2440_v49 = vmul.f32 0.01, %v2424_v5  ;;  %vm2432_vm4 = vcmp.gt.f32.partialorder %v2424_v5, 1.0  ;;  %v2533_v34 = vmul.f32 %v6752_v13, %v5384_v27 }
 0x4d5   :  { %v2313_v29 = vadd.f32 %v2305_v57, %v2297_v54  ;;  %v2386_v18 = vsel %vm2362_vm5, %v2378_v38, %v2354_v7 }
 0x4d6   :  { %v2448_v46 = vadd.f32 0.99, %v2440_v49  ;;  %v2394_v21 = vmul.f32 %v6610_v12, %v2386_v18 }
 0x4d7   :  { %v2401_v9 = vadd.f32 %v2393_v40, %v2313_v29 }
 0x4d8   :  { %v2456_v41 = vsel %vm2432_vm4, %v2448_v46, %v2424_v5 }
 0x4d9   :  { %vm2409_vm6 = vcmp.lt.f32.partialorder %v2401_v9, 0.0  ;;  %v2417_v53 = vmul.f32 0.01, %v2401_v9  ;;  %2490 = vmatmul.f32.gmra.mxu0 %v2456_v41  ;;  %v2521_v8 = vrot.slane %v2456_v41, 1  ;;  %2510 = vrot.lane.b32.xlu0 %v2456_v41, %s5013_s2 }
 0x4da   :  { %v2224_v61 = vpop.f32.mrf.mxu3 }
 0x4db   :  { %v2298_v2 = vadd.f32 %v6790_v15, %v2224_v61  ;;  %v2425_v43 = vsel %vm2409_vm6, %v2417_v53, %v2401_v9  ;;  %v2526_v44 = vsel %vm339_vm0, %v2520_v20, %v2521_v8  ;;  %v6827_v53 = vld [vmem:[#allocation7] ss:$0 sm:$0xff] }
 0x4dc   :  { %v2441_v56 = vmul.f32 0.01, %v2425_v43  ;;  %vm2433_vm7 = vcmp.gt.f32.partialorder %v2425_v43, 1.0 }
 0x4dd   :  { %v2314_v0 = vadd.f32 %v2306_v17, %v2298_v2 }
 0x4de   :  { %v2449_v30 = vadd.f32 0.99, %v2441_v56  ;;  %v2534_v56 = vmul.f32 %v6771_v52, %v5364_v58 }
 0x4df   :  { %v2402_v1 = vadd.f32 %v2394_v21, %v2314_v0 }
 0x4e0   :  { %v2457_v45 = vsel %vm2433_vm7, %v2449_v30, %v2425_v43 }
 0x4e1   :  { %2512 = vrot.lane.b32.xlu1 %v2457_v45, %s5013_s2  ;;  %v2522_v47 = vrot.slane %v2457_v45, 1  ;;  %vm2410_vm8 = vcmp.lt.f32.partialorder %v2402_v1, 0.0  ;;  %v2418_v3 = vmul.f32 0.01, %v2402_v1  ;;  %2493 = vmatmul.f32.gmra.mxu0 %v2457_v45 }
 0x4e3   :  { %v2426_v6 = vsel %vm2410_vm8, %v2418_v3, %v2402_v1  ;;  %v6800_v33 = vsel %vm339_vm0, %v2521_v8, %v2522_v47 }
 0x4e4   :  { %v2442_v22 = vmul.f32 0.01, %v2426_v6  ;;  %vm2434_vm9 = vcmp.gt.f32.partialorder %v2426_v6, 1.0 }
 0x4e6   :  { %v2450_v37 = vadd.f32 0.99, %v2442_v22 }
 0x4e8   :  { %v2458_v19 = vsel %vm2434_vm9, %v2450_v37, %v2426_v6 }
 0x4e9   :  { %2514 = vrot.lane.b32.xlu2 %v2458_v19, %s5013_s2  ;;  %v2523_v7 = vrot.slane %v2458_v19, 1  ;;  %2496 = vmatmul.f32.gmra.mxu0 %v2458_v19 }
 0x4eb   :  { %v6807_v36 = vsel %vm339_vm0, %v2523_v7, %v2516_v10  ;;  %v6811_v24 = vsel %vm339_vm0, %v2522_v47, %v2523_v7  ;;  %v2536_v47 = vmul.f32 %v2526_v44, %v7800_v39 }
 0x510   :  { %v2503_v20 = vpop.permute.xlu2 %2502 }
 0x511   :  { %v2589_v32 = vadd.f32 %v2533_v34, %v2503_v20  ;;  %v2541_v10 = vrot.slane %v2503_v20, 1 }
 0x513   :  { %v4631_v5 = vadd.f32 -1.0, %v2589_v32 }
 0x515   :  { %v2613_v49 = vmul.f32 0.01, %v4631_v5  ;;  %vm2605_vm11 = vcmp.lt.f32.partialorder %v4631_v5, 0.0 }
 0x517   :  { %v2621_v63 = vsel %vm2605_vm11, %v2613_v49, %v4631_v5 }
 0x518   :  { %v2637_v17 = vmul.f32 0.01, %v2621_v63  ;;  %vm2629_vm14 = vcmp.gt.f32.partialorder %v2621_v63, 1.0 }
 0x51a   :  { %v2645_v30 = vadd.f32 0.99, %v2637_v17 }
 0x51c   :  { %v2653_v34 = vsel %vm2629_vm14, %v2645_v30, %v2621_v63 }
 0x51f   :  { %v6817_v54 = vpop.permute.xlu1 %2500 }
 0x520   :  { %v2540_v59 = vrot.slane %v6817_v54, 1  ;;  %v2588_v57 = vadd.f32 %v2532_v55, %v6817_v54 }
 0x522   :  { %v4630_v4 = vadd.f32 -1.0, %v2588_v57  ;;  %v2554_v29 = vsel %vm339_vm0, %v2540_v59, %v2541_v10 }
 0x523   :  { %v2556_v38 = vmul.f32 %v2554_v29, %v7799_v35 }
 0x524   :  { %vm2604_vm10 = vcmp.lt.f32.partialorder %v4630_v4, 0.0  ;;  %v2612_v13 = vmul.f32 0.01, %v4630_v4 }
 0x525   :  { %v2572_v8 = vmul.f32 %v6827_v53, %v2556_v38 }
 0x526   :  { %v2620_v40 = vsel %vm2604_vm10, %v2612_v13, %v4630_v4 }
 0x527   :  { %v2636_v25 = vmul.f32 0.01, %v2620_v40  ;;  %vm2628_vm12 = vcmp.gt.f32.partialorder %v2620_v40, 1.0 }
 0x529   :  { %v2644_v9 = vadd.f32 0.99, %v2636_v25 }
 0x52a   :  { %v2476_v46 = vpop.f32.mrf.mxu0 }
 0x52b   :  { %v2564_v41 = vadd.f32 %v6676_v48, %v2476_v46  ;;  %v2652_v61 = vsel %vm2628_vm12, %v2644_v9, %v2620_v40  ;;  %v6833_v1 = vpop.permute.xlu2 %2508  ;;  %v2661_v40 = vmul.f32 %v6610_v12, %v2653_v34 }
 0x52c   :  { %v2660_v18 = vmul.f32 %v6610_v12, %v2652_v61  ;;  %v2592_v52 = vadd.f32 %v2536_v47, %v6833_v1  ;;  %v2544_v9 = vrot.slane %v6833_v1, 1 }
 0x52d   :  { %v2580_v2 = vadd.f32 %v2572_v8, %v2564_v41 }
 0x52e   :  { %v4634_v5 = vadd.f32 -1.0, %v2592_v52 }
 0x52f   :  { %v2668_v43 = vadd.f32 %v2660_v18, %v2580_v2 }
 0x530   :  { %v2616_v61 = vmul.f32 0.01, %v4634_v5  ;;  %vm2608_vm3 = vcmp.lt.f32.partialorder %v4634_v5, 0.0 }
 0x531   :  { %v2684_v0 = vmul.f32 0.01, %v2668_v43  ;;  %vm2676_vm13 = vcmp.lt.f32.partialorder %v2668_v43, 0.0 }
 0x533   :  { %v2505_v21 = vpop.permute.xlu0 %2504  ;;  %v2692_v3 = vsel %vm2676_vm13, %v2684_v0, %v2668_v43  ;;  %v2479_v37 = vpop.f32.mrf.mxu0 }
 0x534   :  { %v2542_v48 = vrot.slane %v2505_v21, 1  ;;  %v2590_v45 = vadd.f32 %v2534_v56, %v2505_v21  ;;  %v2708_v19 = vmul.f32 0.01, %v2692_v3  ;;  %v2565_v32 = vadd.f32 %v6686_v60, %v2479_v37 }
 0x535   :  { %vm2700_vm1 = vcmp.gt.f32.partialorder %v2692_v3, 1.0 }
 0x536   :  { %v2553_v6 = vsel %vm339_vm0, %v2541_v10, %v2542_v48  ;;  %v4632_v22 = vadd.f32 -1.0, %v2590_v45  ;;  %v2716_v55 = vadd.f32 0.99, %v2708_v19  ;;  %v2535_v10 = vmul.f32 %v6785_v23, %v5389_v28 }
 0x537   :  { %v2557_v7 = vmul.f32 %v2553_v6, %v5384_v27  ;;  %v2624_v45 = vsel %vm2608_vm3, %v2616_v61, %v4634_v5 }
 0x538   :  { %vm2606_vm15 = vcmp.lt.f32.partialorder %v4632_v22, 0.0  ;;  %v2614_v20 = vmul.f32 0.01, %v4632_v22  ;;  %v6844_v4 = vsel %vm2700_vm1, %v2716_v55, %v2692_v3  ;;  %v2640_v52 = vmul.f32 0.01, %v2624_v45 }
 0x539   :  { %v2573_v44 = vmul.f32 %v6827_v53, %v2557_v7  ;;  %2748 = vmatmul.f32.vlgmr.msra.gmra.mxu1 %v6844_v4  ;;  %2773 = vrot.lane.b32.xlu0 %v6844_v4, %s5013_s2  ;;  %vm2632_vm11 = vcmp.gt.f32.partialorder %v2624_v45, 1.0 }
 0x53a   :  { %v2622_v57 = vsel %vm2606_vm15, %v2614_v20, %v4632_v22 }
 0x53b   :  { %v2638_v29 = vmul.f32 0.01, %v2622_v57  ;;  %v2581_v13 = vadd.f32 %v2573_v44, %v2565_v32  ;;  %v2507_v49 = vpop.permute.xlu1 %2506  ;;  %vm2630_vm2 = vcmp.gt.f32.partialorder %v2622_v57, 1.0 }
 0x53c   :  { %v2543_v25 = vrot.slane %v2507_v49, 1  ;;  %v2591_v38 = vadd.f32 %v2535_v10, %v2507_v49 }
 0x53d   :  { %v2646_v46 = vadd.f32 0.99, %v2638_v29  ;;  %v2669_v63 = vadd.f32 %v2661_v40, %v2581_v13  ;;  %v2539_v40 = vmul.f32 %v6807_v36, %v5411_v51 }
 0x53e   :  { %v2552_v23 = vsel %vm339_vm0, %v2542_v48, %v2543_v25  ;;  %v4633_v41 = vadd.f32 -1.0, %v2591_v38  ;;  %v2482_v8 = vpop.f32.mrf.mxu0  ;;  %v2551_v18 = vsel %vm339_vm0, %v2543_v25, %v2544_v9  ;;  %v2537_v25 = vmul.f32 %v6800_v33, %v5394_v42 }
 0x53f   :  { %v2558_v2 = vmul.f32 %v2552_v23, %v5364_v58  ;;  %v2654_v43 = vsel %vm2630_vm2, %v2646_v46, %v2622_v57  ;;  %v2566_v56 = vadd.f32 %v6702_v50, %v2482_v8  ;;  %vm2677_vm5 = vcmp.lt.f32.partialorder %v2669_v63, 0.0 }
 0x540   :  { %vm2607_vm4 = vcmp.lt.f32.partialorder %v4633_v41, 0.0  ;;  %v2615_v17 = vmul.f32 0.01, %v4633_v41  ;;  %v2685_v21 = vmul.f32 0.01, %v2669_v63  ;;  %v2559_v48 = vmul.f32 %v2551_v18, %v5389_v28 }
 0x541   :  { %v2574_v0 = vmul.f32 %v6827_v53, %v2558_v2  ;;  %v2662_v6 = vmul.f32 %v6610_v12, %v2654_v43  ;;  %v2648_v46 = vadd.f32 0.99, %v2640_v52 }
 0x542   :  { %v2623_v30 = vsel %vm2607_vm4, %v2615_v17, %v4633_v41  ;;  %v2693_v22 = vsel %vm2677_vm5, %v2685_v21, %v2669_v63  ;;  %v2575_v20 = vmul.f32 %v6827_v53, %v2559_v48  ;;  %v2789_v63 = vrot.slane %v6844_v4, 1 }
 0x543   :  { %v2639_v47 = vmul.f32 0.01, %v2623_v30  ;;  %v2582_v3 = vadd.f32 %v2574_v0, %v2566_v56  ;;  %vm2631_vm6 = vcmp.gt.f32.partialorder %v2623_v30, 1.0  ;;  %v2709_v34 = vmul.f32 0.01, %v2693_v22  ;;  %v6865_v5 = vpop.permute.xlu2 %2514 }
 0x544   :  { %vm2701_vm8 = vcmp.gt.f32.partialorder %v2693_v22, 1.0  ;;  %v2595_v61 = vadd.f32 %v2539_v40, %v6865_v5  ;;  %v2656_v48 = vsel %vm2632_vm11, %v2648_v46, %v2624_v45 }
 0x545   :  { %v2647_v37 = vadd.f32 0.99, %v2639_v47  ;;  %v2670_v19 = vadd.f32 %v2662_v6, %v2582_v3  ;;  %v2717_v10 = vadd.f32 0.99, %v2709_v34 }
 0x546   :  { %v2485_v7 = vpop.f32.mrf.mxu0  ;;  %v4637_v6 = vadd.f32 -1.0, %v2595_v61 }
 0x547   :  { %v2567_v55 = vadd.f32 %v6729_v62, %v2485_v7  ;;  %v2655_v32 = vsel %vm2631_vm6, %v2647_v37, %v2623_v30  ;;  %vm2678_vm7 = vcmp.lt.f32.partialorder %v2670_v19, 0.0  ;;  %v2686_v44 = vmul.f32 0.01, %v2670_v19 }
 0x548   :  { %v2663_v57 = vmul.f32 %v6610_v12, %v2655_v32  ;;  %v2725_v49 = vsel %vm2701_vm8, %v2717_v10, %v2693_v22  ;;  %v2664_v7 = vmul.f32 %v6610_v12, %v2656_v48  ;;  %vm2611_vm14 = vcmp.lt.f32.partialorder %v4637_v6, 0.0 }
 0x549   :  { %v2583_v29 = vadd.f32 %v2575_v20, %v2567_v55  ;;  %v2694_v13 = vsel %vm2678_vm7, %v2686_v44, %v2670_v19  ;;  %2751 = vmatmul.f32.gmra.mxu1 %v2725_v49  ;;  %v2790_v41 = vrot.slane %v2725_v49, 1  ;;  %2775 = vrot.lane.b32.xlu1 %v2725_v49, %s5013_s2  ;;  %v2538_v20 = vmul.f32 %v6811_v24, %v5436_v16 }
 0x54a   :  { %v2710_v38 = vmul.f32 0.01, %v2694_v13  ;;  %vm2702_vm9 = vcmp.gt.f32.partialorder %v2694_v13, 1.0 }
 0x54b   :  { %v2671_v23 = vadd.f32 %v2663_v57, %v2583_v29  ;;  %v2511_v8 = vpop.permute.xlu0 %2510  ;;  %v6878_v33 = vsel %vm339_vm0, %v2789_v63, %v2790_v41  ;;  %v2547_v57 = vrot.slane %v6865_v5, 1 }
 0x54c   :  { %v2545_v18 = vrot.slane %v2511_v8, 1  ;;  %v2593_v2 = vadd.f32 %v2537_v25, %v2511_v8  ;;  %v2718_v17 = vadd.f32 0.99, %v2710_v38 }
 0x54d   :  { %vm2679_vm10 = vcmp.lt.f32.partialorder %v2671_v23, 0.0  ;;  %v2687_v36 = vmul.f32 0.01, %v2671_v23 }
 0x54e   :  { %v2550_v43 = vsel %vm339_vm0, %v2544_v9, %v2545_v18  ;;  %v4635_v56 = vadd.f32 -1.0, %v2593_v2  ;;  %v2488_v0 = vpop.f32.mrf.mxu0  ;;  %v2726_v21 = vsel %vm2702_vm9, %v2718_v17, %v2694_v13  ;;  %v2619_v13 = vmul.f32 0.01, %v4637_v6 }
 0x54f   :  { %v2560_v30 = vmul.f32 %v2550_v43, %v7800_v39  ;;  %v2791_v47 = vrot.slane %v2726_v21, 1  ;;  %2777 = vrot.lane.b32.xlu2 %v2726_v21, %s5013_s2  ;;  %v2695_v3 = vsel %vm2679_vm10, %v2687_v36, %v2671_v23  ;;  %v2568_v19 = vadd.f32 %v6743_v14, %v2488_v0  ;;  %v6909_v0 = vld [vmem:[#allocation7 + $0x1] ss:$0 sm:$0xff] }
 0x550   :  { %vm2609_vm12 = vcmp.lt.f32.partialorder %v4635_v56, 0.0  ;;  %v2617_v22 = vmul.f32 0.01, %v4635_v56  ;;  %v2711_v37 = vmul.f32 0.01, %v2695_v3  ;;  %vm2703_vm13 = vcmp.gt.f32.partialorder %v2695_v3, 1.0 }
 0x551   :  { %v2576_v1 = vmul.f32 %v6827_v53, %v2560_v30  ;;  %v6890_v9 = vsel %vm339_vm0, %v2790_v41, %v2791_v47  ;;  %2754 = vmatmul.f32.gmra.mxu1 %v2726_v21  ;;  %v2627_v2 = vsel %vm2611_vm14, %v2619_v13, %v4637_v6 }
 0x552   :  { %v2625_v52 = vsel %vm2609_vm12, %v2617_v22, %v4635_v56  ;;  %v2719_v34 = vadd.f32 0.99, %v2711_v37  ;;  %vm2635_vm7 = vcmp.gt.f32.partialorder %v2627_v2, 1.0 }
 0x553   :  { %v2513_v45 = vpop.permute.xlu1 %2512  ;;  %v2641_v55 = vmul.f32 0.01, %v2625_v52  ;;  %v2584_v32 = vadd.f32 %v2576_v1, %v2568_v19  ;;  %vm2633_vm15 = vcmp.gt.f32.partialorder %v2625_v52, 1.0  ;;  %v2643_v19 = vmul.f32 0.01, %v2627_v2 }
 0x554   :  { %v2546_v44 = vrot.slane %v2513_v45, 1  ;;  %v2594_v10 = vadd.f32 %v2538_v20, %v2513_v45  ;;  %v2727_v29 = vsel %vm2703_vm13, %v2719_v34, %v2695_v3 }
 0x555   :  { %v2649_v40 = vadd.f32 0.99, %v2641_v55  ;;  %v2672_v49 = vadd.f32 %v2664_v7, %v2584_v32  ;;  %2779 = vrot.lane.b32.xlu0 %v2727_v29, %s5013_s2  ;;  %v2792_v25 = vrot.slane %v2727_v29, 1  ;;  %v2555_v55 = vsel %vm339_vm0, %v2547_v57, %v2540_v59 }
 0x556   :  { %v2549_v12 = vsel %vm339_vm0, %v2545_v18, %v2546_v44  ;;  %v4636_v24 = vadd.f32 -1.0, %v2594_v10  ;;  %v2491_v38 = vpop.f32.mrf.mxu0  ;;  %v2548_v5 = vsel %vm339_vm0, %v2546_v44, %v2547_v57 }
 0x557   :  { %v2561_v46 = vmul.f32 %v2549_v12, %v5394_v42  ;;  %v2657_v23 = vsel %vm2633_vm15, %v2649_v40, %v2625_v52  ;;  %vm2680_vm1 = vcmp.lt.f32.partialorder %v2672_v49, 0.0  ;;  %v2688_v41 = vmul.f32 0.01, %v2672_v49 }
 0x558   :  { %vm2610_vm2 = vcmp.lt.f32.partialorder %v4636_v24, 0.0  ;;  %v2618_v8 = vmul.f32 0.01, %v4636_v24  ;;  %v2569_v61 = vadd.f32 %v6761_v31, %v2491_v38  ;;  %v6907_v36 = vsel %vm339_vm0, %v2791_v47, %v2792_v25 }
 0x559   :  { %v2577_v18 = vmul.f32 %v6827_v53, %v2561_v46  ;;  %v2696_v17 = vsel %vm2680_vm1, %v2688_v41, %v2672_v49  ;;  %v2665_v21 = vmul.f32 %v6909_v0, %v2657_v23  ;;  %2757 = vmatmul.f32.gmra.mxu1 %v2727_v29  ;;  %v2562_v3 = vmul.f32 %v2548_v5, %v5436_v16 }
 0x55a   :  { %v2626_v43 = vsel %vm2610_vm2, %v2618_v8, %v4636_v24  ;;  %v2712_v30 = vmul.f32 0.01, %v2696_v17  ;;  %vm2704_vm3 = vcmp.gt.f32.partialorder %v2696_v17, 1.0  ;;  %v2651_v40 = vadd.f32 0.99, %v2643_v19 }
 0x55b   :  { %v2585_v56 = vadd.f32 %v2577_v18, %v2569_v61  ;;  %v2642_v48 = vmul.f32 0.01, %v2626_v43  ;;  %vm2634_vm4 = vcmp.gt.f32.partialorder %v2626_v43, 1.0  ;;  %v2578_v45 = vmul.f32 %v6827_v53, %v2562_v3 }
 0x55c   :  { %v2720_v37 = vadd.f32 0.99, %v2712_v30  ;;  %v2563_v12 = vmul.f32 %v2555_v55, %v5411_v51  ;;  %v2659_v38 = vsel %vm2635_vm7, %v2651_v40, %v2627_v2  ;;  %v2807_v55 = vmul.f32 %v6907_v36, %v5364_v58 }
 0x55d   :  { %v2673_v22 = vadd.f32 %v2665_v21, %v2585_v56  ;;  %v2650_v6 = vadd.f32 0.99, %v2642_v48  ;;  %v2667_v18 = vmul.f32 %v6909_v0, %v2659_v38 }
 0x55e   :  { %v2494_v1 = vpop.f32.mrf.mxu0  ;;  %v2728_v47 = vsel %vm2704_vm3, %v2720_v37, %v2696_v17 }
 0x55f   :  { %vm2681_vm5 = vcmp.lt.f32.partialorder %v2673_v22, 0.0  ;;  %v2689_v52 = vmul.f32 0.01, %v2673_v22  ;;  %v2570_v7 = vadd.f32 %v6775_v11, %v2494_v1  ;;  %v2658_v20 = vsel %vm2634_vm4, %v2650_v6, %v2626_v43  ;;  %2781 = vrot.lane.b32.xlu1 %v2728_v47, %s5013_s2 }
 0x560   :  { %v2793_v34 = vrot.slane %v2728_v47, 1  ;;  %v2666_v32 = vmul.f32 %v6909_v0, %v2658_v20 }
 0x561   :  { %v2697_v44 = vsel %vm2681_vm5, %v2689_v52, %v2673_v22  ;;  %v2586_v10 = vadd.f32 %v2578_v45, %v2570_v7  ;;  %2760 = vmatmul.f32.gmra.mxu1 %v2728_v47  ;;  %v2805_v47 = vmul.f32 %v6878_v33, %v7799_v35 }
 0x562   :  { %v2713_v29 = vmul.f32 0.01, %v2697_v44  ;;  %v6923_v13 = vsel %vm339_vm0, %v2792_v25, %v2793_v34  ;;  %vm2705_vm6 = vcmp.gt.f32.partialorder %v2697_v44, 1.0  ;;  %v2579_v25 = vmul.f32 %v6827_v53, %v2563_v12 }
 0x563   :  { %v2674_v49 = vadd.f32 %v2666_v32, %v2586_v10  ;;  %v2806_v10 = vmul.f32 %v6890_v9, %v5384_v27 }
 0x564   :  { %v2721_v24 = vadd.f32 0.99, %v2713_v29 }
 0x565   :  { %vm2682_vm8 = vcmp.lt.f32.partialorder %v2674_v49, 0.0  ;;  %v2690_v59 = vmul.f32 0.01, %v2674_v49 }
 0x566   :  { %v2729_v54 = vsel %vm2705_vm6, %v2721_v24, %v2697_v44  ;;  %v2497_v57 = vpop.f32.mrf.mxu0 }
 0x567   :  { %v2794_v46 = vrot.slane %v2729_v54, 1  ;;  %2783 = vrot.lane.b32.xlu2 %v2729_v54, %s5013_s2  ;;  %v2571_v5 = vadd.f32 %v6790_v15, %v2497_v57  ;;  %v2698_v23 = vsel %vm2682_vm8, %v2690_v59, %v2674_v49 }
 0x568   :  { %v2714_v41 = vmul.f32 0.01, %v2698_v23  ;;  %vm2706_vm9 = vcmp.gt.f32.partialorder %v2698_v23, 1.0 }
 0x569   :  { %v6931_v8 = vsel %vm339_vm0, %v2793_v34, %v2794_v46  ;;  %v2587_v61 = vadd.f32 %v2579_v25, %v2571_v5  ;;  %2763 = vmatmul.f32.gmra.mxu1 %v2729_v54  ;;  %v6965_v25 = vld [vmem:[#allocation2] sm:$0xff] }
 0x56a   :  { %v2722_v17 = vadd.f32 0.99, %v2714_v41 }
 0x56b   :  { %v2675_v43 = vadd.f32 %v2667_v18, %v2587_v61 }
 0x56c   :  { %v2730_v2 = vsel %vm2706_vm9, %v2722_v17, %v2698_v23 }
 0x56d   :  { %2785 = vrot.lane.b32.xlu0 %v2730_v2, %s5013_s2  ;;  %v2795_v56 = vrot.slane %v2730_v2, 1  ;;  %vm2683_vm10 = vcmp.lt.f32.partialorder %v2675_v43, 0.0  ;;  %v2691_v21 = vmul.f32 0.01, %v2675_v43 }
 0x56f   :  { %v2699_v30 = vsel %vm2683_vm10, %v2691_v21, %v2675_v43  ;;  %v2798_v48 = vsel %vm339_vm0, %v2794_v46, %v2795_v56  ;;  %v2808_v21 = vmul.f32 %v6923_v13, %v5389_v28 }
 0x570   :  { %v2715_v3 = vmul.f32 0.01, %v2699_v30  ;;  %vm2707_vm11 = vcmp.gt.f32.partialorder %v2699_v30, 1.0 }
 0x571   :  { %2766 = vmatmul.f32.gmra.mxu1 %v2730_v2 }
 0x572   :  { %v2723_v22 = vadd.f32 0.99, %v2715_v3 }
 0x574   :  { %v2731_v37 = vsel %vm2707_vm11, %v2723_v22, %v2699_v30 }
 0x575   :  { %2787 = vrot.lane.b32.xlu1 %v2731_v37, %s5013_s2  ;;  %v2796_v19 = vrot.slane %v2731_v37, 1 }
 0x577   :  { %v6940_v6 = vsel %vm339_vm0, %v2795_v56, %v2796_v19  ;;  %v6946_v1 = vsel %vm339_vm0, %v2796_v19, %v2789_v63 }
 0x579   :  { %2769 = vmatmul.f32.gmra.mxu1 %v2731_v37 }
 0x5a9   :  { %v2778_v34 = vpop.permute.xlu2 %2777 }
 0x5aa   :  { %v2863_v32 = vadd.f32 %v2807_v55, %v2778_v34  ;;  %v2815_v24 = vrot.slane %v2778_v34, 1 }
 0x5ab   :  { %v6950_v52 = vpop.permute.xlu0 %2773 }
 0x5ac   :  { %v2861_v7 = vadd.f32 %v2805_v47, %v6950_v52  ;;  %v4640_v63 = vadd.f32 -1.0, %v2863_v32  ;;  %v2813_v33 = vrot.slane %v6950_v52, 1 }
 0x5ae   :  { %v4638_v45 = vadd.f32 -1.0, %v2861_v7  ;;  %v2887_v54 = vmul.f32 0.01, %v4640_v63  ;;  %vm2879_vm13 = vcmp.lt.f32.partialorder %v4640_v63, 0.0 }
 0x5b0   :  { %v2885_v20 = vmul.f32 0.01, %v4638_v45  ;;  %vm2877_vm12 = vcmp.lt.f32.partialorder %v4638_v45, 0.0  ;;  %v2895_v61 = vsel %vm2879_vm13, %v2887_v54, %v4640_v63 }
 0x5b1   :  { %v2911_v37 = vmul.f32 0.01, %v2895_v61  ;;  %vm2903_vm4 = vcmp.gt.f32.partialorder %v2895_v61, 1.0 }
 0x5b2   :  { %v2893_v4 = vsel %vm2877_vm12, %v2885_v20, %v4638_v45  ;;  %v2810_v20 = vmul.f32 %v2798_v48, %v5394_v42 }
 0x5b3   :  { %v2909_v44 = vmul.f32 0.01, %v2893_v4  ;;  %vm2901_vm14 = vcmp.gt.f32.partialorder %v2893_v4, 1.0 }
 0x5b5   :  { %v2917_v40 = vadd.f32 0.99, %v2909_v44 }
 0x5b6   :  { %v2749_v59 = vpop.f32.mrf.mxu1 }
 0x5b7   :  { %v2925_v9 = vsel %vm2901_vm14, %v2917_v40, %v2893_v4  ;;  %v2837_v23 = vadd.f32 %v6965_v25, %v2749_v59  ;;  %v2919_v40 = vadd.f32 0.99, %v2911_v37 }
 0x5b8   :  { %v2933_v17 = vmul.f32 %v6909_v0, %v2925_v9 }
 0x5bb   :  { %v2776_v29 = vpop.permute.xlu1 %2775 }
 0x5bc   :  { %v2814_v49 = vrot.slane %v2776_v29, 1  ;;  %v2862_v12 = vadd.f32 %v2806_v10, %v2776_v29 }
 0x5be   :  { %v2827_v36 = vsel %vm339_vm0, %v2813_v33, %v2814_v49  ;;  %v4639_v57 = vadd.f32 -1.0, %v2862_v12  ;;  %v2826_v46 = vsel %vm339_vm0, %v2814_v49, %v2815_v24 }
 0x5bf   :  { %v2829_v38 = vmul.f32 %v2827_v36, %v7799_v35  ;;  %v2830_v56 = vmul.f32 %v2826_v46, %v5384_v27  ;;  %v2809_v36 = vmul.f32 %v6931_v8, %v7800_v39 }
 0x5c0   :  { %vm2878_vm15 = vcmp.lt.f32.partialorder %v4639_v57, 0.0  ;;  %v2886_v5 = vmul.f32 0.01, %v4639_v57 }
 0x5c1   :  { %v2845_v41 = vmul.f32 %v6827_v53, %v2829_v38  ;;  %v6973_v45 = vpop.permute.xlu2 %2783  ;;  %v2846_v55 = vmul.f32 %v6827_v53, %v2830_v56 }
 0x5c2   :  { %v2894_v18 = vsel %vm2878_vm15, %v2886_v5, %v4639_v57  ;;  %v2866_v49 = vadd.f32 %v2810_v20, %v6973_v45  ;;  %v2927_v5 = vsel %vm2903_vm4, %v2919_v40, %v2895_v61  ;;  %v2818_v8 = vrot.slane %v6973_v45, 1 }
 0x5c3   :  { %v2853_v43 = vadd.f32 %v2845_v41, %v2837_v23  ;;  %v2910_v2 = vmul.f32 0.01, %v2894_v18  ;;  %vm2902_vm1 = vcmp.gt.f32.partialorder %v2894_v18, 1.0 }
 0x5c4   :  { %v4643_v38 = vadd.f32 -1.0, %v2866_v49 }
 0x5c5   :  { %v2918_v30 = vadd.f32 0.99, %v2910_v2  ;;  %v2941_v22 = vadd.f32 %v2933_v17, %v2853_v43 }
 0x5c6   :  { %v2752_v19 = vpop.f32.mrf.mxu1  ;;  %vm2882_vm7 = vcmp.lt.f32.partialorder %v4643_v38, 0.0  ;;  %v2890_v37 = vmul.f32 0.01, %v4643_v38 }
 0x5c7   :  { %v2780_v3 = vpop.permute.xlu0 %2779  ;;  %v2838_v34 = vadd.f32 %v6686_v60, %v2752_v19  ;;  %v2926_v4 = vsel %vm2902_vm1, %v2918_v30, %v2894_v18  ;;  %vm2949_vm2 = vcmp.lt.f32.partialorder %v2941_v22, 0.0  ;;  %v2957_v29 = vmul.f32 0.01, %v2941_v22 }
 0x5c8   :  { %v2816_v47 = vrot.slane %v2780_v3, 1  ;;  %v2864_v7 = vadd.f32 %v2808_v21, %v2780_v3  ;;  %v2934_v32 = vmul.f32 %v6909_v0, %v2926_v4  ;;  %v2935_v30 = vmul.f32 %v6909_v0, %v2927_v5 }
 0x5c9   :  { %v2854_v63 = vadd.f32 %v2846_v55, %v2838_v34  ;;  %v2965_v12 = vsel %vm2949_vm2, %v2957_v29, %v2941_v22  ;;  %v2811_v5 = vmul.f32 %v6940_v6, %v5436_v16 }
 0x5ca   :  { %v2825_v13 = vsel %vm339_vm0, %v2815_v24, %v2816_v47  ;;  %v4641_v44 = vadd.f32 -1.0, %v2864_v7  ;;  %v2981_v59 = vmul.f32 0.01, %v2965_v12  ;;  %vm2973_vm6 = vcmp.gt.f32.partialorder %v2965_v12, 1.0 }
 0x5cb   :  { %v2831_v10 = vmul.f32 %v2825_v13, %v5364_v58  ;;  %v2942_v60 = vadd.f32 %v2934_v32, %v2854_v63 }
 0x5cc   :  { %vm2880_vm3 = vcmp.lt.f32.partialorder %v4641_v44, 0.0  ;;  %v2888_v48 = vmul.f32 0.01, %v4641_v44  ;;  %v2989_v23 = vadd.f32 0.99, %v2981_v59 }
 0x5cd   :  { %v2847_v24 = vmul.f32 %v6827_v53, %v2831_v10  ;;  %vm2950_vm5 = vcmp.lt.f32.partialorder %v2942_v60, 0.0  ;;  %v2958_v57 = vmul.f32 0.01, %v2942_v60 }
 0x5ce   :  { %v2896_v54 = vsel %vm2880_vm3, %v2888_v48, %v4641_v44  ;;  %v2755_v46 = vpop.f32.mrf.mxu1  ;;  %v6987_v43 = vsel %vm2973_vm6, %v2989_v23, %v2965_v12 }
 0x5cf   :  { %v2912_v9 = vmul.f32 0.01, %v2896_v54  ;;  %v2839_v41 = vadd.f32 %v6702_v50, %v2755_v46  ;;  %v2966_v17 = vsel %vm2950_vm5, %v2958_v57, %v2942_v60  ;;  %3021 = vmatmul.f32.vlgmr.msra.gmra.mxu2 %v6987_v43  ;;  %3046 = vrot.lane.b32.xlu2 %v6987_v43, %s5013_s2  ;;  %vm2904_vm8 = vcmp.gt.f32.partialorder %v2896_v54, 1.0 }
 0x5d0   :  { %v2982_v61 = vmul.f32 0.01, %v2966_v17  ;;  %vm2974_vm10 = vcmp.gt.f32.partialorder %v2966_v17, 1.0  ;;  %v3062_v32 = vrot.slane %v6987_v43, 1 }
 0x5d1   :  { %v2782_v18 = vpop.permute.xlu1 %2781  ;;  %v2855_v21 = vadd.f32 %v2847_v24, %v2839_v41  ;;  %v2920_v50 = vadd.f32 0.99, %v2912_v9 }
 0x5d2   :  { %v2817_v2 = vrot.slane %v2782_v18, 1  ;;  %v2865_v56 = vadd.f32 %v2809_v36, %v2782_v18  ;;  %v2990_v7 = vadd.f32 0.99, %v2982_v61 }
 0x5d3   :  { %v2943_v19 = vadd.f32 %v2935_v30, %v2855_v21  ;;  %v2928_v63 = vsel %vm2904_vm8, %v2920_v50, %v2896_v54  ;;  %v2898_v54 = vsel %vm2882_vm7, %v2890_v37, %v4643_v38 }
 0x5d4   :  { %v2824_v3 = vsel %vm339_vm0, %v2816_v47, %v2817_v2  ;;  %v4642_v22 = vadd.f32 -1.0, %v2865_v56  ;;  %v2998_v34 = vsel %vm2974_vm10, %v2990_v7, %v2966_v17  ;;  %v2823_v10 = vsel %vm339_vm0, %v2817_v2, %v2818_v8 }
 0x5d5   :  { %v2832_v45 = vmul.f32 %v2824_v3, %v5389_v28  ;;  %vm2951_vm11 = vcmp.lt.f32.partialorder %v2943_v19, 0.0  ;;  %v2959_v4 = vmul.f32 0.01, %v2943_v19  ;;  %v3063_v44 = vrot.slane %v2998_v34, 1  ;;  %3048 = vrot.lane.b32.xlu0 %v2998_v34, %s5013_s2 }
 0x5d6   :  { %vm2881_vm9 = vcmp.lt.f32.partialorder %v4642_v22, 0.0  ;;  %v2889_v20 = vmul.f32 0.01, %v4642_v22  ;;  %v2758_v47 = vpop.f32.mrf.mxu1  ;;  %v2936_v36 = vmul.f32 %v6909_v0, %v2928_v63  ;;  %v2833_v57 = vmul.f32 %v2823_v10, %v7800_v39 }
 0x5d7   :  { %v2848_v55 = vmul.f32 %v6827_v53, %v2832_v45  ;;  %v2840_v40 = vadd.f32 %v6729_v62, %v2758_v47  ;;  %v2967_v49 = vsel %vm2951_vm11, %v2959_v4, %v2943_v19  ;;  %v7007_v60 = vsel %vm339_vm0, %v3062_v32, %v3063_v44  ;;  %3024 = vmatmul.f32.gmra.mxu2 %v2998_v34 }
 0x5d8   :  { %v2897_v13 = vsel %vm2881_vm9, %v2889_v20, %v4642_v22  ;;  %v2983_v48 = vmul.f32 0.01, %v2967_v49  ;;  %vm2975_vm13 = vcmp.gt.f32.partialorder %v2967_v49, 1.0  ;;  %v2914_v23 = vmul.f32 0.01, %v2898_v54 }
 0x5d9   :  { %v2913_v29 = vmul.f32 0.01, %v2897_v13  ;;  %v2856_v59 = vadd.f32 %v2848_v55, %v2840_v40  ;;  %vm2905_vm12 = vcmp.gt.f32.partialorder %v2897_v13, 1.0  ;;  %v2849_v38 = vmul.f32 %v6827_v53, %v2833_v57 }
 0x5da   :  { %v2991_v24 = vadd.f32 0.99, %v2983_v48  ;;  %v2922_v19 = vadd.f32 0.99, %v2914_v23  ;;  %vm2906_vm2 = vcmp.gt.f32.partialorder %v2898_v54, 1.0 }
 0x5db   :  { %v2921_v12 = vadd.f32 0.99, %v2913_v29  ;;  %v2944_v62 = vadd.f32 %v2936_v36, %v2856_v59 }
 0x5dc   :  { %v2999_v9 = vsel %vm2975_vm13, %v2991_v24, %v2967_v49 }
 0x5dd   :  { %v2929_v46 = vsel %vm2905_vm12, %v2921_v12, %v2897_v13  ;;  %v3064_v41 = vrot.slane %v2999_v9, 1  ;;  %3050 = vrot.lane.b32.xlu1 %v2999_v9, %s5013_s2  ;;  %vm2952_vm14 = vcmp.lt.f32.partialorder %v2944_v62, 0.0  ;;  %v2960_v17 = vmul.f32 0.01, %v2944_v62 }
 0x5de   :  { %v2761_v2 = vpop.f32.mrf.mxu1  ;;  %v2937_v61 = vmul.f32 %v6909_v0, %v2929_v46  ;;  %v2812_v13 = vmul.f32 %v6946_v1, %v5411_v51 }
 0x5df   :  { %v2786_v18 = vpop.permute.xlu0 %2785  ;;  %v2841_v30 = vadd.f32 %v6743_v14, %v2761_v2  ;;  %v2968_v50 = vsel %vm2952_vm14, %v2960_v17, %v2944_v62  ;;  %v7020_v6 = vsel %vm339_vm0, %v3063_v44, %v3064_v41  ;;  %3027 = vmatmul.f32.gmra.mxu2 %v2999_v9  ;;  %v2930_v44 = vsel %vm2906_vm2, %v2922_v19, %v2898_v54 }
 0x5e0   :  { %v2819_v56 = vrot.slane %v2786_v18, 1  ;;  %v2867_v21 = vadd.f32 %v2811_v5, %v2786_v18  ;;  %v2984_v37 = vmul.f32 0.01, %v2968_v50  ;;  %vm2976_vm1 = vcmp.gt.f32.partialorder %v2968_v50, 1.0 }
 0x5e1   :  { %v2857_v7 = vadd.f32 %v2849_v38, %v2841_v30  ;;  %v2938_v57 = vmul.f32 %v6909_v0, %v2930_v44 }
 0x5e2   :  { %v2822_v3 = vsel %vm339_vm0, %v2818_v8, %v2819_v56  ;;  %v4644_v22 = vadd.f32 -1.0, %v2867_v21  ;;  %v2992_v14 = vadd.f32 0.99, %v2984_v37 }
 0x5e3   :  { %v2834_v45 = vmul.f32 %v2822_v3, %v5394_v42  ;;  %v2945_v34 = vadd.f32 %v2937_v61, %v2857_v7 }
 0x5e4   :  { %vm2883_vm15 = vcmp.lt.f32.partialorder %v4644_v22, 0.0  ;;  %v2891_v20 = vmul.f32 0.01, %v4644_v22  ;;  %v3000_v4 = vsel %vm2976_vm1, %v2992_v14, %v2968_v50 }
 0x5e5   :  { %v2850_v8 = vmul.f32 %v6827_v53, %v2834_v45  ;;  %v3065_v47 = vrot.slane %v3000_v4, 1  ;;  %3052 = vrot.lane.b32.xlu2 %v3000_v4, %s5013_s2  ;;  %vm2953_vm3 = vcmp.lt.f32.partialorder %v2945_v34, 0.0  ;;  %v2961_v48 = vmul.f32 0.01, %v2945_v34 }
 0x5e6   :  { %v2899_v55 = vsel %vm2883_vm15, %v2891_v20, %v4644_v22  ;;  %v2764_v29 = vpop.f32.mrf.mxu1 }
 0x5e7   :  { %v2788_v63 = vpop.permute.xlu1 %2787  ;;  %v2915_v10 = vmul.f32 0.01, %v2899_v55  ;;  %v2842_v12 = vadd.f32 %v6761_v31, %v2764_v29  ;;  %v7032_v59 = vsel %vm339_vm0, %v3064_v41, %v3065_v47  ;;  %v2969_v54 = vsel %vm2953_vm3, %v2961_v48, %v2945_v34  ;;  %3030 = vmatmul.f32.gmra.mxu2 %v3000_v4 }
 0x5e8   :  { %v2820_v40 = vrot.slane %v2788_v63, 1  ;;  %v2868_v49 = vadd.f32 %v2812_v13, %v2788_v63  ;;  %v2985_v62 = vmul.f32 0.01, %v2969_v54  ;;  %vm2977_vm5 = vcmp.gt.f32.partialorder %v2969_v54, 1.0 }
 0x5e9   :  { %v2858_v24 = vadd.f32 %v2850_v8, %v2842_v12  ;;  %v2923_v46 = vadd.f32 0.99, %v2915_v10  ;;  %vm2907_vm6 = vcmp.gt.f32.partialorder %v2899_v55, 1.0 }
 0x5ea   :  { %v2821_v1 = vsel %vm339_vm0, %v2819_v56, %v2820_v40  ;;  %v4645_v36 = vadd.f32 -1.0, %v2868_v49  ;;  %v2993_v23 = vadd.f32 0.99, %v2985_v62  ;;  %v2828_v50 = vsel %vm339_vm0, %v2820_v40, %v2813_v33 }
 0x5eb   :  { %v2835_v9 = vmul.f32 %v2821_v1, %v5436_v16  ;;  %v2946_v31 = vadd.f32 %v2938_v57, %v2858_v24  ;;  %v2931_v21 = vsel %vm2907_vm6, %v2923_v46, %v2899_v55 }
 0x5ec   :  { %vm2884_vm4 = vcmp.lt.f32.partialorder %v4645_v36, 0.0  ;;  %v2892_v5 = vmul.f32 0.01, %v4645_v36  ;;  %v3001_v41 = vsel %vm2977_vm5, %v2993_v23, %v2969_v54  ;;  %v2939_v19 = vmul.f32 %v6909_v0, %v2931_v21 }
 0x5ed   :  { %v2851_v17 = vmul.f32 %v6827_v53, %v2835_v9  ;;  %vm2954_vm7 = vcmp.lt.f32.partialorder %v2946_v31, 0.0  ;;  %v3066_v38 = vrot.slane %v3001_v41, 1  ;;  %3054 = vrot.lane.b32.xlu0 %v3001_v41, %s5013_s2  ;;  %v2962_v30 = vmul.f32 0.01, %v2946_v31 }
 0x5ee   :  { %v2900_v18 = vsel %vm2884_vm4, %v2892_v5, %v4645_v36  ;;  %v2767_v56 = vpop.f32.mrf.mxu1 }
 0x5ef   :  { %v2916_v2 = vmul.f32 0.01, %v2900_v18  ;;  %v2843_v61 = vadd.f32 %v6775_v11, %v2767_v56  ;;  %v2970_v3 = vsel %vm2954_vm7, %v2962_v30, %v2946_v31  ;;  %v7047_v22 = vsel %vm339_vm0, %v3065_v47, %v3066_v38  ;;  %3033 = vmatmul.f32.gmra.mxu2 %v3001_v41 }
 0x5f0   :  { %v2986_v7 = vmul.f32 0.01, %v2970_v3  ;;  %v2836_v11 = vmul.f32 %v2828_v50, %v5411_v51  ;;  %vm2978_vm8 = vcmp.gt.f32.partialorder %v2970_v3, 1.0  ;;  %vm2908_vm9 = vcmp.gt.f32.partialorder %v2900_v18, 1.0 }
 0x5f1   :  { %v2859_v37 = vadd.f32 %v2851_v17, %v2843_v61  ;;  %v2924_v45 = vadd.f32 0.99, %v2916_v2  ;;  %v3078_v31 = vmul.f32 %v7007_v60, %v7799_v35  ;;  %v3079_v17 = vmul.f32 %v7020_v6, %v5384_v27 }
 0x5f2   :  { %v2994_v14 = vadd.f32 0.99, %v2986_v7  ;;  %v2852_v8 = vmul.f32 %v6827_v53, %v2836_v11  ;;  %v3080_v50 = vmul.f32 %v7032_v59, %v5364_v58 }
 0x5f3   :  { %v2947_v20 = vadd.f32 %v2939_v19, %v2859_v37  ;;  %v2932_v4 = vsel %vm2908_vm9, %v2924_v45, %v2900_v18 }
 0x5f4   :  { %v3002_v52 = vsel %vm2978_vm8, %v2994_v14, %v2970_v3  ;;  %v2940_v29 = vmul.f32 %v6909_v0, %v2932_v4 }
 0x5f5   :  { %vm2955_vm10 = vcmp.lt.f32.partialorder %v2947_v20, 0.0  ;;  %v2963_v33 = vmul.f32 0.01, %v2947_v20  ;;  %v3067_v34 = vrot.slane %v3002_v52, 1  ;;  %3056 = vrot.lane.b32.xlu1 %v3002_v52, %s5013_s2 }
 0x5f6   :  { %v2770_v55 = vpop.f32.mrf.mxu1 }
 0x5f7   :  { %v2844_v13 = vadd.f32 %v6790_v15, %v2770_v55  ;;  %v2971_v44 = vsel %vm2955_vm10, %v2963_v33, %v2947_v20  ;;  %v7056_v63 = vsel %vm339_vm0, %v3066_v38, %v3067_v34  ;;  %3036 = vmatmul.f32.gmra.mxu2 %v3002_v52  ;;  %v3081_v20 = vmul.f32 %v7047_v22, %v5389_v28 }
 0x5f8   :  { %v2987_v47 = vmul.f32 0.01, %v2971_v44  ;;  %vm2979_vm11 = vcmp.gt.f32.partialorder %v2971_v44, 1.0 }
 0x5f9   :  { %v2860_v10 = vadd.f32 %v2852_v8, %v2844_v13 }
 0x5fa   :  { %v2995_v40 = vadd.f32 0.99, %v2987_v47 }
 0x5fb   :  { %v2948_v49 = vadd.f32 %v2940_v29, %v2860_v10 }
 0x5fc   :  { %v3003_v48 = vsel %vm2979_vm11, %v2995_v40, %v2971_v44 }
 0x5fd   :  { %3058 = vrot.lane.b32.xlu2 %v3003_v48, %s5013_s2  ;;  %v3068_v12 = vrot.slane %v3003_v48, 1  ;;  %vm2956_vm12 = vcmp.lt.f32.partialorder %v2948_v49, 0.0  ;;  %v2964_v15 = vmul.f32 0.01, %v2948_v49 }
 0x5ff   :  { %v2972_v1 = vsel %vm2956_vm12, %v2964_v15, %v2948_v49  ;;  %v7062_v36 = vsel %vm339_vm0, %v3067_v34, %v3068_v12  ;;  %3039 = vmatmul.f32.gmra.mxu2 %v3003_v48 }
 0x600   :  { %v2988_v54 = vmul.f32 0.01, %v2972_v1  ;;  %vm2980_vm13 = vcmp.gt.f32.partialorder %v2972_v1, 1.0 }
 0x602   :  { %v2996_v24 = vadd.f32 0.99, %v2988_v54 }
 0x604   :  { %v3004_v57 = vsel %vm2980_vm13, %v2996_v24, %v2972_v1 }
 0x605   :  { %3060 = vrot.lane.b32.xlu0 %v3004_v57, %s5013_s2  ;;  %v3069_v62 = vrot.slane %v3004_v57, 1 }
 0x607   :  { %v7067_v9 = vsel %vm339_vm0, %v3068_v12, %v3069_v62  ;;  %v7073_v46 = vsel %vm339_vm0, %v3069_v62, %v3062_v32  ;;  %3042 = vmatmul.f32.gmra.mxu2 %v3004_v57  ;;  %v7104_v57 = vld [vmem:[#allocation2 + $0x8] sm:$0xff] }
 0x629   :  { %v7075_v5 = vpop.permute.xlu2 %3046 }
 0x62a   :  { %v3134_v23 = vadd.f32 %v3078_v31, %v7075_v5  ;;  %v3086_v21 = vrot.slane %v7075_v5, 1  ;;  %v7107_v31 = vld [vmem:[#allocation7] ss:$0 sm:$0xff] }
 0x62c   :  { %v4646_v18 = vadd.f32 -1.0, %v3134_v23 }
 0x62e   :  { %v3158_v41 = vmul.f32 0.01, %v4646_v18  ;;  %vm3150_vm14 = vcmp.lt.f32.partialorder %v4646_v18, 0.0 }
 0x630   :  { %v3166_v43 = vsel %vm3150_vm14, %v3158_v41, %v4646_v18 }
 0x631   :  { %v3182_v30 = vmul.f32 0.01, %v3166_v43  ;;  %vm3174_vm1 = vcmp.gt.f32.partialorder %v3166_v43, 1.0 }
 0x633   :  { %v3190_v6 = vadd.f32 0.99, %v3182_v30 }
 0x635   :  { %v3198_v55 = vsel %vm3174_vm1, %v3190_v6, %v3166_v43  ;;  %v3082_v43 = vmul.f32 %v7056_v63, %v7800_v39 }
 0x636   :  { %v3206_v22 = vmul.f32 %v6909_v0, %v3198_v55 }
 0x63f   :  { %v7089_v19 = vpop.permute.xlu2 %3052 }
 0x640   :  { %v3137_v52 = vadd.f32 %v3081_v20, %v7089_v19  ;;  %v3089_v48 = vrot.slane %v7089_v19, 1 }
 0x642   :  { %v4649_v47 = vadd.f32 -1.0, %v3137_v52 }
 0x644   :  { %vm3153_vm5 = vcmp.lt.f32.partialorder %v4649_v47, 0.0 }
 0x647   :  { %v3049_v2 = vpop.permute.xlu0 %3048 }
 0x648   :  { %v3135_v38 = vadd.f32 %v3079_v17, %v3049_v2  ;;  %v3087_v56 = vrot.slane %v3049_v2, 1 }
 0x64a   :  { %v4647_v32 = vadd.f32 -1.0, %v3135_v38  ;;  %v3100_v60 = vsel %vm339_vm0, %v3086_v21, %v3087_v56 }
 0x64b   :  { %v3102_v45 = vmul.f32 %v3100_v60, %v7799_v35 }
 0x64c   :  { %v3159_v61 = vmul.f32 0.01, %v4647_v32  ;;  %vm3151_vm15 = vcmp.lt.f32.partialorder %v4647_v32, 0.0 }
 0x64d   :  { %v3118_v13 = vmul.f32 %v6827_v53, %v3102_v45  ;;  %v3161_v53 = vmul.f32 0.01, %v4649_v47 }
 0x64e   :  { %v3167_v7 = vsel %vm3151_vm15, %v3159_v61, %v4647_v32 }
 0x64f   :  { %v3051_v3 = vpop.permute.xlu1 %3050  ;;  %v3183_v33 = vmul.f32 0.01, %v3167_v7  ;;  %vm3175_vm3 = vcmp.gt.f32.partialorder %v3167_v7, 1.0  ;;  %v3169_v38 = vsel %vm3153_vm5, %v3161_v53, %v4649_v47 }
 0x650   :  { %v3136_v37 = vadd.f32 %v3080_v50, %v3051_v3  ;;  %v3088_v14 = vrot.slane %v3051_v3, 1  ;;  %vm3177_vm10 = vcmp.gt.f32.partialorder %v3169_v38, 1.0 }
 0x651   :  { %v3191_v10 = vadd.f32 0.99, %v3183_v33 }
 0x652   :  { %v4648_v11 = vadd.f32 -1.0, %v3136_v37  ;;  %v3022_v34 = vpop.f32.mrf.mxu2  ;;  %v3099_v8 = vsel %vm339_vm0, %v3087_v56, %v3088_v14  ;;  %v3098_v24 = vsel %vm339_vm0, %v3088_v14, %v3089_v48  ;;  %v3185_v37 = vmul.f32 0.01, %v3169_v38 }
 0x653   :  { %v3110_v4 = vadd.f32 %v6965_v25, %v3022_v34  ;;  %v3103_v49 = vmul.f32 %v3099_v8, %v5384_v27  ;;  %v3199_v54 = vsel %vm3175_vm3, %v3191_v10, %v3167_v7  ;;  %v3104_v61 = vmul.f32 %v3098_v24, %v5364_v58 }
 0x654   :  { %v3160_v59 = vmul.f32 0.01, %v4648_v11  ;;  %vm3152_vm2 = vcmp.lt.f32.partialorder %v4648_v11, 0.0  ;;  %v3207_v2 = vmul.f32 %v6909_v0, %v3199_v54  ;;  %v3083_v34 = vmul.f32 %v7062_v36, %v5394_v42 }
 0x655   :  { %v3126_v44 = vadd.f32 %v3118_v13, %v3110_v4  ;;  %v3119_v23 = vmul.f32 %v7107_v31, %v3103_v49  ;;  %v3120_v33 = vmul.f32 %v7107_v31, %v3104_v61 }
 0x656   :  { %v3168_v29 = vsel %vm3152_vm2, %v3160_v59, %v4648_v11  ;;  %v7121_v11 = vld [vmem:[#allocation2 + $0x10] sm:$0xff]  ;;  %v3193_v59 = vadd.f32 0.99, %v3185_v37 }
 0x657   :  { %v3214_v40 = vadd.f32 %v3206_v22, %v3126_v44  ;;  %v3184_v15 = vmul.f32 0.01, %v3168_v29  ;;  %vm3176_vm7 = vcmp.gt.f32.partialorder %v3168_v29, 1.0  ;;  %v7128_v44 = vpop.permute.xlu2 %3058  ;;  %v3084_v22 = vmul.f32 %v7067_v9, %v5436_v16 }
 0x659   :  { %v3230_v12 = vmul.f32 0.01, %v3214_v40  ;;  %vm3222_vm4 = vcmp.lt.f32.partialorder %v3214_v40, 0.0  ;;  %v3192_v56 = vadd.f32 0.99, %v3184_v15 }
 0x65a   :  { %v3025_v1 = vpop.f32.mrf.mxu2 }
 0x65b   :  { %v3111_v62 = vadd.f32 %v7104_v57, %v3025_v1  ;;  %v3238_v18 = vsel %vm3222_vm4, %v3230_v12, %v3214_v40  ;;  %v3200_v7 = vsel %vm3176_vm7, %v3192_v56, %v3168_v29  ;;  %v3140_v12 = vadd.f32 %v3084_v22, %v7128_v44 }
 0x65c   :  { %v3254_v41 = vmul.f32 0.01, %v3238_v18  ;;  %vm3246_vm6 = vcmp.gt.f32.partialorder %v3238_v18, 1.0  ;;  %v3208_v13 = vmul.f32 %v6909_v0, %v3200_v7  ;;  %v3201_v1 = vsel %vm3177_vm10, %v3193_v59, %v3169_v38 }
 0x65d   :  { %v3127_v17 = vadd.f32 %v3119_v23, %v3111_v62  ;;  %v4652_v61 = vadd.f32 -1.0, %v3140_v12  ;;  %v3085_v22 = vmul.f32 %v7073_v46, %v5411_v51 }
 0x65e   :  { %v3262_v30 = vadd.f32 0.99, %v3254_v41 }
 0x65f   :  { %v3055_v32 = vpop.permute.xlu0 %3054  ;;  %v3215_v60 = vadd.f32 %v3207_v2, %v3127_v17  ;;  %vm3156_vm2 = vcmp.lt.f32.partialorder %v4652_v61, 0.0 }
 0x660   :  { %v3090_v50 = vrot.slane %v3055_v32, 1  ;;  %v3138_v3 = vadd.f32 %v3082_v43, %v3055_v32  ;;  %v7114_v6 = vsel %vm3246_vm6, %v3262_v30, %v3238_v18  ;;  %v7135_v18 = vld [vmem:[#allocation2 + $0x18] sm:$0xff]  ;;  %v3209_v32 = vmul.f32 %v6909_v0, %v3201_v1 }
 0x661   :  { %3294 = vmatmul.f32.vlgmr.msrb.gmra.mxu3 %v7114_v6  ;;  %3319 = vrot.lane.b32.xlu1 %v7114_v6, %s5013_s2  ;;  %vm3223_vm8 = vcmp.lt.f32.partialorder %v3215_v60, 0.0  ;;  %v3231_v45 = vmul.f32 0.01, %v3215_v60  ;;  %v3335_v2 = vrot.slane %v7114_v6, 1 }
 0x662   :  { %v4650_v19 = vadd.f32 -1.0, %v3138_v3  ;;  %v3028_v63 = vpop.f32.mrf.mxu2  ;;  %v3097_v20 = vsel %vm339_vm0, %v3089_v48, %v3090_v50 }
 0x663   :  { %v3112_v52 = vadd.f32 %v7121_v11, %v3028_v63  ;;  %v3239_v55 = vsel %vm3223_vm8, %v3231_v45, %v3215_v60  ;;  %v3105_v10 = vmul.f32 %v3097_v20, %v5389_v28 }
 0x664   :  { %v3162_v14 = vmul.f32 0.01, %v4650_v19  ;;  %vm3154_vm9 = vcmp.lt.f32.partialorder %v4650_v19, 0.0  ;;  %v3255_v8 = vmul.f32 0.01, %v3239_v55  ;;  %vm3247_vm11 = vcmp.gt.f32.partialorder %v3239_v55, 1.0 }
 0x665   :  { %v3128_v4 = vadd.f32 %v3120_v33, %v3112_v52  ;;  %v3121_v17 = vmul.f32 %v7107_v31, %v3105_v10 }
 0x666   :  { %v3170_v29 = vsel %vm3154_vm9, %v3162_v14, %v4650_v19  ;;  %v3263_v48 = vadd.f32 0.99, %v3255_v8  ;;  %v3164_v14 = vmul.f32 0.01, %v4652_v61 }
 0x667   :  { %v3057_v47 = vpop.permute.xlu1 %3056  ;;  %v3216_v40 = vadd.f32 %v3208_v13, %v3128_v4  ;;  %v3186_v54 = vmul.f32 0.01, %v3170_v29  ;;  %vm3178_vm15 = vcmp.gt.f32.partialorder %v3170_v29, 1.0  ;;  %v7154_v4 = vld [vmem:[#allocation2 + $0x20] sm:$0xff] }
 0x668   :  { %v3139_v49 = vadd.f32 %v3083_v34, %v3057_v47  ;;  %v3091_v36 = vrot.slane %v3057_v47, 1  ;;  %v3271_v15 = vsel %vm3247_vm11, %v3263_v48, %v3239_v55 }
 0x669   :  { %3297 = vmatmul.f32.gmra.mxu3 %v3271_v15  ;;  %v3336_v24 = vrot.slane %v3271_v15, 1  ;;  %3321 = vrot.lane.b32.xlu2 %v3271_v15, %s5013_s2  ;;  %vm3224_vm12 = vcmp.lt.f32.partialorder %v3216_v40, 0.0  ;;  %v3232_v62 = vmul.f32 0.01, %v3216_v40  ;;  %v3194_v60 = vadd.f32 0.99, %v3186_v54 }
 0x66a   :  { %v4651_v53 = vadd.f32 -1.0, %v3139_v49  ;;  %v3031_v9 = vpop.f32.mrf.mxu2  ;;  %v3096_v43 = vsel %vm339_vm0, %v3090_v50, %v3091_v36  ;;  %v3092_v50 = vrot.slane %v7128_v44, 1  ;;  %v3172_v15 = vsel %vm3156_vm2, %v3164_v14, %v4652_v61 }
 0x66b   :  { %v3113_v41 = vadd.f32 %v7135_v18, %v3031_v9  ;;  %v3240_v38 = vsel %vm3224_vm12, %v3232_v62, %v3216_v40  ;;  %v7147_v3 = vsel %vm339_vm0, %v3335_v2, %v3336_v24  ;;  %v3106_v7 = vmul.f32 %v3096_v43, %v7800_v39 }
 0x66c   :  { %v3163_v23 = vmul.f32 0.01, %v4651_v53  ;;  %vm3155_vm13 = vcmp.lt.f32.partialorder %v4651_v53, 0.0  ;;  %v3256_v30 = vmul.f32 0.01, %v3240_v38  ;;  %vm3248_vm14 = vcmp.gt.f32.partialorder %v3240_v38, 1.0 }
 0x66d   :  { %v3129_v56 = vadd.f32 %v3121_v17, %v3113_v41  ;;  %v3202_v55 = vsel %vm3178_vm15, %v3194_v60, %v3170_v29  ;;  %v3095_v59 = vsel %vm339_vm0, %v3091_v36, %v3092_v50  ;;  %v3122_v8 = vmul.f32 %v7107_v31, %v3106_v7 }
 0x66e   :  { %v3171_v37 = vsel %vm3155_vm13, %v3163_v23, %v4651_v53  ;;  %v3264_v63 = vadd.f32 0.99, %v3256_v30  ;;  %v3210_v40 = vmul.f32 %v6909_v0, %v3202_v55  ;;  %v3107_v53 = vmul.f32 %v3095_v59, %v5394_v42 }
 0x66f   :  { %v3217_v19 = vadd.f32 %v3209_v32, %v3129_v56  ;;  %v3187_v52 = vmul.f32 0.01, %v3171_v37  ;;  %vm3179_vm4 = vcmp.gt.f32.partialorder %v3171_v37, 1.0  ;;  %v3188_v23 = vmul.f32 0.01, %v3172_v15  ;;  %v7168_v56 = vld [vmem:[#allocation2 + $0x28] sm:$0xff] }
 0x670   :  { %v3272_v45 = vsel %vm3248_vm14, %v3264_v63, %v3240_v38  ;;  %v3123_v17 = vmul.f32 %v7107_v31, %v3107_v53  ;;  %vm3180_vm8 = vcmp.gt.f32.partialorder %v3172_v15, 1.0 }
 0x671   :  { %vm3225_vm1 = vcmp.lt.f32.partialorder %v3217_v19, 0.0  ;;  %v3233_v20 = vmul.f32 0.01, %v3217_v19  ;;  %3300 = vmatmul.f32.gmra.mxu3 %v3272_v45  ;;  %v3337_v33 = vrot.slane %v3272_v45, 1  ;;  %3323 = vrot.lane.b32.xlu0 %v3272_v45, %s5013_s2  ;;  %v3195_v48 = vadd.f32 0.99, %v3187_v52 }
 0x672   :  { %v3034_v34 = vpop.f32.mrf.mxu2  ;;  %v3196_v45 = vadd.f32 0.99, %v3188_v23 }
 0x673   :  { %v3114_v13 = vadd.f32 %v7154_v4, %v3034_v34  ;;  %v3241_v44 = vsel %vm3225_vm1, %v3233_v20, %v3217_v19  ;;  %v7162_v10 = vsel %vm339_vm0, %v3336_v24, %v3337_v33  ;;  %v3203_v43 = vsel %vm3179_vm4, %v3195_v48, %v3171_v37  ;;  %v7192_v48 = vld [vmem:[#allocation7 + $0x1] ss:$0 sm:$0xff] }
 0x674   :  { %v3257_v47 = vmul.f32 0.01, %v3241_v44  ;;  %vm3249_vm3 = vcmp.gt.f32.partialorder %v3241_v44, 1.0  ;;  %v3211_v7 = vmul.f32 %v6909_v0, %v3203_v43 }
 0x675   :  { %v3130_v29 = vadd.f32 %v3122_v8, %v3114_v13  ;;  %v3204_v13 = vsel %vm3180_vm8, %v3196_v45, %v3172_v15  ;;  %v7180_v8 = vld [vmem:[#allocation2 + $0x30] sm:$0xff] }
 0x676   :  { %v3265_v12 = vadd.f32 0.99, %v3257_v47 }
 0x677   :  { %v3061_v49 = vpop.permute.xlu0 %3060  ;;  %v3218_v1 = vadd.f32 %v3210_v40, %v3130_v29 }
 0x678   :  { %v3141_v36 = vadd.f32 %v3085_v22, %v3061_v49  ;;  %v3093_v54 = vrot.slane %v3061_v49, 1  ;;  %v3273_v46 = vsel %vm3249_vm3, %v3265_v12, %v3241_v44 }
 0x679   :  { %v3338_v62 = vrot.slane %v3273_v46, 1  ;;  %3325 = vrot.lane.b32.xlu1 %v3273_v46, %s5013_s2  ;;  %vm3226_vm5 = vcmp.lt.f32.partialorder %v3218_v1, 0.0  ;;  %v3234_v24 = vmul.f32 0.01, %v3218_v1  ;;  %3303 = vmatmul.f32.gmra.mxu3 %v3273_v46 }
 0x67a   :  { %v4653_v9 = vadd.f32 -1.0, %v3141_v36  ;;  %v3037_v41 = vpop.f32.mrf.mxu2  ;;  %v3094_v60 = vsel %vm339_vm0, %v3092_v50, %v3093_v54  ;;  %v3101_v29 = vsel %vm339_vm0, %v3093_v54, %v3086_v21  ;;  %v3212_v36 = vmul.f32 %v7192_v48, %v3204_v13 }
 0x67b   :  { %v3115_v32 = vadd.f32 %v7168_v56, %v3037_v41  ;;  %v3242_v30 = vsel %vm3226_vm5, %v3234_v24, %v3218_v1  ;;  %v7173_v61 = vsel %vm339_vm0, %v3337_v33, %v3338_v62  ;;  %v3108_v52 = vmul.f32 %v3094_v60, %v5436_v16 }
 0x67c   :  { %v3165_v38 = vmul.f32 0.01, %v4653_v9  ;;  %vm3157_vm6 = vcmp.lt.f32.partialorder %v4653_v9, 0.0  ;;  %v3258_v19 = vmul.f32 0.01, %v3242_v30  ;;  %vm3250_vm7 = vcmp.gt.f32.partialorder %v3242_v30, 1.0 }
 0x67d   :  { %v3131_v63 = vadd.f32 %v3123_v17, %v3115_v32  ;;  %v3124_v44 = vmul.f32 %v7107_v31, %v3108_v52  ;;  %v3109_v1 = vmul.f32 %v3101_v29, %v5411_v51 }
 0x67e   :  { %v3266_v37 = vadd.f32 0.99, %v3258_v19  ;;  %v3173_v20 = vsel %vm3157_vm6, %v3165_v38, %v4653_v9 }
 0x67f   :  { %v3219_v14 = vadd.f32 %v3211_v7, %v3131_v63  ;;  %v3189_v50 = vmul.f32 0.01, %v3173_v20  ;;  %vm3181_vm11 = vcmp.gt.f32.partialorder %v3173_v20, 1.0  ;;  %v3125_v23 = vmul.f32 %v7107_v31, %v3109_v1 }
 0x680   :  { %v3274_v34 = vsel %vm3250_vm7, %v3266_v37, %v3242_v30 }
 0x681   :  { %v3339_v55 = vrot.slane %v3274_v34, 1  ;;  %3327 = vrot.lane.b32.xlu2 %v3274_v34, %s5013_s2  ;;  %vm3227_vm9 = vcmp.lt.f32.partialorder %v3219_v14, 0.0  ;;  %v3235_v33 = vmul.f32 0.01, %v3219_v14  ;;  %3306 = vmatmul.f32.gmra.mxu3 %v3274_v34  ;;  %v3197_v12 = vadd.f32 0.99, %v3189_v50 }
 0x682   :  { %v3040_v59 = vpop.f32.mrf.mxu2  ;;  %v3351_v50 = vmul.f32 %v7147_v3, %v7799_v35 }
 0x683   :  { %v3116_v0 = vadd.f32 %v7180_v8, %v3040_v59  ;;  %v3243_v22 = vsel %vm3227_vm9, %v3235_v33, %v3219_v14  ;;  %v7186_v47 = vsel %vm339_vm0, %v3338_v62, %v3339_v55  ;;  %v3205_v54 = vsel %vm3181_vm11, %v3197_v12, %v3173_v20  ;;  %v7197_v62 = vld [vmem:[#allocation2 + $0x38] sm:$0xff] }
 0x684   :  { %v3259_v40 = vmul.f32 0.01, %v3243_v22  ;;  %vm3251_vm10 = vcmp.gt.f32.partialorder %v3243_v22, 1.0  ;;  %v3213_v32 = vmul.f32 %v7192_v48, %v3205_v54 }
 0x685   :  { %v3132_v49 = vadd.f32 %v3124_v44, %v3116_v0  ;;  %v3352_v44 = vmul.f32 %v7162_v10, %v5384_v27 }
 0x686   :  { %v3267_v53 = vadd.f32 0.99, %v3259_v40 }
 0x687   :  { %v3220_v15 = vadd.f32 %v3212_v36, %v3132_v49 }
 0x688   :  { %v3275_v9 = vsel %vm3251_vm10, %v3267_v53, %v3243_v22 }
 0x689   :  { %v3340_v46 = vrot.slane %v3275_v9, 1  ;;  %3329 = vrot.lane.b32.xlu0 %v3275_v9, %s5013_s2  ;;  %vm3228_vm12 = vcmp.lt.f32.partialorder %v3220_v15, 0.0  ;;  %v3236_v5 = vmul.f32 0.01, %v3220_v15  ;;  %3309 = vmatmul.f32.gmra.mxu3 %v3275_v9  ;;  %v3353_v9 = vmul.f32 %v7173_v61, %v5364_v58 }
 0x68a   :  { %v3043_v21 = vpop.f32.mrf.mxu2 }
 0x68b   :  { %v3117_v24 = vadd.f32 %v7197_v62, %v3043_v21  ;;  %v3244_v41 = vsel %vm3228_vm12, %v3236_v5, %v3220_v15  ;;  %v7203_v17 = vsel %vm339_vm0, %v3339_v55, %v3340_v46 }
 0x68c   :  { %v3260_v43 = vmul.f32 0.01, %v3244_v41  ;;  %vm3252_vm13 = vcmp.gt.f32.partialorder %v3244_v41, 1.0 }
 0x68d   :  { %v3133_v38 = vadd.f32 %v3125_v23, %v3117_v24 }
 0x68e   :  { %v3268_v30 = vadd.f32 0.99, %v3260_v43 }
 0x68f   :  { %v3221_v60 = vadd.f32 %v3213_v32, %v3133_v38 }
 0x690   :  { %v3276_v19 = vsel %vm3252_vm13, %v3268_v30, %v3244_v41 }
 0x691   :  { %3331 = vrot.lane.b32.xlu1 %v3276_v19, %s5013_s2  ;;  %v3341_v63 = vrot.slane %v3276_v19, 1  ;;  %vm3229_vm14 = vcmp.lt.f32.partialorder %v3221_v60, 0.0  ;;  %v3237_v7 = vmul.f32 0.01, %v3221_v60  ;;  %3312 = vmatmul.f32.gmra.mxu3 %v3276_v19 }
 0x693   :  { %v3245_v45 = vsel %vm3229_vm14, %v3237_v7, %v3221_v60  ;;  %v7209_v37 = vsel %vm339_vm0, %v3340_v46, %v3341_v63  ;;  %v3354_v7 = vmul.f32 %v7186_v47, %v5389_v28 }
 0x694   :  { %v3261_v20 = vmul.f32 0.01, %v3245_v45  ;;  %vm3253_vm15 = vcmp.gt.f32.partialorder %v3245_v45, 1.0 }
 0x696   :  { %v3269_v14 = vadd.f32 0.99, %v3261_v20 }
 0x698   :  { %v3277_v52 = vsel %vm3253_vm15, %v3269_v14, %v3245_v45 }
 0x699   :  { %3333 = vrot.lane.b32.xlu2 %v3277_v52, %s5013_s2  ;;  %v3342_v34 = vrot.slane %v3277_v52, 1  ;;  %3315 = vmatmul.f32.gmra.mxu3 %v3277_v52 }
 0x69b   :  { %v7216_v55 = vsel %vm339_vm0, %v3342_v34, %v3335_v2  ;;  %v7220_v33 = vsel %vm339_vm0, %v3341_v63, %v3342_v34  ;;  %v3355_v34 = vmul.f32 %v7203_v17, %v7800_v39 }
 0x6c3   :  { %v3322_v13 = vpop.permute.xlu2 %3321 }
 0x6c4   :  { %v3408_v22 = vadd.f32 %v3352_v44, %v3322_v13  ;;  %v3360_v36 = vrot.slane %v3322_v13, 1 }
 0x6c6   :  { %v4655_v49 = vadd.f32 -1.0, %v3408_v22 }
 0x6c8   :  { %v3432_v53 = vmul.f32 0.01, %v4655_v49  ;;  %vm3424_vm2 = vcmp.lt.f32.partialorder %v4655_v49, 0.0 }
 0x6ca   :  { %v3440_v1 = vsel %vm3424_vm2, %v3432_v53, %v4655_v49 }
 0x6cb   :  { %v3456_v43 = vmul.f32 0.01, %v3440_v1  ;;  %vm3448_vm6 = vcmp.gt.f32.partialorder %v3440_v1, 1.0 }
 0x6cd   :  { %v3464_v63 = vadd.f32 0.99, %v3456_v43 }
 0x6d3   :  { %v7224_v59 = vpop.permute.xlu1 %3319 }
 0x6d4   :  { %v3407_v0 = vadd.f32 %v3351_v50, %v7224_v59  ;;  %v3359_v29 = vrot.slane %v7224_v59, 1 }
 0x6d6   :  { %v4654_v6 = vadd.f32 -1.0, %v3407_v0  ;;  %v3373_v3 = vsel %vm339_vm0, %v3359_v29, %v3360_v36 }
 0x6d7   :  { %v3375_v10 = vmul.f32 %v3373_v3, %v7799_v35 }
 0x6d8   :  { %vm3423_vm1 = vcmp.lt.f32.partialorder %v4654_v6, 0.0  ;;  %v3431_v2 = vmul.f32 0.01, %v4654_v6 }
 0x6d9   :  { %v3391_v41 = vmul.f32 %v7107_v31, %v3375_v10 }
 0x6da   :  { %v3439_v40 = vsel %vm3423_vm1, %v3431_v2, %v4654_v6  ;;  %v3472_v2 = vsel %vm3448_vm6, %v3464_v63, %v3440_v1 }
 0x6db   :  { %v3455_v12 = vmul.f32 0.01, %v3439_v40  ;;  %vm3447_vm3 = vcmp.gt.f32.partialorder %v3439_v40, 1.0  ;;  %v7244_v45 = vpop.permute.xlu2 %3327 }
 0x6dc   :  { %v3411_v22 = vadd.f32 %v3355_v34, %v7244_v45 }
 0x6dd   :  { %v3463_v15 = vadd.f32 0.99, %v3455_v12 }
 0x6df   :  { %v3471_v21 = vsel %vm3447_vm3, %v3463_v15, %v3439_v40  ;;  %v3480_v15 = vmul.f32 %v7192_v48, %v3472_v2 }
 0x6e0   :  { %v3479_v30 = vmul.f32 %v7192_v48, %v3471_v21 }
 0x6e3   :  { %v3324_v46 = vpop.permute.xlu0 %3323 }
 0x6e4   :  { %v3295_v5 = vpop.f32.mrf.mxu3  ;;  %v3361_v54 = vrot.slane %v3324_v46, 1  ;;  %v3409_v24 = vadd.f32 %v3353_v9, %v3324_v46  ;;  %v4658_v9 = vadd.f32 -1.0, %v3411_v22 }
 0x6e5   :  { %v3383_v23 = vadd.f32 %v6965_v25, %v3295_v5 }
 0x6e6   :  { %v4656_v38 = vadd.f32 -1.0, %v3409_v24  ;;  %v3372_v60 = vsel %vm339_vm0, %v3360_v36, %v3361_v54  ;;  %vm3427_vm11 = vcmp.lt.f32.partialorder %v4658_v9, 0.0 }
 0x6e7   :  { %v3399_v32 = vadd.f32 %v3391_v41, %v3383_v23  ;;  %v3376_v52 = vmul.f32 %v3372_v60, %v5384_v27 }
 0x6e8   :  { %vm3425_vm4 = vcmp.lt.f32.partialorder %v4656_v38, 0.0  ;;  %v3433_v19 = vmul.f32 0.01, %v4656_v38 }
 0x6e9   :  { %v3487_v61 = vadd.f32 %v3479_v30, %v3399_v32  ;;  %v3392_v36 = vmul.f32 %v7107_v31, %v3376_v52 }
 0x6ea   :  { %v3441_v25 = vsel %vm3425_vm4, %v3433_v19, %v4656_v38  ;;  %v3435_v38 = vmul.f32 0.01, %v4658_v9 }
 0x6eb   :  { %v3503_v20 = vmul.f32 0.01, %v3487_v61  ;;  %v3326_v14 = vpop.permute.xlu1 %3325  ;;  %vm3495_vm5 = vcmp.lt.f32.partialorder %v3487_v61, 0.0  ;;  %v3457_v0 = vmul.f32 0.01, %v3441_v25  ;;  %vm3449_vm9 = vcmp.gt.f32.partialorder %v3441_v25, 1.0 }
 0x6ec   :  { %v3362_v50 = vrot.slane %v3326_v14, 1  ;;  %v3410_v13 = vadd.f32 %v3354_v7, %v3326_v14  ;;  %v3298_v44 = vpop.f32.mrf.mxu3 }
 0x6ed   :  { %v3511_v6 = vsel %vm3495_vm5, %v3503_v20, %v3487_v61  ;;  %v3384_v49 = vadd.f32 %v7104_v57, %v3298_v44  ;;  %v3465_v3 = vadd.f32 0.99, %v3457_v0  ;;  %v3443_v20 = vsel %vm3427_vm11, %v3435_v38, %v4658_v9 }
 0x6ee   :  { %v4657_v47 = vadd.f32 -1.0, %v3410_v13  ;;  %v3371_v40 = vsel %vm339_vm0, %v3361_v54, %v3362_v50  ;;  %v3527_v12 = vmul.f32 0.01, %v3511_v6  ;;  %vm3519_vm8 = vcmp.gt.f32.partialorder %v3511_v6, 1.0 }
 0x6ef   :  { %v3400_v53 = vadd.f32 %v3392_v36, %v3384_v49  ;;  %v3377_v1 = vmul.f32 %v3371_v40, %v5364_v58  ;;  %v3363_v54 = vrot.slane %v7244_v45, 1  ;;  %v3473_v41 = vsel %vm3449_vm9, %v3465_v3, %v3441_v25 }
 0x6f0   :  { %vm3426_vm7 = vcmp.lt.f32.partialorder %v4657_v47, 0.0  ;;  %v3434_v17 = vmul.f32 0.01, %v4657_v47  ;;  %v3535_v10 = vadd.f32 0.99, %v3527_v12  ;;  %v3481_v63 = vmul.f32 %v7192_v48, %v3473_v41 }
 0x6f1   :  { %v3488_v5 = vadd.f32 %v3480_v15, %v3400_v53  ;;  %v3393_v30 = vmul.f32 %v7107_v31, %v3377_v1  ;;  %v3370_v60 = vsel %vm339_vm0, %v3362_v50, %v3363_v54  ;;  %v3356_v25 = vmul.f32 %v7209_v37, %v5394_v42 }
 0x6f2   :  { %v3442_v46 = vsel %vm3426_vm7, %v3434_v17, %v4657_v47  ;;  %v7256_v21 = vsel %vm3519_vm8, %v3535_v10, %v3511_v6  ;;  %v3378_v52 = vmul.f32 %v3370_v60, %v5389_v28  ;;  %v3459_v6 = vmul.f32 0.01, %v3443_v20 }
 0x6f3   :  { %3567 = vmatmul.f32.vlgmr.msrb.gmra.mxu0 %v7256_v21  ;;  %3592 = vrot.lane.b32.xlu0 %v7256_v21, %s5013_s2  ;;  %v3458_v24 = vmul.f32 0.01, %v3442_v46  ;;  %vm3496_vm10 = vcmp.lt.f32.partialorder %v3488_v5, 0.0  ;;  %v3504_v43 = vmul.f32 0.01, %v3488_v5  ;;  %vm3450_vm12 = vcmp.gt.f32.partialorder %v3442_v46, 1.0 }
 0x6f4   :  { %v3301_v23 = vpop.f32.mrf.mxu3  ;;  %v3394_v36 = vmul.f32 %v7107_v31, %v3378_v52  ;;  %v3608_v12 = vrot.slane %v7256_v21, 1  ;;  %vm3451_vm3 = vcmp.gt.f32.partialorder %v3443_v20, 1.0 }
 0x6f5   :  { %v3385_v32 = vadd.f32 %v7121_v11, %v3301_v23  ;;  %v3512_v19 = vsel %vm3496_vm10, %v3504_v43, %v3488_v5  ;;  %v3466_v7 = vadd.f32 0.99, %v3458_v24  ;;  %v3467_v5 = vadd.f32 0.99, %v3459_v6  ;;  %v7285_v24 = vpop.permute.xlu2 %3333 }
 0x6f6   :  { %v3528_v45 = vmul.f32 0.01, %v3512_v19  ;;  %vm3520_vm13 = vcmp.gt.f32.partialorder %v3512_v19, 1.0  ;;  %v3358_v43 = vmul.f32 %v7216_v55, %v5411_v51 }
 0x6f7   :  { %v3401_v61 = vadd.f32 %v3393_v30, %v3385_v32  ;;  %v3474_v2 = vsel %vm3450_vm12, %v3466_v7, %v3442_v46  ;;  %v3357_v46 = vmul.f32 %v7220_v33, %v5436_v16 }
 0x6f8   :  { %v3536_v34 = vadd.f32 0.99, %v3528_v45  ;;  %v3482_v10 = vmul.f32 %v7192_v48, %v3474_v2 }
 0x6f9   :  { %v3489_v14 = vadd.f32 %v3481_v63, %v3401_v61  ;;  %v3414_v61 = vadd.f32 %v3358_v43, %v7285_v24 }
 0x6fa   :  { %v3544_v22 = vsel %vm3520_vm13, %v3536_v34, %v3512_v19 }
 0x6fb   :  { %v3330_v13 = vpop.permute.xlu0 %3329  ;;  %vm3497_vm14 = vcmp.lt.f32.partialorder %v3489_v14, 0.0  ;;  %v3505_v50 = vmul.f32 0.01, %v3489_v14  ;;  %3570 = vmatmul.f32.gmra.mxu0 %v3544_v22  ;;  %v3609_v40 = vrot.slane %v3544_v22, 1  ;;  %3594 = vrot.lane.b32.xlu2 %v3544_v22, %s5013_s2  ;;  %v4661_v22 = vadd.f32 -1.0, %v3414_v61 }
 0x6fc   :  { %v3364_v0 = vrot.slane %v3330_v13, 1  ;;  %v3412_v44 = vadd.f32 %v3356_v25, %v3330_v13  ;;  %v3304_v47 = vpop.f32.mrf.mxu3  ;;  %v3475_v25 = vsel %vm3451_vm3, %v3467_v5, %v3443_v20 }
 0x6fd   :  { %v3386_v37 = vadd.f32 %v7135_v18, %v3304_v47  ;;  %v3513_v3 = vsel %vm3497_vm14, %v3505_v50, %v3489_v14  ;;  %v7283_v1 = vsel %vm339_vm0, %v3608_v12, %v3609_v40  ;;  %v3483_v2 = vmul.f32 %v7192_v48, %v3475_v25 }
 0x6fe   :  { %v4659_v49 = vadd.f32 -1.0, %v3412_v44  ;;  %v3369_v17 = vsel %vm339_vm0, %v3363_v54, %v3364_v0  ;;  %v3529_v9 = vmul.f32 0.01, %v3513_v3  ;;  %vm3521_vm1 = vcmp.gt.f32.partialorder %v3513_v3, 1.0 }
 0x6ff   :  { %v3402_v15 = vadd.f32 %v3394_v36, %v3386_v37  ;;  %v3379_v41 = vmul.f32 %v3369_v17, %v7800_v39  ;;  %v3366_v17 = vrot.slane %v7285_v24, 1  ;;  %v3438_v5 = vmul.f32 0.01, %v4661_v22 }
 0x700   :  { %vm3428_vm15 = vcmp.lt.f32.partialorder %v4659_v49, 0.0  ;;  %v3436_v53 = vmul.f32 0.01, %v4659_v49  ;;  %v3537_v32 = vadd.f32 0.99, %v3529_v9  ;;  %vm3430_vm8 = vcmp.lt.f32.partialorder %v4661_v22, 0.0 }
 0x701   :  { %v3490_v23 = vadd.f32 %v3482_v10, %v3402_v15  ;;  %v3395_v55 = vmul.f32 %v7107_v31, %v3379_v41 }
 0x702   :  { %v3444_v54 = vsel %vm3428_vm15, %v3436_v53, %v4659_v49  ;;  %v3545_v63 = vsel %vm3521_vm1, %v3537_v32, %v3513_v3 }
 0x703   :  { %v3460_v38 = vmul.f32 0.01, %v3444_v54  ;;  %v3332_v33 = vpop.permute.xlu1 %3331  ;;  %vm3498_vm2 = vcmp.lt.f32.partialorder %v3490_v23, 0.0  ;;  %v3506_v19 = vmul.f32 0.01, %v3490_v23  ;;  %3573 = vmatmul.f32.gmra.mxu0 %v3545_v63  ;;  %v3610_v45 = vrot.slane %v3545_v63, 1  ;;  %3596 = vrot.lane.b32.xlu1 %v3545_v63, %s5013_s2 }
 0x704   :  { %v3365_v30 = vrot.slane %v3332_v33, 1  ;;  %v3413_v60 = vadd.f32 %v3357_v46, %v3332_v33  ;;  %v3307_v7 = vpop.f32.mrf.mxu3  ;;  %vm3452_vm5 = vcmp.gt.f32.partialorder %v3444_v54, 1.0 }
 0x705   :  { %v3468_v52 = vadd.f32 0.99, %v3460_v38  ;;  %v3387_v13 = vadd.f32 %v7154_v4, %v3307_v7  ;;  %v3514_v44 = vsel %vm3498_vm2, %v3506_v19, %v3490_v23  ;;  %v7300_v20 = vsel %vm339_vm0, %v3609_v40, %v3610_v45 }
 0x706   :  { %v4660_v14 = vadd.f32 -1.0, %v3413_v60  ;;  %v3368_v34 = vsel %vm339_vm0, %v3364_v0, %v3365_v30  ;;  %v3530_v6 = vmul.f32 0.01, %v3514_v44  ;;  %vm3522_vm6 = vcmp.gt.f32.partialorder %v3514_v44, 1.0 }
 0x707   :  { %v3403_v47 = vadd.f32 %v3395_v55, %v3387_v13  ;;  %v3380_v36 = vmul.f32 %v3368_v34, %v5394_v42  ;;  %v3476_v53 = vsel %vm3452_vm5, %v3468_v52, %v3444_v54  ;;  %v3367_v41 = vsel %vm339_vm0, %v3365_v30, %v3366_v17 }
 0x708   :  { %vm3429_vm4 = vcmp.lt.f32.partialorder %v4660_v14, 0.0  ;;  %v3437_v50 = vmul.f32 0.01, %v4660_v14  ;;  %v3538_v37 = vadd.f32 0.99, %v3530_v6  ;;  %v3484_v38 = vmul.f32 %v7192_v48, %v3476_v53 }
 0x709   :  { %v3491_v0 = vadd.f32 %v3483_v2, %v3403_v47  ;;  %v3396_v40 = vmul.f32 %v7107_v31, %v3380_v36  ;;  %v3446_v60 = vsel %vm3430_vm8, %v3438_v5, %v4661_v22  ;;  %v3381_v63 = vmul.f32 %v3367_v41, %v5436_v16 }
 0x70a   :  { %v3445_v49 = vsel %vm3429_vm4, %v3437_v50, %v4660_v14  ;;  %v3546_v3 = vsel %vm3522_vm6, %v3538_v37, %v3514_v44  ;;  %v3462_v14 = vmul.f32 0.01, %v3446_v60  ;;  %v3374_v44 = vsel %vm339_vm0, %v3366_v17, %v3359_v29 }
 0x70b   :  { %v3461_v15 = vmul.f32 0.01, %v3445_v49  ;;  %v3611_v10 = vrot.slane %v3546_v3, 1  ;;  %3598 = vrot.lane.b32.xlu0 %v3546_v3, %s5013_s2  ;;  %vm3499_vm7 = vcmp.lt.f32.partialorder %v3491_v0, 0.0  ;;  %v3507_v46 = vmul.f32 0.01, %v3491_v0  ;;  %3576 = vmatmul.f32.gmra.mxu0 %v3546_v3 }
 0x70c   :  { %v3310_v9 = vpop.f32.mrf.mxu3  ;;  %vm3453_vm10 = vcmp.gt.f32.partialorder %v3445_v49, 1.0  ;;  %v3397_v34 = vmul.f32 %v7107_v31, %v3381_v63  ;;  %v3470_v2 = vadd.f32 0.99, %v3462_v14  ;;  %v3382_v36 = vmul.f32 %v3374_v44, %v5411_v51 }
 0x70d   :  { %v3388_v23 = vadd.f32 %v7168_v56, %v3310_v9  ;;  %v3515_v24 = vsel %vm3499_vm7, %v3507_v46, %v3491_v0  ;;  %v7310_v54 = vsel %vm339_vm0, %v3610_v45, %v3611_v10  ;;  %v3469_v33 = vadd.f32 0.99, %v3461_v15 }
 0x70e   :  { %v3531_v32 = vmul.f32 0.01, %v3515_v24  ;;  %vm3523_vm9 = vcmp.gt.f32.partialorder %v3515_v24, 1.0  ;;  %vm3454_vm13 = vcmp.gt.f32.partialorder %v3446_v60, 1.0  ;;  %v3398_v15 = vmul.f32 %v7107_v31, %v3382_v36 }
 0x70f   :  { %v3404_v43 = vadd.f32 %v3396_v40, %v3388_v23  ;;  %v3477_v25 = vsel %vm3453_vm10, %v3469_v33, %v3445_v49  ;;  %v3478_v3 = vsel %vm3454_vm13, %v3470_v2, %v3446_v60 }
 0x710   :  { %v3539_v61 = vadd.f32 0.99, %v3531_v32  ;;  %v3485_v47 = vmul.f32 %v7192_v48, %v3477_v25  ;;  %v3486_v23 = vmul.f32 %v7192_v48, %v3478_v3  ;;  %v3624_v25 = vmul.f32 %v7283_v1, %v7799_v35 }
 0x711   :  { %v3492_v19 = vadd.f32 %v3484_v38, %v3404_v43 }
 0x712   :  { %v3547_v7 = vsel %vm3523_vm9, %v3539_v61, %v3515_v24 }
 0x713   :  { %vm3500_vm11 = vcmp.lt.f32.partialorder %v3492_v19, 0.0  ;;  %v3508_v30 = vmul.f32 0.01, %v3492_v19  ;;  %v3612_v55 = vrot.slane %v3547_v7, 1  ;;  %3600 = vrot.lane.b32.xlu1 %v3547_v7, %s5013_s2  ;;  %3579 = vmatmul.f32.gmra.mxu0 %v3547_v7 }
 0x714   :  { %v3313_v45 = vpop.f32.mrf.mxu3 }
 0x715   :  { %v3389_v52 = vadd.f32 %v7180_v8, %v3313_v45  ;;  %v3516_v13 = vsel %vm3500_vm11, %v3508_v30, %v3492_v19  ;;  %v7323_v6 = vsel %vm339_vm0, %v3611_v10, %v3612_v55 }
 0x716   :  { %v3532_v50 = vmul.f32 0.01, %v3516_v13  ;;  %vm3524_vm12 = vcmp.gt.f32.partialorder %v3516_v13, 1.0 }
 0x717   :  { %v3405_v22 = vadd.f32 %v3397_v34, %v3389_v52 }
 0x718   :  { %v3540_v49 = vadd.f32 0.99, %v3532_v50 }
 0x719   :  { %v3493_v37 = vadd.f32 %v3485_v47, %v3405_v22 }
 0x71a   :  { %v3548_v0 = vsel %vm3524_vm12, %v3540_v49, %v3516_v13 }
 0x71b   :  { %v3613_v59 = vrot.slane %v3548_v0, 1  ;;  %3602 = vrot.lane.b32.xlu2 %v3548_v0, %s5013_s2  ;;  %vm3501_vm14 = vcmp.lt.f32.partialorder %v3493_v37, 0.0  ;;  %v3509_v29 = vmul.f32 0.01, %v3493_v37  ;;  %3582 = vmatmul.f32.gmra.mxu0 %v3548_v0  ;;  %v7362_v0 = vld [vmem:[#allocation2] sm:$0xff] }
 0x71c   :  { %v3316_v17 = vpop.f32.mrf.mxu3 }
 0x71d   :  { %v3390_v53 = vadd.f32 %v7197_v62, %v3316_v17  ;;  %v3517_v10 = vsel %vm3501_vm14, %v3509_v29, %v3493_v37  ;;  %v7332_v9 = vsel %vm339_vm0, %v3612_v55, %v3613_v59  ;;  %v3625_v55 = vmul.f32 %v7300_v20, %v5384_v27 }
 0x71e   :  { %v3533_v46 = vmul.f32 0.01, %v3517_v10  ;;  %vm3525_vm15 = vcmp.gt.f32.partialorder %v3517_v10, 1.0 }
 0x71f   :  { %v3406_v5 = vadd.f32 %v3398_v15, %v3390_v53 }
 0x720   :  { %v3541_v40 = vadd.f32 0.99, %v3533_v46  ;;  %v3626_v46 = vmul.f32 %v7310_v54, %v5364_v58 }
 0x721   :  { %v3494_v41 = vadd.f32 %v3486_v23, %v3406_v5 }
 0x722   :  { %v3549_v24 = vsel %vm3525_vm15, %v3541_v40, %v3517_v10 }
 0x723   :  { %3604 = vrot.lane.b32.xlu0 %v3549_v24, %s5013_s2  ;;  %v3614_v43 = vrot.slane %v3549_v24, 1  ;;  %vm3502_vm1 = vcmp.lt.f32.partialorder %v3494_v41, 0.0  ;;  %v3510_v38 = vmul.f32 0.01, %v3494_v41  ;;  %3585 = vmatmul.f32.gmra.mxu0 %v3549_v24 }
 0x725   :  { %v3518_v32 = vsel %vm3502_vm1, %v3510_v38, %v3494_v41  ;;  %v3617_v33 = vsel %vm339_vm0, %v3613_v59, %v3614_v43 }
 0x726   :  { %v3534_v60 = vmul.f32 0.01, %v3518_v32  ;;  %vm3526_vm2 = vcmp.gt.f32.partialorder %v3518_v32, 1.0 }
 0x728   :  { %v3542_v19 = vadd.f32 0.99, %v3534_v60 }
 0x72a   :  { %v3550_v61 = vsel %vm3526_vm2, %v3542_v19, %v3518_v32 }
 0x72b   :  { %3606 = vrot.lane.b32.xlu1 %v3550_v61, %s5013_s2  ;;  %v3615_v63 = vrot.slane %v3550_v61, 1  ;;  %3588 = vmatmul.f32.gmra.mxu0 %v3550_v61 }
 0x72d   :  { %v7341_v7 = vsel %vm339_vm0, %v3614_v43, %v3615_v63  ;;  %v7347_v30 = vsel %vm339_vm0, %v3615_v63, %v3608_v12 }
 0x755   :  { %v3595_v14 = vpop.permute.xlu2 %3594 }
 0x756   :  { %v3681_v45 = vadd.f32 %v3625_v55, %v3595_v14  ;;  %v3633_v44 = vrot.slane %v3595_v14, 1  ;;  %v3629_v55 = vmul.f32 %v3617_v33, %v5394_v42 }
 0x758   :  { %v4663_v21 = vadd.f32 -1.0, %v3681_v45 }
 0x75a   :  { %v3705_v22 = vmul.f32 0.01, %v4663_v21  ;;  %vm3697_vm4 = vcmp.lt.f32.partialorder %v4663_v21, 0.0 }
 0x75c   :  { %v3713_v37 = vsel %vm3697_vm4, %v3705_v22, %v4663_v21 }
 0x75d   :  { %v3729_v53 = vmul.f32 0.01, %v3713_v37  ;;  %vm3721_vm7 = vcmp.gt.f32.partialorder %v3713_v37, 1.0 }
 0x75f   :  { %v3737_v5 = vadd.f32 0.99, %v3729_v53 }
 0x761   :  { %v3745_v61 = vsel %vm3721_vm7, %v3737_v5, %v3713_v37 }
 0x765   :  { %v7353_v52 = vpop.permute.xlu0 %3592 }
 0x766   :  { %v3632_v34 = vrot.slane %v7353_v52, 1  ;;  %v3680_v13 = vadd.f32 %v3624_v25, %v7353_v52 }
 0x768   :  { %v4662_v50 = vadd.f32 -1.0, %v3680_v13  ;;  %v3646_v12 = vsel %vm339_vm0, %v3632_v34, %v3633_v44 }
 0x769   :  { %v3648_v2 = vmul.f32 %v3646_v12, %v7799_v35 }
 0x76a   :  { %vm3696_vm3 = vcmp.lt.f32.partialorder %v4662_v50, 0.0  ;;  %v3704_v20 = vmul.f32 0.01, %v4662_v50 }
 0x76b   :  { %v3664_v29 = vmul.f32 %v7107_v31, %v3648_v2 }
 0x76c   :  { %v3712_v47 = vsel %vm3696_vm3, %v3704_v20, %v4662_v50  ;;  %v3627_v50 = vmul.f32 %v7323_v6, %v5389_v28 }
 0x76d   :  { %v3728_v1 = vmul.f32 0.01, %v3712_v47  ;;  %vm3720_vm5 = vcmp.gt.f32.partialorder %v3712_v47, 1.0 }
 0x76f   :  { %v3736_v49 = vadd.f32 0.99, %v3728_v1 }
 0x770   :  { %v3568_v36 = vpop.f32.mrf.mxu0 }
 0x771   :  { %v3656_v59 = vadd.f32 %v7362_v0, %v3568_v36  ;;  %v3744_v17 = vsel %vm3720_vm5, %v3736_v49, %v3712_v47 }
 0x772   :  { %v3752_v3 = vmul.f32 %v7192_v48, %v3744_v17 }
 0x773   :  { %v3672_v15 = vadd.f32 %v3664_v29, %v3656_v59 }
 0x775   :  { %v3760_v10 = vadd.f32 %v3752_v3, %v3672_v15  ;;  %v3597_v23 = vpop.permute.xlu1 %3596  ;;  %v7372_v54 = vpop.permute.xlu2 %3602  ;;  %v7390_v15 = vld [vmem:[#allocation7] ss:$0 sm:$0xff] }
 0x776   :  { %v3634_v41 = vrot.slane %v3597_v23, 1  ;;  %v3682_v24 = vadd.f32 %v3626_v46, %v3597_v23  ;;  %v3685_v22 = vadd.f32 %v3629_v55, %v7372_v54  ;;  %v3637_v46 = vrot.slane %v7372_v54, 1 }
 0x777   :  { %vm3768_vm6 = vcmp.lt.f32.partialorder %v3760_v10, 0.0  ;;  %v3776_v40 = vmul.f32 0.01, %v3760_v10 }
 0x778   :  { %v3645_v38 = vsel %vm339_vm0, %v3633_v44, %v3634_v41  ;;  %v4664_v32 = vadd.f32 -1.0, %v3682_v24  ;;  %v3571_v60 = vpop.f32.mrf.mxu0  ;;  %v3753_v44 = vmul.f32 %v7192_v48, %v3745_v61  ;;  %v4667_v36 = vadd.f32 -1.0, %v3685_v22 }
 0x779   :  { %v3784_v43 = vsel %vm3768_vm6, %v3776_v40, %v3760_v10  ;;  %v3649_v19 = vmul.f32 %v3645_v38, %v5384_v27  ;;  %v3657_v45 = vadd.f32 %v7104_v57, %v3571_v60  ;;  %v3628_v40 = vmul.f32 %v7332_v9, %v7800_v39 }
 0x77a   :  { %v3800_v63 = vmul.f32 0.01, %v3784_v43  ;;  %vm3698_vm8 = vcmp.lt.f32.partialorder %v4664_v32, 0.0  ;;  %v3706_v14 = vmul.f32 0.01, %v4664_v32  ;;  %vm3792_vm9 = vcmp.gt.f32.partialorder %v3784_v43, 1.0 }
 0x77b   :  { %v3665_v25 = vmul.f32 %v7107_v31, %v3649_v19  ;;  %vm3701_vm13 = vcmp.lt.f32.partialorder %v4667_v36, 0.0  ;;  %v3709_v60 = vmul.f32 0.01, %v4667_v36 }
 0x77c   :  { %v3808_v13 = vadd.f32 0.99, %v3800_v63  ;;  %v3714_v21 = vsel %vm3698_vm8, %v3706_v14, %v4664_v32 }
 0x77d   :  { %v3599_v12 = vpop.permute.xlu0 %3598  ;;  %v3730_v20 = vmul.f32 0.01, %v3714_v21  ;;  %v3673_v47 = vadd.f32 %v3665_v25, %v3657_v45  ;;  %vm3722_vm10 = vcmp.gt.f32.partialorder %v3714_v21, 1.0  ;;  %v3717_v22 = vsel %vm3701_vm13, %v3709_v60, %v4667_v36 }
 0x77e   :  { %v3635_v1 = vrot.slane %v3599_v12, 1  ;;  %v3683_v2 = vadd.f32 %v3627_v50, %v3599_v12  ;;  %v7381_v33 = vsel %vm3792_vm9, %v3808_v13, %v3784_v43  ;;  %vm3725_vm6 = vcmp.gt.f32.partialorder %v3717_v22, 1.0 }
 0x77f   :  { %v3738_v57 = vadd.f32 0.99, %v3730_v20  ;;  %v3761_v49 = vadd.f32 %v3753_v44, %v3673_v47  ;;  %3865 = vrot.lane.b32.xlu2 %v7381_v33, %s5013_s2  ;;  %3840 = vmatmul.f32.vlgmr.msra.gmra.mxu0 %v7381_v33  ;;  %v3881_v47 = vrot.slane %v7381_v33, 1 }
 0x780   :  { %v3644_v31 = vsel %vm339_vm0, %v3634_v41, %v3635_v1  ;;  %v4665_v6 = vadd.f32 -1.0, %v3683_v2  ;;  %v3574_v37 = vpop.f32.mrf.mxu0 }
 0x781   :  { %v3650_v59 = vmul.f32 %v3644_v31, %v5364_v58  ;;  %vm3769_vm11 = vcmp.lt.f32.partialorder %v3761_v49, 0.0  ;;  %v3746_v17 = vsel %vm3722_vm10, %v3738_v57, %v3714_v21  ;;  %v3777_v3 = vmul.f32 0.01, %v3761_v49 }
 0x782   :  { %vm3699_vm12 = vcmp.lt.f32.partialorder %v4665_v6, 0.0  ;;  %v3707_v29 = vmul.f32 0.01, %v4665_v6  ;;  %v3658_v53 = vadd.f32 %v7121_v11, %v3574_v37  ;;  %v3754_v38 = vmul.f32 %v7192_v48, %v3746_v17 }
 0x783   :  { %v3666_v10 = vmul.f32 %v7390_v15, %v3650_v59  ;;  %v3785_v41 = vsel %vm3769_vm11, %v3777_v3, %v3761_v49  ;;  %v3733_v17 = vmul.f32 0.01, %v3717_v22 }
 0x784   :  { %v3715_v5 = vsel %vm3699_vm12, %v3707_v29, %v4665_v6  ;;  %v3801_v19 = vmul.f32 0.01, %v3785_v41  ;;  %vm3793_vm15 = vcmp.gt.f32.partialorder %v3785_v41, 1.0 }
 0x785   :  { %v3601_v23 = vpop.permute.xlu1 %3600  ;;  %v3731_v24 = vmul.f32 0.01, %v3715_v5  ;;  %v3674_v43 = vadd.f32 %v3666_v10, %v3658_v53  ;;  %vm3723_vm14 = vcmp.gt.f32.partialorder %v3715_v5, 1.0 }
 0x786   :  { %v3636_v32 = vrot.slane %v3601_v23, 1  ;;  %v3684_v11 = vadd.f32 %v3628_v40, %v3601_v23  ;;  %v3809_v25 = vadd.f32 0.99, %v3801_v19 }
 0x787   :  { %v3739_v61 = vadd.f32 0.99, %v3731_v24  ;;  %v3762_v63 = vadd.f32 %v3754_v38, %v3674_v43 }
 0x788   :  { %v3643_v14 = vsel %vm339_vm0, %v3635_v1, %v3636_v32  ;;  %v4666_v55 = vadd.f32 -1.0, %v3684_v11  ;;  %v3577_v45 = vpop.f32.mrf.mxu0  ;;  %v3642_v21 = vsel %vm339_vm0, %v3636_v32, %v3637_v46  ;;  %v3817_v1 = vsel %vm3793_vm15, %v3809_v25, %v3785_v41 }
 0x789   :  { %v3651_v9 = vmul.f32 %v3643_v14, %v5389_v28  ;;  %vm3770_vm1 = vcmp.lt.f32.partialorder %v3762_v63, 0.0  ;;  %v3778_v13 = vmul.f32 0.01, %v3762_v63  ;;  %v3747_v44 = vsel %vm3723_vm14, %v3739_v61, %v3715_v5  ;;  %3867 = vrot.lane.b32.xlu0 %v3817_v1, %s5013_s2  ;;  %3843 = vmatmul.f32.gmra.mxu0 %v3817_v1 }
 0x78a   :  { %vm3700_vm2 = vcmp.lt.f32.partialorder %v4666_v55, 0.0  ;;  %v3708_v50 = vmul.f32 0.01, %v4666_v55  ;;  %v3659_v12 = vadd.f32 %v7135_v18, %v3577_v45  ;;  %v3755_v31 = vmul.f32 %v7192_v48, %v3747_v44 }
 0x78b   :  { %v3667_v20 = vmul.f32 %v7390_v15, %v3651_v9  ;;  %v3786_v2 = vsel %vm3770_vm1, %v3778_v13, %v3762_v63  ;;  %v3882_v6 = vrot.slane %v3817_v1, 1  ;;  %v3652_v59 = vmul.f32 %v3642_v21, %v7800_v39 }
 0x78c   :  { %v3716_v57 = vsel %vm3700_vm2, %v3708_v50, %v4666_v55  ;;  %v3802_v18 = vmul.f32 0.01, %v3786_v2  ;;  %vm3794_vm4 = vcmp.gt.f32.partialorder %v3786_v2, 1.0  ;;  %v3630_v32 = vmul.f32 %v7341_v7, %v5436_v16 }
 0x78d   :  { %v3675_v49 = vadd.f32 %v3667_v20, %v3659_v12  ;;  %v3732_v37 = vmul.f32 0.01, %v3716_v57  ;;  %v7415_v36 = vsel %vm339_vm0, %v3881_v47, %v3882_v6  ;;  %vm3724_vm3 = vcmp.gt.f32.partialorder %v3716_v57, 1.0 }
 0x78e   :  { %v3810_v53 = vadd.f32 0.99, %v3802_v18  ;;  %v3668_v40 = vmul.f32 %v7390_v15, %v3652_v59  ;;  %v3741_v63 = vadd.f32 0.99, %v3733_v17 }
 0x78f   :  { %v3763_v29 = vadd.f32 %v3755_v31, %v3675_v49  ;;  %v3740_v3 = vadd.f32 0.99, %v3732_v37  ;;  %v3631_v49 = vmul.f32 %v7347_v30, %v5411_v51 }
 0x790   :  { %v3580_v10 = vpop.f32.mrf.mxu0  ;;  %v3818_v24 = vsel %vm3794_vm4, %v3810_v53, %v3786_v2  ;;  %v3749_v20 = vsel %vm3725_vm6, %v3741_v63, %v3717_v22 }
 0x791   :  { %vm3771_vm5 = vcmp.lt.f32.partialorder %v3763_v29, 0.0  ;;  %v3779_v5 = vmul.f32 0.01, %v3763_v29  ;;  %v3660_v23 = vadd.f32 %v7154_v4, %v3580_v10  ;;  %v3748_v41 = vsel %vm3724_vm3, %v3740_v3, %v3716_v57  ;;  %3846 = vmatmul.f32.vlgmr.msrb.gmra.mxu1 %v3818_v24  ;;  %3869 = vrot.lane.b32.xlu1 %v3818_v24, %s5013_s2 }
 0x792   :  { %v3756_v43 = vmul.f32 %v7192_v48, %v3748_v41  ;;  %v3883_v38 = vrot.slane %v3818_v24, 1  ;;  %v3757_v59 = vmul.f32 %v7192_v48, %v3749_v20 }
 0x793   :  { %v3787_v60 = vsel %vm3771_vm5, %v3779_v5, %v3763_v29  ;;  %v3676_v11 = vadd.f32 %v3668_v40, %v3660_v23 }
 0x794   :  { %v3803_v61 = vmul.f32 0.01, %v3787_v60  ;;  %v7425_v55 = vsel %vm339_vm0, %v3882_v6, %v3883_v38  ;;  %vm3795_vm7 = vcmp.gt.f32.partialorder %v3787_v60, 1.0 }
 0x795   :  { %v3605_v19 = vpop.permute.xlu0 %3604  ;;  %v3764_v45 = vadd.f32 %v3756_v43, %v3676_v11 }
 0x796   :  { %v3638_v14 = vrot.slane %v3605_v19, 1  ;;  %v3686_v4 = vadd.f32 %v3630_v32, %v3605_v19  ;;  %v3811_v9 = vadd.f32 0.99, %v3803_v61 }
 0x797   :  { %vm3772_vm8 = vcmp.lt.f32.partialorder %v3764_v45, 0.0  ;;  %v3780_v44 = vmul.f32 0.01, %v3764_v45 }
 0x798   :  { %v3641_v25 = vsel %vm339_vm0, %v3637_v46, %v3638_v14  ;;  %v4668_v7 = vadd.f32 -1.0, %v3686_v4  ;;  %v3819_v21 = vsel %vm3795_vm7, %v3811_v9, %v3787_v60  ;;  %v3583_v12 = vpop.f32.mrf.mxu0 }
 0x799   :  { %v3653_v13 = vmul.f32 %v3641_v25, %v5394_v42  ;;  %v3884_v1 = vrot.slane %v3819_v21, 1  ;;  %3871 = vrot.lane.b32.xlu2 %v3819_v21, %s5013_s2  ;;  %v3661_v2 = vadd.f32 %v7168_v56, %v3583_v12  ;;  %v3788_v57 = vsel %vm3772_vm8, %v3780_v44, %v3764_v45  ;;  %3849 = vmatmul.f32.gmra.mxu1 %v3819_v21 }
 0x79a   :  { %vm3702_vm9 = vcmp.lt.f32.partialorder %v4668_v7, 0.0  ;;  %v3710_v50 = vmul.f32 0.01, %v4668_v7  ;;  %v3804_v31 = vmul.f32 0.01, %v3788_v57  ;;  %vm3796_vm10 = vcmp.gt.f32.partialorder %v3788_v57, 1.0 }
 0x79b   :  { %v3669_v54 = vmul.f32 %v7390_v15, %v3653_v13  ;;  %v7439_v6 = vsel %vm339_vm0, %v3883_v38, %v3884_v1 }
 0x79c   :  { %v3718_v46 = vsel %vm3702_vm9, %v3710_v50, %v4668_v7  ;;  %v3812_v17 = vadd.f32 0.99, %v3804_v31 }
 0x79d   :  { %v3734_v37 = vmul.f32 0.01, %v3718_v46  ;;  %v3677_v22 = vadd.f32 %v3669_v54, %v3661_v2  ;;  %v3607_v18 = vpop.permute.xlu1 %3606  ;;  %vm3726_vm11 = vcmp.gt.f32.partialorder %v3718_v46, 1.0 }
 0x79e   :  { %v3639_v29 = vrot.slane %v3607_v18, 1  ;;  %v3687_v56 = vadd.f32 %v3631_v49, %v3607_v18  ;;  %v3820_v5 = vsel %vm3796_vm10, %v3812_v17, %v3788_v57 }
 0x79f   :  { %v3742_v3 = vadd.f32 0.99, %v3734_v37  ;;  %v3765_v53 = vadd.f32 %v3757_v59, %v3677_v22  ;;  %v3885_v23 = vrot.slane %v3820_v5, 1  ;;  %3873 = vrot.lane.b32.xlu0 %v3820_v5, %s5013_s2 }
 0x7a0   :  { %v3640_v10 = vsel %vm339_vm0, %v3638_v14, %v3639_v29  ;;  %v4669_v30 = vadd.f32 -1.0, %v3687_v56  ;;  %v3586_v24 = vpop.f32.mrf.mxu0  ;;  %v3647_v38 = vsel %vm339_vm0, %v3639_v29, %v3632_v34 }
 0x7a1   :  { %v3654_v40 = vmul.f32 %v3640_v10, %v5436_v16  ;;  %v3750_v43 = vsel %vm3726_vm11, %v3742_v3, %v3718_v46  ;;  %vm3773_vm13 = vcmp.lt.f32.partialorder %v3765_v53, 0.0  ;;  %v3662_v32 = vadd.f32 %v7180_v8, %v3586_v24  ;;  %3852 = vmatmul.f32.gmra.mxu1 %v3820_v5 }
 0x7a2   :  { %vm3703_vm12 = vcmp.lt.f32.partialorder %v4669_v30, 0.0  ;;  %v3711_v41 = vmul.f32 0.01, %v4669_v30  ;;  %v3781_v11 = vmul.f32 0.01, %v3765_v53  ;;  %v3892_v61 = vsel %vm339_vm0, %v3884_v1, %v3885_v23 }
 0x7a3   :  { %v3670_v60 = vmul.f32 %v7390_v15, %v3654_v40  ;;  %v3758_v4 = vmul.f32 %v7192_v48, %v3750_v43  ;;  %v3655_v52 = vmul.f32 %v3647_v38, %v5411_v51  ;;  %v3900_v33 = vmul.f32 %v3892_v61, %v5389_v28 }
 0x7a4   :  { %v3719_v19 = vsel %vm3703_vm12, %v3711_v41, %v4669_v30  ;;  %v3789_v45 = vsel %vm3773_vm13, %v3781_v11, %v3765_v53  ;;  %v3897_v30 = vmul.f32 %v7415_v36, %v7799_v35 }
 0x7a5   :  { %v3735_v63 = vmul.f32 0.01, %v3719_v19  ;;  %v3678_v14 = vadd.f32 %v3670_v60, %v3662_v32  ;;  %v3805_v9 = vmul.f32 0.01, %v3789_v45  ;;  %vm3727_vm14 = vcmp.gt.f32.partialorder %v3719_v19, 1.0 }
 0x7a6   :  { %vm3797_vm15 = vcmp.gt.f32.partialorder %v3789_v45, 1.0  ;;  %v3671_v44 = vmul.f32 %v7390_v15, %v3655_v52 }
 0x7a7   :  { %v3743_v25 = vadd.f32 0.99, %v3735_v63  ;;  %v3766_v34 = vadd.f32 %v3758_v4, %v3678_v14  ;;  %v3813_v8 = vadd.f32 0.99, %v3805_v9  ;;  %v3899_v9 = vmul.f32 %v7439_v6, %v5364_v58 }
 0x7a8   :  { %v3589_v21 = vpop.f32.mrf.mxu0 }
 0x7a9   :  { %v3751_v7 = vsel %vm3727_vm14, %v3743_v25, %v3719_v19  ;;  %vm3774_vm1 = vcmp.lt.f32.partialorder %v3766_v34, 0.0  ;;  %v3782_v13 = vmul.f32 0.01, %v3766_v34  ;;  %v3821_v50 = vsel %vm3797_vm15, %v3813_v8, %v3789_v45 }
 0x7aa   :  { %v3663_v12 = vadd.f32 %v7197_v62, %v3589_v21  ;;  %v3759_v20 = vmul.f32 %v7192_v48, %v3751_v7  ;;  %3875 = vrot.lane.b32.xlu2 %v3821_v50, %s5013_s2  ;;  %v3886_v1 = vrot.slane %v3821_v50, 1  ;;  %3855 = vmatmul.f32.gmra.mxu1 %v3821_v50 }
 0x7ab   :  { %v3790_v2 = vsel %vm3774_vm1, %v3782_v13, %v3766_v34 }
 0x7ac   :  { %v3806_v54 = vmul.f32 0.01, %v3790_v2  ;;  %v3679_v57 = vadd.f32 %v3671_v44, %v3663_v12  ;;  %v7462_v46 = vsel %vm339_vm0, %v3885_v23, %v3886_v1  ;;  %vm3798_vm2 = vcmp.gt.f32.partialorder %v3790_v2, 1.0 }
 0x7ae   :  { %v3814_v49 = vadd.f32 0.99, %v3806_v54  ;;  %v3767_v31 = vadd.f32 %v3759_v20, %v3679_v57  ;;  %v7501_v20 = vld [vmem:[#allocation7 + $0x1] ss:$0 sm:$0xff] }
 0x7b0   :  { %v3822_v37 = vsel %vm3798_vm2, %v3814_v49, %v3790_v2  ;;  %vm3775_vm3 = vcmp.lt.f32.partialorder %v3767_v31, 0.0  ;;  %v3783_v48 = vmul.f32 0.01, %v3767_v31 }
 0x7b1   :  { %3877 = vrot.lane.b32.xlu1 %v3822_v37, %s5013_s2  ;;  %v3887_v62 = vrot.slane %v3822_v37, 1 }
 0x7b2   :  { %v3791_v22 = vsel %vm3775_vm3, %v3783_v48, %v3767_v31  ;;  %3858 = vmatmul.f32.gmra.mxu1 %v3822_v37 }
 0x7b3   :  { %v7467_v59 = vsel %vm339_vm0, %v3886_v1, %v3887_v62  ;;  %v3807_v18 = vmul.f32 0.01, %v3791_v22  ;;  %vm3799_vm4 = vcmp.gt.f32.partialorder %v3791_v22, 1.0 }
 0x7b5   :  { %v3815_v29 = vadd.f32 0.99, %v3807_v18 }
 0x7b7   :  { %v3823_v56 = vsel %vm3799_vm4, %v3815_v29, %v3791_v22 }
 0x7b8   :  { %3879 = vrot.lane.b32.xlu0 %v3823_v56, %s5013_s2  ;;  %v3888_v17 = vrot.slane %v3823_v56, 1 }
 0x7ba   :  { %v7472_v3 = vsel %vm339_vm0, %v3887_v62, %v3888_v17  ;;  %v7478_v53 = vsel %vm339_vm0, %v3888_v17, %v3881_v47  ;;  %3861 = vmatmul.f32.gmra.mxu1 %v3823_v56  ;;  %v3898_v47 = vmul.f32 %v7425_v55, %v5384_v27  ;;  %v7510_v56 = vld [vmem:[#allocation2 + $0x8] sm:$0xff] }
 0x7d9   :  { %v7480_v10 = vpop.permute.xlu2 %3865 }
 0x7da   :  { %v3953_v5 = vadd.f32 %v3897_v30, %v7480_v10  ;;  %v3905_v60 = vrot.slane %v7480_v10, 1 }
 0x7dc   :  { %v4670_v23 = vadd.f32 -1.0, %v3953_v5 }
 0x7de   :  { %v3977_v40 = vmul.f32 0.01, %v4670_v23  ;;  %vm3969_vm5 = vcmp.lt.f32.partialorder %v4670_v23, 0.0 }
 0x7e0   :  { %v3985_v41 = vsel %vm3969_vm5, %v3977_v40, %v4670_v23  ;;  %v3902_v23 = vmul.f32 %v7467_v59, %v5394_v42  ;;  %v7523_v59 = vld [vmem:[#allocation2 + $0x10] sm:$0xff] }
 0x7e1   :  { %v4001_v24 = vmul.f32 0.01, %v3985_v41  ;;  %vm3993_vm6 = vcmp.gt.f32.partialorder %v3985_v41, 1.0 }
 0x7e3   :  { %v4009_v36 = vadd.f32 0.99, %v4001_v24 }
 0x7e5   :  { %v4017_v52 = vsel %vm3993_vm6, %v4009_v36, %v3985_v41 }
 0x7e6   :  { %v4025_v1 = vmul.f32 %v7501_v20, %v4017_v52 }
 0x7f3   :  { %v7485_v43 = vpop.permute.xlu2 %3871 }
 0x7f4   :  { %v3956_v38 = vadd.f32 %v3900_v33, %v7485_v43  ;;  %v3908_v2 = vrot.slane %v7485_v43, 1 }
 0x7f6   :  { %v4673_v61 = vadd.f32 -1.0, %v3956_v38 }
 0x7f8   :  { %v3980_v44 = vmul.f32 0.01, %v4673_v61  ;;  %vm3972_vm8 = vcmp.lt.f32.partialorder %v4673_v61, 0.0 }
 0x7fa   :  { %v3988_v22 = vsel %vm3972_vm8, %v3980_v44, %v4673_v61 }
 0x7fb   :  { %v3868_v32 = vpop.permute.xlu0 %3867  ;;  %v4004_v24 = vmul.f32 0.01, %v3988_v22  ;;  %vm3996_vm15 = vcmp.gt.f32.partialorder %v3988_v22, 1.0 }
 0x7fc   :  { %v3906_v11 = vrot.slane %v3868_v32, 1  ;;  %v3954_v19 = vadd.f32 %v3898_v47, %v3868_v32  ;;  %v3841_v4 = vpop.f32.mrf.mxu0  ;;  %v3901_v32 = vmul.f32 %v7462_v46, %v7800_v39 }
 0x7fd   :  { %v3929_v25 = vadd.f32 %v7362_v0, %v3841_v4 }
 0x7fe   :  { %v3919_v63 = vsel %vm339_vm0, %v3905_v60, %v3906_v11  ;;  %v4671_v14 = vadd.f32 -1.0, %v3954_v19 }
 0x7ff   :  { %v3921_v45 = vmul.f32 %v3919_v63, %v7799_v35 }
 0x800   :  { %vm3970_vm7 = vcmp.lt.f32.partialorder %v4671_v14, 0.0  ;;  %v3978_v55 = vmul.f32 0.01, %v4671_v14 }
 0x801   :  { %v3937_v34 = vmul.f32 %v7390_v15, %v3921_v45 }
 0x802   :  { %v3986_v7 = vsel %vm3970_vm7, %v3978_v55, %v4671_v14  ;;  %v4012_v55 = vadd.f32 0.99, %v4004_v24 }
 0x803   :  { %v3870_v8 = vpop.permute.xlu1 %3869  ;;  %v4002_v50 = vmul.f32 0.01, %v3986_v7  ;;  %v3945_v12 = vadd.f32 %v3937_v34, %v3929_v25  ;;  %vm3994_vm9 = vcmp.gt.f32.partialorder %v3986_v7, 1.0 }
 0x804   :  { %v3907_v13 = vrot.slane %v3870_v8, 1  ;;  %v3955_v21 = vadd.f32 %v3899_v9, %v3870_v8  ;;  %v7514_v5 = vpop.permute.xlu2 %3875 }
 0x805   :  { %v4010_v57 = vadd.f32 0.99, %v4002_v50  ;;  %v4033_v49 = vadd.f32 %v4025_v1, %v3945_v12  ;;  %v3958_v36 = vadd.f32 %v3902_v23, %v7514_v5 }
 0x806   :  { %v3918_v6 = vsel %vm339_vm0, %v3906_v11, %v3907_v13  ;;  %v4672_v54 = vadd.f32 -1.0, %v3955_v21  ;;  %v3917_v31 = vsel %vm339_vm0, %v3907_v13, %v3908_v2  ;;  %v3844_v62 = vpop.f32.mrf.mxu0 }
 0x807   :  { %v3922_v48 = vmul.f32 %v3918_v6, %v5384_v27  ;;  %v4018_v18 = vsel %vm3994_vm9, %v4010_v57, %v3986_v7  ;;  %v3930_v17 = vadd.f32 %v7510_v56, %v3844_v62  ;;  %v3923_v41 = vmul.f32 %v3917_v31, %v5364_v58 }
 0x808   :  { %vm3971_vm10 = vcmp.lt.f32.partialorder %v4672_v54, 0.0  ;;  %v3979_v37 = vmul.f32 0.01, %v4672_v54  ;;  %vm4041_vm11 = vcmp.lt.f32.partialorder %v4033_v49, 0.0  ;;  %v4026_v33 = vmul.f32 %v7501_v20, %v4018_v18  ;;  %v7538_v18 = vld [vmem:[#allocation2 + $0x18] sm:$0xff] }
 0x809   :  { %v3938_v30 = vmul.f32 %v7390_v15, %v3922_v48  ;;  %v4049_v47 = vmul.f32 0.01, %v4033_v49  ;;  %v3939_v4 = vmul.f32 %v7390_v15, %v3923_v41  ;;  %v4675_v13 = vadd.f32 -1.0, %v3958_v36 }
 0x80a   :  { %v3987_v29 = vsel %vm3971_vm10, %v3979_v37, %v4672_v54  ;;  %v4020_v54 = vsel %vm3996_vm15, %v4012_v55, %v3988_v22  ;;  %v3910_v57 = vrot.slane %v7514_v5, 1 }
 0x80b   :  { %v4003_v40 = vmul.f32 0.01, %v3987_v29  ;;  %v3946_v43 = vadd.f32 %v3938_v30, %v3930_v17  ;;  %vm3995_vm12 = vcmp.gt.f32.partialorder %v3987_v29, 1.0  ;;  %v4057_v63 = vsel %vm4041_vm11, %v4049_v47, %v4033_v49 }
 0x80c   :  { %v4073_v45 = vmul.f32 0.01, %v4057_v63  ;;  %vm4065_vm14 = vcmp.gt.f32.partialorder %v4057_v63, 1.0  ;;  %v3982_v37 = vmul.f32 0.01, %v4675_v13  ;;  %vm3974_vm3 = vcmp.lt.f32.partialorder %v4675_v13, 0.0 }
 0x80d   :  { %v4011_v38 = vadd.f32 0.99, %v4003_v40  ;;  %v4034_v11 = vadd.f32 %v4026_v33, %v3946_v43  ;;  %v4028_v24 = vmul.f32 %v7501_v20, %v4020_v54 }
 0x80e   :  { %v3847_v19 = vpop.f32.mrf.mxu1  ;;  %v4081_v34 = vadd.f32 0.99, %v4073_v45  ;;  %v3990_v33 = vsel %vm3974_vm3, %v3982_v37, %v4675_v13 }
 0x80f   :  { %v3931_v14 = vadd.f32 %v7523_v59, %v3847_v19  ;;  %v4019_v61 = vsel %vm3995_vm12, %v4011_v38, %v3987_v29  ;;  %vm4042_vm13 = vcmp.lt.f32.partialorder %v4034_v11, 0.0  ;;  %v4050_v46 = vmul.f32 0.01, %v4034_v11 }
 0x810   :  { %v4027_v52 = vmul.f32 %v7501_v20, %v4019_v61  ;;  %v7528_v50 = vsel %vm4065_vm14, %v4081_v34, %v4057_v63  ;;  %v4006_v45 = vmul.f32 0.01, %v3990_v33  ;;  %vm3998_vm9 = vcmp.gt.f32.partialorder %v3990_v33, 1.0 }
 0x811   :  { %v3874_v9 = vpop.permute.xlu0 %3873  ;;  %v3947_v25 = vadd.f32 %v3939_v4, %v3931_v14  ;;  %v4058_v21 = vsel %vm4042_vm13, %v4050_v46, %v4034_v11  ;;  %4138 = vrot.lane.b32.xlu1 %v7528_v50, %s5013_s2  ;;  %4113 = vmatmul.f32.vlgmr.msrb.gmra.mxu2 %v7528_v50  ;;  %v4154_v47 = vrot.slane %v7528_v50, 1  ;;  %v7556_v46 = vld [vmem:[#allocation2 + $0x20] sm:$0xff] }
 0x812   :  { %v3909_v8 = vrot.slane %v3874_v9, 1  ;;  %v3957_v7 = vadd.f32 %v3901_v32, %v3874_v9  ;;  %v4074_v49 = vmul.f32 0.01, %v4058_v21  ;;  %vm4066_vm4 = vcmp.gt.f32.partialorder %v4058_v21, 1.0 }
 0x813   :  { %v4035_v44 = vadd.f32 %v4027_v52, %v3947_v25  ;;  %v3903_v9 = vmul.f32 %v7472_v3, %v5436_v16  ;;  %v4014_v54 = vadd.f32 0.99, %v4006_v45 }
 0x814   :  { %v3916_v12 = vsel %vm339_vm0, %v3908_v2, %v3909_v8  ;;  %v4674_v1 = vadd.f32 -1.0, %v3957_v7  ;;  %v4082_v17 = vadd.f32 0.99, %v4074_v49  ;;  %v3915_v22 = vsel %vm339_vm0, %v3909_v8, %v3910_v57 }
 0x815   :  { %v3924_v6 = vmul.f32 %v3916_v12, %v5389_v28  ;;  %vm4043_vm1 = vcmp.lt.f32.partialorder %v4035_v44, 0.0  ;;  %v4051_v31 = vmul.f32 0.01, %v4035_v44  ;;  %v3925_v19 = vmul.f32 %v3915_v22, %v7800_v39 }
 0x816   :  { %vm3973_vm2 = vcmp.lt.f32.partialorder %v4674_v1, 0.0  ;;  %v3981_v62 = vmul.f32 0.01, %v4674_v1  ;;  %v3850_v48 = vpop.f32.mrf.mxu1  ;;  %v4090_v43 = vsel %vm4066_vm4, %v4082_v17, %v4058_v21  ;;  %v4022_v22 = vsel %vm3998_vm9, %v4014_v54, %v3990_v33 }
 0x817   :  { %v3940_v2 = vmul.f32 %v7390_v15, %v3924_v6  ;;  %v3932_v29 = vadd.f32 %v7538_v18, %v3850_v48  ;;  %v4059_v30 = vsel %vm4043_vm1, %v4051_v31, %v4035_v44  ;;  %4140 = vrot.lane.b32.xlu2 %v4090_v43, %s5013_s2  ;;  %v4155_v38 = vrot.slane %v4090_v43, 1 }
 0x818   :  { %v3989_v5 = vsel %vm3973_vm2, %v3981_v62, %v4674_v1  ;;  %v4075_v23 = vmul.f32 0.01, %v4059_v30  ;;  %vm4067_vm5 = vcmp.gt.f32.partialorder %v4059_v30, 1.0  ;;  %v3941_v34 = vmul.f32 %v7390_v15, %v3925_v19 }
 0x819   :  { %v4005_v40 = vmul.f32 0.01, %v3989_v5  ;;  %v3948_v41 = vadd.f32 %v3940_v2, %v3932_v29  ;;  %4116 = vmatmul.f32.gmra.mxu2 %v4090_v43  ;;  %v7551_v14 = vsel %vm339_vm0, %v4154_v47, %v4155_v38  ;;  %vm3997_vm6 = vcmp.gt.f32.partialorder %v3989_v5, 1.0 }
 0x81a   :  { %v4083_v32 = vadd.f32 0.99, %v4075_v23 }
 0x81b   :  { %v4013_v36 = vadd.f32 0.99, %v4005_v40  ;;  %v4036_v11 = vadd.f32 %v4028_v24, %v3948_v41  ;;  %v3904_v41 = vmul.f32 %v7478_v53, %v5411_v51 }
 0x81c   :  { %v4091_v63 = vsel %vm4067_vm5, %v4083_v32, %v4059_v30 }
 0x81d   :  { %v4156_v4 = vrot.slane %v4091_v63, 1  ;;  %4142 = vrot.lane.b32.xlu0 %v4091_v63, %s5013_s2  ;;  %vm4044_vm7 = vcmp.lt.f32.partialorder %v4036_v11, 0.0  ;;  %v4052_v61 = vmul.f32 0.01, %v4036_v11  ;;  %v4021_v52 = vsel %vm3997_vm6, %v4013_v36, %v3989_v5 }
 0x81e   :  { %v3853_v55 = vpop.f32.mrf.mxu1  ;;  %v4029_v12 = vmul.f32 %v7501_v20, %v4021_v52 }
 0x81f   :  { %v3933_v25 = vadd.f32 %v7556_v46, %v3853_v55  ;;  %v4060_v8 = vsel %vm4044_vm7, %v4052_v61, %v4036_v11  ;;  %v7562_v7 = vsel %vm339_vm0, %v4155_v38, %v4156_v4  ;;  %v4030_v11 = vmul.f32 %v7501_v20, %v4022_v22 }
 0x820   :  { %v4076_v21 = vmul.f32 0.01, %v4060_v8  ;;  %vm4068_vm8 = vcmp.gt.f32.partialorder %v4060_v8, 1.0 }
 0x821   :  { %v3949_v44 = vadd.f32 %v3941_v34, %v3933_v25  ;;  %4119 = vmatmul.f32.gmra.mxu2 %v4091_v63 }
 0x822   :  { %v4084_v3 = vadd.f32 0.99, %v4076_v21 }
 0x823   :  { %v3878_v13 = vpop.permute.xlu1 %3877  ;;  %v4037_v49 = vadd.f32 %v4029_v12, %v3949_v44 }
 0x824   :  { %v3911_v1 = vrot.slane %v3878_v13, 1  ;;  %v3959_v6 = vadd.f32 %v3903_v9, %v3878_v13  ;;  %v4092_v62 = vsel %vm4068_vm8, %v4084_v3, %v4060_v8 }
 0x825   :  { %v4157_v29 = vrot.slane %v4092_v62, 1  ;;  %4144 = vrot.lane.b32.xlu1 %v4092_v62, %s5013_s2  ;;  %vm4045_vm11 = vcmp.lt.f32.partialorder %v4037_v49, 0.0  ;;  %v4053_v5 = vmul.f32 0.01, %v4037_v49 }
 0x826   :  { %v3914_v31 = vsel %vm339_vm0, %v3910_v57, %v3911_v1  ;;  %v4676_v37 = vadd.f32 -1.0, %v3959_v6  ;;  %v7570_v57 = vld [vmem:[#allocation2 + $0x28] sm:$0xff] }
 0x827   :  { %v3926_v48 = vmul.f32 %v3914_v31, %v5394_v42  ;;  %v3856_v17 = vpop.f32.mrf.mxu1  ;;  %v7577_v24 = vsel %vm339_vm0, %v4156_v4, %v4157_v29  ;;  %v4061_v32 = vsel %vm4045_vm11, %v4053_v5, %v4037_v49 }
 0x828   :  { %vm3975_vm10 = vcmp.lt.f32.partialorder %v4676_v37, 0.0  ;;  %v3983_v2 = vmul.f32 0.01, %v4676_v37  ;;  %v3934_v40 = vadd.f32 %v7570_v57, %v3856_v17  ;;  %v4077_v61 = vmul.f32 0.01, %v4061_v32 }
 0x829   :  { %v3942_v30 = vmul.f32 %v7390_v15, %v3926_v48  ;;  %4122 = vmatmul.f32.gmra.mxu2 %v4092_v62  ;;  %vm4069_vm14 = vcmp.gt.f32.partialorder %v4061_v32, 1.0 }
 0x82a   :  { %v3991_v23 = vsel %vm3975_vm10, %v3983_v2, %v4676_v37  ;;  %v3880_v38 = vpop.permute.xlu0 %3879  ;;  %v4085_v52 = vadd.f32 0.99, %v4077_v61 }
 0x82b   :  { %v4007_v43 = vmul.f32 0.01, %v3991_v23  ;;  %v3950_v36 = vadd.f32 %v3942_v30, %v3934_v40  ;;  %v3912_v33 = vrot.slane %v3880_v38, 1  ;;  %v3960_v19 = vadd.f32 %v3904_v41, %v3880_v38  ;;  %v7599_v41 = vld [vmem:[#allocation2 + $0x38] sm:$0xff] }
 0x82c   :  { %vm3999_vm12 = vcmp.gt.f32.partialorder %v3991_v23, 1.0  ;;  %v4093_v34 = vsel %vm4069_vm14, %v4085_v52, %v4061_v32 }
 0x82d   :  { %v4015_v63 = vadd.f32 0.99, %v4007_v43  ;;  %v4038_v45 = vadd.f32 %v4030_v11, %v3950_v36  ;;  %v3913_v55 = vsel %vm339_vm0, %v3911_v1, %v3912_v33  ;;  %v4677_v53 = vadd.f32 -1.0, %v3960_v19  ;;  %4146 = vrot.lane.b32.xlu2 %v4093_v34, %s5013_s2  ;;  %v7585_v1 = vld [vmem:[#allocation2 + $0x30] sm:$0xff] }
 0x82e   :  { %v3927_v4 = vmul.f32 %v3913_v55, %v5436_v16  ;;  %v4158_v12 = vrot.slane %v4093_v34, 1  ;;  %v3920_v3 = vsel %vm339_vm0, %v3912_v33, %v3905_v60 }
 0x82f   :  { %v4023_v9 = vsel %vm3999_vm12, %v4015_v63, %v3991_v23  ;;  %vm3976_vm13 = vcmp.lt.f32.partialorder %v4677_v53, 0.0  ;;  %v3984_v25 = vmul.f32 0.01, %v4677_v53  ;;  %vm4046_vm15 = vcmp.lt.f32.partialorder %v4038_v45, 0.0  ;;  %v3859_v8 = vpop.f32.mrf.mxu1 }
 0x830   :  { %v3943_v13 = vmul.f32 %v7390_v15, %v3927_v4  ;;  %v4054_v21 = vmul.f32 0.01, %v4038_v45  ;;  %v3935_v6 = vadd.f32 %v7585_v1, %v3859_v8  ;;  %v4031_v54 = vmul.f32 %v7501_v20, %v4023_v9 }
 0x831   :  { %v3992_v44 = vsel %vm3976_vm13, %v3984_v25, %v4677_v53  ;;  %v7595_v48 = vsel %vm339_vm0, %v4157_v29, %v4158_v12  ;;  %v3928_v30 = vmul.f32 %v3920_v3, %v5411_v51  ;;  %4125 = vmatmul.f32.gmra.mxu2 %v4093_v34 }
 0x832   :  { %v4008_v49 = vmul.f32 0.01, %v3992_v44  ;;  %v4062_v31 = vsel %vm4046_vm15, %v4054_v21, %v4038_v45  ;;  %v3951_v37 = vadd.f32 %v3943_v13, %v3935_v6  ;;  %vm4000_vm2 = vcmp.gt.f32.partialorder %v3992_v44, 1.0 }
 0x833   :  { %v4078_v62 = vmul.f32 0.01, %v4062_v31  ;;  %vm4070_vm1 = vcmp.gt.f32.partialorder %v4062_v31, 1.0  ;;  %v3944_v43 = vmul.f32 %v7390_v15, %v3928_v30 }
 0x834   :  { %v4016_v2 = vadd.f32 0.99, %v4008_v49  ;;  %v4039_v17 = vadd.f32 %v4031_v54, %v3951_v37 }
 0x835   :  { %v4086_v22 = vadd.f32 0.99, %v4078_v62  ;;  %v4172_v62 = vmul.f32 %v7577_v24, %v5364_v58 }
 0x836   :  { %vm4047_vm3 = vcmp.lt.f32.partialorder %v4039_v17, 0.0  ;;  %v4055_v5 = vmul.f32 0.01, %v4039_v17  ;;  %v4024_v23 = vsel %vm4000_vm2, %v4016_v2, %v3992_v44  ;;  %v4170_v44 = vmul.f32 %v7551_v14, %v7799_v35 }
 0x837   :  { %v4094_v10 = vsel %vm4070_vm1, %v4086_v22, %v4062_v31  ;;  %v3862_v60 = vpop.f32.mrf.mxu1  ;;  %v4032_v33 = vmul.f32 %v7501_v20, %v4024_v23 }
 0x838   :  { %v4159_v40 = vrot.slane %v4094_v10, 1  ;;  %4148 = vrot.lane.b32.xlu0 %v4094_v10, %s5013_s2  ;;  %v3936_v29 = vadd.f32 %v7599_v41, %v3862_v60  ;;  %v4063_v38 = vsel %vm4047_vm3, %v4055_v5, %v4039_v17 }
 0x839   :  { %v4079_v32 = vmul.f32 0.01, %v4063_v38  ;;  %vm4071_vm4 = vcmp.gt.f32.partialorder %v4063_v38, 1.0  ;;  %4128 = vmatmul.f32.gmra.mxu2 %v4094_v10 }
 0x83a   :  { %v4164_v36 = vsel %vm339_vm0, %v4158_v12, %v4159_v40  ;;  %v3952_v11 = vadd.f32 %v3944_v43, %v3936_v29  ;;  %v4171_v12 = vmul.f32 %v7562_v7, %v5384_v27 }
 0x83b   :  { %v4087_v19 = vadd.f32 0.99, %v4079_v32  ;;  %v4174_v60 = vmul.f32 %v4164_v36, %v7800_v39 }
 0x83c   :  { %v4040_v63 = vadd.f32 %v4032_v33, %v3952_v11 }
 0x83d   :  { %v4095_v61 = vsel %vm4071_vm4, %v4087_v19, %v4063_v38  ;;  %v4173_v38 = vmul.f32 %v7595_v48, %v5389_v28 }
 0x83e   :  { %4150 = vrot.lane.b32.xlu1 %v4095_v61, %s5013_s2  ;;  %v4160_v45 = vrot.slane %v4095_v61, 1  ;;  %4131 = vmatmul.f32.vlgmr.msra.gmra.mxu3 %v4095_v61  ;;  %vm4048_vm5 = vcmp.lt.f32.partialorder %v4040_v63, 0.0  ;;  %v4056_v55 = vmul.f32 0.01, %v4040_v63 }
 0x840   :  { %v4064_v53 = vsel %vm4048_vm5, %v4056_v55, %v4040_v63  ;;  %v7609_v52 = vsel %vm339_vm0, %v4159_v40, %v4160_v45 }
 0x841   :  { %v4080_v4 = vmul.f32 0.01, %v4064_v53  ;;  %vm4072_vm6 = vcmp.gt.f32.partialorder %v4064_v53, 1.0 }
 0x843   :  { %v4088_v9 = vadd.f32 0.99, %v4080_v4 }
 0x845   :  { %v4096_v25 = vsel %vm4072_vm6, %v4088_v9, %v4064_v53 }
 0x846   :  { %4152 = vrot.lane.b32.xlu2 %v4096_v25, %s5013_s2  ;;  %v4161_v34 = vrot.slane %v4096_v25, 1  ;;  %4134 = vmatmul.f32.gmra.mxu3 %v4096_v25 }
 0x848   :  { %v4169_v8 = vsel %vm339_vm0, %v4161_v34, %v4154_v47  ;;  %v7618_v13 = vsel %vm339_vm0, %v4160_v45, %v4161_v34 }
 0x871   :  { %v4141_v21 = vpop.permute.xlu2 %4140 }
 0x872   :  { %v4227_v3 = vadd.f32 %v4171_v12, %v4141_v21  ;;  %v4179_v2 = vrot.slane %v4141_v21, 1 }
 0x874   :  { %v4679_v47 = vadd.f32 -1.0, %v4227_v3 }
 0x876   :  { %v4251_v30 = vmul.f32 0.01, %v4679_v47  ;;  %vm4243_vm8 = vcmp.lt.f32.partialorder %v4679_v47, 0.0 }
 0x878   :  { %v4259_v40 = vsel %vm4243_vm8, %v4251_v30, %v4679_v47  ;;  %v4177_v47 = vmul.f32 %v4169_v8, %v5411_v51 }
 0x879   :  { %v4275_v32 = vmul.f32 0.01, %v4259_v40  ;;  %vm4267_vm11 = vcmp.gt.f32.partialorder %v4259_v40, 1.0 }
 0x87b   :  { %v4283_v9 = vadd.f32 0.99, %v4275_v32 }
 0x883   :  { %v7624_v6 = vpop.permute.xlu1 %4138 }
 0x884   :  { %v4226_v54 = vadd.f32 %v4170_v44, %v7624_v6  ;;  %v4178_v31 = vrot.slane %v7624_v6, 1 }
 0x886   :  { %v4678_v50 = vadd.f32 -1.0, %v4226_v54  ;;  %v4192_v22 = vsel %vm339_vm0, %v4178_v31, %v4179_v2 }
 0x887   :  { %v7634_v10 = vpop.permute.xlu2 %4146  ;;  %v4194_v24 = vmul.f32 %v4192_v22, %v7799_v35 }
 0x888   :  { %vm4242_vm7 = vcmp.lt.f32.partialorder %v4678_v50, 0.0  ;;  %v4250_v49 = vmul.f32 0.01, %v4678_v50  ;;  %v4230_v29 = vadd.f32 %v4174_v60, %v7634_v10  ;;  %v4182_v8 = vrot.slane %v7634_v10, 1 }
 0x889   :  { %v4210_v36 = vmul.f32 %v7390_v15, %v4194_v24 }
 0x88a   :  { %v4258_v37 = vsel %vm4242_vm7, %v4250_v49, %v4678_v50  ;;  %v4682_v55 = vadd.f32 -1.0, %v4230_v29  ;;  %v4291_v50 = vsel %vm4267_vm11, %v4283_v9, %v4259_v40 }
 0x88b   :  { %v4274_v14 = vmul.f32 0.01, %v4258_v37  ;;  %vm4266_vm9 = vcmp.gt.f32.partialorder %v4258_v37, 1.0  ;;  %v4299_v60 = vmul.f32 %v7501_v20, %v4291_v50 }
 0x88c   :  { %v4254_v44 = vmul.f32 0.01, %v4682_v55  ;;  %vm4246_vm13 = vcmp.lt.f32.partialorder %v4682_v55, 0.0 }
 0x88d   :  { %v4282_v5 = vadd.f32 0.99, %v4274_v14 }
 0x88f   :  { %v4143_v17 = vpop.permute.xlu0 %4142  ;;  %v4290_v19 = vsel %vm4266_vm9, %v4282_v5, %v4258_v37 }
 0x890   :  { %v4228_v7 = vadd.f32 %v4172_v62, %v4143_v17  ;;  %v4180_v43 = vrot.slane %v4143_v17, 1  ;;  %v4298_v4 = vmul.f32 %v7501_v20, %v4290_v19 }
 0x892   :  { %v4680_v23 = vadd.f32 -1.0, %v4228_v7  ;;  %v4191_v35 = vsel %vm339_vm0, %v4179_v2, %v4180_v43  ;;  %v4262_v7 = vsel %vm4246_vm13, %v4254_v44, %v4682_v55 }
 0x893   :  { %v4195_v21 = vmul.f32 %v4191_v35, %v5384_v27  ;;  %v4278_v29 = vmul.f32 0.01, %v4262_v7  ;;  %vm4270_vm3 = vcmp.gt.f32.partialorder %v4262_v7, 1.0 }
 0x894   :  { %v4252_v11 = vmul.f32 0.01, %v4680_v23  ;;  %v4114_v33 = vpop.f32.mrf.mxu2  ;;  %vm4244_vm10 = vcmp.lt.f32.partialorder %v4680_v23, 0.0 }
 0x895   :  { %v4202_v61 = vadd.f32 %v7362_v0, %v4114_v33  ;;  %v4211_v14 = vmul.f32 %v7390_v15, %v4195_v21 }
 0x896   :  { %v4260_v48 = vsel %vm4244_vm10, %v4252_v11, %v4680_v23 }
 0x897   :  { %v4145_v63 = vpop.permute.xlu1 %4144  ;;  %v4218_v53 = vadd.f32 %v4210_v36, %v4202_v61  ;;  %v4276_v0 = vmul.f32 0.01, %v4260_v48  ;;  %vm4268_vm1 = vcmp.gt.f32.partialorder %v4260_v48, 1.0 }
 0x898   :  { %v4229_v45 = vadd.f32 %v4173_v38, %v4145_v63  ;;  %v4181_v12 = vrot.slane %v4145_v63, 1 }
 0x899   :  { %v4306_v25 = vadd.f32 %v4298_v4, %v4218_v53  ;;  %v4284_v22 = vadd.f32 0.99, %v4276_v0  ;;  %v4286_v53 = vadd.f32 0.99, %v4278_v29 }
 0x89a   :  { %v4681_v34 = vadd.f32 -1.0, %v4229_v45  ;;  %v4190_v17 = vsel %vm339_vm0, %v4180_v43, %v4181_v12  ;;  %v4189_v10 = vsel %vm339_vm0, %v4181_v12, %v4182_v8  ;;  %v7665_v45 = vld [vmem:[#allocation7] ss:$0 sm:$0xff] }
 0x89b   :  { %vm4314_vm12 = vcmp.lt.f32.partialorder %v4306_v25, 0.0  ;;  %v4322_v54 = vmul.f32 0.01, %v4306_v25  ;;  %v4196_v24 = vmul.f32 %v4190_v17, %v5364_v58  ;;  %v4292_v33 = vsel %vm4268_vm1, %v4284_v22, %v4260_v48 }
 0x89c   :  { %v4117_v3 = vpop.f32.mrf.mxu2  ;;  %v4253_v62 = vmul.f32 0.01, %v4681_v34  ;;  %vm4245_vm14 = vcmp.lt.f32.partialorder %v4681_v34, 0.0  ;;  %v4300_v48 = vmul.f32 %v7501_v20, %v4292_v33  ;;  %v4197_v12 = vmul.f32 %v4189_v10, %v5389_v28 }
 0x89d   :  { %v4330_v37 = vsel %vm4314_vm12, %v4322_v54, %v4306_v25  ;;  %v4203_v2 = vadd.f32 %v7510_v56, %v4117_v3  ;;  %v4175_v56 = vmul.f32 %v7609_v52, %v5394_v42  ;;  %v4176_v52 = vmul.f32 %v7618_v13, %v5436_v16 }
 0x89e   :  { %v4346_v27 = vmul.f32 0.01, %v4330_v37  ;;  %vm4338_vm15 = vcmp.gt.f32.partialorder %v4330_v37, 1.0  ;;  %v4261_v15 = vsel %vm4245_vm14, %v4253_v62, %v4681_v34  ;;  %v4212_v55 = vmul.f32 %v7665_v45, %v4196_v24 }
 0x89f   :  { %v4219_v5 = vadd.f32 %v4211_v14, %v4203_v2  ;;  %v4277_v19 = vmul.f32 0.01, %v4261_v15  ;;  %vm4269_vm6 = vcmp.gt.f32.partialorder %v4261_v15, 1.0  ;;  %v4294_v17 = vsel %vm4270_vm3, %v4286_v53, %v4262_v7 }
 0x8a0   :  { %v7647_v49 = vpop.permute.xlu2 %4152  ;;  %v4354_v23 = vadd.f32 0.99, %v4346_v27 }
 0x8a1   :  { %v4233_v30 = vadd.f32 %v4177_v47, %v7647_v49  ;;  %v4307_v40 = vadd.f32 %v4299_v60, %v4219_v5  ;;  %v4285_v21 = vadd.f32 0.99, %v4277_v19  ;;  %v4185_v50 = vrot.slane %v7647_v49, 1 }
 0x8a2   :  { %v4362_v43 = vsel %vm4338_vm15, %v4354_v23, %v4330_v37  ;;  %v4213_v49 = vmul.f32 %v7665_v45, %v4197_v12 }
 0x8a3   :  { %v4685_v38 = vadd.f32 -1.0, %v4233_v30  ;;  %v4686_v32 = vadd.f32 -0.5, %v4362_v43  ;;  %vm4315_vm2 = vcmp.lt.f32.partialorder %v4307_v40, 0.0  ;;  %v4323_v11 = vmul.f32 0.01, %v4307_v40 }
 0x8a4   :  { %v4120_v63 = vpop.f32.mrf.mxu2  ;;  %v4293_v28 = vsel %vm4269_vm6, %v4285_v21, %v4261_v15  ;;  %v4193_v23 = vsel %vm339_vm0, %v4185_v50, %v4178_v31  ;;  %v4302_v31 = vmul.f32 %v7501_v20, %v4294_v17 }
 0x8a5   :  { %v4694_v61 = vmul.f32 -5.0, %v4686_v32  ;;  %v4331_v36 = vsel %vm4315_vm2, %v4323_v11, %v4307_v40  ;;  %v4204_v58 = vadd.f32 %v7523_v59, %v4120_v63  ;;  %v4257_v9 = vmul.f32 0.01, %v4685_v38 }
 0x8a6   :  { %v4347_v4 = vmul.f32 0.01, %v4331_v36  ;;  %vm4249_vm4 = vcmp.lt.f32.partialorder %v4685_v38, 0.0  ;;  %vm4339_vm5 = vcmp.gt.f32.partialorder %v4331_v36, 1.0  ;;  %v4301_v43 = vmul.f32 %v7501_v20, %v4293_v28 }
 0x8a7   :  { %v4394_v25 = vmul.f32 1.442695, %v4694_v61  ;;  %v4220_v34 = vadd.f32 %v4212_v55, %v4204_v58  ;;  %v7675_v47 = vsel %vm4249_vm4, %v4257_v9, %v4685_v38  ;;  %v7694_v10 = vmul.f32 %v4193_v23, %v5411_v51 }
 0x8a8   :  { %v4355_v44 = vadd.f32 0.99, %v4347_v4 }
 0x8a9   :  { %4760 = vpow2.f32 %v4394_v25  ;;  %v4308_v0 = vadd.f32 %v4300_v48, %v4220_v34 }
 0x8aa   :  { %v7668_v35 = vpop.permute.xlu0 %4148  ;;  %v4363_v3 = vsel %vm4339_vm5, %v4355_v44, %v4331_v36 }
 0x8ab   :  { %v4231_v13 = vadd.f32 %v4175_v56, %v7668_v35  ;;  %v4183_v59 = vrot.slane %v7668_v35, 1  ;;  %v4687_v37 = vadd.f32 -0.5, %v4363_v3  ;;  %vm4316_vm7 = vcmp.lt.f32.partialorder %v4308_v0, 0.0 }
 0x8ac   :  { %v4324_v62 = vmul.f32 0.01, %v4308_v0  ;;  %v4123_v27 = vpop.f32.mrf.mxu2  ;;  %v4281_v56 = vmul.f32 0.01, %v7675_v47 }
 0x8ad   :  { %v4683_v54 = vadd.f32 -1.0, %v4231_v13  ;;  %v4188_v2 = vsel %vm339_vm0, %v4182_v8, %v4183_v59  ;;  %v4695_v30 = vmul.f32 -5.0, %v4687_v37  ;;  %v4205_v5 = vadd.f32 %v7538_v18, %v4123_v27 }
 0x8ae   :  { %v4332_v22 = vsel %vm4316_vm7, %v4324_v62, %v4308_v0  ;;  %v4198_v7 = vmul.f32 %v4188_v2, %v7800_v39  ;;  %v7696_v19 = vadd.f32 0.99, %v4281_v56 }
 0x8af   :  { %vm4247_vm8 = vcmp.lt.f32.partialorder %v4683_v54, 0.0  ;;  %v4255_v14 = vmul.f32 0.01, %v4683_v54  ;;  %v4348_v8 = vmul.f32 0.01, %v4332_v22  ;;  %v4761_v24 = vpop.eup %4760  ;;  %v4221_v29 = vadd.f32 %v4213_v49, %v4205_v5 }
 0x8b0   :  { %v4151_v60 = vpop.permute.xlu1 %4150  ;;  %v4396_v15 = vmul.f32 1.442695, %v4695_v30  ;;  %v7689_v18 = vadd.f32 1.0, %v4761_v24  ;;  %vm4340_vm9 = vcmp.gt.f32.partialorder %v4332_v22, 1.0  ;;  %v4214_v61 = vmul.f32 %v7665_v45, %v4198_v7 }
 0x8b1   :  { %v4263_v40 = vsel %vm4247_vm8, %v4255_v14, %v4683_v54  ;;  %v4356_v38 = vadd.f32 0.99, %v4348_v8  ;;  %v4184_v32 = vrot.slane %v4151_v60, 1  ;;  %v4232_v11 = vadd.f32 %v4176_v52, %v4151_v60 }
 0x8b2   :  { %4762 = vpow2.f32 %v4396_v15  ;;  %v4279_v6 = vmul.f32 0.01, %v4263_v40  ;;  %v4309_v33 = vadd.f32 %v4301_v43, %v4221_v29  ;;  %vm4271_vm11 = vcmp.gt.f32.partialorder %v4263_v40, 1.0 }
 0x8b3   :  { %4764 = vrcp.f32 %v7689_v18  ;;  %v4364_v39 = vsel %vm4340_vm9, %v4356_v38, %v4332_v22  ;;  %v4187_v52 = vsel %vm339_vm0, %v4183_v59, %v4184_v32  ;;  %v4684_v58 = vadd.f32 -1.0, %v4232_v11 }
 0x8b4   :  { %vm4317_vm10 = vcmp.lt.f32.partialorder %v4309_v33, 0.0  ;;  %v4325_v63 = vmul.f32 0.01, %v4309_v33  ;;  %v4688_v36 = vadd.f32 -0.5, %v4364_v39  ;;  %v4126_v55 = vpop.f32.mrf.mxu2  ;;  %v4287_v35 = vadd.f32 0.99, %v4279_v6 }
 0x8b5   :  { %v4186_v51 = vsel %vm339_vm0, %v4184_v32, %v4185_v50  ;;  %v4206_v4 = vadd.f32 %v7556_v46, %v4126_v55  ;;  %v4427_v9 = vand.u32 2147483647, %v7689_v18  ;;  %vm4248_vm12 = vcmp.lt.f32.partialorder %v4684_v58, 0.0 }
 0x8b6   :  { %v4333_v53 = vsel %vm4317_vm10, %v4325_v63, %v4309_v33  ;;  %v4696_v48 = vmul.f32 -5.0, %v4688_v36  ;;  %vm4423_vm13 = vweird.f32 %v7689_v18  ;;  %v4199_v13 = vmul.f32 %v4187_v52, %v5394_v42 }
 0x8b7   :  { %v4349_v25 = vmul.f32 0.01, %v4333_v53  ;;  %v4256_v21 = vmul.f32 0.01, %v4684_v58  ;;  %v4222_v44 = vadd.f32 %v4214_v61, %v4206_v4  ;;  %v4429_v12 = vand.u32 2147483648, %v7689_v18 }
 0x8b8   :  { %v4763_v34 = vpop.eup %4762  ;;  %v4398_v26 = vmul.f32 1.442695, %v4696_v48  ;;  %v4295_v37 = vsel %vm4271_vm11, %v4287_v35, %v4263_v40  ;;  %vm7712_vm0 = vcmp.eq.f32.partialorder %v4427_v9, 8.507059e+37  ;;  %vm4341_vm14 = vcmp.gt.f32.partialorder %v4333_v53, 1.0 }
 0x8b9   :  { %v4765_v59 = vpop.eup %4764  ;;  %v7708_v0 = vadd.f32 1.0, %v4763_v34  ;;  %v4357_v54 = vadd.f32 0.99, %v4349_v25  ;;  %v4264_v3 = vsel %vm4248_vm12, %v4256_v21, %v4684_v58  ;;  %v4310_v50 = vadd.f32 %v4302_v31, %v4222_v44 }
 0x8ba   :  { %v4419_v46 = vmul.f32 %v4765_v59, %v7689_v18  ;;  %v4200_v42 = vmul.f32 %v4186_v51, %v5436_v16  ;;  %v4215_v27 = vmul.f32 %v7665_v45, %v4199_v13  ;;  %vm4424_vm15 = vweird.f32 %v4765_v59 }
 0x8bb   :  { %4766 = vrcp.f32 %v7708_v0  ;;  %v4365_v14 = vsel %vm4341_vm14, %v4357_v54, %v4333_v53  ;;  %v4280_v17 = vmul.f32 0.01, %v4264_v3  ;;  %v4303_v22 = vmul.f32 %v7501_v20, %v4295_v37  ;;  %vm4425_vm2 = vmor %vm4423_vm13, %vm4424_vm15 }
 0x8bc   :  { %v4420_v2 = vsub.f32 1.0, %v4419_v46  ;;  %4768 = vpow2.f32 %v4398_v26  ;;  %v4689_v28 = vadd.f32 -0.5, %v4365_v14  ;;  %v4129_v30 = vpop.f32.mrf.mxu2  ;;  %vm4318_vm1 = vcmp.lt.f32.partialorder %v4310_v50, 0.0 }
 0x8bd   :  { %v4326_v49 = vmul.f32 0.01, %v4310_v50  ;;  %v4207_v60 = vadd.f32 %v7570_v57, %v4129_v30  ;;  %v4442_v56 = vand.u32 2147483647, %v7708_v0  ;;  %v4216_v40 = vmul.f32 %v7665_v45, %v4200_v42 }
 0x8be   :  { %v4421_v5 = vmul.f32 %v4765_v59, %v4420_v2  ;;  %v4697_v16 = vmul.f32 -5.0, %v4689_v28  ;;  %v4288_v15 = vadd.f32 0.99, %v4280_v17  ;;  %v4430_v38 = vor.u32 1.1754944e-38, %v4429_v12 }
 0x8bf   :  { %v4334_v7 = vsel %vm4318_vm1, %v4326_v49, %v4310_v50  ;;  %v4223_v29 = vadd.f32 %v4215_v27, %v4207_v60  ;;  %vm4272_vm3 = vcmp.gt.f32.partialorder %v4264_v3, 1.0  ;;  %v4444_v58 = vand.u32 2147483648, %v7708_v0 }
 0x8c0   :  { %v4422_v24 = vadd.f32 %v4765_v59, %v4421_v5  ;;  %v4400_v32 = vmul.f32 1.442695, %v4697_v16  ;;  %v4350_v57 = vmul.f32 0.01, %v4334_v7  ;;  %v4296_v52 = vsel %vm4272_vm3, %v4288_v15, %v4264_v3 }
 0x8c1   :  { %v4132_v23 = vpop.f32.mrf.mxu3  ;;  %v4767_v43 = vpop.eup %4766  ;;  %vm4342_vm6 = vcmp.gt.f32.partialorder %v4334_v7, 1.0  ;;  %v4304_v51 = vmul.f32 %v7501_v20, %v4296_v52  ;;  %vm4438_vm7 = vweird.f32 %v7708_v0  ;;  %vm4273_vm8 = vcmp.gt.f32.partialorder %v7675_v47, 1.0 }
 0x8c2   :  { %v4208_v8 = vadd.f32 %v7585_v1, %v4132_v23  ;;  %v4769_v11 = vpop.eup %4768  ;;  %v4426_v6 = vsel %vm4425_vm2, %v4765_v59, %v4422_v24  ;;  %v4434_v33 = vmul.f32 %v4767_v43, %v7708_v0  ;;  %v4311_v1 = vadd.f32 %v4303_v22, %v4223_v29 }
 0x8c3   :  { %v4431_v39 = vsel %vm7712_vm0, %v4430_v38, %v4426_v6  ;;  %v7730_v63 = vadd.f32 1.0, %v4769_v11  ;;  %4770 = vpow2.f32 %v4400_v32  ;;  %v4358_v61 = vadd.f32 0.99, %v4350_v57 }
 0x8c4   :  { %v4224_v31 = vadd.f32 %v4216_v40, %v4208_v8  ;;  %4538 = vst [vmem:[#allocation8] sm:$0xff] %v4431_v39  ;;  %v4435_v18 = vsub.f32 1.0, %v4434_v33  ;;  %vm4319_vm4 = vcmp.lt.f32.partialorder %v4311_v1, 0.0  ;;  %v4327_v36 = vmul.f32 0.01, %v4311_v1 }
 0x8c5   :  { %vm4439_vm5 = vweird.f32 %v4767_v43  ;;  %4772 = vrcp.f32 %v7730_v63  ;;  %v4366_v35 = vsel %vm4342_vm6, %v4358_v61, %v4334_v7  ;;  %v4217_v48 = vmul.f32 %v7665_v45, %v7694_v10 }
 0x8c6   :  { %v4436_v55 = vmul.f32 %v4767_v43, %v4435_v18  ;;  %v4335_v53 = vsel %vm4319_vm4, %v4327_v36, %v4311_v1  ;;  %v4690_v9 = vadd.f32 -0.5, %v4366_v35  ;;  %v4312_v13 = vadd.f32 %v4304_v51, %v4224_v31  ;;  %vm4440_vm9 = vmor %vm4438_vm7, %vm4439_vm5 }
 0x8c7   :  { %v4351_v34 = vmul.f32 0.01, %v4335_v53  ;;  %vm4443_vm10 = vcmp.eq.f32.partialorder %v4442_v56, 8.507059e+37  ;;  %v4445_v59 = vor.u32 1.1754944e-38, %v4444_v58  ;;  %v4297_v0 = vsel %vm4273_vm8, %v7696_v19, %v7675_v47 }
 0x8c8   :  { %v4437_v25 = vadd.f32 %v4767_v43, %v4436_v55  ;;  %v4698_v12 = vmul.f32 -5.0, %v4690_v9  ;;  %vm4320_vm11 = vcmp.lt.f32.partialorder %v4312_v13, 0.0  ;;  %v4328_v50 = vmul.f32 0.01, %v4312_v13 }
 0x8c9   :  { %v4135_v4 = vpop.f32.mrf.mxu3  ;;  %v4771_v44 = vpop.eup %4770  ;;  %v4359_v46 = vadd.f32 0.99, %v4351_v34  ;;  %vm4343_vm12 = vcmp.gt.f32.partialorder %v4335_v53, 1.0  ;;  %v4305_v62 = vmul.f32 %v7501_v20, %v4297_v0  ;;  %v4457_v27 = vand.u32 2147483647, %v7730_v63 }
 0x8ca   :  { %v4209_v21 = vadd.f32 %v7599_v41, %v4135_v4  ;;  %v4441_v26 = vsel %vm4440_vm9, %v4767_v43, %v4437_v25  ;;  %v7743_v54 = vadd.f32 1.0, %v4771_v44  ;;  %v4402_v3 = vmul.f32 1.442695, %v4698_v12 }
 0x8cb   :  { %v4773_v45 = vpop.eup %4772  ;;  %v4446_v10 = vsel %vm4443_vm10, %v4445_v59, %v4441_v26  ;;  %v4367_v47 = vsel %vm4343_vm12, %v4359_v46, %v4335_v53  ;;  %v4336_v2 = vsel %vm4320_vm11, %v4328_v50, %v4312_v13  ;;  %v4459_v28 = vand.u32 2147483648, %v7730_v63 }
 0x8cc   :  { %v4225_v37 = vadd.f32 %v4217_v48, %v4209_v21  ;;  %4539 = vst [vmem:[#allocation8 + $0x8] sm:$0xff] %v4446_v10  ;;  %v4449_v41 = vmul.f32 %v4773_v45, %v7730_v63  ;;  %4774 = vrcp.f32 %v7743_v54  ;;  %v4691_v42 = vadd.f32 -0.5, %v4367_v47 }
 0x8cd   :  { %4776 = vpow2.f32 %v4402_v3  ;;  %vm4454_vm13 = vweird.f32 %v4773_v45  ;;  %v4352_v17 = vmul.f32 0.01, %v4336_v2  ;;  %vm4453_vm14 = vweird.f32 %v7730_v63 }
 0x8ce   :  { %v4450_v19 = vsub.f32 1.0, %v4449_v41  ;;  %v4313_v14 = vadd.f32 %v4305_v62, %v4225_v37  ;;  %v4699_v22 = vmul.f32 -5.0, %v4691_v42  ;;  %vm4344_vm15 = vcmp.gt.f32.partialorder %v4336_v2, 1.0  ;;  %vm4455_vm1 = vmor %vm4453_vm14, %vm4454_vm13 }
 0x8cf   :  { %v4360_v49 = vadd.f32 0.99, %v4352_v17  ;;  %vm4458_vm2 = vcmp.eq.f32.partialorder %v4457_v27, 8.507059e+37  ;;  %v4460_v8 = vor.u32 1.1754944e-38, %v4459_v28  ;;  %v4472_v57 = vand.u32 2147483647, %v7743_v54 }
 0x8d0   :  { %v4451_v30 = vmul.f32 %v4773_v45, %v4450_v19  ;;  %vm4321_vm0 = vcmp.lt.f32.partialorder %v4313_v14, 0.0  ;;  %v4329_v5 = vmul.f32 0.01, %v4313_v14  ;;  %v4404_v23 = vmul.f32 1.442695, %v4699_v22 }
 0x8d1   :  { %v4368_v24 = vsel %vm4344_vm15, %v4360_v49, %v4336_v2  ;;  %v4474_v11 = vand.u32 2147483648, %v7743_v54  ;;  %vm4468_vm5 = vweird.f32 %v7743_v54  ;;  %vm4473_vm7 = vcmp.eq.f32.partialorder %v4472_v57, 8.507059e+37 }
 0x8d2   :  { %v4775_v20 = vpop.eup %4774  ;;  %v4452_v60 = vadd.f32 %v4773_v45, %v4451_v30  ;;  %v4337_v56 = vsel %vm4321_vm0, %v4329_v5, %v4313_v14  ;;  %4778 = vpow2.f32 %v4404_v23  ;;  %v4692_v29 = vadd.f32 -0.5, %v4368_v24 }
 0x8d3   :  { %v4777_v16 = vpop.eup %4776  ;;  %v4464_v40 = vmul.f32 %v4775_v20, %v7743_v54  ;;  %v4353_v32 = vmul.f32 0.01, %v4337_v56  ;;  %vm4469_vm3 = vweird.f32 %v4775_v20  ;;  %vm4345_vm4 = vcmp.gt.f32.partialorder %v4337_v56, 1.0 }
 0x8d4   :  { %v4456_v15 = vsel %vm4455_vm1, %v4773_v45, %v4452_v60  ;;  %v4414_v7 = vadd.f32 1.0, %v4777_v16  ;;  %v4700_v33 = vmul.f32 -5.0, %v4692_v29  ;;  %vm4470_vm6 = vmor %vm4468_vm5, %vm4469_vm3  ;;  %v4475_v18 = vor.u32 1.1754944e-38, %v4474_v11 }
 0x8d5   :  { %v4461_v43 = vsel %vm4458_vm2, %v4460_v8, %v4456_v15  ;;  %v4465_v38 = vsub.f32 1.0, %v4464_v40  ;;  %v4361_v1 = vadd.f32 0.99, %v4353_v32 }
 0x8d6   :  { %4540 = vst [vmem:[#allocation8 + $0x10] sm:$0xff] %v4461_v43  ;;  %4780 = vrcp.f32 %v4414_v7  ;;  %v4406_v39 = vmul.f32 1.442695, %v4700_v33  ;;  %v4489_v48 = vand.u32 2147483648, %v4414_v7  ;;  %v4487_v13 = vand.u32 2147483647, %v4414_v7 }
 0x8d7   :  { %v4466_v6 = vmul.f32 %v4775_v20, %v4465_v38  ;;  %v4369_v63 = vsel %vm4345_vm4, %v4361_v1, %v4337_v56  ;;  %vm4483_vm9 = vweird.f32 %v4414_v7 }
 0x8d8   :  { %v4779_v61 = vpop.eup %4778  ;;  %v4693_v36 = vadd.f32 -0.5, %v4369_v63  ;;  %4782 = vpow2.f32 %v4406_v39  ;;  %v4490_v12 = vor.u32 1.1754944e-38, %v4489_v48  ;;  %vm4488_vm11 = vcmp.eq.f32.partialorder %v4487_v13, 8.507059e+37 }
 0x8d9   :  { %v4467_v31 = vadd.f32 %v4775_v20, %v4466_v6  ;;  %v4415_v58 = vadd.f32 1.0, %v4779_v61 }
 0x8da   :  { %v4701_v53 = vmul.f32 -5.0, %v4693_v36 }
 0x8db   :  { %v4471_v52 = vsel %vm4470_vm6, %v4775_v20, %v4467_v31  ;;  %4784 = vrcp.f32 %v4415_v58  ;;  %v4504_v10 = vand.u32 2147483648, %v4415_v58  ;;  %v4502_v37 = vand.u32 2147483647, %v4415_v58 }
 0x8dc   :  { %v4781_v55 = vpop.eup %4780  ;;  %v4476_v35 = vsel %vm4473_vm7, %v4475_v18, %v4471_v52  ;;  %v4408_v4 = vmul.f32 1.442695, %v4701_v53  ;;  %vm4498_vm13 = vweird.f32 %v4415_v58 }
 0x8dd   :  { %4541 = vst [vmem:[#allocation8 + $0x18] sm:$0xff] %v4476_v35  ;;  %v4479_v51 = vmul.f32 %v4781_v55, %v4414_v7  ;;  %vm4484_vm8 = vweird.f32 %v4781_v55  ;;  %v4505_v47 = vor.u32 1.1754944e-38, %v4504_v10  ;;  %vm4503_vm14 = vcmp.eq.f32.partialorder %v4502_v37, 8.507059e+37 }
 0x8de   :  { %4786 = vpow2.f32 %v4408_v4  ;;  %v4783_v25 = vpop.eup %4782  ;;  %vm4485_vm10 = vmor %vm4483_vm9, %vm4484_vm8 }
 0x8df   :  { %v4480_v9 = vsub.f32 1.0, %v4479_v51  ;;  %v4416_v21 = vadd.f32 1.0, %v4783_v25 }
 0x8e1   :  { %v4481_v34 = vmul.f32 %v4781_v55, %v4480_v9  ;;  %v4785_v44 = vpop.eup %4784  ;;  %4788 = vrcp.f32 %v4416_v21  ;;  %v4519_v27 = vand.u32 2147483648, %v4416_v21  ;;  %v4517_v30 = vand.u32 2147483647, %v4416_v21 }
 0x8e2   :  { %v4494_v0 = vmul.f32 %v4785_v44, %v4415_v58  ;;  %vm4499_vm12 = vweird.f32 %v4785_v44  ;;  %vm4513_vm1 = vweird.f32 %v4416_v21 }
 0x8e3   :  { %v4482_v59 = vadd.f32 %v4781_v55, %v4481_v34  ;;  %vm4500_vm0 = vmor %vm4498_vm13, %vm4499_vm12  ;;  %v4520_v49 = vor.u32 1.1754944e-38, %v4519_v27  ;;  %vm4518_vm3 = vcmp.eq.f32.partialorder %v4517_v30, 8.507059e+37 }
 0x8e4   :  { %v4787_v54 = vpop.eup %4786  ;;  %v4495_v45 = vsub.f32 1.0, %v4494_v0 }
 0x8e5   :  { %v4486_v26 = vsel %vm4485_vm10, %v4781_v55, %v4482_v59  ;;  %v4417_v3 = vadd.f32 1.0, %v4787_v54 }
 0x8e6   :  { %v4491_v46 = vsel %vm4488_vm11, %v4490_v12, %v4486_v26  ;;  %v4496_v50 = vmul.f32 %v4785_v44, %v4495_v45 }
 0x8e7   :  { %4542 = vst [vmem:[#allocation8 + $0x20] sm:$0xff] %v4491_v46  ;;  %4790 = vrcp.f32 %v4417_v3  ;;  %v4789_v41 = vpop.eup %4788  ;;  %v4534_v23 = vand.u32 2147483648, %v4417_v3  ;;  %v4532_v8 = vand.u32 2147483647, %v4417_v3  ;;  %vm4528_vm5 = vweird.f32 %v4417_v3 }
 0x8e8   :  { %v4497_v62 = vadd.f32 %v4785_v44, %v4496_v50  ;;  %v4509_v19 = vmul.f32 %v4789_v41, %v4416_v21  ;;  %vm4514_vm15 = vweird.f32 %v4789_v41 }
 0x8e9   :  { %vm4515_vm2 = vmor %vm4513_vm1, %vm4514_vm15  ;;  %v4535_v24 = vor.u32 1.1754944e-38, %v4534_v23  ;;  %vm4533_vm7 = vcmp.eq.f32.partialorder %v4532_v8, 8.507059e+37 }
 0x8ea   :  { %v4501_v42 = vsel %vm4500_vm0, %v4785_v44, %v4497_v62  ;;  %v4510_v14 = vsub.f32 1.0, %v4509_v19 }
 0x8eb   :  { %v4506_v2 = vsel %vm4503_vm14, %v4505_v47, %v4501_v42 }
 0x8ec   :  { %4543 = vst [vmem:[#allocation8 + $0x28] sm:$0xff] %v4506_v2  ;;  %v4511_v17 = vmul.f32 %v4789_v41, %v4510_v14 }
 0x8ed   :  { %v4791_v28 = vpop.eup %4790 }
 0x8ee   :  { %v4524_v22 = vmul.f32 %v4791_v28, %v4417_v3  ;;  %v4512_v5 = vadd.f32 %v4789_v41, %v4511_v17  ;;  %vm4529_vm4 = vweird.f32 %v4791_v28 }
 0x8ef   :  { %vm4530_vm6 = vmor %vm4528_vm5, %vm4529_vm4 }
 0x8f0   :  { %v4525_v20 = vsub.f32 1.0, %v4524_v22  ;;  %v4516_v60 = vsel %vm4515_vm2, %v4789_v41, %v4512_v5 }
 0x8f1   :  { %v4521_v56 = vsel %vm4518_vm3, %v4520_v49, %v4516_v60 }
 0x8f2   :  { %v4526_v16 = vmul.f32 %v4791_v28, %v4525_v20  ;;  %4544 = vst [vmem:[#allocation8 + $0x30] sm:$0xff] %v4521_v56 }
 0x8f4   :  { %v4527_v40 = vadd.f32 %v4791_v28, %v4526_v16 }
 0x8f6   :  { %v4531_v15 = vsel %vm4530_vm6, %v4791_v28, %v4527_v40 }
 0x8f7   :  { %v4536_v7 = vsel %vm4533_vm7, %v4535_v24, %v4531_v15 }
 0x8f8   :  { %4545 = vst [vmem:[#allocation8 + $0x38] sm:$0xff] %v4536_v7 }
 0x8f9   :  { %4558 = dma.vmem_to_hbm [thread:$0]  %s4551_s28, 1024, %s4553_s4, [#allocation4], %s5009_s20, %s5009_s20, %s5010_s21  }
 0x8fa   :  { %5006 = dma.done.wait [#allocation4], 1024  }
 0x8fb   :  { %5007 = vsyncadd [#allocation4], 4294966272 }
 0x8fc   :  { %4563 = vsyncpa [#allocation3], 1 }
 0x8fd   :  { %4564 = vsyncpa [#allocation6], 1 }
 0x8fe   :  { %4565 = vsyncpa [#allocation4], 1 }

</bundles_post_ra>
